<compile_context>
chip_gen: v7x
topology: tpu7x:2x2x1
jax: 0.10.0
libtpu: 0.0.40
codegen_flags: <defaults>
</compile_context>

<pallas_src>
import functools

import jax
import jax.numpy as jnp
from jax.experimental import pallas as pl
from jax.experimental.pallas import tpu as pltpu

_KEEP_VAR = 2e-07            # keep_variance_fn(x) = x + 2e-07 (adf.Dropout, eval mode)
_VAR_EPS = 2e-07             # safety eps on conv output variance before rsqrt
_NEG_SLOPE = 0.01            # adf.LeakyReLU default negative_slope
_BN_EPS = 1e-5               # adf.BatchNorm2d default eps
_SQRT1_2 = 0.7071067811865476
_INV_SQRT_2PI = 0.3989422804014327
# Abramowitz & Stegun 7.1.26 erf coefficients (|err| < 1.5e-7 with an exact divide)
_ERF_A1, _ERF_A2, _ERF_A3 = 0.254829592, -0.284496736, 1.421413741
_ERF_A4, _ERF_A5, _ERF_P = -1.453152027, 1.061405429, 0.3275911
_PMAX = 2                    # largest conv padding in the block (conv2: pad=2)


def _upblock_kernel(x_ref, w1_ref, w2_ref, w3_ref, w4_ref, prm_ref, msk_ref,
                    out_ref, e1_ref, e2_ref, e3_ref, *,
                    cout, rows, store_off, canvas_len, taps1, taps2, taps3,
                    final_var_add):
    """Fused conv1..conv4 + adf.LeakyReLU + adf.BatchNorm(eval) for one image.

    Canvas layout (inputs and VMEM scratch): (channels, canvas_len) f32, channels =
    [means | vars]; spatial (r, c) of valid data sits at lane store_off + r*Wc + c and all
    other lanes hold zeros, which realises the conv zero-padding implicitly.
    """
    f32 = jnp.float32
    mask = msk_ref[...]                       # (1, rows): 1.0 where column < W else 0.0

    def conv(pairs, w_ref):
        # pairs: (source ref, absolute flat lane offset, weight tap index) - all static.
        acc = None
        for src, off, t in pairs:
            part = jnp.dot(w_ref[t], src[:, pl.ds(off, rows)],
                           preferred_element_type=f32)
            acc = part if acc is None else acc + part
        return acc                            # (2*cout, rows) f32: [means | vars]

    def adf_epilogue(acc, layer, extra_var):
        # packed per-layer constants: [bias, var_bias, bn_scale, bn_shift, bn_gamma^2]
        col = lambda j: prm_ref[:, 5 * layer + j:5 * layer + j + 1]   # (cout, 1)
        m = acc[:cout, :] + col(0)
        v = acc[cout:, :] + col(1)            # var_bias >= _VAR_EPS keeps rsqrt finite
        # ---- adf.LeakyReLU (Gaussian moment matching); one shared exp for pdf & erf ----
        inv_std = jax.lax.rsqrt(v)
        std = v * inv_std                     # = sqrt(v)
        div = m * inv_std
        e = jnp.exp(-0.5 * div * div)         # = exp(-(div/sqrt(2))^2)
        pdf = _INV_SQRT_2PI * e
        t = 1.0 / (1.0 + (_ERF_P * _SQRT1_2) * jnp.abs(div))   # exact divide (review)
        poly = ((((_ERF_A5 * t + _ERF_A4) * t + _ERF_A3) * t + _ERF_A2) * t + _ERF_A1) * t
        erf_abs = 1.0 - poly * e
        cdf = 0.5 * (1.0 + jnp.where(div >= 0.0, erf_abs, -erf_abs))
        ncdf = 1.0 - cdf
        std_pdf = std * pdf
        sq_mv = m * m + v
        m_std_pdf = m * std_pdf
        mean_r = m * cdf + std_pdf
        var_r = sq_mv * cdf + m_std_pdf - mean_r * mean_r
        mean_n = std_pdf - m * ncdf
        var_n = sq_mv * ncdf - m_std_pdf - mean_n * mean_n
        covxy = -mean_r * mean_n
        om = mean_r - _NEG_SLOPE * mean_n
        ov = jnp.maximum(var_r + (_NEG_SLOPE * _NEG_SLOPE) * var_n
                         - (2.0 * _NEG_SLOPE) * covxy, 0.0)     # clamp: next rsqrt safety
        # ---- adf.BatchNorm2d (eval, running stats) + trailing dropout keep-variance ----
        om = om * col(2) + col(3)
        ov = ov * col(4) + extra_var
        return om, ov

    def store_canvas(dst, om, ov):
        # zero margins (implicit conv zero-padding), then one aligned lane-dense store of
        # the column-masked [means | vars] block at lane offset `store_off`.
        dst[:, pl.ds(0, store_off)] = jnp.zeros((2 * cout, store_off), f32)
        tail = canvas_len - store_off - rows
        dst[:, pl.ds(store_off + rows, tail)] = jnp.zeros((2 * cout, tail), f32)
        dst[:, pl.ds(store_off, rows)] = jnp.concatenate([om * mask, ov * mask], axis=0)

    # conv1 (3x3, pad 1)  <- HBM-staged input canvas
    om, ov = adf_epilogue(conv([(x_ref, o, t) for t, o in enumerate(taps1)], w1_ref),
                          0, 0.0)
    store_canvas(e1_ref, om, ov)
    # conv2 (3x3, dil 2, pad 2)  <- e1
    om, ov = adf_epilogue(conv([(e1_ref, o, t) for t, o in enumerate(taps2)], w2_ref),
                          1, 0.0)
    store_canvas(e2_ref, om, ov)
    # conv3 (2x2, dil 2, pad 1)  <- e2
    om, ov = adf_epilogue(conv([(e2_ref, o, t) for t, o in enumerate(taps3)], w3_ref),
                          2, 0.0)
    store_canvas(e3_ref, om, ov)
    # conv4 (1x1)  <- cat(e1, e2, e3); dropout3 keep-variance is folded into its var_bias,
    # dropout4 keep-variance is `final_var_add`.
    om, ov = adf_epilogue(conv([(e1_ref, store_off, 0), (e2_ref, store_off, 1),
                                (e3_ref, store_off, 2)], w4_ref),
                          3, final_var_add)
    out_ref[...] = jnp.concatenate([om, ov], axis=0)


# ------------------------------ host-side glue ------------------------------

def _merge_tap_weights(w):
    """(cout, cin, kh, kw) -> (kh*kw, 2*cout, 2*cin): per tap [[W, 0], [0, W**2]]."""
    cout, cin, kh, kw = w.shape
    wt = jnp.transpose(w, (2, 3, 0, 1)).reshape(kh * kw, cout, cin).astype(jnp.float32)
    z = jnp.zeros_like(wt)
    top = jnp.concatenate([wt, z], axis=2)           # mean rows use W
    bot = jnp.concatenate([z, wt * wt], axis=2)      # variance rows use W^2
    return jnp.concatenate([top, bot], axis=1)


def _bn_fold(p):
    scale = p['gamma'] * jax.lax.rsqrt(p['rvar'] + _BN_EPS)
    shift = p['beta'] - p['rmean'] * scale
    return scale, shift, p['gamma'] * p['gamma']     # SalsaNext adf.BatchNorm2d: var *= gamma^2


def pixel_shuffle_nchw(x, r):
    n, c, h, w = x.shape
    co = c // (r * r)
    x = x.reshape(n, co, r, r, h, w).transpose(0, 1, 4, 2, 5, 3)
    return x.reshape(n, co, h * r, w * r)


def up_block_forward(params, x_mean, x_var, skip_mean, skip_var, drop_out=True):
    """ADF UpBlock forward (eval semantics); NCHW in / NCHW (mean, var) out."""
    f32 = jnp.float32
    kv = _KEEP_VAR if drop_out else 0.0

    upA_m = pixel_shuffle_nchw(x_mean.astype(f32), 2)
    upA_v = pixel_shuffle_nchw(x_var.astype(f32), 2) + 2.0 * kv   # dropout1 + dropout2
    sk_m = skip_mean.astype(f32)
    sk_v = skip_var.astype(f32) + kv                              # dropout2
    n, _, H, W = upA_m.shape
    c1_in = upA_m.shape[1] + sk_m.shape[1]
    cout = params['c1']['w'].shape[0]

    # ---- shared canvas geometry ----
    wc = W + 2 * _PMAX                       # padded row width (pad columns kept zero)
    rows = H * wc                            # flattened "wide" output positions per image
    store_off = ((_PMAX * (wc + 1) + 127) // 128) * 128   # lane-aligned top margin
    canvas_len = store_off + rows + 2 * (wc + 1)

    # ---- conv1 input: channel-major [means | vars] canvas with zero margins ----
    mv = jnp.concatenate([upA_m, sk_m, upA_v, sk_v], axis=1)      # (n, 2*c1_in, H, W)
    mv = jnp.pad(mv, ((0, 0), (0, 0), (0, 0), (0, wc - W)))
    mv = mv.reshape(n, 2 * c1_in, rows)
    canvas_in = jnp.pad(mv, ((0, 0), (0, 0), (store_off, canvas_len - store_off - rows)))

    # ---- merged per-tap weights + packed per-layer epilogue constants ----
    w1 = _merge_tap_weights(params['c1']['w'])                    # (9, 2*cout, 2*c1_in)
    w2 = _merge_tap_weights(params['c2']['w'])                    # (9, 2*cout, 2*cout)
    w3 = _merge_tap_weights(params['c3']['w'])                    # (4, 2*cout, 2*cout)
    w4p = params['c4']['w'][:, :, 0, 0].astype(f32)               # (cout, 3*cout)
    w4 = jnp.stack(
        [_merge_tap_weights(w4p[:, s * cout:(s + 1) * cout][:, :, None, None])[0]
         for s in range(3)], axis=0)                              # (3, 2*cout, 2*cout)

    prm_cols = []
    for name in ('c1', 'c2', 'c3', 'c4'):
        p = params[name]
        scale, shift, g2 = _bn_fold(p)
        vb = jnp.full((cout,), _VAR_EPS, f32)
        if name == 'c4':                     # dropout3 keep-variance folded through 1x1
            vb = vb + kv * jnp.sum(w4p * w4p, axis=1)
        prm_cols += [p['b'].astype(f32), vb, scale.astype(f32), shift.astype(f32),
                     g2.astype(f32)]
    prm = jnp.stack(prm_cols, axis=1)        # (cout, 20)

    col_mask = ((jnp.arange(rows, dtype=jnp.int32) % wc) < W).astype(f32).reshape(1, rows)

    def tap_offsets(pad, dil, k):
        q0 = store_off - pad * (wc + 1)
        return tuple(q0 + (di * wc + dj) * dil for di in range(k) for dj in range(k))

    kernel = functools.partial(
        _upblock_kernel, cout=cout, rows=rows, store_off=store_off,
        canvas_len=canvas_len, taps1=tap_offsets(1, 1, 3), taps2=tap_offsets(2, 2, 3),
        taps3=tap_offsets(1, 2, 2), final_var_add=kv)

    full = lambda a: pl.BlockSpec(a.shape, lambda i, nd=a.ndim: (0,) * nd)
    out = pl.pallas_call(
        kernel,
        out_shape=jax.ShapeDtypeStruct((n, 2 * cout, rows), f32),
        grid_spec=pltpu.PrefetchScalarGridSpec(
            num_scalar_prefetch=0,
            grid=(n,),
            in_specs=[pl.BlockSpec((None, 2 * c1_in, canvas_len), lambda i: (i, 0, 0)),
                      full(w1), full(w2), full(w3), full(w4), full(prm), full(col_mask)],
            out_specs=pl.BlockSpec((None, 2 * cout, rows), lambda i: (i, 0, 0)),
            scratch_shapes=[pltpu.VMEM((2 * cout, canvas_len), f32)] * 3),
        compiler_params=pltpu.CompilerParams(dimension_semantics=("parallel",)),
    )(canvas_in, w1, w2, w3, w4, prm, col_mask)

    out = out.reshape(n, 2 * cout, H, wc)[:, :, :, :W]            # strip wide pad columns
    return out[:, :cout], out[:, cout:]


def init_params(key, in_filters, out_filters):
    c1_in = in_filters // 4 + 2 * out_filters
    defs = {
        'c1': (c1_in, out_filters, 3, 3),
        'c2': (out_filters, out_filters, 3, 3),
        'c3': (out_filters, out_filters, 2, 2),
        'c4': (3 * out_filters, out_filters, 1, 1),
    }
    params = {}
    for name, (cin, cout, kh, kw) in defs.items():
        key, kw_, kb, kg, kbe, krm, krv = jax.random.split(key, 7)
        fan_in = cin * kh * kw
        params[name] = dict(
            w=jax.random.normal(kw_, (cout, cin, kh, kw), jnp.float32) / jnp.sqrt(fan_in),
            b=0.05 * jax.random.normal(kb, (cout,), jnp.float32),
            gamma=1.0 + 0.1 * jax.random.normal(kg, (cout,), jnp.float32),
            beta=0.1 * jax.random.normal(kbe, (cout,), jnp.float32),
            rmean=0.1 * jax.random.normal(krm, (cout,), jnp.float32),
            rvar=0.5 + jax.random.uniform(krv, (cout,), jnp.float32),
        )
    return params


if __name__ == "__main__":
    in_filters, out_filters = 16, 8
    N, H0, W0 = 2, 16, 16                    # x spatial; skip / output spatial = 2H0 x 2W0

    key = jax.random.PRNGKey(0)
    k1, k2, k3, k4, kp = jax.random.split(key, 5)
    x_mean = jax.random.normal(k1, (N, in_filters, H0, W0), jnp.float32)
    x_var = 0.1 + jax.random.uniform(k2, (N, in_filters, H0, W0), jnp.float32)
    skip_mean = jax.random.normal(k3, (N, 2 * out_filters, 2 * H0, 2 * W0), jnp.float32)
    skip_var = 0.1 + jax.random.uniform(k4, (N, 2 * out_filters, 2 * H0, 2 * W0),
                                        jnp.float32)
    params = init_params(kp, in_filters, out_filters)

    fwd = jax.jit(lambda xm, xv, sm, sv: up_block_forward(params, xm, xv, sm, sv))
    out_m, out_v = fwd(x_mean, x_var, skip_mean, skip_var)
    jax.block_until_ready((out_m, out_v))

    assert out_m.shape == (N, out_filters, 2 * H0, 2 * W0), out_m.shape
    assert out_v.shape == (N, out_filters, 2 * H0, 2 * W0), out_v.shape
    assert bool(jnp.isfinite(out_m).all()) and bool(jnp.isfinite(out_v).all())
    assert bool((out_v >= 0.0).all())
    print("KERNEL_OK")
</pallas_src>

<mosaic_0001>
module attributes {stable_mosaic.version = 11 : i64} {
  func.func @_upblock_kernel(%arg0: i32, %arg1: memref<1x40x1354xf32, #tpu.memory_space<vmem>>, %arg2: memref<9x16x40xf32, #tpu.memory_space<vmem>>, %arg3: memref<9x16x16xf32, #tpu.memory_space<vmem>>, %arg4: memref<4x16x16xf32, #tpu.memory_space<vmem>>, %arg5: memref<3x16x16xf32, #tpu.memory_space<vmem>>, %arg6: memref<8x20xf32, #tpu.memory_space<vmem>>, %arg7: memref<1x1152xf32, #tpu.memory_space<vmem>>, %arg8: memref<1x16x1152xf32, #tpu.memory_space<vmem>>, %arg9: memref<16x1354xf32, #tpu.memory_space<vmem>>, %arg10: memref<16x1354xf32, #tpu.memory_space<vmem>>, %arg11: memref<16x1354xf32, #tpu.memory_space<vmem>>) attributes {dimension_semantics = [#tpu.dimension_semantics<parallel>], iteration_bounds = array<i64: 2>, scalar_prefetch = 0 : i64, scratch_operands = 3 : i64, tpu.core_type = #tpu.core_type<tc>, window_params = [{transform_indices = @transform_0, window_bounds = array<i64: 1, 40, 1354>}, {pipeline_mode = #tpu.pipeline_mode<synchronous>, transform_indices = @transform_1, window_bounds = array<i64: 9, 16, 40>}, {pipeline_mode = #tpu.pipeline_mode<synchronous>, transform_indices = @transform_2, window_bounds = array<i64: 9, 16, 16>}, {pipeline_mode = #tpu.pipeline_mode<synchronous>, transform_indices = @transform_3, window_bounds = array<i64: 4, 16, 16>}, {pipeline_mode = #tpu.pipeline_mode<synchronous>, transform_indices = @transform_4, window_bounds = array<i64: 3, 16, 16>}, {pipeline_mode = #tpu.pipeline_mode<synchronous>, transform_indices = @transform_5, window_bounds = array<i64: 8, 20>}, {pipeline_mode = #tpu.pipeline_mode<synchronous>, transform_indices = @transform_6, window_bounds = array<i64: 1, 1152>}, {transform_indices = @transform_7, window_bounds = array<i64: 1, 16, 1152>}]} {
    %c0 = arith.constant 0 : index
    %c0_0 = arith.constant 0 : index
    %0 = vector.load %arg7[%c0, %c0_0] : memref<1x1152xf32, #tpu.memory_space<vmem>>, vector<1x1152xf32>
    %c0_1 = arith.constant 0 : index
    %c0_2 = arith.constant 0 : index
    %c0_3 = arith.constant 0 : index
    %1 = vector.load %arg2[%c0_1, %c0_2, %c0_3] : memref<9x16x40xf32, #tpu.memory_space<vmem>>, vector<1x16x40xf32>
    %2 = vector.shape_cast %1 : vector<1x16x40xf32> to vector<16x40xf32>
    %c0_4 = arith.constant 0 : index
    %c0_5 = arith.constant 0 : index
    %c91 = arith.constant 91 : index
    %3 = vector.load %arg1[%c0_4, %c0_5, %c91] : memref<1x40x1354xf32, #tpu.memory_space<vmem>>, vector<1x40x1152xf32>
    %4 = vector.shape_cast %3 : vector<1x40x1152xf32> to vector<40x1152xf32>
    %cst = arith.constant dense<0.000000e+00> : vector<16x1152xf32>
    %5 = tpu.matmul %2, %4, %cst {dimension_numbers = #tpu.dot_dimension_numbers<[1], [0], [0], [1], [0, 0, 1, 1], [], []>} : vector<16x40xf32>, vector<40x1152xf32>, vector<16x1152xf32> -> vector<16x1152xf32>
    %c1 = arith.constant 1 : index
    %c0_6 = arith.constant 0 : index
    %c0_7 = arith.constant 0 : index
    %6 = vector.load %arg2[%c1, %c0_6, %c0_7] : memref<9x16x40xf32, #tpu.memory_space<vmem>>, vector<1x16x40xf32>
    %7 = vector.shape_cast %6 : vector<1x16x40xf32> to vector<16x40xf32>
    %c0_8 = arith.constant 0 : index
    %c0_9 = arith.constant 0 : index
    %c92 = arith.constant 92 : index
    %8 = vector.load %arg1[%c0_8, %c0_9, %c92] : memref<1x40x1354xf32, #tpu.memory_space<vmem>>, vector<1x40x1152xf32>
    %9 = vector.shape_cast %8 : vector<1x40x1152xf32> to vector<40x1152xf32>
    %cst_10 = arith.constant dense<0.000000e+00> : vector<16x1152xf32>
    %10 = tpu.matmul %7, %9, %cst_10 {dimension_numbers = #tpu.dot_dimension_numbers<[1], [0], [0], [1], [0, 0, 1, 1], [], []>} : vector<16x40xf32>, vector<40x1152xf32>, vector<16x1152xf32> -> vector<16x1152xf32>
    %11 = arith.addf %5, %10 : vector<16x1152xf32>
    %c2 = arith.constant 2 : index
    %c0_11 = arith.constant 0 : index
    %c0_12 = arith.constant 0 : index
    %12 = vector.load %arg2[%c2, %c0_11, %c0_12] : memref<9x16x40xf32, #tpu.memory_space<vmem>>, vector<1x16x40xf32>
    %13 = vector.shape_cast %12 : vector<1x16x40xf32> to vector<16x40xf32>
    %c0_13 = arith.constant 0 : index
    %c0_14 = arith.constant 0 : index
    %c93 = arith.constant 93 : index
    %14 = vector.load %arg1[%c0_13, %c0_14, %c93] : memref<1x40x1354xf32, #tpu.memory_space<vmem>>, vector<1x40x1152xf32>
    %15 = vector.shape_cast %14 : vector<1x40x1152xf32> to vector<40x1152xf32>
    %cst_15 = arith.constant dense<0.000000e+00> : vector<16x1152xf32>
    %16 = tpu.matmul %13, %15, %cst_15 {dimension_numbers = #tpu.dot_dimension_numbers<[1], [0], [0], [1], [0, 0, 1, 1], [], []>} : vector<16x40xf32>, vector<40x1152xf32>, vector<16x1152xf32> -> vector<16x1152xf32>
    %17 = arith.addf %11, %16 : vector<16x1152xf32>
    %c3 = arith.constant 3 : index
    %c0_16 = arith.constant 0 : index
    %c0_17 = arith.constant 0 : index
    %18 = vector.load %arg2[%c3, %c0_16, %c0_17] : memref<9x16x40xf32, #tpu.memory_space<vmem>>, vector<1x16x40xf32>
    %19 = vector.shape_cast %18 : vector<1x16x40xf32> to vector<16x40xf32>
    %c0_18 = arith.constant 0 : index
    %c0_19 = arith.constant 0 : index
    %c127 = arith.constant 127 : index
    %20 = vector.load %arg1[%c0_18, %c0_19, %c127] : memref<1x40x1354xf32, #tpu.memory_space<vmem>>, vector<1x40x1152xf32>
    %21 = vector.shape_cast %20 : vector<1x40x1152xf32> to vector<40x1152xf32>
    %cst_20 = arith.constant dense<0.000000e+00> : vector<16x1152xf32>
    %22 = tpu.matmul %19, %21, %cst_20 {dimension_numbers = #tpu.dot_dimension_numbers<[1], [0], [0], [1], [0, 0, 1, 1], [], []>} : vector<16x40xf32>, vector<40x1152xf32>, vector<16x1152xf32> -> vector<16x1152xf32>
    %23 = arith.addf %17, %22 : vector<16x1152xf32>
    %c4 = arith.constant 4 : index
    %c0_21 = arith.constant 0 : index
    %c0_22 = arith.constant 0 : index
    %24 = vector.load %arg2[%c4, %c0_21, %c0_22] : memref<9x16x40xf32, #tpu.memory_space<vmem>>, vector<1x16x40xf32>
    %25 = vector.shape_cast %24 : vector<1x16x40xf32> to vector<16x40xf32>
    %c0_23 = arith.constant 0 : index
    %c0_24 = arith.constant 0 : index
    %c128 = arith.constant 128 : index
    %26 = vector.load %arg1[%c0_23, %c0_24, %c128] : memref<1x40x1354xf32, #tpu.memory_space<vmem>>, vector<1x40x1152xf32>
    %27 = vector.shape_cast %26 : vector<1x40x1152xf32> to vector<40x1152xf32>
    %cst_25 = arith.constant dense<0.000000e+00> : vector<16x1152xf32>
    %28 = tpu.matmul %25, %27, %cst_25 {dimension_numbers = #tpu.dot_dimension_numbers<[1], [0], [0], [1], [0, 0, 1, 1], [], []>} : vector<16x40xf32>, vector<40x1152xf32>, vector<16x1152xf32> -> vector<16x1152xf32>
    %29 = arith.addf %23, %28 : vector<16x1152xf32>
    %c5 = arith.constant 5 : index
    %c0_26 = arith.constant 0 : index
    %c0_27 = arith.constant 0 : index
    %30 = vector.load %arg2[%c5, %c0_26, %c0_27] : memref<9x16x40xf32, #tpu.memory_space<vmem>>, vector<1x16x40xf32>
    %31 = vector.shape_cast %30 : vector<1x16x40xf32> to vector<16x40xf32>
    %c0_28 = arith.constant 0 : index
    %c0_29 = arith.constant 0 : index
    %c129 = arith.constant 129 : index
    %32 = vector.load %arg1[%c0_28, %c0_29, %c129] : memref<1x40x1354xf32, #tpu.memory_space<vmem>>, vector<1x40x1152xf32>
    %33 = vector.shape_cast %32 : vector<1x40x1152xf32> to vector<40x1152xf32>
    %cst_30 = arith.constant dense<0.000000e+00> : vector<16x1152xf32>
    %34 = tpu.matmul %31, %33, %cst_30 {dimension_numbers = #tpu.dot_dimension_numbers<[1], [0], [0], [1], [0, 0, 1, 1], [], []>} : vector<16x40xf32>, vector<40x1152xf32>, vector<16x1152xf32> -> vector<16x1152xf32>
    %35 = arith.addf %29, %34 : vector<16x1152xf32>
    %c6 = arith.constant 6 : index
    %c0_31 = arith.constant 0 : index
    %c0_32 = arith.constant 0 : index
    %36 = vector.load %arg2[%c6, %c0_31, %c0_32] : memref<9x16x40xf32, #tpu.memory_space<vmem>>, vector<1x16x40xf32>
    %37 = vector.shape_cast %36 : vector<1x16x40xf32> to vector<16x40xf32>
    %c0_33 = arith.constant 0 : index
    %c0_34 = arith.constant 0 : index
    %c163 = arith.constant 163 : index
    %38 = vector.load %arg1[%c0_33, %c0_34, %c163] : memref<1x40x1354xf32, #tpu.memory_space<vmem>>, vector<1x40x1152xf32>
    %39 = vector.shape_cast %38 : vector<1x40x1152xf32> to vector<40x1152xf32>
    %cst_35 = arith.constant dense<0.000000e+00> : vector<16x1152xf32>
    %40 = tpu.matmul %37, %39, %cst_35 {dimension_numbers = #tpu.dot_dimension_numbers<[1], [0], [0], [1], [0, 0, 1, 1], [], []>} : vector<16x40xf32>, vector<40x1152xf32>, vector<16x1152xf32> -> vector<16x1152xf32>
    %41 = arith.addf %35, %40 : vector<16x1152xf32>
    %c7 = arith.constant 7 : index
    %c0_36 = arith.constant 0 : index
    %c0_37 = arith.constant 0 : index
    %42 = vector.load %arg2[%c7, %c0_36, %c0_37] : memref<9x16x40xf32, #tpu.memory_space<vmem>>, vector<1x16x40xf32>
    %43 = vector.shape_cast %42 : vector<1x16x40xf32> to vector<16x40xf32>
    %c0_38 = arith.constant 0 : index
    %c0_39 = arith.constant 0 : index
    %c164 = arith.constant 164 : index
    %44 = vector.load %arg1[%c0_38, %c0_39, %c164] : memref<1x40x1354xf32, #tpu.memory_space<vmem>>, vector<1x40x1152xf32>
    %45 = vector.shape_cast %44 : vector<1x40x1152xf32> to vector<40x1152xf32>
    %cst_40 = arith.constant dense<0.000000e+00> : vector<16x1152xf32>
    %46 = tpu.matmul %43, %45, %cst_40 {dimension_numbers = #tpu.dot_dimension_numbers<[1], [0], [0], [1], [0, 0, 1, 1], [], []>} : vector<16x40xf32>, vector<40x1152xf32>, vector<16x1152xf32> -> vector<16x1152xf32>
    %47 = arith.addf %41, %46 : vector<16x1152xf32>
    %c8 = arith.constant 8 : index
    %c0_41 = arith.constant 0 : index
    %c0_42 = arith.constant 0 : index
    %48 = vector.load %arg2[%c8, %c0_41, %c0_42] : memref<9x16x40xf32, #tpu.memory_space<vmem>>, vector<1x16x40xf32>
    %49 = vector.shape_cast %48 : vector<1x16x40xf32> to vector<16x40xf32>
    %c0_43 = arith.constant 0 : index
    %c0_44 = arith.constant 0 : index
    %c165 = arith.constant 165 : index
    %50 = vector.load %arg1[%c0_43, %c0_44, %c165] : memref<1x40x1354xf32, #tpu.memory_space<vmem>>, vector<1x40x1152xf32>
    %51 = vector.shape_cast %50 : vector<1x40x1152xf32> to vector<40x1152xf32>
    %cst_45 = arith.constant dense<0.000000e+00> : vector<16x1152xf32>
    %52 = tpu.matmul %49, %51, %cst_45 {dimension_numbers = #tpu.dot_dimension_numbers<[1], [0], [0], [1], [0, 0, 1, 1], [], []>} : vector<16x40xf32>, vector<40x1152xf32>, vector<16x1152xf32> -> vector<16x1152xf32>
    %53 = arith.addf %47, %52 : vector<16x1152xf32>
    %54 = vector.extract_strided_slice %53 {offsets = [0, 0], sizes = [8, 1152], strides = [1, 1]} : vector<16x1152xf32> to vector<8x1152xf32>
    %c0_46 = arith.constant 0 : index
    %c0_47 = arith.constant 0 : index
    %55 = vector.load %arg6[%c0_46, %c0_47] : memref<8x20xf32, #tpu.memory_space<vmem>>, vector<8x1xf32>
    %56 = vector.broadcast %55 : vector<8x1xf32> to vector<8x1152xf32>
    %57 = arith.addf %54, %56 : vector<8x1152xf32>
    %58 = vector.extract_strided_slice %53 {offsets = [8, 0], sizes = [8, 1152], strides = [1, 1]} : vector<16x1152xf32> to vector<8x1152xf32>
    %c0_48 = arith.constant 0 : index
    %c1_49 = arith.constant 1 : index
    %59 = vector.load %arg6[%c0_48, %c1_49] : memref<8x20xf32, #tpu.memory_space<vmem>>, vector<8x1xf32>
    %60 = vector.broadcast %59 : vector<8x1xf32> to vector<8x1152xf32>
    %61 = arith.addf %58, %60 : vector<8x1152xf32>
    %62 = math.rsqrt %61 : vector<8x1152xf32>
    %63 = arith.mulf %61, %62 : vector<8x1152xf32>
    %64 = arith.mulf %57, %62 : vector<8x1152xf32>
    %cst_50 = arith.constant -5.000000e-01 : f32
    %65 = vector.broadcast %cst_50 : f32 to vector<8x1152xf32>
    %66 = arith.mulf %65, %64 : vector<8x1152xf32>
    %67 = arith.mulf %66, %64 : vector<8x1152xf32>
    %68 = math.exp %67 : vector<8x1152xf32>
    %cst_51 = arith.constant 0.398942292 : f32
    %69 = vector.broadcast %cst_51 : f32 to vector<8x1152xf32>
    %70 = arith.mulf %69, %68 : vector<8x1152xf32>
    %71 = math.absf %64 : vector<8x1152xf32>
    %cst_52 = arith.constant 0.231641889 : f32
    %72 = vector.broadcast %cst_52 : f32 to vector<8x1152xf32>
    %73 = arith.mulf %72, %71 : vector<8x1152xf32>
    %cst_53 = arith.constant 1.000000e+00 : f32
    %74 = vector.broadcast %cst_53 : f32 to vector<8x1152xf32>
    %75 = arith.addf %74, %73 : vector<8x1152xf32>
    %cst_54 = arith.constant 1.000000e+00 : f32
    %76 = vector.broadcast %cst_54 : f32 to vector<8x1152xf32>
    %77 = arith.divf %76, %75 : vector<8x1152xf32>
    %cst_55 = arith.constant 1.06140542 : f32
    %78 = vector.broadcast %cst_55 : f32 to vector<8x1152xf32>
    %79 = arith.mulf %78, %77 : vector<8x1152xf32>
    %cst_56 = arith.constant -1.45315206 : f32
    %80 = vector.broadcast %cst_56 : f32 to vector<8x1152xf32>
    %81 = arith.addf %79, %80 : vector<8x1152xf32>
    %82 = arith.mulf %81, %77 : vector<8x1152xf32>
    %cst_57 = arith.constant 1.42141378 : f32
    %83 = vector.broadcast %cst_57 : f32 to vector<8x1152xf32>
    %84 = arith.addf %82, %83 : vector<8x1152xf32>
    %85 = arith.mulf %84, %77 : vector<8x1152xf32>
    %cst_58 = arith.constant -0.284496725 : f32
    %86 = vector.broadcast %cst_58 : f32 to vector<8x1152xf32>
    %87 = arith.addf %85, %86 : vector<8x1152xf32>
    %88 = arith.mulf %87, %77 : vector<8x1152xf32>
    %cst_59 = arith.constant 0.254829586 : f32
    %89 = vector.broadcast %cst_59 : f32 to vector<8x1152xf32>
    %90 = arith.addf %88, %89 : vector<8x1152xf32>
    %91 = arith.mulf %90, %77 : vector<8x1152xf32>
    %92 = arith.mulf %91, %68 : vector<8x1152xf32>
    %cst_60 = arith.constant 1.000000e+00 : f32
    %93 = vector.broadcast %cst_60 : f32 to vector<8x1152xf32>
    %94 = arith.subf %93, %92 : vector<8x1152xf32>
    %cst_61 = arith.constant 0.000000e+00 : f32
    %95 = vector.broadcast %cst_61 : f32 to vector<8x1152xf32>
    %96 = arith.cmpf oge, %64, %95 : vector<8x1152xf32>
    %cst_62 = arith.constant 0.000000e+00 : f32
    %97 = vector.broadcast %cst_62 : f32 to vector<8x1152xf32>
    %98 = arith.subf %97, %94 : vector<8x1152xf32>
    %99 = arith.select %96, %94, %98 : vector<8x1152xi1>, vector<8x1152xf32>
    %cst_63 = arith.constant 1.000000e+00 : f32
    %100 = vector.broadcast %cst_63 : f32 to vector<8x1152xf32>
    %101 = arith.addf %100, %99 : vector<8x1152xf32>
    %cst_64 = arith.constant 5.000000e-01 : f32
    %102 = vector.broadcast %cst_64 : f32 to vector<8x1152xf32>
    %103 = arith.mulf %102, %101 : vector<8x1152xf32>
    %cst_65 = arith.constant 1.000000e+00 : f32
    %104 = vector.broadcast %cst_65 : f32 to vector<8x1152xf32>
    %105 = arith.subf %104, %103 : vector<8x1152xf32>
    %106 = arith.mulf %63, %70 : vector<8x1152xf32>
    %107 = arith.mulf %57, %57 : vector<8x1152xf32>
    %108 = arith.addf %107, %61 : vector<8x1152xf32>
    %109 = arith.mulf %57, %106 : vector<8x1152xf32>
    %110 = arith.mulf %57, %103 : vector<8x1152xf32>
    %111 = arith.addf %110, %106 : vector<8x1152xf32>
    %112 = arith.mulf %108, %103 : vector<8x1152xf32>
    %113 = arith.addf %112, %109 : vector<8x1152xf32>
    %114 = arith.mulf %111, %111 : vector<8x1152xf32>
    %115 = arith.subf %113, %114 : vector<8x1152xf32>
    %116 = arith.mulf %57, %105 : vector<8x1152xf32>
    %117 = arith.subf %106, %116 : vector<8x1152xf32>
    %118 = arith.mulf %108, %105 : vector<8x1152xf32>
    %119 = arith.subf %118, %109 : vector<8x1152xf32>
    %120 = arith.mulf %117, %117 : vector<8x1152xf32>
    %121 = arith.subf %119, %120 : vector<8x1152xf32>
    %cst_66 = arith.constant 0.000000e+00 : f32
    %122 = vector.broadcast %cst_66 : f32 to vector<8x1152xf32>
    %123 = arith.subf %122, %111 : vector<8x1152xf32>
    %124 = arith.mulf %123, %117 : vector<8x1152xf32>
    %cst_67 = arith.constant 0.00999999977 : f32
    %125 = vector.broadcast %cst_67 : f32 to vector<8x1152xf32>
    %126 = arith.mulf %125, %117 : vector<8x1152xf32>
    %127 = arith.subf %111, %126 : vector<8x1152xf32>
    %cst_68 = arith.constant 9.99999974E-5 : f32
    %128 = vector.broadcast %cst_68 : f32 to vector<8x1152xf32>
    %129 = arith.mulf %128, %121 : vector<8x1152xf32>
    %130 = arith.addf %115, %129 : vector<8x1152xf32>
    %cst_69 = arith.constant 2.000000e-02 : f32
    %131 = vector.broadcast %cst_69 : f32 to vector<8x1152xf32>
    %132 = arith.mulf %131, %124 : vector<8x1152xf32>
    %133 = arith.subf %130, %132 : vector<8x1152xf32>
    %cst_70 = arith.constant 0.000000e+00 : f32
    %134 = vector.broadcast %cst_70 : f32 to vector<8x1152xf32>
    %135 = arith.maximumf %133, %134 : vector<8x1152xf32>
    %c0_71 = arith.constant 0 : index
    %c2_72 = arith.constant 2 : index
    %136 = vector.load %arg6[%c0_71, %c2_72] : memref<8x20xf32, #tpu.memory_space<vmem>>, vector<8x1xf32>
    %137 = vector.broadcast %136 : vector<8x1xf32> to vector<8x1152xf32>
    %138 = arith.mulf %127, %137 : vector<8x1152xf32>
    %c0_73 = arith.constant 0 : index
    %c3_74 = arith.constant 3 : index
    %139 = vector.load %arg6[%c0_73, %c3_74] : memref<8x20xf32, #tpu.memory_space<vmem>>, vector<8x1xf32>
    %140 = vector.broadcast %139 : vector<8x1xf32> to vector<8x1152xf32>
    %141 = arith.addf %138, %140 : vector<8x1152xf32>
    %c0_75 = arith.constant 0 : index
    %c4_76 = arith.constant 4 : index
    %142 = vector.load %arg6[%c0_75, %c4_76] : memref<8x20xf32, #tpu.memory_space<vmem>>, vector<8x1xf32>
    %143 = vector.broadcast %142 : vector<8x1xf32> to vector<8x1152xf32>
    %144 = arith.mulf %135, %143 : vector<8x1152xf32>
    %cst_77 = arith.constant 0.000000e+00 : f32
    %145 = vector.broadcast %cst_77 : f32 to vector<8x1152xf32>
    %146 = arith.addf %144, %145 : vector<8x1152xf32>
    %cst_78 = arith.constant 0.000000e+00 : f32
    %147 = vector.broadcast %cst_78 : f32 to vector<16x128xf32>
    %c0_79 = arith.constant 0 : index
    %c0_80 = arith.constant 0 : index
    %148 = vector.load %arg9[%c0_79, %c0_80] : memref<16x1354xf32, #tpu.memory_space<vmem>>, vector<16x128xf32>
    tpu.vector_store %arg9[%c0_79, %c0_80], %147 {strides = array<i32>} : memref<16x1354xf32, #tpu.memory_space<vmem>>, vector<16x128xf32>,
    %cst_81 = arith.constant 0.000000e+00 : f32
    %149 = vector.broadcast %cst_81 : f32 to vector<16x74xf32>
    %c0_82 = arith.constant 0 : index
    %c1280 = arith.constant 1280 : index
    %150 = vector.load %arg9[%c0_82, %c1280] : memref<16x1354xf32, #tpu.memory_space<vmem>>, vector<16x74xf32>
    tpu.vector_store %arg9[%c0_82, %c1280], %149 {strides = array<i32>} : memref<16x1354xf32, #tpu.memory_space<vmem>>, vector<16x74xf32>,
    %151 = vector.broadcast %0 : vector<1x1152xf32> to vector<8x1152xf32>
    %152 = arith.mulf %141, %151 : vector<8x1152xf32>
    %153 = vector.broadcast %0 : vector<1x1152xf32> to vector<8x1152xf32>
    %154 = arith.mulf %146, %153 : vector<8x1152xf32>
    %155 = tpu.concatenate %152, %154 in 0 : vector<8x1152xf32>, vector<8x1152xf32> -> vector<16x1152xf32>
    %c0_83 = arith.constant 0 : index
    %c128_84 = arith.constant 128 : index
    %156 = vector.load %arg9[%c0_83, %c128_84] : memref<16x1354xf32, #tpu.memory_space<vmem>>, vector<16x1152xf32>
    tpu.vector_store %arg9[%c0_83, %c128_84], %155 {strides = array<i32>} : memref<16x1354xf32, #tpu.memory_space<vmem>>, vector<16x1152xf32>,
    %c0_85 = arith.constant 0 : index
    %c0_86 = arith.constant 0 : index
    %c0_87 = arith.constant 0 : index
    %157 = vector.load %arg3[%c0_85, %c0_86, %c0_87] : memref<9x16x16xf32, #tpu.memory_space<vmem>>, vector<1x16x16xf32>
    %158 = vector.shape_cast %157 : vector<1x16x16xf32> to vector<16x16xf32>
    %c0_88 = arith.constant 0 : index
    %c54 = arith.constant 54 : index
    %159 = vector.load %arg9[%c0_88, %c54] : memref<16x1354xf32, #tpu.memory_space<vmem>>, vector<16x1152xf32>
    %cst_89 = arith.constant dense<0.000000e+00> : vector<16x1152xf32>
    %160 = tpu.matmul %158, %159, %cst_89 {dimension_numbers = #tpu.dot_dimension_numbers<[1], [0], [0], [1], [0, 0, 1, 1], [], []>} : vector<16x16xf32>, vector<16x1152xf32>, vector<16x1152xf32> -> vector<16x1152xf32>
    %c1_90 = arith.constant 1 : index
    %c0_91 = arith.constant 0 : index
    %c0_92 = arith.constant 0 : index
    %161 = vector.load %arg3[%c1_90, %c0_91, %c0_92] : memref<9x16x16xf32, #tpu.memory_space<vmem>>, vector<1x16x16xf32>
    %162 = vector.shape_cast %161 : vector<1x16x16xf32> to vector<16x16xf32>
    %c0_93 = arith.constant 0 : index
    %c56 = arith.constant 56 : index
    %163 = vector.load %arg9[%c0_93, %c56] : memref<16x1354xf32, #tpu.memory_space<vmem>>, vector<16x1152xf32>
    %cst_94 = arith.constant dense<0.000000e+00> : vector<16x1152xf32>
    %164 = tpu.matmul %162, %163, %cst_94 {dimension_numbers = #tpu.dot_dimension_numbers<[1], [0], [0], [1], [0, 0, 1, 1], [], []>} : vector<16x16xf32>, vector<16x1152xf32>, vector<16x1152xf32> -> vector<16x1152xf32>
    %165 = arith.addf %160, %164 : vector<16x1152xf32>
    %c2_95 = arith.constant 2 : index
    %c0_96 = arith.constant 0 : index
    %c0_97 = arith.constant 0 : index
    %166 = vector.load %arg3[%c2_95, %c0_96, %c0_97] : memref<9x16x16xf32, #tpu.memory_space<vmem>>, vector<1x16x16xf32>
    %167 = vector.shape_cast %166 : vector<1x16x16xf32> to vector<16x16xf32>
    %c0_98 = arith.constant 0 : index
    %c58 = arith.constant 58 : index
    %168 = vector.load %arg9[%c0_98, %c58] : memref<16x1354xf32, #tpu.memory_space<vmem>>, vector<16x1152xf32>
    %cst_99 = arith.constant dense<0.000000e+00> : vector<16x1152xf32>
    %169 = tpu.matmul %167, %168, %cst_99 {dimension_numbers = #tpu.dot_dimension_numbers<[1], [0], [0], [1], [0, 0, 1, 1], [], []>} : vector<16x16xf32>, vector<16x1152xf32>, vector<16x1152xf32> -> vector<16x1152xf32>
    %170 = arith.addf %165, %169 : vector<16x1152xf32>
    %c3_100 = arith.constant 3 : index
    %c0_101 = arith.constant 0 : index
    %c0_102 = arith.constant 0 : index
    %171 = vector.load %arg3[%c3_100, %c0_101, %c0_102] : memref<9x16x16xf32, #tpu.memory_space<vmem>>, vector<1x16x16xf32>
    %172 = vector.shape_cast %171 : vector<1x16x16xf32> to vector<16x16xf32>
    %c0_103 = arith.constant 0 : index
    %c126 = arith.constant 126 : index
    %173 = vector.load %arg9[%c0_103, %c126] : memref<16x1354xf32, #tpu.memory_space<vmem>>, vector<16x1152xf32>
    %cst_104 = arith.constant dense<0.000000e+00> : vector<16x1152xf32>
    %174 = tpu.matmul %172, %173, %cst_104 {dimension_numbers = #tpu.dot_dimension_numbers<[1], [0], [0], [1], [0, 0, 1, 1], [], []>} : vector<16x16xf32>, vector<16x1152xf32>, vector<16x1152xf32> -> vector<16x1152xf32>
    %175 = arith.addf %170, %174 : vector<16x1152xf32>
    %c4_105 = arith.constant 4 : index
    %c0_106 = arith.constant 0 : index
    %c0_107 = arith.constant 0 : index
    %176 = vector.load %arg3[%c4_105, %c0_106, %c0_107] : memref<9x16x16xf32, #tpu.memory_space<vmem>>, vector<1x16x16xf32>
    %177 = vector.shape_cast %176 : vector<1x16x16xf32> to vector<16x16xf32>
    %c0_108 = arith.constant 0 : index
    %c128_109 = arith.constant 128 : index
    %178 = vector.load %arg9[%c0_108, %c128_109] : memref<16x1354xf32, #tpu.memory_space<vmem>>, vector<16x1152xf32>
    %cst_110 = arith.constant dense<0.000000e+00> : vector<16x1152xf32>
    %179 = tpu.matmul %177, %178, %cst_110 {dimension_numbers = #tpu.dot_dimension_numbers<[1], [0], [0], [1], [0, 0, 1, 1], [], []>} : vector<16x16xf32>, vector<16x1152xf32>, vector<16x1152xf32> -> vector<16x1152xf32>
    %180 = arith.addf %175, %179 : vector<16x1152xf32>
    %c5_111 = arith.constant 5 : index
    %c0_112 = arith.constant 0 : index
    %c0_113 = arith.constant 0 : index
    %181 = vector.load %arg3[%c5_111, %c0_112, %c0_113] : memref<9x16x16xf32, #tpu.memory_space<vmem>>, vector<1x16x16xf32>
    %182 = vector.shape_cast %181 : vector<1x16x16xf32> to vector<16x16xf32>
    %c0_114 = arith.constant 0 : index
    %c130 = arith.constant 130 : index
    %183 = vector.load %arg9[%c0_114, %c130] : memref<16x1354xf32, #tpu.memory_space<vmem>>, vector<16x1152xf32>
    %cst_115 = arith.constant dense<0.000000e+00> : vector<16x1152xf32>
    %184 = tpu.matmul %182, %183, %cst_115 {dimension_numbers = #tpu.dot_dimension_numbers<[1], [0], [0], [1], [0, 0, 1, 1], [], []>} : vector<16x16xf32>, vector<16x1152xf32>, vector<16x1152xf32> -> vector<16x1152xf32>
    %185 = arith.addf %180, %184 : vector<16x1152xf32>
    %c6_116 = arith.constant 6 : index
    %c0_117 = arith.constant 0 : index
    %c0_118 = arith.constant 0 : index
    %186 = vector.load %arg3[%c6_116, %c0_117, %c0_118] : memref<9x16x16xf32, #tpu.memory_space<vmem>>, vector<1x16x16xf32>
    %187 = vector.shape_cast %186 : vector<1x16x16xf32> to vector<16x16xf32>
    %c0_119 = arith.constant 0 : index
    %c198 = arith.constant 198 : index
    %188 = vector.load %arg9[%c0_119, %c198] : memref<16x1354xf32, #tpu.memory_space<vmem>>, vector<16x1152xf32>
    %cst_120 = arith.constant dense<0.000000e+00> : vector<16x1152xf32>
    %189 = tpu.matmul %187, %188, %cst_120 {dimension_numbers = #tpu.dot_dimension_numbers<[1], [0], [0], [1], [0, 0, 1, 1], [], []>} : vector<16x16xf32>, vector<16x1152xf32>, vector<16x1152xf32> -> vector<16x1152xf32>
    %190 = arith.addf %185, %189 : vector<16x1152xf32>
    %c7_121 = arith.constant 7 : index
    %c0_122 = arith.constant 0 : index
    %c0_123 = arith.constant 0 : index
    %191 = vector.load %arg3[%c7_121, %c0_122, %c0_123] : memref<9x16x16xf32, #tpu.memory_space<vmem>>, vector<1x16x16xf32>
    %192 = vector.shape_cast %191 : vector<1x16x16xf32> to vector<16x16xf32>
    %c0_124 = arith.constant 0 : index
    %c200 = arith.constant 200 : index
    %193 = vector.load %arg9[%c0_124, %c200] : memref<16x1354xf32, #tpu.memory_space<vmem>>, vector<16x1152xf32>
    %cst_125 = arith.constant dense<0.000000e+00> : vector<16x1152xf32>
    %194 = tpu.matmul %192, %193, %cst_125 {dimension_numbers = #tpu.dot_dimension_numbers<[1], [0], [0], [1], [0, 0, 1, 1], [], []>} : vector<16x16xf32>, vector<16x1152xf32>, vector<16x1152xf32> -> vector<16x1152xf32>
    %195 = arith.addf %190, %194 : vector<16x1152xf32>
    %c8_126 = arith.constant 8 : index
    %c0_127 = arith.constant 0 : index
    %c0_128 = arith.constant 0 : index
    %196 = vector.load %arg3[%c8_126, %c0_127, %c0_128] : memref<9x16x16xf32, #tpu.memory_space<vmem>>, vector<1x16x16xf32>
    %197 = vector.shape_cast %196 : vector<1x16x16xf32> to vector<16x16xf32>
    %c0_129 = arith.constant 0 : index
    %c202 = arith.constant 202 : index
    %198 = vector.load %arg9[%c0_129, %c202] : memref<16x1354xf32, #tpu.memory_space<vmem>>, vector<16x1152xf32>
    %cst_130 = arith.constant dense<0.000000e+00> : vector<16x1152xf32>
    %199 = tpu.matmul %197, %198, %cst_130 {dimension_numbers = #tpu.dot_dimension_numbers<[1], [0], [0], [1], [0, 0, 1, 1], [], []>} : vector<16x16xf32>, vector<16x1152xf32>, vector<16x1152xf32> -> vector<16x1152xf32>
    %200 = arith.addf %195, %199 : vector<16x1152xf32>
    %201 = vector.extract_strided_slice %200 {offsets = [0, 0], sizes = [8, 1152], strides = [1, 1]} : vector<16x1152xf32> to vector<8x1152xf32>
    %c0_131 = arith.constant 0 : index
    %c5_132 = arith.constant 5 : index
    %202 = vector.load %arg6[%c0_131, %c5_132] : memref<8x20xf32, #tpu.memory_space<vmem>>, vector<8x1xf32>
    %203 = vector.broadcast %202 : vector<8x1xf32> to vector<8x1152xf32>
    %204 = arith.addf %201, %203 : vector<8x1152xf32>
    %205 = vector.extract_strided_slice %200 {offsets = [8, 0], sizes = [8, 1152], strides = [1, 1]} : vector<16x1152xf32> to vector<8x1152xf32>
    %c0_133 = arith.constant 0 : index
    %c6_134 = arith.constant 6 : index
    %206 = vector.load %arg6[%c0_133, %c6_134] : memref<8x20xf32, #tpu.memory_space<vmem>>, vector<8x1xf32>
    %207 = vector.broadcast %206 : vector<8x1xf32> to vector<8x1152xf32>
    %208 = arith.addf %205, %207 : vector<8x1152xf32>
    %209 = math.rsqrt %208 : vector<8x1152xf32>
    %210 = arith.mulf %208, %209 : vector<8x1152xf32>
    %211 = arith.mulf %204, %209 : vector<8x1152xf32>
    %cst_135 = arith.constant -5.000000e-01 : f32
    %212 = vector.broadcast %cst_135 : f32 to vector<8x1152xf32>
    %213 = arith.mulf %212, %211 : vector<8x1152xf32>
    %214 = arith.mulf %213, %211 : vector<8x1152xf32>
    %215 = math.exp %214 : vector<8x1152xf32>
    %cst_136 = arith.constant 0.398942292 : f32
    %216 = vector.broadcast %cst_136 : f32 to vector<8x1152xf32>
    %217 = arith.mulf %216, %215 : vector<8x1152xf32>
    %218 = math.absf %211 : vector<8x1152xf32>
    %cst_137 = arith.constant 0.231641889 : f32
    %219 = vector.broadcast %cst_137 : f32 to vector<8x1152xf32>
    %220 = arith.mulf %219, %218 : vector<8x1152xf32>
    %cst_138 = arith.constant 1.000000e+00 : f32
    %221 = vector.broadcast %cst_138 : f32 to vector<8x1152xf32>
    %222 = arith.addf %221, %220 : vector<8x1152xf32>
    %cst_139 = arith.constant 1.000000e+00 : f32
    %223 = vector.broadcast %cst_139 : f32 to vector<8x1152xf32>
    %224 = arith.divf %223, %222 : vector<8x1152xf32>
    %cst_140 = arith.constant 1.06140542 : f32
    %225 = vector.broadcast %cst_140 : f32 to vector<8x1152xf32>
    %226 = arith.mulf %225, %224 : vector<8x1152xf32>
    %cst_141 = arith.constant -1.45315206 : f32
    %227 = vector.broadcast %cst_141 : f32 to vector<8x1152xf32>
    %228 = arith.addf %226, %227 : vector<8x1152xf32>
    %229 = arith.mulf %228, %224 : vector<8x1152xf32>
    %cst_142 = arith.constant 1.42141378 : f32
    %230 = vector.broadcast %cst_142 : f32 to vector<8x1152xf32>
    %231 = arith.addf %229, %230 : vector<8x1152xf32>
    %232 = arith.mulf %231, %224 : vector<8x1152xf32>
    %cst_143 = arith.constant -0.284496725 : f32
    %233 = vector.broadcast %cst_143 : f32 to vector<8x1152xf32>
    %234 = arith.addf %232, %233 : vector<8x1152xf32>
    %235 = arith.mulf %234, %224 : vector<8x1152xf32>
    %cst_144 = arith.constant 0.254829586 : f32
    %236 = vector.broadcast %cst_144 : f32 to vector<8x1152xf32>
    %237 = arith.addf %235, %236 : vector<8x1152xf32>
    %238 = arith.mulf %237, %224 : vector<8x1152xf32>
    %239 = arith.mulf %238, %215 : vector<8x1152xf32>
    %cst_145 = arith.constant 1.000000e+00 : f32
    %240 = vector.broadcast %cst_145 : f32 to vector<8x1152xf32>
    %241 = arith.subf %240, %239 : vector<8x1152xf32>
    %cst_146 = arith.constant 0.000000e+00 : f32
    %242 = vector.broadcast %cst_146 : f32 to vector<8x1152xf32>
    %243 = arith.cmpf oge, %211, %242 : vector<8x1152xf32>
    %cst_147 = arith.constant 0.000000e+00 : f32
    %244 = vector.broadcast %cst_147 : f32 to vector<8x1152xf32>
    %245 = arith.subf %244, %241 : vector<8x1152xf32>
    %246 = arith.select %243, %241, %245 : vector<8x1152xi1>, vector<8x1152xf32>
    %cst_148 = arith.constant 1.000000e+00 : f32
    %247 = vector.broadcast %cst_148 : f32 to vector<8x1152xf32>
    %248 = arith.addf %247, %246 : vector<8x1152xf32>
    %cst_149 = arith.constant 5.000000e-01 : f32
    %249 = vector.broadcast %cst_149 : f32 to vector<8x1152xf32>
    %250 = arith.mulf %249, %248 : vector<8x1152xf32>
    %cst_150 = arith.constant 1.000000e+00 : f32
    %251 = vector.broadcast %cst_150 : f32 to vector<8x1152xf32>
    %252 = arith.subf %251, %250 : vector<8x1152xf32>
    %253 = arith.mulf %210, %217 : vector<8x1152xf32>
    %254 = arith.mulf %204, %204 : vector<8x1152xf32>
    %255 = arith.addf %254, %208 : vector<8x1152xf32>
    %256 = arith.mulf %204, %253 : vector<8x1152xf32>
    %257 = arith.mulf %204, %250 : vector<8x1152xf32>
    %258 = arith.addf %257, %253 : vector<8x1152xf32>
    %259 = arith.mulf %255, %250 : vector<8x1152xf32>
    %260 = arith.addf %259, %256 : vector<8x1152xf32>
    %261 = arith.mulf %258, %258 : vector<8x1152xf32>
    %262 = arith.subf %260, %261 : vector<8x1152xf32>
    %263 = arith.mulf %204, %252 : vector<8x1152xf32>
    %264 = arith.subf %253, %263 : vector<8x1152xf32>
    %265 = arith.mulf %255, %252 : vector<8x1152xf32>
    %266 = arith.subf %265, %256 : vector<8x1152xf32>
    %267 = arith.mulf %264, %264 : vector<8x1152xf32>
    %268 = arith.subf %266, %267 : vector<8x1152xf32>
    %cst_151 = arith.constant 0.000000e+00 : f32
    %269 = vector.broadcast %cst_151 : f32 to vector<8x1152xf32>
    %270 = arith.subf %269, %258 : vector<8x1152xf32>
    %271 = arith.mulf %270, %264 : vector<8x1152xf32>
    %cst_152 = arith.constant 0.00999999977 : f32
    %272 = vector.broadcast %cst_152 : f32 to vector<8x1152xf32>
    %273 = arith.mulf %272, %264 : vector<8x1152xf32>
    %274 = arith.subf %258, %273 : vector<8x1152xf32>
    %cst_153 = arith.constant 9.99999974E-5 : f32
    %275 = vector.broadcast %cst_153 : f32 to vector<8x1152xf32>
    %276 = arith.mulf %275, %268 : vector<8x1152xf32>
    %277 = arith.addf %262, %276 : vector<8x1152xf32>
    %cst_154 = arith.constant 2.000000e-02 : f32
    %278 = vector.broadcast %cst_154 : f32 to vector<8x1152xf32>
    %279 = arith.mulf %278, %271 : vector<8x1152xf32>
    %280 = arith.subf %277, %279 : vector<8x1152xf32>
    %cst_155 = arith.constant 0.000000e+00 : f32
    %281 = vector.broadcast %cst_155 : f32 to vector<8x1152xf32>
    %282 = arith.maximumf %280, %281 : vector<8x1152xf32>
    %c0_156 = arith.constant 0 : index
    %c7_157 = arith.constant 7 : index
    %283 = vector.load %arg6[%c0_156, %c7_157] : memref<8x20xf32, #tpu.memory_space<vmem>>, vector<8x1xf32>
    %284 = vector.broadcast %283 : vector<8x1xf32> to vector<8x1152xf32>
    %285 = arith.mulf %274, %284 : vector<8x1152xf32>
    %c0_158 = arith.constant 0 : index
    %c8_159 = arith.constant 8 : index
    %286 = vector.load %arg6[%c0_158, %c8_159] : memref<8x20xf32, #tpu.memory_space<vmem>>, vector<8x1xf32>
    %287 = vector.broadcast %286 : vector<8x1xf32> to vector<8x1152xf32>
    %288 = arith.addf %285, %287 : vector<8x1152xf32>
    %c0_160 = arith.constant 0 : index
    %c9 = arith.constant 9 : index
    %289 = vector.load %arg6[%c0_160, %c9] : memref<8x20xf32, #tpu.memory_space<vmem>>, vector<8x1xf32>
    %290 = vector.broadcast %289 : vector<8x1xf32> to vector<8x1152xf32>
    %291 = arith.mulf %282, %290 : vector<8x1152xf32>
    %cst_161 = arith.constant 0.000000e+00 : f32
    %292 = vector.broadcast %cst_161 : f32 to vector<8x1152xf32>
    %293 = arith.addf %291, %292 : vector<8x1152xf32>
    %cst_162 = arith.constant 0.000000e+00 : f32
    %294 = vector.broadcast %cst_162 : f32 to vector<16x128xf32>
    %c0_163 = arith.constant 0 : index
    %c0_164 = arith.constant 0 : index
    %295 = vector.load %arg10[%c0_163, %c0_164] : memref<16x1354xf32, #tpu.memory_space<vmem>>, vector<16x128xf32>
    tpu.vector_store %arg10[%c0_163, %c0_164], %294 {strides = array<i32>} : memref<16x1354xf32, #tpu.memory_space<vmem>>, vector<16x128xf32>,
    %cst_165 = arith.constant 0.000000e+00 : f32
    %296 = vector.broadcast %cst_165 : f32 to vector<16x74xf32>
    %c0_166 = arith.constant 0 : index
    %c1280_167 = arith.constant 1280 : index
    %297 = vector.load %arg10[%c0_166, %c1280_167] : memref<16x1354xf32, #tpu.memory_space<vmem>>, vector<16x74xf32>
    tpu.vector_store %arg10[%c0_166, %c1280_167], %296 {strides = array<i32>} : memref<16x1354xf32, #tpu.memory_space<vmem>>, vector<16x74xf32>,
    %298 = vector.broadcast %0 : vector<1x1152xf32> to vector<8x1152xf32>
    %299 = arith.mulf %288, %298 : vector<8x1152xf32>
    %300 = vector.broadcast %0 : vector<1x1152xf32> to vector<8x1152xf32>
    %301 = arith.mulf %293, %300 : vector<8x1152xf32>
    %302 = tpu.concatenate %299, %301 in 0 : vector<8x1152xf32>, vector<8x1152xf32> -> vector<16x1152xf32>
    %c0_168 = arith.constant 0 : index
    %c128_169 = arith.constant 128 : index
    %303 = vector.load %arg10[%c0_168, %c128_169] : memref<16x1354xf32, #tpu.memory_space<vmem>>, vector<16x1152xf32>
    tpu.vector_store %arg10[%c0_168, %c128_169], %302 {strides = array<i32>} : memref<16x1354xf32, #tpu.memory_space<vmem>>, vector<16x1152xf32>,
    %c0_170 = arith.constant 0 : index
    %c0_171 = arith.constant 0 : index
    %c0_172 = arith.constant 0 : index
    %304 = vector.load %arg4[%c0_170, %c0_171, %c0_172] : memref<4x16x16xf32, #tpu.memory_space<vmem>>, vector<1x16x16xf32>
    %305 = vector.shape_cast %304 : vector<1x16x16xf32> to vector<16x16xf32>
    %c0_173 = arith.constant 0 : index
    %c91_174 = arith.constant 91 : index
    %306 = vector.load %arg10[%c0_173, %c91_174] : memref<16x1354xf32, #tpu.memory_space<vmem>>, vector<16x1152xf32>
    %cst_175 = arith.constant dense<0.000000e+00> : vector<16x1152xf32>
    %307 = tpu.matmul %305, %306, %cst_175 {dimension_numbers = #tpu.dot_dimension_numbers<[1], [0], [0], [1], [0, 0, 1, 1], [], []>} : vector<16x16xf32>, vector<16x1152xf32>, vector<16x1152xf32> -> vector<16x1152xf32>
    %c1_176 = arith.constant 1 : index
    %c0_177 = arith.constant 0 : index
    %c0_178 = arith.constant 0 : index
    %308 = vector.load %arg4[%c1_176, %c0_177, %c0_178] : memref<4x16x16xf32, #tpu.memory_space<vmem>>, vector<1x16x16xf32>
    %309 = vector.shape_cast %308 : vector<1x16x16xf32> to vector<16x16xf32>
    %c0_179 = arith.constant 0 : index
    %c93_180 = arith.constant 93 : index
    %310 = vector.load %arg10[%c0_179, %c93_180] : memref<16x1354xf32, #tpu.memory_space<vmem>>, vector<16x1152xf32>
    %cst_181 = arith.constant dense<0.000000e+00> : vector<16x1152xf32>
    %311 = tpu.matmul %309, %310, %cst_181 {dimension_numbers = #tpu.dot_dimension_numbers<[1], [0], [0], [1], [0, 0, 1, 1], [], []>} : vector<16x16xf32>, vector<16x1152xf32>, vector<16x1152xf32> -> vector<16x1152xf32>
    %312 = arith.addf %307, %311 : vector<16x1152xf32>
    %c2_182 = arith.constant 2 : index
    %c0_183 = arith.constant 0 : index
    %c0_184 = arith.constant 0 : index
    %313 = vector.load %arg4[%c2_182, %c0_183, %c0_184] : memref<4x16x16xf32, #tpu.memory_space<vmem>>, vector<1x16x16xf32>
    %314 = vector.shape_cast %313 : vector<1x16x16xf32> to vector<16x16xf32>
    %c0_185 = arith.constant 0 : index
    %c163_186 = arith.constant 163 : index
    %315 = vector.load %arg10[%c0_185, %c163_186] : memref<16x1354xf32, #tpu.memory_space<vmem>>, vector<16x1152xf32>
    %cst_187 = arith.constant dense<0.000000e+00> : vector<16x1152xf32>
    %316 = tpu.matmul %314, %315, %cst_187 {dimension_numbers = #tpu.dot_dimension_numbers<[1], [0], [0], [1], [0, 0, 1, 1], [], []>} : vector<16x16xf32>, vector<16x1152xf32>, vector<16x1152xf32> -> vector<16x1152xf32>
    %317 = arith.addf %312, %316 : vector<16x1152xf32>
    %c3_188 = arith.constant 3 : index
    %c0_189 = arith.constant 0 : index
    %c0_190 = arith.constant 0 : index
    %318 = vector.load %arg4[%c3_188, %c0_189, %c0_190] : memref<4x16x16xf32, #tpu.memory_space<vmem>>, vector<1x16x16xf32>
    %319 = vector.shape_cast %318 : vector<1x16x16xf32> to vector<16x16xf32>
    %c0_191 = arith.constant 0 : index
    %c165_192 = arith.constant 165 : index
    %320 = vector.load %arg10[%c0_191, %c165_192] : memref<16x1354xf32, #tpu.memory_space<vmem>>, vector<16x1152xf32>
    %cst_193 = arith.constant dense<0.000000e+00> : vector<16x1152xf32>
    %321 = tpu.matmul %319, %320, %cst_193 {dimension_numbers = #tpu.dot_dimension_numbers<[1], [0], [0], [1], [0, 0, 1, 1], [], []>} : vector<16x16xf32>, vector<16x1152xf32>, vector<16x1152xf32> -> vector<16x1152xf32>
    %322 = arith.addf %317, %321 : vector<16x1152xf32>
    %323 = vector.extract_strided_slice %322 {offsets = [0, 0], sizes = [8, 1152], strides = [1, 1]} : vector<16x1152xf32> to vector<8x1152xf32>
    %c0_194 = arith.constant 0 : index
    %c10 = arith.constant 10 : index
    %324 = vector.load %arg6[%c0_194, %c10] : memref<8x20xf32, #tpu.memory_space<vmem>>, vector<8x1xf32>
    %325 = vector.broadcast %324 : vector<8x1xf32> to vector<8x1152xf32>
    %326 = arith.addf %323, %325 : vector<8x1152xf32>
    %327 = vector.extract_strided_slice %322 {offsets = [8, 0], sizes = [8, 1152], strides = [1, 1]} : vector<16x1152xf32> to vector<8x1152xf32>
    %c0_195 = arith.constant 0 : index
    %c11 = arith.constant 11 : index
    %328 = vector.load %arg6[%c0_195, %c11] : memref<8x20xf32, #tpu.memory_space<vmem>>, vector<8x1xf32>
    %329 = vector.broadcast %328 : vector<8x1xf32> to vector<8x1152xf32>
    %330 = arith.addf %327, %329 : vector<8x1152xf32>
    %331 = math.rsqrt %330 : vector<8x1152xf32>
    %332 = arith.mulf %330, %331 : vector<8x1152xf32>
    %333 = arith.mulf %326, %331 : vector<8x1152xf32>
    %cst_196 = arith.constant -5.000000e-01 : f32
    %334 = vector.broadcast %cst_196 : f32 to vector<8x1152xf32>
    %335 = arith.mulf %334, %333 : vector<8x1152xf32>
    %336 = arith.mulf %335, %333 : vector<8x1152xf32>
    %337 = math.exp %336 : vector<8x1152xf32>
    %cst_197 = arith.constant 0.398942292 : f32
    %338 = vector.broadcast %cst_197 : f32 to vector<8x1152xf32>
    %339 = arith.mulf %338, %337 : vector<8x1152xf32>
    %340 = math.absf %333 : vector<8x1152xf32>
    %cst_198 = arith.constant 0.231641889 : f32
    %341 = vector.broadcast %cst_198 : f32 to vector<8x1152xf32>
    %342 = arith.mulf %341, %340 : vector<8x1152xf32>
    %cst_199 = arith.constant 1.000000e+00 : f32
    %343 = vector.broadcast %cst_199 : f32 to vector<8x1152xf32>
    %344 = arith.addf %343, %342 : vector<8x1152xf32>
    %cst_200 = arith.constant 1.000000e+00 : f32
    %345 = vector.broadcast %cst_200 : f32 to vector<8x1152xf32>
    %346 = arith.divf %345, %344 : vector<8x1152xf32>
    %cst_201 = arith.constant 1.06140542 : f32
    %347 = vector.broadcast %cst_201 : f32 to vector<8x1152xf32>
    %348 = arith.mulf %347, %346 : vector<8x1152xf32>
    %cst_202 = arith.constant -1.45315206 : f32
    %349 = vector.broadcast %cst_202 : f32 to vector<8x1152xf32>
    %350 = arith.addf %348, %349 : vector<8x1152xf32>
    %351 = arith.mulf %350, %346 : vector<8x1152xf32>
    %cst_203 = arith.constant 1.42141378 : f32
    %352 = vector.broadcast %cst_203 : f32 to vector<8x1152xf32>
    %353 = arith.addf %351, %352 : vector<8x1152xf32>
    %354 = arith.mulf %353, %346 : vector<8x1152xf32>
    %cst_204 = arith.constant -0.284496725 : f32
    %355 = vector.broadcast %cst_204 : f32 to vector<8x1152xf32>
    %356 = arith.addf %354, %355 : vector<8x1152xf32>
    %357 = arith.mulf %356, %346 : vector<8x1152xf32>
    %cst_205 = arith.constant 0.254829586 : f32
    %358 = vector.broadcast %cst_205 : f32 to vector<8x1152xf32>
    %359 = arith.addf %357, %358 : vector<8x1152xf32>
    %360 = arith.mulf %359, %346 : vector<8x1152xf32>
    %361 = arith.mulf %360, %337 : vector<8x1152xf32>
    %cst_206 = arith.constant 1.000000e+00 : f32
    %362 = vector.broadcast %cst_206 : f32 to vector<8x1152xf32>
    %363 = arith.subf %362, %361 : vector<8x1152xf32>
    %cst_207 = arith.constant 0.000000e+00 : f32
    %364 = vector.broadcast %cst_207 : f32 to vector<8x1152xf32>
    %365 = arith.cmpf oge, %333, %364 : vector<8x1152xf32>
    %cst_208 = arith.constant 0.000000e+00 : f32
    %366 = vector.broadcast %cst_208 : f32 to vector<8x1152xf32>
    %367 = arith.subf %366, %363 : vector<8x1152xf32>
    %368 = arith.select %365, %363, %367 : vector<8x1152xi1>, vector<8x1152xf32>
    %cst_209 = arith.constant 1.000000e+00 : f32
    %369 = vector.broadcast %cst_209 : f32 to vector<8x1152xf32>
    %370 = arith.addf %369, %368 : vector<8x1152xf32>
    %cst_210 = arith.constant 5.000000e-01 : f32
    %371 = vector.broadcast %cst_210 : f32 to vector<8x1152xf32>
    %372 = arith.mulf %371, %370 : vector<8x1152xf32>
    %cst_211 = arith.constant 1.000000e+00 : f32
    %373 = vector.broadcast %cst_211 : f32 to vector<8x1152xf32>
    %374 = arith.subf %373, %372 : vector<8x1152xf32>
    %375 = arith.mulf %332, %339 : vector<8x1152xf32>
    %376 = arith.mulf %326, %326 : vector<8x1152xf32>
    %377 = arith.addf %376, %330 : vector<8x1152xf32>
    %378 = arith.mulf %326, %375 : vector<8x1152xf32>
    %379 = arith.mulf %326, %372 : vector<8x1152xf32>
    %380 = arith.addf %379, %375 : vector<8x1152xf32>
    %381 = arith.mulf %377, %372 : vector<8x1152xf32>
    %382 = arith.addf %381, %378 : vector<8x1152xf32>
    %383 = arith.mulf %380, %380 : vector<8x1152xf32>
    %384 = arith.subf %382, %383 : vector<8x1152xf32>
    %385 = arith.mulf %326, %374 : vector<8x1152xf32>
    %386 = arith.subf %375, %385 : vector<8x1152xf32>
    %387 = arith.mulf %377, %374 : vector<8x1152xf32>
    %388 = arith.subf %387, %378 : vector<8x1152xf32>
    %389 = arith.mulf %386, %386 : vector<8x1152xf32>
    %390 = arith.subf %388, %389 : vector<8x1152xf32>
    %cst_212 = arith.constant 0.000000e+00 : f32
    %391 = vector.broadcast %cst_212 : f32 to vector<8x1152xf32>
    %392 = arith.subf %391, %380 : vector<8x1152xf32>
    %393 = arith.mulf %392, %386 : vector<8x1152xf32>
    %cst_213 = arith.constant 0.00999999977 : f32
    %394 = vector.broadcast %cst_213 : f32 to vector<8x1152xf32>
    %395 = arith.mulf %394, %386 : vector<8x1152xf32>
    %396 = arith.subf %380, %395 : vector<8x1152xf32>
    %cst_214 = arith.constant 9.99999974E-5 : f32
    %397 = vector.broadcast %cst_214 : f32 to vector<8x1152xf32>
    %398 = arith.mulf %397, %390 : vector<8x1152xf32>
    %399 = arith.addf %384, %398 : vector<8x1152xf32>
    %cst_215 = arith.constant 2.000000e-02 : f32
    %400 = vector.broadcast %cst_215 : f32 to vector<8x1152xf32>
    %401 = arith.mulf %400, %393 : vector<8x1152xf32>
    %402 = arith.subf %399, %401 : vector<8x1152xf32>
    %cst_216 = arith.constant 0.000000e+00 : f32
    %403 = vector.broadcast %cst_216 : f32 to vector<8x1152xf32>
    %404 = arith.maximumf %402, %403 : vector<8x1152xf32>
    %c0_217 = arith.constant 0 : index
    %c12 = arith.constant 12 : index
    %405 = vector.load %arg6[%c0_217, %c12] : memref<8x20xf32, #tpu.memory_space<vmem>>, vector<8x1xf32>
    %406 = vector.broadcast %405 : vector<8x1xf32> to vector<8x1152xf32>
    %407 = arith.mulf %396, %406 : vector<8x1152xf32>
    %c0_218 = arith.constant 0 : index
    %c13 = arith.constant 13 : index
    %408 = vector.load %arg6[%c0_218, %c13] : memref<8x20xf32, #tpu.memory_space<vmem>>, vector<8x1xf32>
    %409 = vector.broadcast %408 : vector<8x1xf32> to vector<8x1152xf32>
    %410 = arith.addf %407, %409 : vector<8x1152xf32>
    %c0_219 = arith.constant 0 : index
    %c14 = arith.constant 14 : index
    %411 = vector.load %arg6[%c0_219, %c14] : memref<8x20xf32, #tpu.memory_space<vmem>>, vector<8x1xf32>
    %412 = vector.broadcast %411 : vector<8x1xf32> to vector<8x1152xf32>
    %413 = arith.mulf %404, %412 : vector<8x1152xf32>
    %cst_220 = arith.constant 0.000000e+00 : f32
    %414 = vector.broadcast %cst_220 : f32 to vector<8x1152xf32>
    %415 = arith.addf %413, %414 : vector<8x1152xf32>
    %cst_221 = arith.constant 0.000000e+00 : f32
    %416 = vector.broadcast %cst_221 : f32 to vector<16x128xf32>
    %c0_222 = arith.constant 0 : index
    %c0_223 = arith.constant 0 : index
    %417 = vector.load %arg11[%c0_222, %c0_223] : memref<16x1354xf32, #tpu.memory_space<vmem>>, vector<16x128xf32>
    tpu.vector_store %arg11[%c0_222, %c0_223], %416 {strides = array<i32>} : memref<16x1354xf32, #tpu.memory_space<vmem>>, vector<16x128xf32>,
    %cst_224 = arith.constant 0.000000e+00 : f32
    %418 = vector.broadcast %cst_224 : f32 to vector<16x74xf32>
    %c0_225 = arith.constant 0 : index
    %c1280_226 = arith.constant 1280 : index
    %419 = vector.load %arg11[%c0_225, %c1280_226] : memref<16x1354xf32, #tpu.memory_space<vmem>>, vector<16x74xf32>
    tpu.vector_store %arg11[%c0_225, %c1280_226], %418 {strides = array<i32>} : memref<16x1354xf32, #tpu.memory_space<vmem>>, vector<16x74xf32>,
    %420 = vector.broadcast %0 : vector<1x1152xf32> to vector<8x1152xf32>
    %421 = arith.mulf %410, %420 : vector<8x1152xf32>
    %422 = vector.broadcast %0 : vector<1x1152xf32> to vector<8x1152xf32>
    %423 = arith.mulf %415, %422 : vector<8x1152xf32>
    %424 = tpu.concatenate %421, %423 in 0 : vector<8x1152xf32>, vector<8x1152xf32> -> vector<16x1152xf32>
    %c0_227 = arith.constant 0 : index
    %c128_228 = arith.constant 128 : index
    %425 = vector.load %arg11[%c0_227, %c128_228] : memref<16x1354xf32, #tpu.memory_space<vmem>>, vector<16x1152xf32>
    tpu.vector_store %arg11[%c0_227, %c128_228], %424 {strides = array<i32>} : memref<16x1354xf32, #tpu.memory_space<vmem>>, vector<16x1152xf32>,
    %c0_229 = arith.constant 0 : index
    %c0_230 = arith.constant 0 : index
    %c0_231 = arith.constant 0 : index
    %426 = vector.load %arg5[%c0_229, %c0_230, %c0_231] : memref<3x16x16xf32, #tpu.memory_space<vmem>>, vector<1x16x16xf32>
    %427 = vector.shape_cast %426 : vector<1x16x16xf32> to vector<16x16xf32>
    %c0_232 = arith.constant 0 : index
    %c128_233 = arith.constant 128 : index
    %428 = vector.load %arg9[%c0_232, %c128_233] : memref<16x1354xf32, #tpu.memory_space<vmem>>, vector<16x1152xf32>
    %cst_234 = arith.constant dense<0.000000e+00> : vector<16x1152xf32>
    %429 = tpu.matmul %427, %428, %cst_234 {dimension_numbers = #tpu.dot_dimension_numbers<[1], [0], [0], [1], [0, 0, 1, 1], [], []>} : vector<16x16xf32>, vector<16x1152xf32>, vector<16x1152xf32> -> vector<16x1152xf32>
    %c1_235 = arith.constant 1 : index
    %c0_236 = arith.constant 0 : index
    %c0_237 = arith.constant 0 : index
    %430 = vector.load %arg5[%c1_235, %c0_236, %c0_237] : memref<3x16x16xf32, #tpu.memory_space<vmem>>, vector<1x16x16xf32>
    %431 = vector.shape_cast %430 : vector<1x16x16xf32> to vector<16x16xf32>
    %c0_238 = arith.constant 0 : index
    %c128_239 = arith.constant 128 : index
    %432 = vector.load %arg10[%c0_238, %c128_239] : memref<16x1354xf32, #tpu.memory_space<vmem>>, vector<16x1152xf32>
    %cst_240 = arith.constant dense<0.000000e+00> : vector<16x1152xf32>
    %433 = tpu.matmul %431, %432, %cst_240 {dimension_numbers = #tpu.dot_dimension_numbers<[1], [0], [0], [1], [0, 0, 1, 1], [], []>} : vector<16x16xf32>, vector<16x1152xf32>, vector<16x1152xf32> -> vector<16x1152xf32>
    %434 = arith.addf %429, %433 : vector<16x1152xf32>
    %c2_241 = arith.constant 2 : index
    %c0_242 = arith.constant 0 : index
    %c0_243 = arith.constant 0 : index
    %435 = vector.load %arg5[%c2_241, %c0_242, %c0_243] : memref<3x16x16xf32, #tpu.memory_space<vmem>>, vector<1x16x16xf32>
    %436 = vector.shape_cast %435 : vector<1x16x16xf32> to vector<16x16xf32>
    %c0_244 = arith.constant 0 : index
    %c128_245 = arith.constant 128 : index
    %437 = vector.load %arg11[%c0_244, %c128_245] : memref<16x1354xf32, #tpu.memory_space<vmem>>, vector<16x1152xf32>
    %cst_246 = arith.constant dense<0.000000e+00> : vector<16x1152xf32>
    %438 = tpu.matmul %436, %437, %cst_246 {dimension_numbers = #tpu.dot_dimension_numbers<[1], [0], [0], [1], [0, 0, 1, 1], [], []>} : vector<16x16xf32>, vector<16x1152xf32>, vector<16x1152xf32> -> vector<16x1152xf32>
    %439 = arith.addf %434, %438 : vector<16x1152xf32>
    %440 = vector.extract_strided_slice %439 {offsets = [0, 0], sizes = [8, 1152], strides = [1, 1]} : vector<16x1152xf32> to vector<8x1152xf32>
    %c0_247 = arith.constant 0 : index
    %c15 = arith.constant 15 : index
    %441 = vector.load %arg6[%c0_247, %c15] : memref<8x20xf32, #tpu.memory_space<vmem>>, vector<8x1xf32>
    %442 = vector.broadcast %441 : vector<8x1xf32> to vector<8x1152xf32>
    %443 = arith.addf %440, %442 : vector<8x1152xf32>
    %444 = vector.extract_strided_slice %439 {offsets = [8, 0], sizes = [8, 1152], strides = [1, 1]} : vector<16x1152xf32> to vector<8x1152xf32>
    %c0_248 = arith.constant 0 : index
    %c16 = arith.constant 16 : index
    %445 = vector.load %arg6[%c0_248, %c16] : memref<8x20xf32, #tpu.memory_space<vmem>>, vector<8x1xf32>
    %446 = vector.broadcast %445 : vector<8x1xf32> to vector<8x1152xf32>
    %447 = arith.addf %444, %446 : vector<8x1152xf32>
    %448 = math.rsqrt %447 : vector<8x1152xf32>
    %449 = arith.mulf %447, %448 : vector<8x1152xf32>
    %450 = arith.mulf %443, %448 : vector<8x1152xf32>
    %cst_249 = arith.constant -5.000000e-01 : f32
    %451 = vector.broadcast %cst_249 : f32 to vector<8x1152xf32>
    %452 = arith.mulf %451, %450 : vector<8x1152xf32>
    %453 = arith.mulf %452, %450 : vector<8x1152xf32>
    %454 = math.exp %453 : vector<8x1152xf32>
    %cst_250 = arith.constant 0.398942292 : f32
    %455 = vector.broadcast %cst_250 : f32 to vector<8x1152xf32>
    %456 = arith.mulf %455, %454 : vector<8x1152xf32>
    %457 = math.absf %450 : vector<8x1152xf32>
    %cst_251 = arith.constant 0.231641889 : f32
    %458 = vector.broadcast %cst_251 : f32 to vector<8x1152xf32>
    %459 = arith.mulf %458, %457 : vector<8x1152xf32>
    %cst_252 = arith.constant 1.000000e+00 : f32
    %460 = vector.broadcast %cst_252 : f32 to vector<8x1152xf32>
    %461 = arith.addf %460, %459 : vector<8x1152xf32>
    %cst_253 = arith.constant 1.000000e+00 : f32
    %462 = vector.broadcast %cst_253 : f32 to vector<8x1152xf32>
    %463 = arith.divf %462, %461 : vector<8x1152xf32>
    %cst_254 = arith.constant 1.06140542 : f32
    %464 = vector.broadcast %cst_254 : f32 to vector<8x1152xf32>
    %465 = arith.mulf %464, %463 : vector<8x1152xf32>
    %cst_255 = arith.constant -1.45315206 : f32
    %466 = vector.broadcast %cst_255 : f32 to vector<8x1152xf32>
    %467 = arith.addf %465, %466 : vector<8x1152xf32>
    %468 = arith.mulf %467, %463 : vector<8x1152xf32>
    %cst_256 = arith.constant 1.42141378 : f32
    %469 = vector.broadcast %cst_256 : f32 to vector<8x1152xf32>
    %470 = arith.addf %468, %469 : vector<8x1152xf32>
    %471 = arith.mulf %470, %463 : vector<8x1152xf32>
    %cst_257 = arith.constant -0.284496725 : f32
    %472 = vector.broadcast %cst_257 : f32 to vector<8x1152xf32>
    %473 = arith.addf %471, %472 : vector<8x1152xf32>
    %474 = arith.mulf %473, %463 : vector<8x1152xf32>
    %cst_258 = arith.constant 0.254829586 : f32
    %475 = vector.broadcast %cst_258 : f32 to vector<8x1152xf32>
    %476 = arith.addf %474, %475 : vector<8x1152xf32>
    %477 = arith.mulf %476, %463 : vector<8x1152xf32>
    %478 = arith.mulf %477, %454 : vector<8x1152xf32>
    %cst_259 = arith.constant 1.000000e+00 : f32
    %479 = vector.broadcast %cst_259 : f32 to vector<8x1152xf32>
    %480 = arith.subf %479, %478 : vector<8x1152xf32>
    %cst_260 = arith.constant 0.000000e+00 : f32
    %481 = vector.broadcast %cst_260 : f32 to vector<8x1152xf32>
    %482 = arith.cmpf oge, %450, %481 : vector<8x1152xf32>
    %cst_261 = arith.constant 0.000000e+00 : f32
    %483 = vector.broadcast %cst_261 : f32 to vector<8x1152xf32>
    %484 = arith.subf %483, %480 : vector<8x1152xf32>
    %485 = arith.select %482, %480, %484 : vector<8x1152xi1>, vector<8x1152xf32>
    %cst_262 = arith.constant 1.000000e+00 : f32
    %486 = vector.broadcast %cst_262 : f32 to vector<8x1152xf32>
    %487 = arith.addf %486, %485 : vector<8x1152xf32>
    %cst_263 = arith.constant 5.000000e-01 : f32
    %488 = vector.broadcast %cst_263 : f32 to vector<8x1152xf32>
    %489 = arith.mulf %488, %487 : vector<8x1152xf32>
    %cst_264 = arith.constant 1.000000e+00 : f32
    %490 = vector.broadcast %cst_264 : f32 to vector<8x1152xf32>
    %491 = arith.subf %490, %489 : vector<8x1152xf32>
    %492 = arith.mulf %449, %456 : vector<8x1152xf32>
    %493 = arith.mulf %443, %443 : vector<8x1152xf32>
    %494 = arith.addf %493, %447 : vector<8x1152xf32>
    %495 = arith.mulf %443, %492 : vector<8x1152xf32>
    %496 = arith.mulf %443, %489 : vector<8x1152xf32>
    %497 = arith.addf %496, %492 : vector<8x1152xf32>
    %498 = arith.mulf %494, %489 : vector<8x1152xf32>
    %499 = arith.addf %498, %495 : vector<8x1152xf32>
    %500 = arith.mulf %497, %497 : vector<8x1152xf32>
    %501 = arith.subf %499, %500 : vector<8x1152xf32>
    %502 = arith.mulf %443, %491 : vector<8x1152xf32>
    %503 = arith.subf %492, %502 : vector<8x1152xf32>
    %504 = arith.mulf %494, %491 : vector<8x1152xf32>
    %505 = arith.subf %504, %495 : vector<8x1152xf32>
    %506 = arith.mulf %503, %503 : vector<8x1152xf32>
    %507 = arith.subf %505, %506 : vector<8x1152xf32>
    %cst_265 = arith.constant 0.000000e+00 : f32
    %508 = vector.broadcast %cst_265 : f32 to vector<8x1152xf32>
    %509 = arith.subf %508, %497 : vector<8x1152xf32>
    %510 = arith.mulf %509, %503 : vector<8x1152xf32>
    %cst_266 = arith.constant 0.00999999977 : f32
    %511 = vector.broadcast %cst_266 : f32 to vector<8x1152xf32>
    %512 = arith.mulf %511, %503 : vector<8x1152xf32>
    %513 = arith.subf %497, %512 : vector<8x1152xf32>
    %cst_267 = arith.constant 9.99999974E-5 : f32
    %514 = vector.broadcast %cst_267 : f32 to vector<8x1152xf32>
    %515 = arith.mulf %514, %507 : vector<8x1152xf32>
    %516 = arith.addf %501, %515 : vector<8x1152xf32>
    %cst_268 = arith.constant 2.000000e-02 : f32
    %517 = vector.broadcast %cst_268 : f32 to vector<8x1152xf32>
    %518 = arith.mulf %517, %510 : vector<8x1152xf32>
    %519 = arith.subf %516, %518 : vector<8x1152xf32>
    %cst_269 = arith.constant 0.000000e+00 : f32
    %520 = vector.broadcast %cst_269 : f32 to vector<8x1152xf32>
    %521 = arith.maximumf %519, %520 : vector<8x1152xf32>
    %c0_270 = arith.constant 0 : index
    %c17 = arith.constant 17 : index
    %522 = vector.load %arg6[%c0_270, %c17] : memref<8x20xf32, #tpu.memory_space<vmem>>, vector<8x1xf32>
    %523 = vector.broadcast %522 : vector<8x1xf32> to vector<8x1152xf32>
    %524 = arith.mulf %513, %523 : vector<8x1152xf32>
    %c0_271 = arith.constant 0 : index
    %c18 = arith.constant 18 : index
    %525 = vector.load %arg6[%c0_271, %c18] : memref<8x20xf32, #tpu.memory_space<vmem>>, vector<8x1xf32>
    %526 = vector.broadcast %525 : vector<8x1xf32> to vector<8x1152xf32>
    %527 = arith.addf %524, %526 : vector<8x1152xf32>
    %c0_272 = arith.constant 0 : index
    %c19 = arith.constant 19 : index
    %528 = vector.load %arg6[%c0_272, %c19] : memref<8x20xf32, #tpu.memory_space<vmem>>, vector<8x1xf32>
    %529 = vector.broadcast %528 : vector<8x1xf32> to vector<8x1152xf32>
    %530 = arith.mulf %521, %529 : vector<8x1152xf32>
    %cst_273 = arith.constant 2.000000e-07 : f32
    %531 = vector.broadcast %cst_273 : f32 to vector<8x1152xf32>
    %532 = arith.addf %530, %531 : vector<8x1152xf32>
    %533 = tpu.concatenate %527, %532 in 0 : vector<8x1152xf32>, vector<8x1152xf32> -> vector<16x1152xf32>
    %c0_274 = arith.constant 0 : index
    %c0_275 = arith.constant 0 : index
    %c0_276 = arith.constant 0 : index
    %534 = vector.load %arg8[%c0_274, %c0_275, %c0_276] : memref<1x16x1152xf32, #tpu.memory_space<vmem>>, vector<1x16x1152xf32>
    %535 = vector.shape_cast %534 : vector<1x16x1152xf32> to vector<16x1152xf32>
    %536 = vector.shape_cast %533 : vector<16x1152xf32> to vector<1x16x1152xf32>
    tpu.vector_store %arg8[%c0_274, %c0_275, %c0_276], %536 {strides = array<i32>} : memref<1x16x1152xf32, #tpu.memory_space<vmem>>, vector<1x16x1152xf32>,
    return
  }
  func.func @transform_0(%arg0: i32) -> (i32, i32, i32) {
    %c0_i32 = arith.constant 0 : i32
    %c0_i32_0 = arith.constant 0 : i32
    %c0_i32_1 = arith.constant 0 : i32
    return %arg0, %c0_i32, %c0_i32_0 : i32, i32, i32
  }
  func.func @transform_1(%arg0: i32) -> (i32, i32, i32) {
    %c0_i32 = arith.constant 0 : i32
    %c0_i32_0 = arith.constant 0 : i32
    %c0_i32_1 = arith.constant 0 : i32
    %c0_i32_2 = arith.constant 0 : i32
    return %c0_i32, %c0_i32_0, %c0_i32_1 : i32, i32, i32
  }
  func.func @transform_2(%arg0: i32) -> (i32, i32, i32) {
    %c0_i32 = arith.constant 0 : i32
    %c0_i32_0 = arith.constant 0 : i32
    %c0_i32_1 = arith.constant 0 : i32
    %c0_i32_2 = arith.constant 0 : i32
    return %c0_i32, %c0_i32_0, %c0_i32_1 : i32, i32, i32
  }
  func.func @transform_3(%arg0: i32) -> (i32, i32, i32) {
    %c0_i32 = arith.constant 0 : i32
    %c0_i32_0 = arith.constant 0 : i32
    %c0_i32_1 = arith.constant 0 : i32
    %c0_i32_2 = arith.constant 0 : i32
    return %c0_i32, %c0_i32_0, %c0_i32_1 : i32, i32, i32
  }
  func.func @transform_4(%arg0: i32) -> (i32, i32, i32) {
    %c0_i32 = arith.constant 0 : i32
    %c0_i32_0 = arith.constant 0 : i32
    %c0_i32_1 = arith.constant 0 : i32
    %c0_i32_2 = arith.constant 0 : i32
    return %c0_i32, %c0_i32_0, %c0_i32_1 : i32, i32, i32
  }
  func.func @transform_5(%arg0: i32) -> (i32, i32) {
    %c0_i32 = arith.constant 0 : i32
    %c0_i32_0 = arith.constant 0 : i32
    %c0_i32_1 = arith.constant 0 : i32
    return %c0_i32, %c0_i32_0 : i32, i32
  }
  func.func @transform_6(%arg0: i32) -> (i32, i32) {
    %c0_i32 = arith.constant 0 : i32
    %c0_i32_0 = arith.constant 0 : i32
    %c0_i32_1 = arith.constant 0 : i32
    return %c0_i32, %c0_i32_0 : i32, i32
  }
  func.func @transform_7(%arg0: i32) -> (i32, i32, i32) {
    %c0_i32 = arith.constant 0 : i32
    %c0_i32_0 = arith.constant 0 : i32
    %c0_i32_1 = arith.constant 0 : i32
    return %arg0, %c0_i32, %c0_i32_0 : i32, i32, i32
  }
}

</mosaic_0001>

<bundles_post_ra>
// kernel: _lambda_.1
= control target key start
LH: loop header
LB: loop body
LE: loop exit
PB: predicated region body
PF: predicated region fallthrough
CT: control target
= control target key end

     0   :  { %s19361_s24 = smov 0   ;;  %s25769_s0 = inlined_call_operand.vmem [shape: f32[2,40,1354], index: 0, kind: input, shape index: {}]   ;;  %s25770_s1 = inlined_call_operand.vmem [shape: f32[9,16,40], index: 1, kind: input, shape index: {}]   ;;  %s25771_s2 = inlined_call_operand.vmem [shape: f32[9,16,16], index: 2, kind: input, shape index: {}]   ;;  %s25772_s3 = inlined_call_operand.vmem [shape: f32[4,16,16], index: 3, kind: input, shape index: {}]   ;;  %s25773_s4 = inlined_call_operand.vmem [shape: f32[3,16,16], index: 4, kind: input, shape index: {}]   ;;  %s25774_s5 = inlined_call_operand.vmem [shape: f32[8,20], index: 5, kind: input, shape index: {}]   ;;  %s25775_s6 = inlined_call_operand.vmem [shape: f32[1,1152], index: 6, kind: input, shape index: {}]   ;;  %s25776_s7 = inlined_call_operand.vmem [shape: f32[2,16,1152], index: 7, kind: output, shape index: {}]  }
   0x1 LB: > { %s15771_s25 = sadd.s32 4294967295, %s19282_s24   ;;  %p15775_p0 = scmp.ge.s32.totalorder %s19282_s24, 1  ;;  %s19282_s24 = sphi %s19361_s24, %s17_s24  }
   0x2   : > { %p237_p1 = scmp.lt.s32.totalorder %s19282_s24, 3 }
   0x4   : > { %p238_p2 = pnand %p15775_p0, %p237_p1 }
   0x6   : > { %241 = sbr.rel (%p238_p2) target bundleno = 2713 (0xa99), region = 48 }
   0xd   : > { %p269_p3 = scmp.lt.s32.totalorder %s15771_s25, 1  ;;  %s19284_s30 = smov 36   ;;  %v25804_v24 = vmov 0.0   ;;  %vm486_vm0 = vcmask 293888   ;;  %vm577_vm1 = vcmask 326656   ;;  %vm1067_vm2 = vcmask 302080  }
   0xe   : > { %648 = vmatprep.mubr.f32.mxu0 %v25804_v24  ;;  %6234 = vst [vmem:[#allocation2] sm:$0xff] %v25804_v24  ;;  %725 = vmatprep.mubr.f32.mxu1 %v25804_v24  ;;  %s19286_s8 = smov 37   ;;  %s19287_s9 = smov 35   ;;  %vm1650_vm3 = vcmask 285696   ;;  %vm2251_vm4 = vcmask 7168   ;;  %vm3362_vm5 = vcmask 1039360  }
   0xf   : > { %s26252_s25 = smov (!%p269_p3, %s15771_s25), 1  ;;  %s19288_s14 = smov 1   ;;  %vm3963_vm6 = vcmask 760832   ;;  %vm4564_vm7 = vcmask 752640   ;;  %vm5165_vm8 = vcmask 744448  }
  0x10   : > { %s17487_s26 = smul.u32 440, %s26252_s25  ;;  %s19289_s19 = smov 127  }
  0x11   : > { %s19290_s12 = smov 93   ;;  %s19292_s15 = smov 91  }
  0x12   : > { %s19375_s29 = scalar_lea.vmem %s25769_s0, %s17487_s26  ;;  %s19300_s21 = smov 70  }
  0x13   : > { %v284_v0 = vld [vmem:[%s19375_s29 + $0x8] sm:$0xff]  ;;  %v285_v1 = vld [vmem:[%s19375_s29 + $0x10] sm:$0xff]  ;;  %v283_v2 = vld [vmem:[%s19375_s29] sm:$0xff]  ;;  %s19301_s22 = smov 2   ;;  %s19302_s23 = smov 126  }
  0x14   : > { %v19380_v3 = vpack.i.bf16 %v285_v1, %v284_v0  ;;  %v293_v4 = vld [vmem:[%s19375_s29 + $0x58] sm:$0xff]  ;;  %v294_v5 = vld [vmem:[%s19375_s29 + $0x60] sm:$0xff]  ;;  %v295_v6 = vld [vmem:[%s19375_s29 + $0x68] sm:$0xff]  ;;  %s19303_s27 = smov 58   ;;  %s19304_s10 = smov 56  }
  0x15   : > { %v19385_v7 = vpack.i.bf16 %v293_v4, %v283_v2  ;;  %v304_v8 = vld [vmem:[%s19375_s29 + $0xb8] sm:$0xff]  ;;  %v305_v9 = vld [vmem:[%s19375_s29 + $0xc0] sm:$0xff]  ;;  %v19391_v10 = vpack.i.bf16 %v295_v6, %v294_v5  ;;  %v314_v12 = vld [vmem:[%s19375_s29 + $0x110] sm:$0xff]  ;;  %s19305_s11 = smov 54   ;;  %s17488_s26 = smul.u32 144, %s26252_s25 }
  0x16   : > { %17535 = vrot.lane.b32.xlu0 %v19380_v3, %s19284_s30  ;;  %v19395_v11 = vpack.i.bf16 %v305_v9, %v304_v8  ;;  %v315_v13 = vld [vmem:[%s19375_s29 + $0x118] sm:$0xff]  ;;  %v303_v14 = vld [vmem:[%s19375_s29 + $0xb0] sm:$0xff]  ;;  %v313_v15 = vld [vmem:[%s19375_s29 + $0x108] sm:$0xff] }
  0x17   : > { %17545 = vrot.lane.b32.xlu1 %v19385_v7, %s19284_s30  ;;  %v19401_v16 = vpack.i.bf16 %v313_v15, %v303_v14  ;;  %v19405_v17 = vpack.i.bf16 %v315_v13, %v314_v12  ;;  %v288_v18 = vld [vmem:[%s19375_s29 + $0x28] sm:$0xff]  ;;  %v289_v19 = vld [vmem:[%s19375_s29 + $0x30] sm:$0xff]  ;;  %v298_v20 = vld [vmem:[%s19375_s29 + $0x80] sm:$0xff]  ;;  %s25666_s28 = scalar_lea.vmem %s25776_s7, %s17488_s26 }
  0x18   : > { %v299_v21 = vld [vmem:[%s19375_s29 + $0x88] sm:$0xff]  ;;  %v19415_v22 = vpack.i.bf16 %v289_v19, %v288_v18  ;;  %v287_v26 = vld [vmem:[%s19375_s29 + $0x20] sm:$0xff]  ;;  %v297_v27 = vld [vmem:[%s19375_s29 + $0x78] sm:$0xff] }
  0x19   : > { %v19419_v23 = vpack.i.bf16 %v299_v21, %v298_v20  ;;  %v19428_v25 = vld [vmem:[%s19375_s29 + $0x168] sm:$0xff]  ;;  %v19434_v28 = vld [vmem:[%s19375_s29 + $0x170] sm:$0xff]  ;;  %v19438_v29 = vpack.i.bf16 %v297_v27, %v287_v26  ;;  %v308_v30 = vld [vmem:[%s19375_s29 + $0xd8] sm:$0xff] }
  0x1a   : > { %17540 = vrot.lane.b32.xlu0 %v19391_v10, %s19284_s30  ;;  %v309_v31 = vld [vmem:[%s19375_s29 + $0xe0] sm:$0xff]  ;;  %v318_v33 = vld [vmem:[%s19375_s29 + $0x130] sm:$0xff]  ;;  %v319_v34 = vld [vmem:[%s19375_s29 + $0x138] sm:$0xff] }
  0x1b   : > { %17550 = vrot.lane.b32.xlu1 %v19395_v11, %s19284_s30  ;;  %v19445_v32 = vld [vmem:[%s19375_s29 + $0x160] sm:$0xff]  ;;  %v19451_v35 = vpack.i.bf16 %v309_v31, %v308_v30  ;;  %v19455_v36 = vpack.i.bf16 %v319_v34, %v318_v33  ;;  %v307_v37 = vld [vmem:[%s19375_s29 + $0xd0] sm:$0xff]  ;;  %v317_v38 = vld [vmem:[%s19375_s29 + $0x128] sm:$0xff] }
  0x1c   : > { %v291_v39 = vld [vmem:[%s19375_s29 + $0x40] sm:$0xff]  ;;  %v292_v40 = vld [vmem:[%s19375_s29 + $0x48] sm:$0xff]  ;;  %v19463_v41 = vpack.i.bf16 %v317_v38, %v307_v37  ;;  %v301_v43 = vld [vmem:[%s19375_s29 + $0x98] sm:$0xff] }
  0x1d   : > { %v19467_v42 = vpack.i.bf16 %v292_v40, %v291_v39  ;;  %v302_v44 = vld [vmem:[%s19375_s29 + $0xa0] sm:$0xff]  ;;  %v19478_v46 = vld [vmem:[%s19375_s29 + $0x188] sm:$0xff]  ;;  %v19485_v47 = vld [vmem:[%s19375_s29 + $0x190] sm:$0xff] }
  0x1e   : > { %17555 = vrot.lane.b32.xlu0 %v19405_v17, %s19284_s30  ;;  %v19473_v45 = vpack.i.bf16 %v302_v44, %v301_v43  ;;  %v311_v48 = vld [vmem:[%s19375_s29 + $0xf0] sm:$0xff]  ;;  %v312_v49 = vld [vmem:[%s19375_s29 + $0xf8] sm:$0xff]  ;;  %v19490_v50 = vld [vmem:[%s19375_s29 + $0x180] sm:$0xff] }
  0x1f   : > { %17560 = vrot.lane.b32.xlu1 %v19401_v16, %s19284_s30  ;;  %v321_v51 = vld [vmem:[%s19375_s29 + $0x148] sm:$0xff]  ;;  %v322_v52 = vld [vmem:[%s19375_s29 + $0x150] sm:$0xff]  ;;  %v19496_v53 = vpack.i.bf16 %v312_v49, %v311_v48  ;;  %v19507_v55 = vld [vmem:[%s19375_s29 + $0x1a0] sm:$0xff] }
  0x20   : > { %v19500_v54 = vpack.i.bf16 %v322_v52, %v321_v51  ;;  %v19510_v56 = vld [vmem:[%s19375_s29 + $0x1a8] sm:$0xff] }
  0x22   : > { %17565 = vrot.lane.b32.xlu0 %v19415_v22, %s19284_s30 }
  0x23   : > { %17570 = vrot.lane.b32.xlu1 %v19419_v23, %s19284_s30 }
  0x26   : > { %468 = vrot.lane.b32.xlu0 %v19428_v25, %s19284_s30 }
  0x27   : > { %470 = vrot.lane.b32.xlu1 %v19434_v28, %s19284_s30 }
  0x2a   : > { %17575 = vrot.lane.b32.xlu0 %v19438_v29, %s19284_s30 }
  0x2b   : > { %466 = vrot.lane.b32.xlu1 %v19445_v32, %s19284_s30 }
  0x2e   : > { %17580 = vrot.lane.b32.xlu0 %v19451_v35, %s19284_s30 }
  0x2f   : > { %17585 = vrot.lane.b32.xlu1 %v19455_v36, %s19284_s30 }
  0x32   : > { %17590 = vrot.lane.b32.xlu0 %v19463_v41, %s19284_s30 }
  0x33   : > { %17595 = vrot.lane.b32.xlu1 %v19467_v42, %s19284_s30 }
  0x36   : > { %17600 = vrot.lane.b32.xlu0 %v19473_v45, %s19284_s30 }
  0x37   : > { %476 = vrot.lane.b32.xlu1 %v19478_v46, %s19284_s30 }
  0x3a   : > { %478 = vrot.lane.b32.xlu0 %v19485_v47, %s19284_s30 }
  0x3b   : > { %474 = vrot.lane.b32.xlu1 %v19490_v50, %s19284_s30 }
  0x3e   : > { %17605 = vrot.lane.b32.xlu0 %v19496_v53, %s19284_s30 }
  0x3f   : > { %17610 = vrot.lane.b32.xlu1 %v19500_v54, %s19284_s30 }
  0x42   : > { %482 = vrot.lane.b32.xlu0 %v19507_v55, %s19284_s30 }
  0x43   : > { %484 = vrot.lane.b32.xlu1 %v19510_v56, %s19284_s30 }
  0x46   : > { %17615 = vrot.lane.b32.xlu0 %v19380_v3, %s19286_s8 }
  0x47   : > { %17620 = vrot.lane.b32.xlu1 %v19391_v10, %s19286_s8 }
  0x4a   : > { %17625 = vrot.lane.b32.xlu0 %v19385_v7, %s19286_s8 }
  0x4b   : > { %17630 = vrot.lane.b32.xlu1 %v19395_v11, %s19286_s8 }
  0x4e   : > { %17635 = vrot.lane.b32.xlu0 %v19405_v17, %s19286_s8 }
  0x4f   : > { %17640 = vrot.lane.b32.xlu1 %v19401_v16, %s19286_s8 }
  0x52   : > { %17645 = vrot.lane.b32.xlu0 %v19415_v22, %s19286_s8 }
  0x53   : > { %17650 = vrot.lane.b32.xlu1 %v19419_v23, %s19286_s8 }
  0x56   : > { %1049 = vrot.lane.b32.xlu0 %v19428_v25, %s19286_s8 }
  0x57   : > { %1051 = vrot.lane.b32.xlu1 %v19434_v28, %s19286_s8 }
  0x5a   : > { %17655 = vrot.lane.b32.xlu0 %v19438_v29, %s19286_s8 }
  0x5b   : > { %1047 = vrot.lane.b32.xlu1 %v19445_v32, %s19286_s8 }
  0x5e   : > { %17660 = vrot.lane.b32.xlu0 %v19451_v35, %s19286_s8 }
  0x5f   : > { %17665 = vrot.lane.b32.xlu1 %v19455_v36, %s19286_s8 }
  0x62   : > { %17670 = vrot.lane.b32.xlu0 %v19463_v41, %s19286_s8 }
  0x63   : > { %17675 = vrot.lane.b32.xlu1 %v19467_v42, %s19286_s8 }
  0x66   : > { %17680 = vrot.lane.b32.xlu0 %v19473_v45, %s19286_s8 }
  0x67   : > { %1057 = vrot.lane.b32.xlu1 %v19478_v46, %s19286_s8 }
  0x6a   : > { %1059 = vrot.lane.b32.xlu0 %v19485_v47, %s19286_s8 }
  0x6b   : > { %1055 = vrot.lane.b32.xlu1 %v19490_v50, %s19286_s8 }
  0x6e   : > { %17685 = vrot.lane.b32.xlu0 %v19496_v53, %s19286_s8 }
  0x6f   : > { %17690 = vrot.lane.b32.xlu1 %v19500_v54, %s19286_s8 }
  0x72   : > { %1063 = vrot.lane.b32.xlu0 %v19507_v55, %s19286_s8 }
  0x73   : > { %1065 = vrot.lane.b32.xlu1 %v19510_v56, %s19286_s8 }
  0x76   : > { %17695 = vrot.lane.b32.xlu0 %v19380_v3, %s19287_s9 }
  0x77   : > { %17700 = vrot.lane.b32.xlu1 %v19391_v10, %s19287_s9 }
  0x7a   : > { %17705 = vrot.lane.b32.xlu0 %v19385_v7, %s19287_s9 }
  0x7b   : > { %17710 = vrot.lane.b32.xlu1 %v19395_v11, %s19287_s9 }
  0x7e   : > { %17715 = vrot.lane.b32.xlu0 %v19405_v17, %s19287_s9 }
  0x7f   : > { %17720 = vrot.lane.b32.xlu1 %v19401_v16, %s19287_s9 }
  0x82   : > { %17725 = vrot.lane.b32.xlu0 %v19415_v22, %s19287_s9 }
  0x83   : > { %17730 = vrot.lane.b32.xlu1 %v19419_v23, %s19287_s9 }
  0x86   : > { %1632 = vrot.lane.b32.xlu0 %v19428_v25, %s19287_s9 }
  0x87   : > { %1634 = vrot.lane.b32.xlu1 %v19434_v28, %s19287_s9 }
  0x88   : > { %v19584_v57 = vpop.permute.xlu0 %17535 }
  0x89   : > { %v17546_v58 = vpop.permute.xlu1 %17545  ;;  %v25792_v59 = vunpack.i.h.bf16 %v19584_v57  ;;  %v17537_v60 = vunpack.i.l.bf16 %v19584_v57 }
  0x8a   : > { %17735 = vrot.lane.b32.xlu0 %v19438_v29, %s19287_s9  ;;  %v17548_v61 = vunpack.i.h.bf16 %v17546_v58  ;;  %v17547_v62 = vunpack.i.l.bf16 %v17546_v58 }
  0x8b   : > { %1630 = vrot.lane.b32.xlu1 %v19445_v32, %s19287_s9  ;;  %v488_v6 = vsel %vm486_vm0, %v17537_v60, %v25792_v59 }
  0x8c   : > { %v19592_v63 = vpop.permute.xlu0 %17540  ;;  %v487_v9 = vsel %vm486_vm0, %v17547_v62, %v17537_v60  ;;  %v19658_v62 = vld [vmem:[%s19375_s29 + $0x70] sm:$0xff] }
  0x8d   : > { %v25789_v0 = vunpack.i.h.bf16 %v19592_v63  ;;  %v17542_v1 = vunpack.i.l.bf16 %v19592_v63  ;;  %v19596_v2 = vpop.permute.xlu1 %17550 }
  0x8e   : > { %v25784_v4 = vunpack.i.h.bf16 %v19596_v2  ;;  %v17552_v5 = vunpack.i.l.bf16 %v19596_v2  ;;  %17740 = vrot.lane.b32.xlu0 %v19451_v35, %s19287_s9 }
  0x8f   : > { %17745 = vrot.lane.b32.xlu1 %v19455_v36, %s19287_s9  ;;  %v497_v8 = vsel %vm486_vm0, %v17542_v1, %v25789_v0  ;;  %v496_v12 = vsel %vm486_vm0, %v17548_v61, %v17542_v1  ;;  %v19655_v61 = vld [vmem:[%s19375_s29 + $0x18] sm:$0xff] }
  0x90   : > { %v19612_v13 = vpop.permute.xlu0 %17555  ;;  %v16429_v14 = vpack.c.bf16 %v497_v8, %v488_v6  ;;  %v16431_v15 = vpack.c.bf16 %v496_v12, %v487_v9  ;;  %v506_v21 = vsel %vm486_vm0, %v17552_v5, %v25784_v4  ;;  %v19667_v9 = vld [vmem:[%s25770_s1 + $0x10] sm:$0xff] }
  0x91   : > { %v25783_v18 = vunpack.i.h.bf16 %v19612_v13  ;;  %v17557_v19 = vunpack.i.l.bf16 %v19612_v13  ;;  %v17561_v20 = vpop.permute.xlu1 %17560 }
  0x92   : > { %v17563_v26 = vunpack.i.h.bf16 %v17561_v20  ;;  %v17562_v27 = vunpack.i.l.bf16 %v17561_v20  ;;  %16430 = vmatprep.subr.bf16.mxu0 %v16429_v14  ;;  %17750 = vrot.lane.b32.xlu0 %v19463_v41, %s19287_s9 }
  0x93   : > { %17755 = vrot.lane.b32.xlu1 %v19467_v42, %s19287_s9  ;;  %16432 = vmatpush1.bf16.msra.mxu0 %v16431_v15  ;;  %v515_v30 = vsel %vm486_vm0, %v17557_v19, %v25783_v18  ;;  %v19674_v15 = vpack.i.bf16 %v19658_v62, %v19655_v61 }
  0x94   : > { %v19626_v31 = vpop.permute.xlu0 %17565  ;;  %v16433_v33 = vpack.c.bf16 %v515_v30, %v506_v21  ;;  %v505_v34 = vsel %vm486_vm0, %v17562_v27, %v17552_v5  ;;  %v514_v37 = vsel %vm486_vm0, %v17563_v26, %v17557_v19 }
  0x95   : > { %v19630_v38 = vpop.permute.xlu1 %17570  ;;  %v16435_v39 = vpack.c.bf16 %v514_v37, %v505_v34  ;;  %v25782_v40 = vunpack.i.h.bf16 %v19626_v31  ;;  %v17567_v43 = vunpack.i.l.bf16 %v19626_v31  ;;  %v19696_v34 = vld [vmem:[%s25770_s1 + $0x18] sm:$0xff] }
  0x96   : > { %17760 = vrot.lane.b32.xlu0 %v19473_v45, %s19287_s9  ;;  %16434 = vmatprep.subr.bf16.mxu0 %v16433_v33  ;;  %v25779_v44 = vunpack.i.h.bf16 %v19630_v38  ;;  %v17572_v48 = vunpack.i.l.bf16 %v19630_v38 }
  0x97   : > { %1640 = vrot.lane.b32.xlu1 %v19478_v46, %s19287_s9  ;;  %16436 = vmatpush1.bf16.msra.mxu0 %v16435_v39  ;;  %v492_v58 = vsel %vm486_vm0, %v17567_v43, %v25782_v40  ;;  %v19798_v40 = vld [vmem:[%s19375_s29 + $0x178] sm:$0xff] }
  0x98   : > { %v469_v49 = vpop.permute.xlu0 %468  ;;  %v501_v60 = vsel %vm486_vm0, %v17572_v48, %v25779_v44 }
  0x99   : > { %v19640_v51 = vpop.permute.xlu1 %470  ;;  %v16445_v14 = vpack.c.bf16 %v501_v60, %v492_v58 }
  0x9a   : > { %1642 = vrot.lane.b32.xlu0 %v19485_v47, %s19287_s9  ;;  %v524_v52 = vsel %vm486_vm0, %v469_v49, %v19640_v51 }
  0x9b   : > { %1638 = vrot.lane.b32.xlu1 %v19490_v50, %s19287_s9  ;;  %592 = vmatprep.subr.mxu0 %v524_v52 }
  0x9c   : > { %v19660_v1 = vpop.permute.xlu0 %17575 }
  0x9d   : > { %v25793_v5 = vunpack.i.h.bf16 %v19660_v1  ;;  %v25798_v6 = vunpack.i.l.bf16 %v19660_v1  ;;  %v467_v8 = vpop.permute.xlu1 %466 }
  0x9e   : > { %17765 = vrot.lane.b32.xlu0 %v19496_v53, %s19287_s9  ;;  %v523_v12 = vsel %vm486_vm0, %v467_v8, %v469_v49 }
  0x9f   : > { %v491_v19 = vsel %vm486_vm0, %v25798_v6, %v17567_v43  ;;  %v500_v20 = vsel %vm486_vm0, %v25793_v5, %v17572_v48  ;;  %17770 = vrot.lane.b32.xlu1 %v19500_v54, %s19287_s9  ;;  %593 = vmatpush1.msra.mxu0 %v523_v12 }
  0xa0   : > { %16446 = vmatprep.subr.bf16.mxu0 %v16445_v14  ;;  %v19684_v21 = vpop.permute.xlu0 %17580  ;;  %15780 = vmatmul.mubr.msk.f32.vlgmr.msra.gmra.mrb[0].mxu0 %vm577_vm1, %v19667_v9  ;;  %v16447_v26 = vpack.c.bf16 %v500_v20, %v491_v19 }
  0xa1   : > { %v25778_v27 = vunpack.i.h.bf16 %v19684_v21  ;;  %v17582_v30 = vunpack.i.l.bf16 %v19684_v21  ;;  %v19690_v33 = vpop.permute.xlu1 %17585  ;;  %654 = vmatprep.mubr.f32.mxu0 %v25804_v24 }
  0xa2   : > { %v25777_v37 = vunpack.i.h.bf16 %v19690_v33  ;;  %v17587_v39 = vunpack.i.l.bf16 %v19690_v33  ;;  %17775 = vrot.lane.b32.xlu0 %v19674_v15, %s19284_s30  ;;  %16448 = vmatpush1.bf16.msra.mxu0 %v16447_v26  ;;  %v19732_v26 = vld [vmem:[%s19375_s29 + $0xc8] sm:$0xff] }
  0xa3   : > { %1646 = vrot.lane.b32.xlu1 %v19507_v55, %s19287_s9  ;;  %v510_v43 = vsel %vm486_vm0, %v17582_v30, %v25778_v27 }
  0xa4   : > { %v19707_v48 = vpop.permute.xlu0 %17590  ;;  %v519_v49 = vsel %vm486_vm0, %v17587_v39, %v25777_v37  ;;  %15781 = vmatmul.mubr.msk.f32.gmra.mrb[2].mxu0 %vm577_vm1, %v19696_v34 }
  0xa5   : > { %v25787_v52 = vunpack.i.h.bf16 %v19707_v48  ;;  %v25788_v58 = vunpack.i.l.bf16 %v19707_v48  ;;  %v19716_v60 = vpop.permute.xlu1 %17595  ;;  %v16449_v8 = vpack.c.bf16 %v519_v49, %v510_v43  ;;  %802 = vmatprep.mubr.f32.mxu0 %v25804_v24  ;;  %v19735_v43 = vld [vmem:[%s19375_s29 + $0x120] sm:$0xff] }
  0xa6   : > { %1648 = vrot.lane.b32.xlu0 %v19510_v56, %s19287_s9  ;;  %v17598_v19 = vunpack.i.h.bf16 %v19716_v60  ;;  %v25781_v20 = vunpack.i.l.bf16 %v19716_v60 }
  0xa7   : > { %v509_v12 = vsel %vm486_vm0, %v25788_v58, %v17582_v30  ;;  %v518_v14 = vsel %vm486_vm0, %v25787_v52, %v17587_v39  ;;  %17780 = vrot.lane.b32.xlu1 %v19380_v3, %s19288_s14  ;;  %16450 = vmatprep.subr.bf16.mxu0 %v16449_v8  ;;  %v19745_v3 = vpack.i.bf16 %v19735_v43, %v19732_v26 }
  0xa8   : > { %v19737_v49 = vpop.permute.xlu0 %17600  ;;  %v16451_v30 = vpack.c.bf16 %v518_v14, %v509_v12  ;;  %v495_v8 = vsel %vm486_vm0, %v25781_v20, %v17598_v19  ;;  %v19771_v19 = vld [vmem:[%s19375_s29 + $0x90] sm:$0xff] }
  0xa9   : > { %v17603_v37 = vunpack.i.h.bf16 %v19737_v49  ;;  %v25780_v39 = vunpack.i.l.bf16 %v19737_v49  ;;  %v477_v27 = vpop.permute.xlu1 %476 }
  0xaa   : > { %17785 = vrot.lane.b32.xlu0 %v19391_v10, %s19288_s14  ;;  %16452 = vmatpush1.bf16.msra.mxu0 %v16451_v30 }
  0xab   : > { %17790 = vrot.lane.b32.xlu1 %v19385_v7, %s19288_s14  ;;  %v504_v12 = vsel %vm486_vm0, %v25780_v39, %v17603_v37  ;;  %v19768_v37 = vld [vmem:[%s19375_s29 + $0x38] sm:$0xff] }
  0xac   : > { %v19755_v14 = vpop.permute.xlu0 %478  ;;  %v16461_v44 = vpack.c.bf16 %v504_v12, %v495_v8 }
  0xad   : > { %v19757_v10 = vpop.permute.xlu1 %474  ;;  %v528_v30 = vsel %vm486_vm0, %v477_v27, %v19755_v14 }
  0xae   : > { %17795 = vrot.lane.b32.xlu0 %v19745_v3, %s19284_s30  ;;  %746 = vmatprep.subr.mxu0 %v528_v30  ;;  %v527_v7 = vsel %vm486_vm0, %v19757_v10, %v477_v27 }
  0xaf   : > { %17800 = vrot.lane.b32.xlu1 %v19395_v11, %s19288_s14  ;;  %747 = vmatpush1.msra.mxu0 %v527_v7  ;;  %v19788_v7 = vpack.i.bf16 %v19771_v19, %v19768_v37 }
  0xb0   : > { %v19773_v39 = vpop.permute.xlu0 %17605  ;;  %16462 = vmatprep.subr.bf16.mxu0 %v16461_v44  ;;  %15784 = vmatmul.mubr.msk.f32.vlgmr.msra.gmra.mrb[4].mxu0 %vm577_vm1, %v19667_v9 }
  0xb1   : > { %v17608_v30 = vunpack.i.h.bf16 %v19773_v39  ;;  %v25786_v27 = vunpack.i.l.bf16 %v19773_v39  ;;  %v19779_v8 = vpop.permute.xlu1 %17610  ;;  %16464 = vmatpush3.bf16.msra.mxu0 %v16461_v44  ;;  %808 = vmatprep.mubr.f32.mxu0 %v25804_v24 }
  0xb2   : > { %v17613_v11 = vunpack.i.h.bf16 %v19779_v8  ;;  %v25785_v12 = vunpack.i.l.bf16 %v19779_v8  ;;  %17805 = vrot.lane.b32.xlu0 %v19405_v17, %s19288_s14 }
  0xb3   : > { %17810 = vrot.lane.b32.xlu1 %v19401_v16, %s19288_s14  ;;  %v513_v44 = vsel %vm486_vm0, %v25786_v27, %v17608_v30 }
  0xb4   : > { %v19795_v20 = vpop.permute.xlu0 %482  ;;  %v522_v18 = vsel %vm486_vm0, %v25785_v12, %v17613_v11  ;;  %15785 = vmatmul.mubr.msk.f32.gmra.mrb[6].mxu0 %vm577_vm1, %v19696_v34 }
  0xb5   : > { %v485_v17 = vpop.permute.xlu1 %484  ;;  %v16465_v4 = vpack.c.bf16 %v522_v18, %v513_v44  ;;  %16210 = vmatprep.mubr.msk.f32.mxu0 %vm577_vm1, %v19667_v9 }
  0xb6   : > { %17815 = vrot.lane.b32.xlu0 %v19788_v7, %s19284_s30  ;;  %v531_v30 = vsel %vm486_vm0, %v19795_v20, %v485_v17 }
  0xb7   : > { %472 = vrot.lane.b32.xlu1 %v19798_v40, %s19284_s30  ;;  %16466 = vmatprep.subr.bf16.mxu0 %v16465_v4 }
  0xb8   : > { %16468 = vmatpush3.bf16.msra.mxu0 %v16465_v4  ;;  %v19811_v16 = vpop.permute.xlu0 %17615 }
  0xb9   : > { %v25790_v11 = vunpack.i.h.bf16 %v19811_v16  ;;  %v17617_v18 = vunpack.i.l.bf16 %v19811_v16  ;;  %v19817_v44 = vpop.permute.xlu1 %17620  ;;  %16208 = vmatprep.subr.mxu0 %v531_v30 }
  0xba   : > { %v25791_v9 = vunpack.i.h.bf16 %v19817_v44  ;;  %v17622_v12 = vunpack.i.l.bf16 %v19817_v44  ;;  %17820 = vrot.lane.b32.xlu0 %v19415_v22, %s19288_s14 }
  0xbb   : > { %17825 = vrot.lane.b32.xlu1 %v19419_v23, %s19288_s14  ;;  %v1069_v4 = vsel %vm1067_vm2, %v17617_v18, %v25790_v11 }
  0xbc   : > { %16209 = vmatpush3.msra.mxu0 %v531_v30  ;;  %v17626_v17 = vpop.permute.xlu0 %17625  ;;  %v1078_v27 = vsel %vm1067_vm2, %v17622_v12, %v25791_v9 }
  0xbd   : > { %v17628_v52 = vunpack.i.h.bf16 %v17626_v17  ;;  %v17627_v58 = vunpack.i.l.bf16 %v17626_v17  ;;  %v19831_v0 = vpop.permute.xlu1 %17630  ;;  %v16469_v22 = vpack.c.bf16 %v1078_v27, %v1069_v4  ;;  %16211 = vmatmul.mubr.msk.f32.vlgmr.msra.gmra.mrb[8].mxu0 %vm577_vm1, %v19696_v34  ;;  %v19845_v27 = vld [vmem:[%s19375_s29 + $0xe8] sm:$0xff]  ;;  %v19848_v34 = vld [vmem:[%s19375_s29 + $0x140] sm:$0xff] }
  0xbe   : > { %v25794_v23 = vunpack.i.h.bf16 %v19831_v0  ;;  %v17632_v11 = vunpack.i.l.bf16 %v19831_v0  ;;  %2233 = vrot.lane.b32.xlu0 %v19428_v25, %s19288_s14  ;;  %1228 = vmatprep.mubr.f32.mxu0 %v25804_v24 }
  0xbf   : > { %v1068_v30 = vsel %vm1067_vm2, %v17627_v58, %v17617_v18  ;;  %v1077_v9 = vsel %vm1067_vm2, %v17628_v52, %v17622_v12  ;;  %2235 = vrot.lane.b32.xlu1 %v19434_v28, %s19288_s14  ;;  %16470 = vmatprep.subr.bf16.mxu0 %v16469_v22  ;;  %v19861_v28 = vpack.i.bf16 %v19848_v34, %v19845_v27 }
  0xc0   : > { %v19850_v4 = vpop.permute.xlu0 %17635  ;;  %v16471_v17 = vpack.c.bf16 %v1077_v9, %v1068_v30  ;;  %v1087_v52 = vsel %vm1067_vm2, %v17632_v11, %v25794_v23 }
  0xc1   : > { %v25795_v59 = vunpack.i.h.bf16 %v19850_v4  ;;  %v17637_v25 = vunpack.i.l.bf16 %v19850_v4  ;;  %v17641_v5 = vpop.permute.xlu1 %17640 }
  0xc2   : > { %v17643_v58 = vunpack.i.h.bf16 %v17641_v5  ;;  %v17642_v12 = vunpack.i.l.bf16 %v17641_v5  ;;  %17830 = vrot.lane.b32.xlu0 %v19438_v29, %s19288_s14  ;;  %16472 = vmatpush1.bf16.msra.mxu0 %v16471_v17 }
  0xc3   : > { %2231 = vrot.lane.b32.xlu1 %v19445_v32, %s19288_s14  ;;  %v1096_v18 = vsel %vm1067_vm2, %v17637_v25, %v25795_v59 }
  0xc4   : > { %v1095_v9 = vsel %vm1067_vm2, %v17643_v58, %v17637_v25  ;;  %v1086_v22 = vsel %vm1067_vm2, %v17642_v12, %v17632_v11  ;;  %v19870_v5 = vpop.permute.xlu0 %17645  ;;  %v16473_v30 = vpack.c.bf16 %v1096_v18, %v1087_v52  ;;  %v19891_v12 = vld [vmem:[%s19375_s29 + $0x198] sm:$0xff] }
  0xc5   : > { %v19872_v29 = vpop.permute.xlu1 %17650  ;;  %v16475_v17 = vpack.c.bf16 %v1095_v9, %v1086_v22  ;;  %v25797_v32 = vunpack.i.h.bf16 %v19870_v5  ;;  %v17647_v23 = vunpack.i.l.bf16 %v19870_v5 }
  0xc6   : > { %17835 = vrot.lane.b32.xlu0 %v19861_v28, %s19284_s30  ;;  %16474 = vmatprep.subr.bf16.mxu0 %v16473_v30  ;;  %v25796_v59 = vunpack.i.h.bf16 %v19872_v29  ;;  %v17652_v25 = vunpack.i.l.bf16 %v19872_v29 }
  0xc7   : > { %17840 = vrot.lane.b32.xlu1 %v19451_v35, %s19288_s14  ;;  %16476 = vmatpush1.bf16.msra.mxu0 %v16475_v17  ;;  %v1073_v35 = vsel %vm1067_vm2, %v17647_v23, %v25797_v32 }
  0xc8   : > { %v1050_v11 = vpop.permute.xlu0 %1049  ;;  %v1082_v18 = vsel %vm1067_vm2, %v17652_v25, %v25796_v59 }
  0xc9   : > { %v19882_v52 = vpop.permute.xlu1 %1051 }
  0xca   : > { %17845 = vrot.lane.b32.xlu0 %v19455_v36, %s19288_s14  ;;  %v1105_v58 = vsel %vm1067_vm2, %v1050_v11, %v19882_v52 }
  0xcb   : > { %17850 = vrot.lane.b32.xlu1 %v19463_v41, %s19288_s14  ;;  %1172 = vmatprep.subr.mxu0 %v1105_v58  ;;  %v19906_v41 = vld [vmem:[%s25770_s1] sm:$0xff]  ;;  %v16485_v58 = vpack.c.bf16 %v1082_v18, %v1073_v35 }
  0xcc   : > { %v19899_v9 = vpop.permute.xlu0 %17655 }
  0xcd   : > { %v25799_v36 = vunpack.i.h.bf16 %v19899_v9  ;;  %v25802_v22 = vunpack.i.l.bf16 %v19899_v9  ;;  %v1048_v30 = vpop.permute.xlu1 %1047 }
  0xce   : > { %v1104_v17 = vsel %vm1067_vm2, %v1048_v30, %v1050_v11  ;;  %480 = vrot.lane.b32.xlu0 %v19891_v12, %s19284_s30 }
  0xcf   : > { %v1072_v59 = vsel %vm1067_vm2, %v25802_v22, %v17647_v23  ;;  %v1081_v32 = vsel %vm1067_vm2, %v25799_v36, %v17652_v25  ;;  %17855 = vrot.lane.b32.xlu1 %v19674_v15, %s19286_s8  ;;  %1173 = vmatpush1.msra.mxu0 %v1104_v17  ;;  %v19931_v25 = vld [vmem:[%s25770_s1 + $0x8] sm:$0xff] }
  0xd0   : > { %16486 = vmatprep.subr.bf16.mxu0 %v16485_v58  ;;  %v19919_v6 = vpop.permute.xlu0 %17660  ;;  %15790 = vmatmul.mubr.msk.f32.vlgmr.msra.gmra.mrb[0].mxu0 %vm577_vm1, %v19906_v41  ;;  %v16487_v11 = vpack.c.bf16 %v1081_v32, %v1072_v59 }
  0xd1   : > { %25969 = vst [vmem:[#allocation5_spill] sm:$0xff] %v19919_v6  ;;  %v25800_v35 = vunpack.i.h.bf16 %v19919_v6  ;;  %v17662_v18 = vunpack.i.l.bf16 %v19919_v6  ;;  %v19925_v23 = vpop.permute.xlu1 %17665  ;;  %1234 = vmatprep.mubr.f32.mxu0 %v25804_v24  ;;  %v3196_v6 = vld [vmem:[%s19375_s29 + $0x130] sm:$0xff] }
  0xd2   : > { %25970 = vst [vmem:[#allocation6_spill] sm:$0xff] %v19925_v23  ;;  %v25801_v30 = vunpack.i.h.bf16 %v19925_v23  ;;  %v17667_v17 = vunpack.i.l.bf16 %v19925_v23  ;;  %17860 = vrot.lane.b32.xlu0 %v19467_v42, %s19288_s14  ;;  %16488 = vmatpush1.bf16.msra.mxu0 %v16487_v11 }
  0xd3   : > { %17865 = vrot.lane.b32.xlu1 %v19473_v45, %s19288_s14  ;;  %v1091_v59 = vsel %vm1067_vm2, %v17662_v18, %v25800_v35 }
  0xd4   : > { %v19942_v32 = vpop.permute.xlu0 %17670  ;;  %v1100_v58 = vsel %vm1067_vm2, %v17667_v17, %v25801_v30  ;;  %15791 = vmatmul.mubr.msk.f32.gmra.mrb[2].mxu0 %vm577_vm1, %v19931_v25 }
  0xd5   : > { %v25810_v36 = vunpack.i.h.bf16 %v19942_v32  ;;  %v25811_v42 = vunpack.i.l.bf16 %v19942_v32  ;;  %v19951_v11 = vpop.permute.xlu1 %17675  ;;  %v16489_v45 = vpack.c.bf16 %v1100_v58, %v1091_v59  ;;  %1382 = vmatprep.mubr.f32.mxu0 %v25804_v24 }
  0xd6   : > { %2241 = vrot.lane.b32.xlu0 %v19478_v46, %s19288_s14  ;;  %v17678_v22 = vunpack.i.h.bf16 %v19951_v11  ;;  %v25807_v23 = vunpack.i.l.bf16 %v19951_v11 }
  0xd7   : > { %v1090_v35 = vsel %vm1067_vm2, %v25811_v42, %v17662_v18  ;;  %v1099_v30 = vsel %vm1067_vm2, %v25810_v36, %v17667_v17  ;;  %2243 = vrot.lane.b32.xlu1 %v19485_v47, %s19288_s14  ;;  %16490 = vmatprep.subr.bf16.mxu0 %v16489_v45 }
  0xd8   : > { %v19966_v59 = vpop.permute.xlu0 %17680  ;;  %v16491_v58 = vpack.c.bf16 %v1099_v30, %v1090_v35  ;;  %v1076_v47 = vsel %vm1067_vm2, %v25807_v23, %v17678_v22 }
  0xd9   : > { %v17683_v46 = vunpack.i.h.bf16 %v19966_v59  ;;  %v25806_v24 = vunpack.i.l.bf16 %v19966_v59  ;;  %v1058_v18 = vpop.permute.xlu1 %1057 }
  0xda   : > { %2239 = vrot.lane.b32.xlu0 %v19490_v50, %s19288_s14  ;;  %16492 = vmatpush1.bf16.msra.mxu0 %v16491_v58 }
  0xdb   : > { %17870 = vrot.lane.b32.xlu1 %v19745_v3, %s19286_s8  ;;  %v1085_v35 = vsel %vm1067_vm2, %v25806_v24, %v17683_v46 }
  0xdc   : > { %v19980_v30 = vpop.permute.xlu0 %1059  ;;  %v16501_v58 = vpack.c.bf16 %v1085_v35, %v1076_v47 }
  0xdd   : > { %25971 = vst [vmem:[#allocation7_spill] sm:$0xff] %v19980_v30  ;;  %v19982_v17 = vpop.permute.xlu1 %1055  ;;  %v1109_v45 = vsel %vm1067_vm2, %v1058_v18, %v19980_v30 }
  0xde   : > { %17875 = vrot.lane.b32.xlu0 %v19496_v53, %s19288_s14  ;;  %1326 = vmatprep.subr.mxu0 %v1109_v45  ;;  %v1108_v50 = vsel %vm1067_vm2, %v19982_v17, %v1058_v18  ;;  %v25974_v45 = vmov 0.0  }
  0xdf   : > { %17880 = vrot.lane.b32.xlu1 %v19500_v54, %s19288_s14  ;;  %1327 = vmatpush1.msra.mxu0 %v1108_v50 }
  0xe0   : > { %v19992_v22 = vpop.permute.xlu0 %17685  ;;  %16502 = vmatprep.subr.bf16.mxu0 %v16501_v58  ;;  %15794 = vmatmul.mubr.msk.f32.vlgmr.msra.gmra.mrb[4].mxu0 %vm577_vm1, %v19906_v41 }
  0xe1   : > { %25972 = vst [vmem:[#allocation8_spill] sm:$0xff] %v19992_v22  ;;  %v17688_v46 = vunpack.i.h.bf16 %v19992_v22  ;;  %v25809_v24 = vunpack.i.l.bf16 %v19992_v22  ;;  %v19998_v53 = vpop.permute.xlu1 %17690  ;;  %16504 = vmatpush3.bf16.msra.mxu0 %v16501_v58  ;;  %1388 = vmatprep.mubr.f32.mxu0 %v25974_v45 }
  0xe2   : > { %25973 = vst [vmem:[#allocation9_spill] sm:$0xff] %v19998_v53  ;;  %v17693_v18 = vunpack.i.h.bf16 %v19998_v53  ;;  %v25808_v54 = vunpack.i.l.bf16 %v19998_v53  ;;  %17885 = vrot.lane.b32.xlu0 %v19788_v7, %s19286_s8  ;;  %v3177_v53 = vld [vmem:[%s19375_s29 + $0x88] sm:$0xff] }
  0xe3   : > { %1053 = vrot.lane.b32.xlu1 %v19798_v40, %s19286_s8  ;;  %v1094_v47 = vsel %vm1067_vm2, %v25809_v24, %v17688_v46 }
  0xe4   : > { %v20010_v35 = vpop.permute.xlu0 %1063  ;;  %v1103_v50 = vsel %vm1067_vm2, %v25808_v54, %v17693_v18  ;;  %15795 = vmatmul.mubr.msk.f32.gmra.mrb[6].mxu0 %vm577_vm1, %v19931_v25 }
  0xe5   : > { %25975 = vst [vmem:[#allocation10_spill] sm:$0xff] %v20010_v35  ;;  %v1066_v58 = vpop.permute.xlu1 %1065  ;;  %v16505_v23 = vpack.c.bf16 %v1103_v50, %v1094_v47  ;;  %16223 = vmatprep.mubr.msk.f32.mxu0 %vm577_vm1, %v19906_v41 }
  0xe6   : > { %2247 = vrot.lane.b32.xlu0 %v19507_v55, %s19288_s14  ;;  %v1112_v18 = vsel %vm1067_vm2, %v20010_v35, %v1066_v58 }
  0xe7   : > { %2249 = vrot.lane.b32.xlu1 %v19510_v56, %s19288_s14  ;;  %16506 = vmatprep.subr.bf16.mxu0 %v16505_v23 }
  0xe8   : > { %16508 = vmatpush3.bf16.msra.mxu0 %v16505_v23  ;;  %v20023_v46 = vpop.permute.xlu0 %17695 }
  0xe9   : > { %25976 = vst [vmem:[#allocation11_spill] sm:$0xff] %v20023_v46  ;;  %v25816_v54 = vunpack.i.h.bf16 %v20023_v46  ;;  %v17697_v47 = vunpack.i.l.bf16 %v20023_v46  ;;  %v20029_v50 = vpop.permute.xlu1 %17700  ;;  %16221 = vmatprep.subr.mxu0 %v1112_v18 }
  0xea   : > { %25977 = vst [vmem:[#allocation12_spill] sm:$0xff] %v20029_v50  ;;  %v25815_v55 = vunpack.i.h.bf16 %v20029_v50  ;;  %v17702_v41 = vunpack.i.l.bf16 %v20029_v50  ;;  %17890 = vrot.lane.b32.xlu0 %v19861_v28, %s19286_s8 }
  0xeb   : > { %1061 = vrot.lane.b32.xlu1 %v19891_v12, %s19286_s8  ;;  %v1652_v56 = vsel %vm1650_vm3, %v17697_v47, %v25816_v54 }
  0xec   : > { %16222 = vmatpush3.msra.mxu0 %v1112_v18  ;;  %v17706_v23 = vpop.permute.xlu0 %17705  ;;  %v1661_v58 = vsel %vm1650_vm3, %v17702_v41, %v25815_v55 }
  0xed   : > { %v17708_v24 = vunpack.i.h.bf16 %v17706_v23  ;;  %v17707_v36 = vunpack.i.l.bf16 %v17706_v23  ;;  %v20043_v42 = vpop.permute.xlu1 %17710  ;;  %v16509_v30 = vpack.c.bf16 %v1661_v58, %v1652_v56  ;;  %16224 = vmatmul.mubr.msk.f32.vlgmr.msra.gmra.mrb[8].mxu0 %vm577_vm1, %v19931_v25 }
  0xee   : > { %25978 = vst [vmem:[#allocation13_spill] sm:$0xff] %v20043_v42  ;;  %v25817_v35 = vunpack.i.h.bf16 %v20043_v42  ;;  %v17712_v46 = vunpack.i.l.bf16 %v20043_v42  ;;  %17895 = vrot.lane.b32.xlu0 %v19674_v15, %s19287_s9  ;;  %1811 = vmatprep.mubr.f32.mxu0 %v25974_v45 }
  0xef   : > { %v1651_v18 = vsel %vm1650_vm3, %v17707_v36, %v17697_v47  ;;  %v1660_v23 = vsel %vm1650_vm3, %v17708_v24, %v17702_v41  ;;  %17900 = vrot.lane.b32.xlu1 %v19745_v3, %s19287_s9  ;;  %16510 = vmatprep.subr.bf16.mxu0 %v16509_v30  ;;  %v3163_v30 = vld [vmem:[%s19375_s29 + $0x10] sm:$0xff] }
  0xf0   : > { %v20056_v56 = vpop.permute.xlu0 %17715  ;;  %v16511_v25 = vpack.c.bf16 %v1660_v23, %v1651_v18  ;;  %v1670_v45 = vsel %vm1650_vm3, %v17712_v46, %v25817_v35 }
  0xf1   : > { %25979 = vst [vmem:[#allocation14_spill] sm:$0xff] %v20056_v56  ;;  %v25818_v58 = vunpack.i.h.bf16 %v20056_v56  ;;  %v17717_v55 = vunpack.i.l.bf16 %v20056_v56  ;;  %v17721_v54 = vpop.permute.xlu1 %17720 }
  0xf2   : > { %v17723_v36 = vunpack.i.h.bf16 %v17721_v54  ;;  %v17722_v47 = vunpack.i.l.bf16 %v17721_v54  ;;  %17905 = vrot.lane.b32.xlu0 %v19788_v7, %s19287_s9  ;;  %16512 = vmatpush1.bf16.msra.mxu0 %v16511_v25 }
  0xf3   : > { %1636 = vrot.lane.b32.xlu1 %v19798_v40, %s19287_s9  ;;  %v1679_v24 = vsel %vm1650_vm3, %v17717_v55, %v25818_v58  ;;  %v20080_v58 = vpack.i.bf16 %v19655_v61, %v3163_v30 }
  0xf4   : > { %v1678_v41 = vsel %vm1650_vm3, %v17723_v36, %v17717_v55  ;;  %v1669_v18 = vsel %vm1650_vm3, %v17722_v47, %v17712_v46  ;;  %v20073_v23 = vpop.permute.xlu0 %17725  ;;  %v16513_v54 = vpack.c.bf16 %v1679_v24, %v1670_v45  ;;  %v3173_v45 = vld [vmem:[%s19375_s29 + $0x68] sm:$0xff] }
  0xf5   : > { %25980 = vst [vmem:[#allocation15_spill] sm:$0xff] %v20073_v23  ;;  %v20075_v35 = vpop.permute.xlu1 %17730  ;;  %v16515_v25 = vpack.c.bf16 %v1678_v41, %v1669_v18  ;;  %v25823_v42 = vunpack.i.h.bf16 %v20073_v23  ;;  %v17727_v55 = vunpack.i.l.bf16 %v20073_v23  ;;  %v3162_v24 = vld [vmem:[%s19375_s29 + $0x8] sm:$0xff]  ;;  %v3172_v41 = vld [vmem:[%s19375_s29 + $0x60] sm:$0xff]  ;;  %v20098_v30 = vpack.i.bf16 %v19658_v62, %v3173_v45 }
  0xf6   : > { %25981 = vst [vmem:[#allocation16_spill] sm:$0xff] %v20075_v35  ;;  %17910 = vrot.lane.b32.xlu0 %v19861_v28, %s19287_s9  ;;  %16514 = vmatprep.subr.bf16.mxu0 %v16513_v54  ;;  %v25822_v46 = vunpack.i.h.bf16 %v20075_v35  ;;  %v17732_v36 = vunpack.i.l.bf16 %v20075_v35  ;;  %v20102_v54 = vpack.i.bf16 %v3172_v41, %v3162_v24  ;;  %v3183_v62 = vld [vmem:[%s19375_s29 + $0xc0] sm:$0xff] }
  0xf7   : > { %1644 = vrot.lane.b32.xlu1 %v19891_v12, %s19287_s9  ;;  %16516 = vmatpush1.bf16.msra.mxu0 %v16515_v25  ;;  %v1656_v25 = vsel %vm1650_vm3, %v17727_v55, %v25823_v42  ;;  %v20118_v24 = vld [vmem:[%s25770_s1 + $0x20] sm:$0xff]  ;;  %v20132_v23 = vpack.i.bf16 %v19732_v26, %v3183_v62  ;;  %v20151_v26 = vld [vmem:[%s25770_s1 + $0x28] sm:$0xff] }
  0xf8   : > { %v1633_v47 = vpop.permute.xlu0 %1632 }
  0xf9   : > { %v20091_v18 = vpop.permute.xlu1 %1634 }
  0xfa   : > { %25982 = vst [vmem:[#allocation17_spill] sm:$0xff] %v20091_v18  ;;  %17915 = vrot.lane.b32.xlu0 %v19674_v15, %s19288_s14  ;;  %v1688_v61 = vsel %vm1650_vm3, %v1633_v47, %v20091_v18  ;;  %v1665_v15 = vsel %vm1650_vm3, %v17732_v36, %v25822_v46 }
  0xfb   : > { %17920 = vrot.lane.b32.xlu1 %v20080_v58, %s19289_s19  ;;  %1755 = vmatprep.subr.mxu0 %v1688_v61  ;;  %v16525_v46 = vpack.c.bf16 %v1665_v15, %v1656_v25  ;;  %v3192_v15 = vld [vmem:[%s19375_s29 + $0x110] sm:$0xff] }
  0xfc   : > { %v20110_v18 = vpop.permute.xlu0 %17735 }
  0xfd   : > { %25983 = vst [vmem:[#allocation18_spill] sm:$0xff] %v20110_v18  ;;  %v25827_v45 = vunpack.i.h.bf16 %v20110_v18  ;;  %v25826_v56 = vunpack.i.l.bf16 %v20110_v18  ;;  %v1631_v61 = vpop.permute.xlu1 %1630 }
  0xfe   : > { %v1687_v41 = vsel %vm1650_vm3, %v1631_v61, %v1633_v47  ;;  %17925 = vrot.lane.b32.xlu0 %v20098_v30, %s19289_s19  ;;  %v3193_v47 = vld [vmem:[%s19375_s29 + $0x118] sm:$0xff] }
  0xff   : > { %v1655_v42 = vsel %vm1650_vm3, %v25826_v56, %v17727_v55  ;;  %v1664_v35 = vsel %vm1650_vm3, %v25827_v45, %v17732_v36  ;;  %17930 = vrot.lane.b32.xlu1 %v20102_v54, %s19289_s19  ;;  %1756 = vmatpush1.msra.mxu0 %v1687_v41  ;;  %v3182_v55 = vld [vmem:[%s19375_s29 + $0xb8] sm:$0xff]  ;;  %v20145_v41 = vld [vmem:[#allocation2] sm:$0xff] }
 0x100   : > { %16526 = vmatprep.subr.bf16.mxu0 %v16525_v46  ;;  %v20135_v61 = vpop.permute.xlu0 %17740  ;;  %15802 = vmatmul.mubr.msk.f32.vlgmr.msra.gmra.mrb[0].mxu0 %vm577_vm1, %v20118_v24  ;;  %v16527_v25 = vpack.c.bf16 %v1664_v35, %v1655_v42  ;;  %v20158_v35 = vpack.i.bf16 %v19735_v43, %v3193_v47  ;;  %v20162_v62 = vpack.i.bf16 %v3192_v15, %v3182_v55 }
 0x101   : > { %25984 = vst [vmem:[#allocation19_spill] sm:$0xff] %v20135_v61  ;;  %v25831_v56 = vunpack.i.h.bf16 %v20135_v61  ;;  %v17742_v36 = vunpack.i.l.bf16 %v20135_v61  ;;  %v20143_v45 = vpop.permute.xlu1 %17745  ;;  %1817 = vmatprep.mubr.f32.mxu0 %v20145_v41 }
 0x102   : > { %25985 = vst [vmem:[#allocation20_spill] sm:$0xff] %v20143_v45  ;;  %v17747_v42 = vunpack.i.l.bf16 %v20143_v45  ;;  %17935 = vrot.lane.b32.xlu0 %v19745_v3, %s19288_s14  ;;  %16528 = vmatpush1.bf16.msra.mxu0 %v16527_v25  ;;  %v25987_v18 = vunpack.i.h.bf16 %v20143_v45 }
 0x103   : > { %17940 = vrot.lane.b32.xlu1 %v20132_v23, %s19289_s19  ;;  %v1674_v50 = vsel %vm1650_vm3, %v17742_v36, %v25831_v56 }
 0x104   : > { %v20167_v46 = vpop.permute.xlu0 %17750  ;;  %v1683_v3 = vsel %vm1650_vm3, %v17747_v42, %v25987_v18  ;;  %15803 = vmatmul.mubr.msk.f32.gmra.mrb[2].mxu0 %vm577_vm1, %v20151_v26 }
 0x105   : > { %25986 = vst [vmem:[#allocation21_spill] sm:$0xff] %v20167_v46  ;;  %v25839_v43 = vunpack.i.h.bf16 %v20167_v46  ;;  %v25836_v47 = vunpack.i.l.bf16 %v20167_v46  ;;  %v20176_v25 = vpop.permute.xlu1 %17755  ;;  %v16529_v55 = vpack.c.bf16 %v1683_v3, %v1674_v50  ;;  %1965 = vmatprep.mubr.f32.mxu0 %v20145_v41  ;;  %v3167_v50 = vld [vmem:[%s19375_s29 + $0x30] sm:$0xff]  ;;  %v3186_v46 = vld [vmem:[%s19375_s29 + $0xd8] sm:$0xff] }
 0x106   : > { %25988 = vst [vmem:[#allocation22_spill] sm:$0xff] %v20176_v25  ;;  %17945 = vrot.lane.b32.xlu0 %v20158_v35, %s19289_s19  ;;  %v17758_v56 = vunpack.i.h.bf16 %v20176_v25  ;;  %v25838_v45 = vunpack.i.l.bf16 %v20176_v25 }
 0x107   : > { %v1673_v18 = vsel %vm1650_vm3, %v25836_v47, %v17742_v36  ;;  %v1682_v15 = vsel %vm1650_vm3, %v25839_v43, %v17747_v42  ;;  %17950 = vrot.lane.b32.xlu1 %v20162_v62, %s19289_s19  ;;  %16530 = vmatprep.subr.bf16.mxu0 %v16529_v55  ;;  %v20200_v42 = vpack.i.bf16 %v19768_v37, %v3167_v50  ;;  %v3176_v50 = vld [vmem:[%s19375_s29 + $0x80] sm:$0xff] }
 0x108   : > { %v20192_v3 = vpop.permute.xlu0 %17760  ;;  %v16531_v61 = vpack.c.bf16 %v1682_v15, %v1673_v18  ;;  %v20205_v55 = vpack.i.bf16 %v19771_v19, %v3177_v53  ;;  %v1659_v18 = vsel %vm1650_vm3, %v25838_v45, %v17758_v56  ;;  %v3166_v56 = vld [vmem:[%s19375_s29 + $0x28] sm:$0xff] }
 0x109   : > { %25989 = vst [vmem:[#allocation23_spill] sm:$0xff] %v20192_v3  ;;  %v17763_v22 = vunpack.i.h.bf16 %v20192_v3  ;;  %v25837_v36 = vunpack.i.l.bf16 %v20192_v3  ;;  %v1641_v47 = vpop.permute.xlu1 %1640  ;;  %v20243_v45 = vpack.i.bf16 %v3176_v50, %v3166_v56  ;;  %v20252_v3 = vld [vmem:[%s19375_s29 + $0x168] sm:$0xff] }
 0x10a   : > { %17955 = vrot.lane.b32.xlu0 %v19788_v7, %s19288_s14  ;;  %16532 = vmatpush1.bf16.msra.mxu0 %v16531_v61 }
 0x10b   : > { %2237 = vrot.lane.b32.xlu1 %v19798_v40, %s19288_s14  ;;  %v1668_v7 = vsel %vm1650_vm3, %v25837_v36, %v17763_v22  ;;  %v20226_v22 = vld [vmem:[%s19375_s29 + $0x170] sm:$0xff] }
 0x10c   : > { %v20213_v61 = vpop.permute.xlu0 %1642  ;;  %v16541_v53 = vpack.c.bf16 %v1668_v7, %v1659_v18 }
 0x10d   : > { %25990 = vst [vmem:[#allocation24_spill] sm:$0xff] %v20213_v61  ;;  %v20215_v15 = vpop.permute.xlu1 %1638  ;;  %v1692_v37 = vsel %vm1650_vm3, %v1641_v47, %v20213_v61  ;;  %v3187_v61 = vld [vmem:[%s19375_s29 + $0xe0] sm:$0xff] }
 0x10e   : > { %25991 = vst [vmem:[#allocation25_spill] sm:$0xff] %v20215_v15  ;;  %17960 = vrot.lane.b32.xlu0 %v20200_v42, %s19289_s19  ;;  %1909 = vmatprep.subr.mxu0 %v1692_v37  ;;  %v1691_v19 = vsel %vm1650_vm3, %v20215_v15, %v1641_v47 }
 0x10f   : > { %17965 = vrot.lane.b32.xlu1 %v20205_v55, %s19289_s19  ;;  %1910 = vmatpush1.msra.mxu0 %v1691_v19 }
 0x110   : > { %v20230_v36 = vpop.permute.xlu0 %17765  ;;  %16542 = vmatprep.subr.bf16.mxu0 %v16541_v53  ;;  %15806 = vmatmul.mubr.msk.f32.vlgmr.msra.gmra.mrb[4].mxu0 %vm577_vm1, %v20118_v24 }
 0x111   : > { %25992 = vst [vmem:[#allocation26_spill] sm:$0xff] %v20230_v36  ;;  %v17768_v37 = vunpack.i.h.bf16 %v20230_v36  ;;  %v25845_v47 = vunpack.i.l.bf16 %v20230_v36  ;;  %v20236_v18 = vpop.permute.xlu1 %17770  ;;  %16544 = vmatpush3.bf16.msra.mxu0 %v16541_v53  ;;  %1971 = vmatprep.mubr.f32.mxu0 %v20145_v41 }
 0x112   : > { %25993 = vst [vmem:[#allocation27_spill] sm:$0xff] %v20236_v18  ;;  %v17773_v7 = vunpack.i.h.bf16 %v20236_v18  ;;  %v25844_v19 = vunpack.i.l.bf16 %v20236_v18  ;;  %3344 = vrot.lane.b32.xlu0 %v20226_v22, %s19289_s19  ;;  %v25998_v18 = vunpack.i.h.bf16 %v19592_v63 }
 0x113   : > { %3346 = vrot.lane.b32.xlu1 %v19798_v40, %s19289_s19  ;;  %v1677_v43 = vsel %vm1650_vm3, %v25845_v47, %v17768_v37  ;;  %v20266_v37 = vpack.i.bf16 %v19845_v27, %v3187_v61  ;;  %v3197_v47 = vld [vmem:[%s19375_s29 + $0x138] sm:$0xff] }
 0x114   : > { %v17776_v53 = vpop.permute.xlu0 %17775  ;;  %v1686_v25 = vsel %vm1650_vm3, %v25844_v19, %v17773_v7  ;;  %15807 = vmatmul.mubr.msk.f32.gmra.mrb[6].mxu0 %vm577_vm1, %v20151_v26  ;;  %v25995_v7 = vunpack.i.l.bf16 %v19660_v1  ;;  %v25996_v19 = vunpack.i.h.bf16 %v19660_v1  ;;  %v20294_v63 = vpack.i.bf16 %v19848_v34, %v3197_v47 }
 0x115   : > { %v17778_v56 = vunpack.i.h.bf16 %v17776_v53  ;;  %v17777_v50 = vunpack.i.l.bf16 %v17776_v53  ;;  %v20259_v40 = vpop.permute.xlu1 %1646  ;;  %v16545_v36 = vpack.c.bf16 %v1686_v25, %v1677_v43  ;;  %16236 = vmatprep.mubr.msk.f32.mxu0 %vm577_vm1, %v20118_v24  ;;  %v25997_v24 = vunpack.i.h.bf16 %v19584_v57 }
 0x116   : > { %25994 = vst [vmem:[#allocation28_spill] sm:$0xff] %v20259_v40  ;;  %17970 = vrot.lane.b32.xlu0 %v20243_v45, %s19289_s19 }
 0x117   : > { %3342 = vrot.lane.b32.xlu1 %v20252_v3, %s19289_s19  ;;  %16546 = vmatprep.subr.bf16.mxu0 %v16545_v36  ;;  %v490_v53 = vsel %vm486_vm0, %v17777_v50, %v25995_v7  ;;  %v499_v43 = vsel %vm486_vm0, %v17778_v56, %v25996_v19  ;;  %v489_v25 = vsel %vm486_vm0, %v25997_v24, %v17777_v50  ;;  %v3171_v50 = vld [vmem:[%s19375_s29 + $0x50] sm:$0xff] }
 0x118   : > { %16548 = vmatpush3.bf16.msra.mxu0 %v16545_v36  ;;  %v1649_v27 = vpop.permute.xlu0 %1648  ;;  %v16437_v61 = vpack.c.bf16 %v499_v43, %v490_v53  ;;  %v498_v15 = vsel %vm486_vm0, %v25998_v18, %v17778_v56  ;;  %v20298_v18 = vpack.i.bf16 %v3196_v6, %v3186_v46  ;;  %v3170_v56 = vld [vmem:[%s19375_s29 + $0x48] sm:$0xff] }
 0x119   : > { %v20285_v7 = vpop.permute.xlu1 %17780  ;;  %v1695_v1 = vsel %vm1650_vm3, %v20259_v40, %v1649_v27  ;;  %v16439_v57 = vpack.c.bf16 %v498_v15, %v489_v25  ;;  %v20316_v43 = vpack.i.bf16 %v3171_v50, %v3170_v56  ;;  %v3180_v25 = vld [vmem:[%s19375_s29 + $0xa0] sm:$0xff]  ;;  %v3181_v27 = vld [vmem:[%s19375_s29 + $0xa8] sm:$0xff] }
 0x11a   : > { %25999 = vst [vmem:[#allocation29_spill] sm:$0xff] %v20285_v7  ;;  %v25851_v19 = vunpack.i.h.bf16 %v20285_v7  ;;  %v17782_v36 = vunpack.i.l.bf16 %v20285_v7  ;;  %17975 = vrot.lane.b32.xlu0 %v19861_v28, %s19288_s14  ;;  %16438 = vmatprep.subr.bf16.mxu1 %v16437_v61 }
 0x11b   : > { %17980 = vrot.lane.b32.xlu1 %v20266_v37, %s19289_s19  ;;  %16234 = vmatprep.subr.mxu0 %v1695_v1 }
 0x11c   : > { %16440 = vmatpush1.bf16.msra.mxu1 %v16439_v57  ;;  %16235 = vmatpush3.msra.mxu0 %v1695_v1  ;;  %v20300_v15 = vpop.permute.xlu0 %17785  ;;  %v2253_v47 = vsel %vm2251_vm4, %v17782_v36, %v25851_v19 }
 0x11d   : > { %26000 = vst [vmem:[#allocation30_spill] sm:$0xff] %v20300_v15  ;;  %v25854_v28 = vunpack.i.h.bf16 %v20300_v15  ;;  %v17787_v53 = vunpack.i.l.bf16 %v20300_v15  ;;  %v17791_v34 = vpop.permute.xlu1 %17790  ;;  %16237 = vmatmul.mubr.msk.f32.vlgmr.msra.gmra.mrb[8].mxu0 %vm577_vm1, %v20151_v26 }
 0x11e   : > { %v17793_v6 = vunpack.i.h.bf16 %v17791_v34  ;;  %v17792_v46 = vunpack.i.l.bf16 %v17791_v34  ;;  %17985 = vrot.lane.b32.xlu0 %v20294_v63, %s19289_s19  ;;  %2412 = vmatprep.mubr.f32.mxu0 %v20145_v41 }
 0x11f   : > { %17990 = vrot.lane.b32.xlu1 %v20298_v18, %s19289_s19  ;;  %v2262_v24 = vsel %vm2251_vm4, %v17787_v53, %v25854_v28  ;;  %v20331_v28 = vpack.i.bf16 %v3181_v27, %v3180_v25 }
 0x120   : > { %v2261_v26 = vsel %vm2251_vm4, %v17793_v6, %v17787_v53  ;;  %v2252_v61 = vsel %vm2251_vm4, %v17792_v46, %v17782_v36  ;;  %v17796_v1 = vpop.permute.xlu0 %17795  ;;  %v16549_v57 = vpack.c.bf16 %v2262_v24, %v2253_v47  ;;  %v26003_v36 = vunpack.i.l.bf16 %v19707_v48 }
 0x121   : > { %v17798_v34 = vunpack.i.h.bf16 %v17796_v1  ;;  %v17797_v19 = vunpack.i.l.bf16 %v17796_v1  ;;  %v20325_v7 = vpop.permute.xlu1 %17800  ;;  %v16551_v40 = vpack.c.bf16 %v2261_v26, %v2252_v61  ;;  %26002 = vst [vmem:[#allocation32_spill] sm:$0xff] %v20331_v28  ;;  %v26004_v47 = vunpack.i.h.bf16 %v19707_v48  ;;  %v20347_v26 = vld [vmem:[%s19375_s29 + $0x190] sm:$0xff] }
 0x122   : > { %26001 = vst [vmem:[#allocation31_spill] sm:$0xff] %v20325_v7  ;;  %v25855_v56 = vunpack.i.h.bf16 %v20325_v7  ;;  %v17802_v50 = vunpack.i.l.bf16 %v20325_v7  ;;  %2245 = vrot.lane.b32.xlu0 %v19891_v12, %s19288_s14  ;;  %16550 = vmatprep.subr.bf16.mxu0 %v16549_v57  ;;  %v26005_v46 = vunpack.i.h.bf16 %v19596_v2  ;;  %26006 = vst [vmem:[#allocation33_spill] sm:$0xff] %v20347_v26  ;;  %s19298_s14 = smov 72  }
 0x123   : > { %17995 = vrot.lane.b32.xlu1 %v20316_v43, %s19289_s19  ;;  %16552 = vmatpush1.bf16.msra.mxu0 %v16551_v40  ;;  %v508_v53 = vsel %vm486_vm0, %v17797_v19, %v26003_v36  ;;  %v517_v6 = vsel %vm486_vm0, %v17798_v34, %v26004_v47  ;;  %v26007_v40 = vunpack.i.h.bf16 %v19612_v13  ;;  %v3190_v13 = vld [vmem:[%s19375_s29 + $0xf8] sm:$0xff] }
 0x124   : > { %v507_v24 = vsel %vm486_vm0, %v26005_v46, %v17797_v19  ;;  %v20344_v25 = vpop.permute.xlu0 %17805  ;;  %v16441_v27 = vpack.c.bf16 %v517_v6, %v508_v53  ;;  %v2271_v19 = vsel %vm2251_vm4, %v17802_v50, %v25855_v56  ;;  %v3200_v6 = vld [vmem:[%s19375_s29 + $0x150] sm:$0xff]  ;;  %v3201_v46 = vld [vmem:[%s19375_s29 + $0x158] sm:$0xff] }
 0x125   : > { %v516_v61 = vsel %vm486_vm0, %v26007_v40, %v17798_v34  ;;  %v25866_v48 = vunpack.i.h.bf16 %v20344_v25  ;;  %v17807_v1 = vunpack.i.l.bf16 %v20344_v25  ;;  %v17811_v57 = vpop.permute.xlu1 %17810  ;;  %v3191_v34 = vld [vmem:[%s19375_s29 + $0x100] sm:$0xff] }
 0x126   : > { %v16443_v2 = vpack.c.bf16 %v516_v61, %v507_v24  ;;  %v17813_v36 = vunpack.i.h.bf16 %v17811_v57  ;;  %v17812_v53 = vunpack.i.l.bf16 %v17811_v57  ;;  %18000 = vrot.lane.b32.xlu0 %v20331_v28, %s19289_s19  ;;  %16442 = vmatprep.subr.bf16.mxu1 %v16441_v27  ;;  %v20371_v57 = vld [vmem:[%s19375_s29 + $0x188] sm:$0xff] }
 0x127   : > { %3352 = vrot.lane.b32.xlu1 %v20347_v26, %s19289_s19  ;;  %v2280_v47 = vsel %vm2251_vm4, %v17807_v1, %v25866_v48  ;;  %v20373_v26 = vpack.i.bf16 %v3191_v34, %v3190_v13  ;;  %v26067_v48 = vld [vmem:[#allocation15_spill] sm:$0xff] }
 0x128   : > { %16444 = vmatpush1.bf16.msra.mxu1 %v16443_v2  ;;  %v2279_v24 = vsel %vm2251_vm4, %v17813_v36, %v17807_v1  ;;  %v2270_v40 = vsel %vm2251_vm4, %v17812_v53, %v17802_v50  ;;  %v17816_v61 = vpop.permute.xlu0 %17815  ;;  %v16553_v27 = vpack.c.bf16 %v2280_v47, %v2271_v19  ;;  %v20381_v1 = vpack.i.bf16 %v3201_v46, %v3200_v6  ;;  %v20418_v6 = vld [vmem:[%s19375_s29 + $0x1a8] sm:$0xff] }
 0x129   : > { %v17818_v56 = vunpack.i.h.bf16 %v17816_v61  ;;  %v17817_v7 = vunpack.i.l.bf16 %v17816_v61  ;;  %v473_v15 = vpop.permute.xlu1 %472  ;;  %v16555_v28 = vpack.c.bf16 %v2279_v24, %v2270_v40  ;;  %v26008_v19 = vunpack.i.h.bf16 %v19626_v31  ;;  %v20421_v24 = vld [vmem:[%s19375_s29 + $0x1b0] sm:$0xff]  ;;  %v20428_v61 = vld [vmem:[%s25770_s1 + $0x18] sm:$0xff] }
 0x12a   : > { %3354 = vrot.lane.b32.xlu0 %v19891_v12, %s19289_s19  ;;  %v526_v2 = vsel %vm486_vm0, %v473_v15, %v19757_v10  ;;  %16554 = vmatprep.subr.bf16.mxu0 %v16553_v27  ;;  %v525_v50 = vsel %vm486_vm0, %v19640_v51, %v473_v15  ;;  %v26009_v53 = vunpack.i.h.bf16 %v19630_v38  ;;  %v26010_v10 = vunpack.i.l.bf16 %v19716_v60  ;;  %v20404_v60 = vld [vmem:[%s25770_s1 + $0x10] sm:$0xff] }
 0x12b   : > { %v493_v36 = vsel %vm486_vm0, %v26008_v19, %v17817_v7  ;;  %3350 = vrot.lane.b32.xlu1 %v20371_v57, %s19289_s19  ;;  %669 = vmatprep.subr.mxu1 %v526_v2  ;;  %v26011_v31 = vunpack.i.l.bf16 %v19737_v49 }
 0x12c   : > { %v502_v13 = vsel %vm486_vm0, %v26009_v53, %v17818_v56  ;;  %v494_v12 = vsel %vm486_vm0, %v17817_v7, %v26010_v10  ;;  %670 = vmatpush1.msra.mxu1 %v525_v50  ;;  %16556 = vmatpush1.bf16.msra.mxu0 %v16555_v28  ;;  %v20394_v51 = vpop.permute.xlu0 %17820  ;;  %v20452_v10 = vld [vmem:[%s25770_s1 + $0x30] sm:$0xff] }
 0x12d   : > { %v503_v15 = vsel %vm486_vm0, %v17818_v56, %v26011_v31  ;;  %v16455_v38 = vpack.c.bf16 %v502_v13, %v493_v36  ;;  %v20399_v34 = vpop.permute.xlu1 %17825  ;;  %15782 = vmatmul.mubr.msk.f32.vlgmr.msra.gmra.mrb[0].mxu1 %vm577_vm1, %v20404_v60  ;;  %v25861_v49 = vunpack.i.h.bf16 %v20394_v51  ;;  %v17822_v7 = vunpack.i.l.bf16 %v20394_v51 }
 0x12e   : > { %v16453_v47 = vpack.c.bf16 %v503_v15, %v494_v12  ;;  %18005 = vrot.lane.b32.xlu0 %v20373_v26, %s19289_s19  ;;  %731 = vmatprep.mubr.f32.mxu1 %v20145_v41  ;;  %v25860_v28 = vunpack.i.h.bf16 %v20399_v34  ;;  %v17827_v56 = vunpack.i.l.bf16 %v20399_v34 }
 0x12f   : > { %18010 = vrot.lane.b32.xlu1 %v20381_v1, %s19289_s19  ;;  %v2257_v2 = vsel %vm2251_vm4, %v17822_v7, %v25861_v49 }
 0x130   : > { %16454 = vmatprep.subr.bf16.mxu1 %v16453_v47  ;;  %v2234_v46 = vpop.permute.xlu0 %2233  ;;  %v2266_v50 = vsel %vm2251_vm4, %v17827_v56, %v25860_v28  ;;  %v3175_v28 = vld [vmem:[%s19375_s29 + $0x78] sm:$0xff] }
 0x131   : > { %16456 = vmatpush1.bf16.msra.mxu1 %v16455_v38  ;;  %v20423_v40 = vpop.permute.xlu1 %2235  ;;  %v16565_v31 = vpack.c.bf16 %v2266_v50, %v2257_v2  ;;  %v26012_v50 = vunpack.i.h.bf16 %v19684_v21 }
 0x132   : > { %15783 = vmatmul.mubr.msk.f32.gmra.mrb[2].mxu1 %vm577_vm1, %v20428_v61  ;;  %3358 = vrot.lane.b32.xlu0 %v20418_v6, %s19289_s19  ;;  %v2289_v27 = vsel %vm2251_vm4, %v2234_v46, %v20423_v40 }
 0x133   : > { %879 = vmatprep.mubr.f32.mxu1 %v20145_v41  ;;  %3360 = vrot.lane.b32.xlu1 %v20421_v24, %s19289_s19 }
 0x134   : > { %2356 = vmatprep.subr.mxu0 %v2289_v27  ;;  %v20445_v19 = vpop.permute.xlu0 %17830 }
 0x135   : > { %v17833_v36 = vunpack.i.h.bf16 %v20445_v19  ;;  %v17832_v53 = vunpack.i.l.bf16 %v20445_v19  ;;  %v2232_v13 = vpop.permute.xlu1 %2231 }
 0x136   : > { %v2288_v12 = vsel %vm2251_vm4, %v2232_v13, %v2234_v46  ;;  %18015 = vrot.lane.b32.xlu0 %v20080_v58, %s19290_s12 }
 0x137   : > { %v2256_v15 = vsel %vm2251_vm4, %v17832_v53, %v17822_v7  ;;  %v2265_v38 = vsel %vm2251_vm4, %v17833_v36, %v17827_v56  ;;  %18020 = vrot.lane.b32.xlu1 %v20098_v30, %s19290_s12  ;;  %2357 = vmatpush1.msra.mxu0 %v2288_v12  ;;  %v20473_v7 = vld [vmem:[%s25770_s1 + $0x38] sm:$0xff]  ;;  %v26013_v12 = vunpack.i.h.bf16 %v19690_v33 }
 0x138   : > { %16566 = vmatprep.subr.bf16.mxu0 %v16565_v31  ;;  %v17836_v47 = vpop.permute.xlu0 %17835  ;;  %15814 = vmatmul.mubr.msk.f32.vlgmr.msra.gmra.mrb[0].mxu0 %vm577_vm1, %v20452_v10  ;;  %v16567_v58 = vpack.c.bf16 %v2265_v38, %v2256_v15  ;;  %v26014_v15 = vunpack.i.l.bf16 %v19773_v39 }
 0x139   : > { %v17838_v46 = vunpack.i.h.bf16 %v17836_v47  ;;  %v17837_v27 = vunpack.i.l.bf16 %v17836_v47  ;;  %v20467_v2 = vpop.permute.xlu1 %17840  ;;  %2418 = vmatprep.mubr.f32.mxu0 %v20145_v41  ;;  %v26015_v47 = vunpack.i.l.bf16 %v19779_v8 }
 0x13a   : > { %v25865_v30 = vunpack.i.h.bf16 %v20467_v2  ;;  %v17842_v56 = vunpack.i.l.bf16 %v20467_v2  ;;  %18025 = vrot.lane.b32.xlu0 %v20102_v54, %s19290_s12  ;;  %16568 = vmatpush1.bf16.msra.mxu0 %v16567_v58  ;;  %v3165_v58 = vld [vmem:[%s19375_s29 + $0x20] sm:$0xff] }
 0x13b   : > { %v511_v13 = vsel %vm486_vm0, %v26012_v50, %v17837_v27  ;;  %v520_v31 = vsel %vm486_vm0, %v26013_v12, %v17838_v46  ;;  %18030 = vrot.lane.b32.xlu1 %v20132_v23, %s19290_s12  ;;  %v512_v38 = vsel %vm486_vm0, %v17837_v27, %v26014_v15  ;;  %v521_v54 = vsel %vm486_vm0, %v17838_v46, %v26015_v47 }
 0x13c   : > { %v20495_v21 = vpop.permute.xlu0 %17845  ;;  %v16457_v50 = vpack.c.bf16 %v521_v54, %v512_v38  ;;  %v16459_v49 = vpack.c.bf16 %v520_v31, %v511_v13  ;;  %15815 = vmatmul.mubr.msk.f32.gmra.mrb[2].mxu0 %vm577_vm1, %v20473_v7  ;;  %v2275_v8 = vsel %vm2251_vm4, %v17842_v56, %v25865_v30  ;;  %v20511_v13 = vpack.i.bf16 %v3175_v28, %v3165_v58 }
 0x13d   : > { %v25864_v33 = vunpack.i.h.bf16 %v20495_v21  ;;  %v17847_v23 = vunpack.i.l.bf16 %v20495_v21  ;;  %v20501_v39 = vpop.permute.xlu1 %17850  ;;  %2566 = vmatprep.mubr.f32.mxu0 %v20145_v41 }
 0x13e   : > { %v17853_v46 = vunpack.i.h.bf16 %v20501_v39  ;;  %v17852_v27 = vunpack.i.l.bf16 %v20501_v39  ;;  %18035 = vrot.lane.b32.xlu0 %v20158_v35, %s19290_s12  ;;  %16458 = vmatprep.subr.bf16.mxu1 %v16457_v50  ;;  %26016 = vst [vmem:[#allocation34_spill] sm:$0xff] %v20511_v13 }
 0x13f   : > { %18040 = vrot.lane.b32.xlu1 %v20162_v62, %s19290_s12  ;;  %16460 = vmatpush1.bf16.msra.mxu1 %v16459_v49  ;;  %v2284_v12 = vsel %vm2251_vm4, %v17847_v23, %v25864_v33 }
 0x140   : > { %v2283_v31 = vsel %vm2251_vm4, %v17853_v46, %v17847_v23  ;;  %v2274_v15 = vsel %vm2251_vm4, %v17852_v27, %v17842_v56  ;;  %v481_v35 = vpop.permute.xlu0 %480  ;;  %v16569_v38 = vpack.c.bf16 %v2284_v12, %v2275_v8  ;;  %v26017_v56 = vunpack.i.h.bf16 %v19811_v16 }
 0x141   : > { %v17856_v28 = vpop.permute.xlu1 %17855  ;;  %v530_v47 = vsel %vm486_vm0, %v481_v35, %v19795_v20  ;;  %v529_v62 = vsel %vm486_vm0, %v19755_v14, %v481_v35  ;;  %v16571_v49 = vpack.c.bf16 %v2283_v31, %v2274_v15  ;;  %v26018_v20 = vunpack.i.h.bf16 %v19817_v44 }
 0x142   : > { %v17858_v54 = vunpack.i.h.bf16 %v17856_v28  ;;  %v17857_v58 = vunpack.i.l.bf16 %v17856_v28  ;;  %18045 = vrot.lane.b32.xlu0 %v20511_v13, %s19289_s19  ;;  %823 = vmatprep.subr.mxu1 %v530_v47  ;;  %v26019_v8 = vunpack.i.l.bf16 %v19899_v9  ;;  %v26020_v16 = vunpack.i.h.bf16 %v19899_v9 }
 0x143   : > { %18050 = vrot.lane.b32.xlu1 %v20200_v42, %s19290_s12  ;;  %16570 = vmatprep.subr.bf16.mxu0 %v16569_v38  ;;  %vm6236_vm0 = vcmask 605184  }
 0x144   : > { %v1070_v50 = vsel %vm1067_vm2, %v26017_v56, %v17857_v58  ;;  %v1079_v23 = vsel %vm1067_vm2, %v26018_v20, %v17858_v54  ;;  %824 = vmatpush1.msra.mxu1 %v529_v62  ;;  %16572 = vmatpush1.bf16.msra.mxu0 %v16571_v49  ;;  %v20538_v14 = vpop.permute.xlu0 %17860  ;;  %v1071_v12 = vsel %vm1067_vm2, %v17857_v58, %v26019_v8  ;;  %v3185_v62 = vld [vmem:[%s19375_s29 + $0xd0] sm:$0xff] }
 0x145   : > { %v17863_v42 = vunpack.i.h.bf16 %v20538_v14  ;;  %v20544_v31 = vpop.permute.xlu1 %17865  ;;  %v1080_v44 = vsel %vm1067_vm2, %v17858_v54, %v26020_v16  ;;  %15786 = vmatmul.mubr.msk.f32.vlgmr.msra.gmra.mrb[4].mxu1 %vm577_vm1, %v20404_v60  ;;  %v16479_v15 = vpack.c.bf16 %v1079_v23, %v1070_v50  ;;  %v25868_v35 = vunpack.i.l.bf16 %v20538_v14  ;;  %v3195_v60 = vld [vmem:[%s19375_s29 + $0x128] sm:$0xff]  ;;  %v20564_v54 = vld [vmem:[%s19375_s29 + $0x178] sm:$0xff] }
 0x146   : > { %v17868_v38 = vunpack.i.h.bf16 %v20544_v31  ;;  %v25867_v28 = vunpack.i.l.bf16 %v20544_v31  ;;  %18055 = vrot.lane.b32.xlu0 %v20205_v55, %s19290_s12  ;;  %v16477_v47 = vpack.c.bf16 %v1080_v44, %v1071_v12  ;;  %885 = vmatprep.mubr.f32.mxu1 %v20145_v41  ;;  %v20580_v56 = vpack.i.bf16 %v3195_v60, %v3185_v62  ;;  %v3179_v62 = vld [vmem:[%s19375_s29 + $0x98] sm:$0xff] }
 0x147   : > { %3945 = vrot.lane.b32.xlu1 %v20226_v22, %s19290_s12  ;;  %v2260_v58 = vsel %vm2251_vm4, %v25868_v35, %v17863_v42  ;;  %v26022_v16 = vunpack.i.h.bf16 %v19831_v0 }
 0x148   : > { %16478 = vmatprep.subr.bf16.mxu1 %v16477_v47  ;;  %v2242_v9 = vpop.permute.xlu0 %2241  ;;  %v2269_v22 = vsel %vm2251_vm4, %v25867_v28, %v17868_v38  ;;  %v26024_v47 = vunpack.i.h.bf16 %v19942_v32  ;;  %v26069_v28 = vld [vmem:[#allocation16_spill] sm:$0xff] }
 0x149   : > { %16480 = vmatpush1.bf16.msra.mxu1 %v16479_v15  ;;  %v20561_v49 = vpop.permute.xlu1 %2243  ;;  %v16581_v8 = vpack.c.bf16 %v2269_v22, %v2260_v58  ;;  %v26070_v35 = vunpack.i.h.bf16 %v26069_v28 }
 0x14a   : > { %3947 = vrot.lane.b32.xlu0 %v20564_v54, %s19290_s12  ;;  %v2293_v55 = vsel %vm2251_vm4, %v2242_v9, %v20561_v49  ;;  %15787 = vmatmul.mubr.msk.f32.gmra.mrb[6].mxu1 %vm577_vm1, %v20428_v61 }
 0x14b   : > { %18060 = vrot.lane.b32.xlu1 %v20243_v45, %s19290_s12  ;;  %2510 = vmatprep.subr.mxu0 %v2293_v55  ;;  %v26021_v45 = vunpack.i.h.bf16 %v19850_v4  ;;  %v3169_v4 = vld [vmem:[%s19375_s29 + $0x40] sm:$0xff] }
 0x14c   : > { %v20582_v50 = vpop.permute.xlu0 %2239  ;;  %1305 = vmatprep.mubr.f32.mxu1 %v20145_v41 }
 0x14d   : > { %v17871_v20 = vpop.permute.xlu1 %17870  ;;  %v2292_v23 = vsel %vm2251_vm4, %v20582_v50, %v2242_v9 }
 0x14e   : > { %v17873_v12 = vunpack.i.h.bf16 %v17871_v20  ;;  %v17872_v42 = vunpack.i.l.bf16 %v17871_v20  ;;  %3943 = vrot.lane.b32.xlu0 %v20252_v3, %s19290_s12  ;;  %2511 = vmatpush1.msra.mxu0 %v2292_v23  ;;  %v26023_v3 = vunpack.i.l.bf16 %v19942_v32  ;;  %v20620_v32 = vpack.i.bf16 %v3179_v62, %v3169_v4 }
 0x14f   : > { %18065 = vrot.lane.b32.xlu1 %v20580_v56, %s19289_s19  ;;  %16582 = vmatprep.subr.bf16.mxu0 %v16581_v8 }
 0x150   : > { %v1097_v61 = vsel %vm1067_vm2, %v26021_v45, %v17873_v12  ;;  %v1088_v44 = vsel %vm1067_vm2, %v26022_v16, %v17872_v42  ;;  %v20597_v15 = vpop.permute.xlu0 %17875  ;;  %15818 = vmatmul.mubr.msk.f32.vlgmr.msra.gmra.mrb[4].mxu0 %vm577_vm1, %v20452_v10  ;;  %v1089_v38 = vsel %vm1067_vm2, %v17872_v42, %v26023_v3  ;;  %v1098_v9 = vsel %vm1067_vm2, %v17873_v12, %v26024_v47 }
 0x151   : > { %v17878_v60 = vunpack.i.h.bf16 %v20597_v15  ;;  %v25863_v0 = vunpack.i.l.bf16 %v20597_v15  ;;  %v20611_v55 = vpop.permute.xlu1 %17880  ;;  %16584 = vmatpush3.bf16.msra.mxu0 %v16581_v8  ;;  %v16481_v58 = vpack.c.bf16 %v1098_v9, %v1089_v38  ;;  %v16483_v22 = vpack.c.bf16 %v1097_v61, %v1088_v44  ;;  %2572 = vmatprep.mubr.f32.mxu0 %v20145_v41 }
 0x152   : > { %v17883_v20 = vunpack.i.h.bf16 %v20611_v55  ;;  %v25862_v23 = vunpack.i.l.bf16 %v20611_v55  ;;  %18070 = vrot.lane.b32.xlu0 %v20266_v37, %s19290_s12  ;;  %v26025_v3 = vunpack.i.h.bf16 %v19870_v5  ;;  %v26026_v47 = vunpack.i.h.bf16 %v19872_v29 }
 0x153   : > { %18075 = vrot.lane.b32.xlu1 %v20294_v63, %s19290_s12  ;;  %16482 = vmatprep.subr.bf16.mxu1 %v16481_v58  ;;  %v2278_v8 = vsel %vm2251_vm4, %v25863_v0, %v17878_v60  ;;  %v26028_v29 = vunpack.i.l.bf16 %v19966_v59 }
 0x154   : > { %16484 = vmatpush1.bf16.msra.mxu1 %v16483_v22  ;;  %v17886_v12 = vpop.permute.xlu0 %17885  ;;  %v2287_v42 = vsel %vm2251_vm4, %v25862_v23, %v17883_v20  ;;  %15819 = vmatmul.mubr.msk.f32.gmra.mrb[6].mxu0 %vm577_vm1, %v20473_v7  ;;  %v19176_v22 = vld [vmem:[%s19375_s29 + $0x10] sm:$0xff]  ;;  %v19177_v20 = vld [vmem:[%s19375_s29 + $0x68] sm:$0xff] }
 0x155   : > { %v17888_v37 = vunpack.i.h.bf16 %v17886_v12  ;;  %v17887_v45 = vunpack.i.l.bf16 %v17886_v12  ;;  %v1054_v63 = vpop.permute.xlu1 %1053  ;;  %v16585_v61 = vpack.c.bf16 %v2287_v42, %v2278_v8  ;;  %16249 = vmatprep.mubr.msk.f32.mxu0 %vm577_vm1, %v20452_v10  ;;  %v16589_v8 = vpack.c.bf16 %v19177_v20, %v19176_v22  ;;  %v19178_v12 = vld [vmem:[%s19375_s29 + $0x8] sm:$0xff]  ;;  %v19179_v42 = vld [vmem:[%s19375_s29 + $0x60] sm:$0xff]  ;;  %v26034_v22 = vld [vmem:[#allocation8_spill] sm:$0xff] }
 0x156   : > { %18080 = vrot.lane.b32.xlu0 %v20298_v18, %s19290_s12  ;;  %v1107_v16 = vsel %vm1067_vm2, %v1054_v63, %v19982_v17  ;;  %v1106_v44 = vsel %vm1067_vm2, %v19882_v52, %v1054_v63  ;;  %v20647_v18 = vld [vmem:[%s19375_s29 + $0x180] sm:$0xff]  ;;  %v26027_v17 = vunpack.i.l.bf16 %v19951_v11  ;;  %v26035_v20 = vunpack.i.l.bf16 %v26034_v22  ;;  %v19187_v22 = vld [vmem:[%s19375_s29 + $0x88] sm:$0xff] }
 0x157   : > { %v1074_v38 = vsel %vm1067_vm2, %v26025_v3, %v17887_v45  ;;  %v1083_v9 = vsel %vm1067_vm2, %v26026_v47, %v17888_v37  ;;  %18085 = vrot.lane.b32.xlu1 %v20620_v32, %s19289_s19  ;;  %1249 = vmatprep.subr.mxu1 %v1107_v16  ;;  %v1084_v4 = vsel %vm1067_vm2, %v17888_v37, %v26028_v29  ;;  %v20660_v11 = vld [vmem:[%s25770_s1] sm:$0xff]  ;;  %v19183_v47 = vld [vmem:[%s19375_s29 + $0xb8] sm:$0xff] }
 0x158   : > { %v1075_v52 = vsel %vm1067_vm2, %v17887_v45, %v26027_v17  ;;  %16586 = vmatprep.subr.bf16.mxu0 %v16585_v61  ;;  %1250 = vmatpush1.msra.mxu1 %v1106_v44  ;;  %v20652_v5 = vpop.permute.xlu0 %2247  ;;  %v16495_v62 = vpack.c.bf16 %v1083_v9, %v1074_v38  ;;  %v16591_v37 = vpack.c.bf16 %v19179_v42, %v19178_v12  ;;  %v19180_v63 = vld [vmem:[%s19375_s29 + $0xc0] sm:$0xff]  ;;  %v19184_v9 = vld [vmem:[%s19375_s29 + $0x110] sm:$0xff] }
 0x159   : > { %16588 = vmatpush3.bf16.msra.mxu0 %v16585_v61  ;;  %v2250_v60 = vpop.permute.xlu1 %2249  ;;  %v16493_v58 = vpack.c.bf16 %v1084_v4, %v1075_v52  ;;  %15792 = vmatmul.mubr.msk.f32.vlgmr.msra.gmra.mrb[0].mxu1 %vm577_vm1, %v20660_v11  ;;  %v19181_v61 = vld [vmem:[%s19375_s29 + $0x118] sm:$0xff]  ;;  %v16595_v17 = vpack.c.bf16 %v19184_v9, %v19183_v47  ;;  %v26029_v52 = vld [vmem:[#allocation5_spill] sm:$0xff]  ;;  %v3189_v47 = vld [vmem:[%s19375_s29 + $0xf0] sm:$0xff] }
 0x15a   : > { %3348 = vrot.lane.b32.xlu0 %v20647_v18, %s19289_s19  ;;  %v2296_v59 = vsel %vm2251_vm4, %v20652_v5, %v2250_v60  ;;  %1311 = vmatprep.mubr.f32.mxu1 %v20145_v41  ;;  %v16593_v16 = vpack.c.bf16 %v19181_v61, %v19180_v63  ;;  %v26030_v29 = vunpack.i.h.bf16 %v26029_v52  ;;  %v26036_v12 = vld [vmem:[#allocation33_spill] sm:$0xff]  ;;  %v3199_v9 = vld [vmem:[%s19375_s29 + $0x148] sm:$0xff] }
 0x15b   : > { %18090 = vrot.lane.b32.xlu1 %v20316_v43, %s19290_s12  ;;  %16494 = vmatprep.subr.bf16.mxu1 %v16493_v58  ;;  %v20680_v43 = vld [vmem:[%s25770_s1 + $0x8] sm:$0xff] }
 0x15c   : > { %16247 = vmatprep.subr.mxu0 %v2296_v59  ;;  %16496 = vmatpush1.bf16.msra.mxu1 %v16495_v62  ;;  %v17891_v45 = vpop.permute.xlu0 %17890  ;;  %v26031_v62 = vld [vmem:[#allocation6_spill] sm:$0xff] }
 0x15d   : > { %16248 = vmatpush3.msra.mxu0 %v2296_v59  ;;  %v17893_v44 = vunpack.i.h.bf16 %v17891_v45  ;;  %v17892_v3 = vunpack.i.l.bf16 %v17891_v45  ;;  %v1062_v38 = vpop.permute.xlu1 %1061  ;;  %15793 = vmatmul.mubr.msk.f32.gmra.mrb[2].mxu1 %vm577_vm1, %v20680_v43  ;;  %v26032_v60 = vunpack.i.h.bf16 %v26031_v62  ;;  %v26033_v59 = vld [vmem:[#allocation32_spill] sm:$0xff]  ;;  %v26037_v45 = vld [vmem:[#allocation9_spill] sm:$0xff] }
 0x15e   : > { %16590 = vmatprep.subr.bf16.mxu0 %v16589_v8  ;;  %16250 = vmatmul.mubr.msk.f32.vlgmr.msra.gmra.mrb[8].mxu0 %vm577_vm1, %v20473_v7  ;;  %v26038_v63 = vunpack.i.l.bf16 %v26037_v45  ;;  %v26041_v45 = vld [vmem:[#allocation18_spill] sm:$0xff] }
 0x15f   : > { %v1092_v4 = vsel %vm1067_vm2, %v26030_v29, %v17892_v3  ;;  %v1101_v58 = vsel %vm1067_vm2, %v26032_v60, %v17893_v44  ;;  %16592 = vmatpush1.bf16.msra.mxu0 %v16591_v37  ;;  %18095 = vrot.lane.b32.xlu0 %v26033_v59, %s19290_s12  ;;  %v1093_v8 = vsel %vm1067_vm2, %v17892_v3, %v26035_v20 }
 0x160   : > { %3953 = vrot.lane.b32.xlu1 %v26036_v12, %s19290_s12  ;;  %v17896_v42 = vpop.permute.xlu0 %17895  ;;  %16594 = vmatprep.subr.bf16.mxu0 %v16593_v16  ;;  %v1102_v61 = vsel %vm1067_vm2, %v17893_v44, %v26038_v63  ;;  %v16499_v60 = vpack.c.bf16 %v1101_v58, %v1092_v4  ;;  %v20709_v16 = vld [vmem:[%s19375_s29 + $0x198] sm:$0xff]  ;;  %v20713_v44 = vpack.i.bf16 %v3199_v9, %v3189_v47  ;;  %v19186_v58 = vld [vmem:[%s19375_s29 + $0x30] sm:$0xff]  ;;  %v26042_v63 = vunpack.i.l.bf16 %v26041_v45  ;;  %v20735_v9 = vld [vmem:[%s25770_s1 + $0x40] sm:$0xff] }
 0x161   : > { %v17898_v37 = vunpack.i.h.bf16 %v17896_v42  ;;  %v17897_v52 = vunpack.i.l.bf16 %v17896_v42  ;;  %v17901_v29 = vpop.permute.xlu1 %17900  ;;  %v16497_v62 = vpack.c.bf16 %v1102_v61, %v1093_v8  ;;  %2822 = vmatprep.mubr.f32.mxu0 %v20145_v41  ;;  %1459 = vmatprep.mubr.f32.mxu1 %v20145_v41  ;;  %26039 = vst [vmem:[#allocation5_spill] sm:$0xff] %v20709_v16  ;;  %v26040_v8 = vld [vmem:[#allocation10_spill] sm:$0xff]  ;;  %v19188_v42 = vld [vmem:[%s19375_s29 + $0x170] sm:$0xff]  ;;  %v26043_v61 = vunpack.i.h.bf16 %v26041_v45 }
 0x162   : > { %v17903_v3 = vunpack.i.h.bf16 %v17901_v29  ;;  %v17902_v59 = vunpack.i.l.bf16 %v17901_v29  ;;  %v1111_v12 = vsel %vm1067_vm2, %v1062_v38, %v26040_v8  ;;  %v19189_v29 = vld [vmem:[%s19375_s29 + $0x28] sm:$0xff] }
 0x163   : > { %16596 = vmatpush1.bf16.msra.mxu0 %v16595_v17  ;;  %3955 = vrot.lane.b32.xlu0 %v20709_v16, %s19290_s12  ;;  %v16605_v17 = vpack.c.bf16 %v19187_v22, %v19186_v58  ;;  %v1663_v47 = vsel %vm1650_vm3, %v17898_v37, %v26043_v61  ;;  %v26044_v58 = vld [vmem:[#allocation11_spill] sm:$0xff] }
 0x164   : > { %3951 = vrot.lane.b32.xlu1 %v20371_v57, %s19290_s12  ;;  %16498 = vmatprep.subr.bf16.mxu1 %v16497_v62  ;;  %v20717_v4 = vpop.permute.xlu0 %17905  ;;  %v1654_v57 = vsel %vm1650_vm3, %v17897_v52, %v26042_v63  ;;  %v19190_v62 = vld [vmem:[%s19375_s29 + $0x80] sm:$0xff]  ;;  %v26045_v22 = vunpack.i.h.bf16 %v26044_v58  ;;  %v26048_v61 = vld [vmem:[#allocation7_spill] sm:$0xff] }
 0x165   : > { %16500 = vmatpush1.bf16.msra.mxu1 %v16499_v60  ;;  %v20721_v20 = vpop.permute.xlu1 %1636  ;;  %2766 = vmatprep.subr.mxu0 %v19188_v42  ;;  %v16607_v60 = vpack.c.bf16 %v19190_v62, %v19189_v29  ;;  %v26046_v42 = vld [vmem:[#allocation12_spill] sm:$0xff]  ;;  %v1110_v23 = vsel %vm1067_vm2, %v26048_v61, %v1062_v38  ;;  %v16517_v29 = vpack.c.bf16 %v1663_v47, %v1654_v57  ;;  %v26049_v62 = vld [vmem:[#allocation21_spill] sm:$0xff]  ;;  %v19195_v61 = vld [vmem:[%s19375_s29 + $0x130] sm:$0xff] }
 0x166   : > { %1403 = vmatprep.subr.mxu1 %v1111_v12  ;;  %v1653_v8 = vsel %vm1650_vm3, %v26045_v22, %v17897_v52  ;;  %v26047_v63 = vunpack.i.h.bf16 %v26046_v42  ;;  %v19191_v12 = vld [vmem:[%s19375_s29 + $0x168] sm:$0xff]  ;;  %v26051_v22 = vunpack.i.h.bf16 %v26049_v62  ;;  %v19194_v47 = vld [vmem:[%s19375_s29 + $0xd8] sm:$0xff] }
 0x167   : > { %2767 = vmatpush1.msra.mxu0 %v19191_v12  ;;  %18100 = vrot.lane.b32.xlu0 %v20713_v44, %s19289_s19 }
 0x168   : > { %v1662_v45 = vsel %vm1650_vm3, %v26047_v63, %v17898_v37  ;;  %18105 = vrot.lane.b32.xlu1 %v20373_v26, %s19290_s12  ;;  %16606 = vmatprep.subr.bf16.mxu0 %v16605_v17  ;;  %v20752_v52 = vpop.permute.xlu0 %17910  ;;  %v26050_v37 = vunpack.i.l.bf16 %v26049_v62  ;;  %v1681_v42 = vsel %vm1650_vm3, %v17903_v3, %v26051_v22  ;;  %v20765_v26 = vld [vmem:[%s19375_s29 + $0x1a0] sm:$0xff]  ;;  %v19193_v63 = vld [vmem:[%s19375_s29 + $0x138] sm:$0xff]  ;;  %v26053_v62 = vld [vmem:[#allocation14_spill] sm:$0xff] }
 0x169   : > { %1404 = vmatpush1.msra.mxu1 %v1110_v23  ;;  %15826 = vmatmul.mubr.msk.f32.vlgmr.msra.gmra.mrb[0].mxu0 %vm577_vm1, %v20735_v9  ;;  %v20762_v38 = vpop.permute.xlu1 %1644  ;;  %26052 = vst [vmem:[#allocation6_spill] sm:$0xff] %v20765_v26  ;;  %v19192_v17 = vld [vmem:[%s19375_s29 + $0xe0] sm:$0xff]  ;;  %v16519_v57 = vpack.c.bf16 %v1662_v45, %v1653_v8  ;;  %v26054_v0 = vunpack.i.h.bf16 %v26053_v62 }
 0x16a   : > { %v1672_v58 = vsel %vm1650_vm3, %v17902_v59, %v26050_v37  ;;  %v16609_v12 = vpack.c.bf16 %v19193_v63, %v19192_v17  ;;  %16608 = vmatpush1.bf16.msra.mxu0 %v16607_v60  ;;  %16518 = vmatprep.subr.bf16.mxu1 %v16517_v29  ;;  %v16611_v37 = vpack.c.bf16 %v19195_v61, %v19194_v47  ;;  %v26055_v22 = vld [vmem:[#allocation13_spill] sm:$0xff]  ;;  %v19196_v29 = vld [vmem:[%s19375_s29 + $0x48] sm:$0xff]  ;;  %v19199_v17 = vld [vmem:[%s19375_s29 + $0x10] sm:$0xff] }
 0x16b   : > { %v1680_v23 = vsel %vm1650_vm3, %v26054_v0, %v17903_v3  ;;  %v26056_v33 = vunpack.i.h.bf16 %v26055_v22  ;;  %15796 = vmatmul.mubr.msk.f32.vlgmr.msra.gmra.mrb[4].mxu1 %vm577_vm1, %v20660_v11  ;;  %18110 = vrot.lane.b32.xlu0 %v20381_v1, %s19290_s12  ;;  %v16521_v60 = vpack.c.bf16 %v1681_v42, %v1672_v58  ;;  %v20788_v0 = vld [vmem:[%s25770_s1 + $0x48] sm:$0xff]  ;;  %v17907_v1 = vunpack.i.l.bf16 %v20717_v4  ;;  %v20804_v42 = vld [vmem:[%s19375_s29 + $0x18] sm:$0xff]  ;;  %v26059_v47 = vld [vmem:[#allocation25_spill] sm:$0xff] }
 0x16c   : > { %16520 = vmatpush1.bf16.msra.mxu1 %v16519_v57  ;;  %3356 = vrot.lane.b32.xlu1 %v20765_v26, %s19289_s19  ;;  %v20783_v8 = vpop.permute.xlu0 %17915  ;;  %v20808_v63 = vpack.i.bf16 %v20804_v42, %v19199_v17  ;;  %v17912_v57 = vunpack.i.l.bf16 %v20752_v52  ;;  %v1690_v61 = vsel %vm1650_vm3, %v20721_v20, %v26059_v47  ;;  %v26063_v22 = vld [vmem:[#allocation23_spill] sm:$0xff]  ;;  %s19291_s19 = smov 92  }
 0x16d   : > { %v1671_v30 = vsel %vm1650_vm3, %v26056_v33, %v17902_v59  ;;  %v17908_v33 = vunpack.i.h.bf16 %v20717_v4  ;;  %16522 = vmatprep.subr.bf16.mxu1 %v16521_v60  ;;  %16610 = vmatprep.subr.bf16.mxu0 %v16609_v12  ;;  %v25869_v11 = vunpack.i.h.bf16 %v20783_v8  ;;  %v25870_v3 = vunpack.i.l.bf16 %v20783_v8  ;;  %v20794_v59 = vpop.permute.xlu1 %17920  ;;  %v19197_v4 = vld [vmem:[%s19375_s29 + $0xa0] sm:$0xff]  ;;  %v20850_v47 = vld [vmem:[%s19375_s29 + $0x70] sm:$0xff] }
 0x16e   : > { %26057 = vst [vmem:[#allocation32_spill] sm:$0xff] %v20794_v59  ;;  %16612 = vmatpush1.bf16.msra.mxu0 %v16611_v37  ;;  %2828 = vmatprep.mubr.f32.mxu0 %v20145_v41  ;;  %v16523_v45 = vpack.c.bf16 %v1680_v23, %v1671_v30  ;;  %v16621_v58 = vpack.c.bf16 %v19197_v4, %v19196_v29  ;;  %26058 = vst [vmem:[#allocation8_spill] sm:$0xff] %v20808_v63  ;;  %v17913_v12 = vunpack.i.h.bf16 %v20752_v52  ;;  %v26061_v52 = vld [vmem:[#allocation22_spill] sm:$0xff]  ;;  %v19201_v29 = vld [vmem:[%s19375_s29 + $0xf8] sm:$0xff] }
 0x16f   : > { %15827 = vmatmul.mubr.msk.f32.gmra.mrb[2].mxu0 %vm577_vm1, %v20788_v0  ;;  %18115 = vrot.lane.b32.xlu0 %v20511_v13, %s19290_s12  ;;  %v20815_v30 = vsel %vm2251_vm4, %v25870_v3, %v17832_v53  ;;  %v20831_v53 = vsel %vm2251_vm4, %v25869_v11, %v17833_v36  ;;  %v26062_v62 = vunpack.i.l.bf16 %v26061_v52  ;;  %v26064_v60 = vunpack.i.l.bf16 %v26063_v22  ;;  %v19202_v4 = vld [vmem:[%s19375_s29 + $0x150] sm:$0xff]  ;;  %v19206_v22 = vld [vmem:[%s19375_s29 + $0x60] sm:$0xff]  ;;  %v19207_v11 = vld [vmem:[%s19375_s29 + $0x188] sm:$0xff] }
 0x170   : > { %16524 = vmatpush1.bf16.msra.mxu1 %v16523_v45  ;;  %3959 = vrot.lane.b32.xlu1 %v20418_v6, %s19290_s12  ;;  %v20824_v37 = vpop.permute.xlu0 %17925  ;;  %v19200_v45 = vld [vmem:[%s19375_s29 + $0x190] sm:$0xff]  ;;  %v16625_v17 = vpack.c.bf16 %v19202_v4, %v19201_v29  ;;  %v26068_v36 = vunpack.i.h.bf16 %v26067_v48  ;;  %v26071_v29 = vld [vmem:[#allocation17_spill] sm:$0xff]  ;;  %v26074_v48 = vld [vmem:[#allocation20_spill] sm:$0xff] }
 0x171   : > { %26060 = vst [vmem:[#allocation33_spill] sm:$0xff] %v20824_v37  ;;  %1465 = vmatprep.mubr.f32.mxu1 %v20145_v41  ;;  %1832 = vmatprep.subr.mxu1 %v1690_v61  ;;  %v20834_v6 = vpop.permute.xlu1 %17930  ;;  %v1658_v23 = vsel %vm1650_vm3, %v17907_v1, %v26062_v62  ;;  %v1667_v19 = vsel %vm1650_vm3, %v17908_v33, %v26064_v60  ;;  %v19204_v61 = vld [vmem:[%s19375_s29 + $0x68] sm:$0xff] }
 0x172   : > { %2920 = vmatprep.subr.mxu0 %v19200_v45  ;;  %15797 = vmatmul.mubr.msk.f32.gmra.mrb[6].mxu1 %vm577_vm1, %v20680_v43  ;;  %v20854_v52 = vpack.i.bf16 %v20850_v47, %v19204_v61  ;;  %v19205_v62 = vld [vmem:[%s19375_s29 + $0x8] sm:$0xff]  ;;  %v1657_v45 = vsel %vm1650_vm3, %v26068_v36, %v17907_v1  ;;  %v1666_v43 = vsel %vm1650_vm3, %v26070_v35, %v17908_v33  ;;  %v26072_v61 = vld [vmem:[#allocation19_spill] sm:$0xff] }
 0x173   : > { %v20858_v60 = vpack.i.bf16 %v19206_v22, %v19205_v62  ;;  %2921 = vmatpush1.msra.mxu0 %v19207_v11  ;;  %2976 = vmatprep.mubr.f32.mxu0 %v20145_v41  ;;  %v1689_v4 = vsel %vm1650_vm3, %v26071_v29, %v20721_v20  ;;  %v26073_v3 = vunpack.i.h.bf16 %v26072_v61  ;;  %v26075_v22 = vunpack.i.h.bf16 %v26074_v48  ;;  %v26076_v11 = vld [vmem:[#allocation26_spill] sm:$0xff]  ;;  %v26078_v29 = vld [vmem:[#allocation27_spill] sm:$0xff] }
 0x174   : > { %26065 = vst [vmem:[#allocation9_spill] sm:$0xff] %v20854_v52  ;;  %16622 = vmatprep.subr.bf16.mxu0 %v16621_v58  ;;  %1833 = vmatpush1.msra.mxu1 %v1689_v4  ;;  %v16533_v35 = vpack.c.bf16 %v1667_v19, %v1658_v23  ;;  %v20881_v28 = vpop.permute.xlu0 %17935  ;;  %v26079_v23 = vunpack.i.l.bf16 %v26078_v29  ;;  %v25872_v4 = vunpack.i.h.bf16 %v20794_v59  ;;  %v17922_v61 = vunpack.i.l.bf16 %v20794_v59  ;;  %v26087_v59 = vld [vmem:[#allocation30_spill] sm:$0xff] }
 0x175   : > { %26066 = vst [vmem:[#allocation10_spill] sm:$0xff] %v20858_v60  ;;  %v20874_v62 = vsel %vm1650_vm3, %v26073_v3, %v17912_v57  ;;  %v20879_v1 = vsel %vm1650_vm3, %v26075_v22, %v17913_v12  ;;  %15830 = vmatmul.mubr.msk.f32.vlgmr.msra.gmra.mrb[4].mxu0 %vm577_vm1, %v20735_v9  ;;  %3961 = vrot.lane.b32.xlu0 %v20421_v24, %s19290_s12  ;;  %v25871_v41 = vunpack.i.h.bf16 %v20881_v28  ;;  %v25874_v20 = vunpack.i.l.bf16 %v20881_v28  ;;  %v20889_v33 = vpop.permute.xlu1 %17940 }
 0x176   : > { %v26077_v3 = vunpack.i.l.bf16 %v26076_v11  ;;  %v1685_v19 = vsel %vm1650_vm3, %v17913_v12, %v26079_v23  ;;  %v25873_v24 = vunpack.i.h.bf16 %v20824_v37  ;;  %v17927_v48 = vunpack.i.l.bf16 %v20824_v37  ;;  %16624 = vmatpush3.bf16.msra.mxu0 %v16621_v58  ;;  %18120 = vrot.lane.b32.xlu1 %v20808_v63, %s19291_s19  ;;  %v20916_v58 = vld [vmem:[%s25770_s1 + $0x20] sm:$0xff] }
 0x177   : > { %16534 = vmatprep.subr.bf16.mxu1 %v16533_v35  ;;  %v16535_v12 = vpack.c.bf16 %v1666_v43, %v1657_v45  ;;  %v20911_v22 = vsel %vm2251_vm4, %v25874_v20, %v17852_v27  ;;  %16626 = vmatprep.subr.bf16.mxu0 %v16625_v17  ;;  %v20923_v45 = vld [vmem:[%s19375_s29 + $0xc8] sm:$0xff]  ;;  %v19211_v43 = vld [vmem:[%s19375_s29 + $0xc0] sm:$0xff]  ;;  %v20934_v27 = vsel %vm2251_vm4, %v25871_v41, %v17853_v46  ;;  %v17933_v46 = vunpack.i.h.bf16 %v20834_v6  ;;  %v26082_v20 = vld [vmem:[#allocation24_spill] sm:$0xff] }
 0x178   : > { %v1676_v36 = vsel %vm1650_vm3, %v17912_v57, %v26077_v3  ;;  %v20903_v57 = vld [vmem:[#allocation2] sm:$0xff]  ;;  %v20920_v35 = vpop.permute.xlu0 %17945  ;;  %v20927_v3 = vpack.i.bf16 %v20923_v45, %v19211_v43  ;;  %v17942_v41 = vunpack.i.l.bf16 %v20889_v33  ;;  %v26088_v16 = vunpack.i.h.bf16 %v26087_v59 }
 0x179   : > { %1888 = vmatprep.mubr.f32.mxu1 %v20903_v57  ;;  %v16537_v11 = vpack.c.bf16 %v1685_v19, %v1676_v36  ;;  %18125 = vrot.lane.b32.xlu0 %v20854_v52, %s19291_s19  ;;  %v16539_v36 = vpack.c.bf16 %v20879_v1, %v20874_v62  ;;  %v17951_v29 = vpop.permute.xlu1 %17950  ;;  %v20941_v23 = vld [vmem:[%s19375_s29 + $0x120] sm:$0xff]  ;;  %v19213_v19 = vld [vmem:[%s19375_s29 + $0x118] sm:$0xff]  ;;  %v3364_v62 = vsel %vm3362_vm5, %v17922_v61, %v25872_v4  ;;  %v26089_v59 = vunpack.i.h.bf16 %v20889_v33 }
 0x17a   : > { %15804 = vmatmul.mubr.msk.f32.vlgmr.msra.gmra.mrb[0].mxu1 %vm577_vm1, %v20916_v58  ;;  %26080 = vst [vmem:[#allocation18_spill] sm:$0xff] %v20941_v23  ;;  %v20945_v43 = vpack.i.bf16 %v20941_v23, %v19213_v19  ;;  %16628 = vmatpush3.bf16.msra.mxu0 %v16625_v17  ;;  %v3373_v1 = vsel %vm3362_vm5, %v17927_v48, %v25873_v24  ;;  %v17947_v17 = vunpack.i.l.bf16 %v20920_v35  ;;  %v17952_v4 = vunpack.i.l.bf16 %v17951_v29  ;;  %v26081_v24 = vld [vmem:[#allocation28_spill] sm:$0xff]  ;;  %v26084_v52 = vld [vmem:[#allocation29_spill] sm:$0xff] }
 0x17b   : > { %16536 = vmatpush1.bf16.msra.mxu1 %v16535_v12  ;;  %v17932_v12 = vunpack.i.l.bf16 %v20834_v6  ;;  %18130 = vrot.lane.b32.xlu1 %v20858_v60, %s19291_s19  ;;  %v1694_v39 = vsel %vm1650_vm3, %v20762_v38, %v26081_v24  ;;  %v1693_v19 = vsel %vm1650_vm3, %v26082_v20, %v20762_v38  ;;  %v26083_v6 = vunpack.i.l.bf16 %v20783_v8  ;;  %v19214_v24 = vld [vmem:[%s19375_s29 + $0x1a8] sm:$0xff] }
 0x17c   : > { %16538 = vmatprep.subr.bf16.mxu1 %v16537_v11  ;;  %2982 = vmatprep.mubr.f32.mxu0 %v20903_v57  ;;  %v17953_v11 = vunpack.i.h.bf16 %v17951_v29  ;;  %v20973_v60 = vpop.permute.xlu0 %17955  ;;  %v26085_v63 = vunpack.i.h.bf16 %v26084_v52  ;;  %v26086_v29 = vunpack.i.h.bf16 %v20783_v8  ;;  %v3372_v23 = vsel %vm3362_vm5, %v17933_v46, %v17927_v48  ;;  %v19215_v8 = vld [vmem:[%s25770_s1 + $0x28] sm:$0xff] }
 0x17d   : > { %15831 = vmatmul.mubr.msk.f32.gmra.mrb[6].mxu0 %vm577_vm1, %v20788_v0  ;;  %1894 = vmatprep.mubr.f32.mxu1 %v20903_v57  ;;  %v17958_v26 = vunpack.i.h.bf16 %v20973_v60  ;;  %v17957_v38 = vunpack.i.l.bf16 %v20973_v60  ;;  %v20988_v20 = vpop.permute.xlu1 %2237  ;;  %v3363_v52 = vsel %vm3362_vm5, %v17932_v12, %v17922_v61  ;;  %v26090_v61 = vunpack.i.h.bf16 %v20920_v35 }
 0x17e   : > { %v2254_v37 = vsel %vm2251_vm4, %v26085_v63, %v26083_v6  ;;  %v2263_v13 = vsel %vm2251_vm4, %v26088_v16, %v26086_v29  ;;  %16260 = vmatprep.subr.mxu0 %v19214_v24  ;;  %15805 = vmatmul.mubr.msk.f32.gmra.mrb[2].mxu1 %vm577_vm1, %v19215_v8  ;;  %v16629_v16 = vpack.c.bf16 %v3373_v1, %v3364_v62  ;;  %v26092_v1 = vunpack.i.l.bf16 %v20544_v31 }
 0x17f   : > { %16540 = vmatpush1.bf16.msra.mxu1 %v16539_v36  ;;  %16261 = vmatpush3.msra.mxu0 %v19214_v24  ;;  %v3382_v63 = vsel %vm3362_vm5, %v17942_v41, %v26089_v59  ;;  %v3391_v48 = vsel %vm3362_vm5, %v17947_v17, %v26090_v61  ;;  %v26091_v36 = vunpack.i.l.bf16 %v20538_v14  ;;  %v3390_v46 = vsel %vm3362_vm5, %v17953_v11, %v17947_v17  ;;  %v19216_v17 = vld [vmem:[%s19375_s29 + $0xb8] sm:$0xff] }
 0x180   : > { %1986 = vmatprep.subr.mxu1 %v1694_v39  ;;  %18135 = vrot.lane.b32.xlu0 %v20580_v56, %s19290_s12  ;;  %v3381_v12 = vsel %vm3362_vm5, %v17952_v4, %v17942_v41  ;;  %v21017_v62 = vpop.permute.xlu0 %17960  ;;  %v21024_v14 = vsel %vm2251_vm4, %v17958_v26, %v26092_v1  ;;  %v16631_v6 = vpack.c.bf16 %v3372_v23, %v3363_v52  ;;  %v19217_v41 = vld [vmem:[%s19375_s29 + $0x110] sm:$0xff]  ;;  %v26094_v52 = vunpack.i.l.bf16 %v20881_v28 }
 0x181   : > { %v21009_v39 = vsel %vm2251_vm4, %v17957_v38, %v26091_v36  ;;  %18140 = vrot.lane.b32.xlu1 %v20927_v3, %s19291_s19  ;;  %16262 = vmatprep.mubr.msk.f32.mxu0 %vm577_vm1, %v20735_v9  ;;  %v21028_v4 = vpack.i.bf16 %v19217_v41, %v19216_v17  ;;  %v21030_v11 = vpop.permute.xlu1 %17965  ;;  %v16633_v31 = vpack.c.bf16 %v3391_v48, %v3382_v63  ;;  %v26097_v36 = vunpack.i.h.bf16 %v20881_v28  ;;  %v21067_v48 = vld [vmem:[%s19375_s29 + $0x38] sm:$0xff] }
 0x182   : > { %16630 = vmatprep.subr.bf16.mxu0 %v16629_v16  ;;  %v16573_v29 = vpack.c.bf16 %v21024_v14, %v21009_v39  ;;  %16263 = vmatmul.mubr.msk.f32.vlgmr.msra.gmra.mrb[8].mxu0 %vm577_vm1, %v20788_v0  ;;  %v16559_v23 = vpack.c.bf16 %v2263_v13, %v2254_v37  ;;  %v16635_v24 = vpack.c.bf16 %v3390_v46, %v3381_v12  ;;  %v26095_v16 = vld [vmem:[#allocation31_spill] sm:$0xff]  ;;  %v26098_v1 = vunpack.i.h.bf16 %v20344_v25 }
 0x183   : > { %1987 = vmatpush1.msra.mxu1 %v1693_v19  ;;  %2042 = vmatprep.mubr.f32.mxu1 %v20903_v57  ;;  %v26093_v19 = vpack.c.bf16 %v20831_v53, %v20815_v30  ;;  %v26096_v59 = vunpack.i.h.bf16 %v26095_v16  ;;  %v26099_v25 = vpack.c.bf16 %v20934_v27, %v20911_v22  ;;  %v25891_v37 = vunpack.i.h.bf16 %v21017_v62  ;;  %v19219_v46 = vld [vmem:[%s19375_s29 + $0x30] sm:$0xff] }
 0x184   : > { %16632 = vmatpush1.bf16.msra.mxu0 %v16631_v6  ;;  %v2281_v17 = vsel %vm2251_vm4, %v26098_v1, %v26097_v36  ;;  %15808 = vmatmul.mubr.msk.f32.vlgmr.msra.gmra.mrb[4].mxu1 %vm577_vm1, %v20916_v58  ;;  %v3345_v13 = vpop.permute.xlu0 %3344  ;;  %v17962_v53 = vunpack.i.l.bf16 %v21017_v62  ;;  %v25889_v28 = vunpack.i.h.bf16 %v21030_v11  ;;  %v17967_v58 = vunpack.i.l.bf16 %v21030_v11  ;;  %v21080_v12 = vld [vmem:[%s19375_s29 + $0x90] sm:$0xff]  ;;  %v19221_v6 = vld [vmem:[%s19375_s29 + $0x88] sm:$0xff] }
 0x185   : > { %16558 = vmatprep.subr.bf16.mxu1 %v26093_v19  ;;  %v2272_v61 = vsel %vm2251_vm4, %v26096_v59, %v26094_v52  ;;  %18145 = vrot.lane.b32.xlu0 %v20945_v43, %s19291_s19  ;;  %v21056_v30 = vpop.permute.xlu1 %3346  ;;  %v21071_v22 = vpack.i.bf16 %v21067_v48, %v19219_v46  ;;  %v2291_v27 = vsel %vm2251_vm4, %v20988_v20, %v20582_v50  ;;  %v26101_v50 = vunpack.i.h.bf16 %v20399_v34 }
 0x186   : > { %16560 = vmatpush1.bf16.msra.mxu1 %v16559_v23  ;;  %18150 = vrot.lane.b32.xlu1 %v21028_v4, %s19291_s19  ;;  %v16563_v63 = vpack.c.bf16 %v2281_v17, %v2272_v61  ;;  %v21084_v41 = vpack.i.bf16 %v21080_v12, %v19221_v6  ;;  %v26100_v23 = vunpack.i.h.bf16 %v20394_v51  ;;  %v3368_v34 = vsel %vm3362_vm5, %v17962_v53, %v25891_v37 }
 0x187   : > { %16562 = vmatprep.subr.bf16.mxu1 %v26099_v25  ;;  %16634 = vmatprep.subr.bf16.mxu0 %v16633_v31  ;;  %v3400_v31 = vsel %vm3362_vm5, %v3345_v13, %v21056_v30  ;;  %v2290_v61 = vsel %vm2251_vm4, %v20423_v40, %v20988_v20  ;;  %v21131_v40 = vld [vmem:[%s25770_s1 + $0x50] sm:$0xff]  ;;  %v26102_v46 = vunpack.i.h.bf16 %v20467_v2  ;;  %v26103_v6 = vunpack.i.h.bf16 %v20495_v21 }
 0x188   : > { %16636 = vmatpush1.bf16.msra.mxu0 %v16635_v24  ;;  %2048 = vmatprep.mubr.f32.mxu1 %v20903_v57  ;;  %v21088_v19 = vpop.permute.xlu0 %17970  ;;  %v2258_v24 = vsel %vm2251_vm4, %v26100_v23, %v17957_v38  ;;  %v26104_v39 = vunpack.i.l.bf16 %v20597_v15  ;;  %v21155_v23 = vld [vmem:[%s19375_s29 + $0x28] sm:$0xff]  ;;  %v26105_v15 = vunpack.i.l.bf16 %v20611_v55  ;;  %v16615_v37 = vpack.c.bf16 %v21080_v12, %v21067_v48  ;;  %v19243_v48 = vld [vmem:[%s19375_s29 + $0xf0] sm:$0xff] }
 0x189   : > { %18155 = vrot.lane.b32.xlu0 %v20620_v32, %s19290_s12  ;;  %15809 = vmatmul.mubr.msk.f32.gmra.mrb[6].mxu1 %vm577_vm1, %v19215_v8  ;;  %v2267_v8 = vsel %vm2251_vm4, %v26101_v50, %v17958_v26  ;;  %v25897_v52 = vunpack.i.h.bf16 %v21088_v19  ;;  %v25898_v16 = vunpack.i.l.bf16 %v21088_v19  ;;  %v3343_v59 = vpop.permute.xlu1 %3342  ;;  %v3377_v26 = vsel %vm3362_vm5, %v17967_v58, %v25889_v28  ;;  %v19244_v12 = vld [vmem:[%s19375_s29 + $0x148] sm:$0xff] }
 0x18a   : > { %16564 = vmatpush1.bf16.msra.mxu1 %v16563_v63  ;;  %3949 = vrot.lane.b32.xlu1 %v20647_v18, %s19290_s12  ;;  %v3399_v51 = vsel %vm3362_vm5, %v3343_v59, %v3345_v13  ;;  %v16575_v36 = vpack.c.bf16 %v2267_v8, %v2258_v24  ;;  %v16645_v17 = vpack.c.bf16 %v3377_v26, %v3368_v34  ;;  %v21158_v24 = vld [vmem:[%s19375_s29 + $0x80] sm:$0xff] }
 0x18b   : > { %2433 = vmatprep.subr.mxu1 %v2291_v27  ;;  %2489 = vmatprep.mubr.f32.mxu1 %v20903_v57  ;;  %v3367_v60 = vsel %vm3362_vm5, %v25898_v16, %v17962_v53  ;;  %v3376_v38 = vsel %vm3362_vm5, %v25897_v52, %v17967_v58  ;;  %v18169_v2 = vpack.i.bf16 %v21158_v24, %v21155_v23 }
 0x18c   : > { %3467 = vmatprep.subr.mxu0 %v3400_v31  ;;  %3523 = vmatprep.mubr.f32.mxu0 %v20903_v57  ;;  %v17976_v1 = vpop.permute.xlu0 %17975  ;;  %v16647_v20 = vpack.c.bf16 %v3376_v38, %v3367_v60 }
 0x18d   : > { %18160 = vrot.lane.b32.xlu0 %v21071_v22, %s19291_s19  ;;  %3468 = vmatpush1.msra.mxu0 %v3399_v51  ;;  %v17978_v13 = vunpack.i.h.bf16 %v17976_v1  ;;  %v17977_v25 = vunpack.i.l.bf16 %v17976_v1  ;;  %v21126_v53 = vpop.permute.xlu1 %17980  ;;  %v19226_v1 = vld [vmem:[%s19375_s29 + $0xe0] sm:$0xff] }
 0x18e   : > { %2434 = vmatpush1.msra.mxu1 %v2290_v61  ;;  %18165 = vrot.lane.b32.xlu1 %v21084_v41, %s19291_s19  ;;  %v25887_v58 = vunpack.i.h.bf16 %v21126_v53  ;;  %v17982_v63 = vunpack.i.l.bf16 %v21126_v53  ;;  %v21184_v61 = vld [vmem:[%s25770_s1 + $0x58] sm:$0xff] }
 0x18f   : > { %16574 = vmatprep.subr.bf16.mxu1 %v16573_v29  ;;  %15816 = vmatmul.mubr.msk.f32.vlgmr.msra.gmra.mrb[0].mxu1 %vm577_vm1, %v20452_v10  ;;  %v2276_v27 = vsel %vm2251_vm4, %v26102_v46, %v17977_v25  ;;  %v2285_v31 = vsel %vm2251_vm4, %v26103_v6, %v17978_v13  ;;  %v2277_v14 = vsel %vm2251_vm4, %v17977_v25, %v26104_v39  ;;  %v21150_v29 = vld [vmem:[%s19375_s29 + $0x170] sm:$0xff]  ;;  %v21207_v6 = vld [vmem:[%s19375_s29 + $0x168] sm:$0xff] }
 0x190   : > { %16576 = vmatpush1.bf16.msra.mxu1 %v16575_v36  ;;  %16646 = vmatprep.subr.bf16.mxu0 %v16645_v17  ;;  %v21164_v21 = vpop.permute.xlu0 %17985  ;;  %v2286_v50 = vsel %vm2251_vm4, %v17978_v13, %v26105_v15  ;;  %v16579_v8 = vpack.c.bf16 %v2285_v31, %v2276_v27  ;;  %v3386_v60 = vsel %vm3362_vm5, %v17982_v63, %v25887_v58  ;;  %v21188_v36 = vld [vmem:[%s19375_s29 + $0xe8] sm:$0xff]  ;;  %v19229_v15 = vld [vmem:[%s19375_s29 + $0x78] sm:$0xff] }
 0x191   : > { %4546 = vrot.lane.b32.xlu0 %v21150_v29, %s19291_s19  ;;  %15838 = vmatmul.mubr.msk.f32.vlgmr.msra.gmra.mrb[0].mxu0 %vm577_vm1, %v21131_v40  ;;  %v25886_v59 = vunpack.i.h.bf16 %v21164_v21  ;;  %v17987_v51 = vunpack.i.l.bf16 %v21164_v21  ;;  %v21173_v34 = vpop.permute.xlu1 %17990  ;;  %v16577_v26 = vpack.c.bf16 %v2286_v50, %v2277_v14  ;;  %v21192_v17 = vpack.i.bf16 %v21188_v36, %v19226_v1  ;;  %v19241_v58 = vld [vmem:[%s19375_s29 + $0x98] sm:$0xff] }
 0x192   : > { %4548 = vrot.lane.b32.xlu1 %v20564_v54, %s19291_s19  ;;  %16648 = vmatpush1.bf16.msra.mxu0 %v16647_v20  ;;  %v25895_v55 = vunpack.i.h.bf16 %v21173_v34  ;;  %v25896_v38 = vunpack.i.l.bf16 %v21173_v34 }
 0x193   : > { %3529 = vmatprep.mubr.f32.mxu0 %v20903_v57  ;;  %2495 = vmatprep.mubr.f32.mxu1 %v20903_v57  ;;  %v3395_v13 = vsel %vm3362_vm5, %v17987_v51, %v25886_v59  ;;  %v19240_v59 = vld [vmem:[%s19375_s29 + $0x40] sm:$0xff] }
 0x194   : > { %16578 = vmatprep.subr.bf16.mxu1 %v16577_v26  ;;  %15817 = vmatmul.mubr.msk.f32.gmra.mrb[2].mxu1 %vm577_vm1, %v20473_v7  ;;  %v3394_v25 = vsel %vm3362_vm5, %v25895_v55, %v17987_v51  ;;  %v3385_v20 = vsel %vm3362_vm5, %v25896_v38, %v17982_v63  ;;  %v2246_v46 = vpop.permute.xlu0 %2245  ;;  %v16649_v27 = vpack.c.bf16 %v3395_v13, %v3386_v60  ;;  %v19228_v63 = vld [vmem:[%s19375_s29 + $0x20] sm:$0xff]  ;;  %v19231_v26 = vld [vmem:[%s19375_s29 + $0x138] sm:$0xff]  ;;  %v19232_v13 = vld [vmem:[%s19375_s29 + $0xd0] sm:$0xff] }
 0x195   : > { %18170 = vrot.lane.b32.xlu0 %v18169_v2, %s19291_s19  ;;  %16580 = vmatpush1.bf16.msra.mxu1 %v16579_v8  ;;  %v21211_v31 = vpop.permute.xlu1 %17995  ;;  %v2295_v39 = vsel %vm2251_vm4, %v2246_v46, %v20652_v5  ;;  %v2294_v14 = vsel %vm2251_vm4, %v20561_v49, %v2246_v46  ;;  %v16651_v2 = vpack.c.bf16 %v3394_v25, %v3385_v20  ;;  %v21229_v51 = vld [vmem:[%s19375_s29 + $0x140] sm:$0xff]  ;;  %v19233_v25 = vld [vmem:[%s19375_s29 + $0x128] sm:$0xff]  ;;  %v21242_v46 = vld [vmem:[%s19375_s29 + $0xd8] sm:$0xff] }
 0x196   : > { %4544 = vrot.lane.b32.xlu1 %v21207_v6, %s19291_s19  ;;  %15839 = vmatmul.mubr.msk.f32.gmra.mrb[2].mxu0 %vm577_vm1, %v21184_v61  ;;  %v16597_v50 = vpack.c.bf16 %v19229_v15, %v19228_v63  ;;  %v17998_v8 = vunpack.i.h.bf16 %v21211_v31  ;;  %v25890_v5 = vunpack.i.l.bf16 %v21211_v31  ;;  %v16599_v49 = vpack.c.bf16 %v20850_v47, %v20804_v42  ;;  %v21245_v42 = vld [vmem:[%s19375_s29 + $0x130] sm:$0xff]  ;;  %v26106_v15 = vld [vmem:[#allocation18_spill] sm:$0xff] }
 0x197   : > { %2587 = vmatprep.subr.mxu1 %v2295_v39  ;;  %16650 = vmatprep.subr.bf16.mxu0 %v16649_v27  ;;  %v21233_v60 = vpack.i.bf16 %v21229_v51, %v19231_v26  ;;  %v16601_v20 = vpack.c.bf16 %v19233_v25, %v19232_v13  ;;  %v18189_v47 = vpack.i.bf16 %v21245_v42, %v21242_v46  ;;  %v26107_v13 = vld [vmem:[#allocation6_spill] sm:$0xff] }
 0x198   : > { %16652 = vmatpush1.bf16.msra.mxu0 %v16651_v2  ;;  %3677 = vmatprep.mubr.f32.mxu0 %v20903_v57  ;;  %v21235_v1 = vpop.permute.xlu0 %18000  ;;  %v3371_v2 = vsel %vm3362_vm5, %v25890_v5, %v17998_v8  ;;  %v16603_v26 = vpack.c.bf16 %v26106_v15, %v20923_v45  ;;  %v21279_v25 = vld [vmem:[%s19375_s29 + $0x48] sm:$0xff]  ;;  %v19242_v5 = vld [vmem:[%s19375_s29 + $0x180] sm:$0xff] }
 0x199   : > { %18175 = vrot.lane.b32.xlu0 %v20713_v44, %s19290_s12  ;;  %2588 = vmatpush1.msra.mxu1 %v2294_v14  ;;  %v18003_v27 = vunpack.i.h.bf16 %v21235_v1  ;;  %v25888_v39 = vunpack.i.l.bf16 %v21235_v1  ;;  %v3353_v14 = vpop.permute.xlu1 %3352 }
 0x19a   : > { %18180 = vrot.lane.b32.xlu1 %v21192_v17, %s19291_s19  ;;  %2643 = vmatprep.mubr.f32.mxu1 %v20903_v57 }
 0x19b   : > { %16598 = vmatprep.subr.bf16.mxu1 %v16597_v50  ;;  %15820 = vmatmul.mubr.msk.f32.vlgmr.msra.gmra.mrb[4].mxu1 %vm577_vm1, %v20452_v10  ;;  %v3380_v63 = vsel %vm3362_vm5, %v25888_v39, %v18003_v27  ;;  %v16613_v39 = vpack.c.bf16 %v19241_v58, %v19240_v59 }
 0x19c   : > { %16600 = vmatpush1.bf16.msra.mxu1 %v16599_v49  ;;  %2649 = vmatprep.mubr.f32.mxu1 %v20903_v57  ;;  %v21265_v10 = vpop.permute.xlu0 %3354  ;;  %v16661_v49 = vpack.c.bf16 %v3380_v63, %v3371_v2  ;;  %v21294_v2 = vld [vmem:[%s19375_s29 + $0xa8] sm:$0xff] }
 0x19d   : > { %18185 = vrot.lane.b32.xlu0 %v21233_v60, %s19291_s19  ;;  %16602 = vmatprep.subr.bf16.mxu1 %v16601_v20  ;;  %v21268_v50 = vpop.permute.xlu1 %3350  ;;  %v3404_v8 = vsel %vm3362_vm5, %v3353_v14, %v21265_v10  ;;  %v21282_v20 = vld [vmem:[%s19375_s29 + $0x50] sm:$0xff]  ;;  %26109 = vst [vmem:[#allocation11_spill] sm:$0xff] %v21294_v2 }
 0x19e   : > { %18190 = vrot.lane.b32.xlu1 %v18189_v47, %s19291_s19  ;;  %3621 = vmatprep.subr.mxu0 %v3404_v8  ;;  %v3403_v45 = vsel %vm3362_vm5, %v21268_v50, %v3353_v14  ;;  %v18199_v47 = vpack.i.bf16 %v21282_v20, %v21279_v25  ;;  %v26108_v14 = vld [vmem:[#allocation34_spill] sm:$0xff] }
 0x19f   : > { %15821 = vmatmul.mubr.msk.f32.gmra.mrb[6].mxu1 %vm577_vm1, %v20473_v7  ;;  %3622 = vmatpush1.msra.mxu0 %v3403_v45  ;;  %v21291_v7 = vld [vmem:[%s19375_s29 + $0xa0] sm:$0xff] }
 0x1a0   : > { %16604 = vmatpush1.bf16.msra.mxu1 %v16603_v26  ;;  %v21286_v27 = vpop.permute.xlu0 %18005  ;;  %16662 = vmatprep.subr.bf16.mxu0 %v16661_v49  ;;  %v18204_v63 = vpack.i.bf16 %v21294_v2, %v21291_v7 }
 0x1a1   : > { %3957 = vrot.lane.b32.xlu0 %v26107_v13, %s19290_s12  ;;  %v18008_v15 = vunpack.i.h.bf16 %v21286_v27  ;;  %v25894_v26 = vunpack.i.l.bf16 %v21286_v27  ;;  %v21300_v8 = vpop.permute.xlu1 %18010  ;;  %15842 = vmatmul.mubr.msk.f32.vlgmr.msra.gmra.mrb[4].mxu0 %vm577_vm1, %v21131_v40 }
 0x1a2   : > { %18195 = vrot.lane.b32.xlu1 %v26108_v14, %s19291_s19  ;;  %v18013_v45 = vunpack.i.h.bf16 %v21300_v8  ;;  %v25892_v14 = vunpack.i.l.bf16 %v21300_v8  ;;  %16664 = vmatpush3.bf16.msra.mxu0 %v16661_v49 }
 0x1a3   : > { %3683 = vmatprep.mubr.f32.mxu0 %v20903_v57  ;;  %v3389_v28 = vsel %vm3362_vm5, %v25894_v26, %v18008_v15  ;;  %2843 = vmatprep.subr.mxu1 %v19242_v5  ;;  %v16619_v15 = vpack.c.bf16 %v21229_v51, %v21188_v36  ;;  %v21377_v26 = vld [vmem:[%s19375_s29 + $0x158] sm:$0xff] }
 0x1a4   : > { %2899 = vmatprep.mubr.f32.mxu1 %v20903_v57  ;;  %v21317_v49 = vpop.permute.xlu0 %3358  ;;  %v3398_v58 = vsel %vm3362_vm5, %v25892_v14, %v18013_v45  ;;  %2844 = vmatpush1.msra.mxu1 %v20564_v54  ;;  %v21333_v54 = vld [vmem:[%s19375_s29 + $0x190] sm:$0xff]  ;;  %26112 = vst [vmem:[#allocation7_spill] sm:$0xff] %v21377_v26 }
 0x1a5   : > { %18200 = vrot.lane.b32.xlu0 %v18199_v47, %s19291_s19  ;;  %v3361_v59 = vpop.permute.xlu1 %3360  ;;  %v16665_v5 = vpack.c.bf16 %v3398_v58, %v3389_v28  ;;  %15843 = vmatmul.mubr.msk.f32.gmra.mrb[6].mxu0 %vm577_vm1, %v21184_v61  ;;  %v16617_v47 = vpack.c.bf16 %v19244_v12, %v19243_v48  ;;  %v21361_v48 = vld [vmem:[%s19375_s29 + $0xf8] sm:$0xff]  ;;  %v21364_v12 = vld [vmem:[%s19375_s29 + $0x100] sm:$0xff] }
 0x1a6   : > { %18205 = vrot.lane.b32.xlu1 %v18204_v63, %s19291_s19  ;;  %16614 = vmatprep.subr.bf16.mxu1 %v16613_v39  ;;  %v3407_v39 = vsel %vm3362_vm5, %v21317_v49, %v3361_v59  ;;  %v26110_v63 = vld [vmem:[#allocation5_spill] sm:$0xff]  ;;  %26111 = vst [vmem:[#allocation12_spill] sm:$0xff] %v21364_v12  ;;  %v18214_v14 = vpack.i.bf16 %v21364_v12, %v21361_v48 }
 0x1a7   : > { %15828 = vmatmul.mubr.msk.f32.vlgmr.msra.gmra.mrb[0].mxu1 %vm577_vm1, %v20735_v9  ;;  %16666 = vmatprep.subr.bf16.mxu0 %v16665_v5 }
 0x1a8   : > { %16616 = vmatpush1.bf16.msra.mxu1 %v16615_v37  ;;  %16668 = vmatpush3.bf16.msra.mxu0 %v16665_v5  ;;  %v21337_v28 = vpop.permute.xlu0 %18015  ;;  %v21356_v5 = vld [vmem:[%s19375_s29 + $0x188] sm:$0xff] }
 0x1a9   : > { %4554 = vrot.lane.b32.xlu0 %v21333_v54, %s19291_s19  ;;  %v25893_v37 = vunpack.i.h.bf16 %v21337_v28  ;;  %v18017_v36 = vunpack.i.l.bf16 %v21337_v28  ;;  %v21345_v51 = vpop.permute.xlu1 %18020  ;;  %16273 = vmatprep.subr.mxu0 %v3407_v39 }
 0x1aa   : > { %4556 = vrot.lane.b32.xlu1 %v26110_v63, %s19291_s19  ;;  %v25899_v45 = vunpack.i.h.bf16 %v21345_v51  ;;  %v18022_v58 = vunpack.i.l.bf16 %v21345_v51  ;;  %16275 = vmatprep.mubr.msk.f32.mxu0 %vm577_vm1, %v21131_v40 }
 0x1ab   : > { %16618 = vmatprep.subr.bf16.mxu1 %v16617_v47  ;;  %v3965_v59 = vsel %vm3963_vm6, %v18017_v36, %v25893_v37  ;;  %2905 = vmatprep.mubr.f32.mxu1 %v20903_v57  ;;  %v21374_v37 = vld [vmem:[%s19375_s29 + $0x150] sm:$0xff] }
 0x1ac   : > { %16620 = vmatpush1.bf16.msra.mxu1 %v16619_v15  ;;  %16274 = vmatpush3.msra.mxu0 %v3407_v39  ;;  %v18026_v47 = vpop.permute.xlu0 %18025  ;;  %v3974_v15 = vsel %vm3963_vm6, %v18022_v58, %v25899_v45  ;;  %v18219_v55 = vpack.i.bf16 %v21377_v26, %v21374_v37 }
 0x1ad   : > { %4552 = vrot.lane.b32.xlu0 %v21356_v5, %s19291_s19  ;;  %v18028_v38 = vunpack.i.h.bf16 %v18026_v47  ;;  %v18027_v52 = vunpack.i.l.bf16 %v18026_v47  ;;  %v21381_v16 = vpop.permute.xlu1 %18030  ;;  %v16669_v39 = vpack.c.bf16 %v3974_v15, %v3965_v59  ;;  %16276 = vmatmul.mubr.msk.f32.vlgmr.msra.gmra.mrb[8].mxu0 %vm577_vm1, %v21184_v61 }
 0x1ae   : > { %18210 = vrot.lane.b32.xlu1 %v20580_v56, %s19291_s19  ;;  %v18032_v12 = vunpack.i.l.bf16 %v21381_v16  ;;  %15829 = vmatmul.mubr.msk.f32.gmra.mrb[2].mxu1 %vm577_vm1, %v20788_v0  ;;  %v19251_v56 = vld [vmem:[%s19375_s29 + $0x1a0] sm:$0xff] }
 0x1af   : > { %2997 = vmatprep.subr.mxu1 %v19251_v56  ;;  %v3964_v2 = vsel %vm3963_vm6, %v18027_v52, %v18017_v36  ;;  %v3973_v26 = vsel %vm3963_vm6, %v18028_v38, %v18022_v58  ;;  %16670 = vmatprep.subr.bf16.mxu0 %v16669_v39  ;;  %v26113_v52 = vunpack.i.h.bf16 %v21381_v16 }
 0x1b0   : > { %2998 = vmatpush1.msra.mxu1 %v26110_v63  ;;  %v21394_v59 = vpop.permute.xlu0 %18035  ;;  %v16671_v47 = vpack.c.bf16 %v3973_v26, %v3964_v2  ;;  %3053 = vmatprep.mubr.f32.mxu1 %v20903_v57 }
 0x1b1   : > { %18215 = vrot.lane.b32.xlu0 %v18214_v14, %s19291_s19  ;;  %v25905_v15 = vunpack.i.h.bf16 %v21394_v59  ;;  %v18037_v56 = vunpack.i.l.bf16 %v21394_v59  ;;  %v18041_v45 = vpop.permute.xlu1 %18040  ;;  %v3983_v38 = vsel %vm3963_vm6, %v18032_v12, %v26113_v52  ;;  %4124 = vmatprep.mubr.f32.mxu0 %v20903_v57 }
 0x1b2   : > { %18220 = vrot.lane.b32.xlu1 %v18219_v55, %s19291_s19  ;;  %v18043_v63 = vunpack.i.h.bf16 %v18041_v45  ;;  %v18042_v14 = vunpack.i.l.bf16 %v18041_v45  ;;  %16672 = vmatpush1.bf16.msra.mxu0 %v16671_v47 }
 0x1b3   : > { %15832 = vmatmul.mubr.msk.f32.vlgmr.msra.gmra.mrb[4].mxu1 %vm577_vm1, %v20735_v9  ;;  %v3992_v55 = vsel %vm3963_vm6, %v18037_v56, %v25905_v15 }
 0x1b4   : > { %3059 = vmatprep.mubr.f32.mxu1 %v20903_v57  ;;  %v3991_v2 = vsel %vm3963_vm6, %v18043_v63, %v18037_v56  ;;  %v3982_v26 = vsel %vm3963_vm6, %v18042_v14, %v18032_v12  ;;  %v18046_v36 = vpop.permute.xlu0 %18045  ;;  %v16673_v45 = vpack.c.bf16 %v3992_v55, %v3983_v38  ;;  %v26117_v12 = vld [vmem:[#allocation33_spill] sm:$0xff]  ;;  %v26120_v55 = vunpack.i.h.bf16 %v21088_v19 }
 0x1b5   : > { %18225 = vrot.lane.b32.xlu0 %v20620_v32, %s19291_s19  ;;  %v18048_v9 = vunpack.i.h.bf16 %v18046_v36  ;;  %v18047_v58 = vunpack.i.l.bf16 %v18046_v36  ;;  %v21416_v39 = vpop.permute.xlu1 %18050  ;;  %v16675_v47 = vpack.c.bf16 %v3991_v2, %v3982_v26  ;;  %v26115_v32 = vld [vmem:[#allocation32_spill] sm:$0xff]  ;;  %v26118_v63 = vunpack.i.h.bf16 %v26117_v12  ;;  %v21433_v26 = vld [vmem:[%s19375_s29 + $0x1a8] sm:$0xff] }
 0x1b6   : > { %4550 = vrot.lane.b32.xlu1 %v20647_v18, %s19291_s19  ;;  %26114 = vst [vmem:[#allocation21_spill] sm:$0xff] %v21416_v39  ;;  %16674 = vmatprep.subr.bf16.mxu0 %v16673_v45  ;;  %v26116_v56 = vunpack.i.h.bf16 %v26115_v32  ;;  %v26119_v18 = vunpack.i.l.bf16 %v21088_v19  ;;  %v25903_v19 = vunpack.i.h.bf16 %v21416_v39 }
 0x1b7   : > { %15833 = vmatmul.mubr.msk.f32.gmra.mrb[6].mxu1 %vm577_vm1, %v20788_v0  ;;  %v3374_v38 = vsel %vm3362_vm5, %v26118_v63, %v18048_v9  ;;  %16676 = vmatpush1.bf16.msra.mxu0 %v16675_v47  ;;  %v3375_v2 = vsel %vm3362_vm5, %v18048_v9, %v26120_v55  ;;  %v21441_v47 = vld [vmem:[%s19375_s29 + $0x1b0] sm:$0xff]  ;;  %v18052_v9 = vunpack.i.l.bf16 %v21416_v39  ;;  %v26123_v63 = vld [vmem:[#allocation9_spill] sm:$0xff] }
 0x1b8   : > { %v3365_v52 = vsel %vm3362_vm5, %v26116_v56, %v18047_v58  ;;  %v3366_v14 = vsel %vm3362_vm5, %v18047_v58, %v26119_v18  ;;  %v21437_v0 = vpop.permute.xlu0 %18055  ;;  %3600 = vmatprep.mubr.f32.mxu1 %v20903_v57 }
 0x1b9   : > { %4560 = vrot.lane.b32.xlu0 %v21433_v26, %s19291_s19  ;;  %26121 = vst [vmem:[#allocation14_spill] sm:$0xff] %v21437_v0  ;;  %v16637_v36 = vpack.c.bf16 %v3375_v2, %v3366_v14  ;;  %v16639_v45 = vpack.c.bf16 %v3374_v38, %v3365_v52  ;;  %v3946_v58 = vpop.permute.xlu1 %3945  ;;  %v25904_v32 = vunpack.i.h.bf16 %v21437_v0  ;;  %v18057_v56 = vunpack.i.l.bf16 %v21437_v0  ;;  %v26122_v52 = vld [vmem:[#allocation8_spill] sm:$0xff] }
 0x1ba   : > { %4562 = vrot.lane.b32.xlu1 %v21441_v47, %s19291_s19  ;;  %v3969_v2 = vsel %vm3963_vm6, %v18052_v9, %v25903_v19  ;;  %v21478_v19 = vld [vmem:[%s25770_s1 + $0x60] sm:$0xff] }
 0x1bb   : > { %16638 = vmatprep.subr.bf16.mxu1 %v16637_v36  ;;  %v3978_v36 = vsel %vm3963_vm6, %v18057_v56, %v25904_v32 }
 0x1bc   : > { %16640 = vmatpush1.bf16.msra.mxu1 %v16639_v45  ;;  %v21451_v12 = vpop.permute.xlu0 %3947  ;;  %v26124_v45 = vld [vmem:[#allocation10_spill] sm:$0xff]  ;;  %v16685_v15 = vpack.c.bf16 %v3978_v36, %v3969_v2 }
 0x1bd   : > { %18230 = vrot.lane.b32.xlu0 %v26122_v52, %s19292_s15  ;;  %v21455_v38 = vpop.permute.xlu1 %18060  ;;  %v4001_v18 = vsel %vm3963_vm6, %v3946_v58, %v21451_v12 }
 0x1be   : > { %18235 = vrot.lane.b32.xlu1 %v26123_v63, %s19292_s15  ;;  %v25908_v14 = vunpack.i.h.bf16 %v21455_v38  ;;  %v18062_v55 = vunpack.i.l.bf16 %v21455_v38  ;;  %4068 = vmatprep.subr.mxu0 %v4001_v18 }
 0x1c0   : > { %v3977_v52 = vsel %vm3963_vm6, %v25908_v14, %v18057_v56  ;;  %v3968_v63 = vsel %vm3963_vm6, %v18062_v55, %v18052_v9  ;;  %v3944_v18 = vpop.permute.xlu0 %3943  ;;  %v26125_v9 = vunpack.i.h.bf16 %v20920_v35 }
 0x1c1   : > { %18240 = vrot.lane.b32.xlu0 %v26124_v45, %s19292_s15  ;;  %v4000_v32 = vsel %vm3963_vm6, %v3944_v18, %v3946_v58  ;;  %v18066_v45 = vpop.permute.xlu1 %18065  ;;  %v16687_v56 = vpack.c.bf16 %v3977_v52, %v3968_v63  ;;  %v26128_v52 = vunpack.i.h.bf16 %v21173_v34 }
 0x1c2   : > { %18245 = vrot.lane.b32.xlu1 %v20713_v44, %s19291_s19  ;;  %v18068_v0 = vunpack.i.h.bf16 %v18066_v45  ;;  %v18067_v39 = vunpack.i.l.bf16 %v18066_v45  ;;  %4069 = vmatpush1.msra.mxu0 %v4000_v32  ;;  %v26126_v44 = vunpack.i.h.bf16 %v20889_v33  ;;  %v26127_v32 = vunpack.i.l.bf16 %v21173_v34  ;;  %v19254_v34 = vld [vmem:[%s19375_s29 + $0x20] sm:$0xff] }
 0x1c3   : > { %16686 = vmatprep.subr.bf16.mxu0 %v16685_v15  ;;  %15850 = vmatmul.mubr.msk.f32.vlgmr.msra.gmra.mrb[0].mxu0 %vm577_vm1, %v21478_v19 }
 0x1c4   : > { %v3392_v14 = vsel %vm3362_vm5, %v26125_v9, %v18068_v0  ;;  %v3383_v58 = vsel %vm3362_vm5, %v26126_v44, %v18067_v39  ;;  %v21493_v2 = vpop.permute.xlu0 %18070  ;;  %16688 = vmatpush1.bf16.msra.mxu0 %v16687_v56  ;;  %v3384_v15 = vsel %vm3362_vm5, %v18067_v39, %v26127_v32  ;;  %v3393_v63 = vsel %vm3362_vm5, %v18068_v0, %v26128_v52  ;;  %v19255_v44 = vld [vmem:[%s19375_s29 + $0x78] sm:$0xff] }
 0x1c5   : > { %18250 = vrot.lane.b32.xlu0 %v20927_v3, %s19292_s15  ;;  %v21501_v3 = vld [vmem:[%s25770_s1 + $0x68] sm:$0xff]  ;;  %v18073_v33 = vunpack.i.h.bf16 %v21493_v2  ;;  %v18072_v35 = vunpack.i.l.bf16 %v21493_v2  ;;  %v21507_v36 = vpop.permute.xlu1 %18075  ;;  %v16643_v39 = vpack.c.bf16 %v3392_v14, %v3383_v58  ;;  %4130 = vmatprep.mubr.f32.mxu0 %v20903_v57  ;;  %v16641_v56 = vpack.c.bf16 %v3393_v63, %v3384_v15 }
 0x1c6   : > { %18255 = vrot.lane.b32.xlu1 %v20945_v43, %s19292_s15  ;;  %v18078_v18 = vunpack.i.h.bf16 %v21507_v36  ;;  %v18077_v45 = vunpack.i.l.bf16 %v21507_v36  ;;  %v18264_v0 = vpack.i.bf16 %v21155_v23, %v19254_v34  ;;  %v18269_v58 = vpack.i.bf16 %v21158_v24, %v19255_v44 }
 0x1c7   : > { %v3987_v43 = vsel %vm3963_vm6, %v18072_v35, %v18073_v33  ;;  %15851 = vmatmul.mubr.msk.f32.gmra.mrb[2].mxu0 %vm577_vm1, %v21501_v3  ;;  %16642 = vmatprep.subr.bf16.mxu1 %v16641_v56  ;;  %v26129_v24 = vunpack.i.h.bf16 %v21017_v62 }
 0x1c8   : > { %v21524_v14 = vpop.permute.xlu0 %18080  ;;  %v3996_v9 = vsel %vm3963_vm6, %v18077_v45, %v18078_v18  ;;  %16644 = vmatpush1.bf16.msra.mxu1 %v16643_v39  ;;  %4278 = vmatprep.mubr.f32.mxu0 %v20903_v57 }
 0x1c9   : > { %18260 = vrot.lane.b32.xlu0 %v21028_v4, %s19292_s15  ;;  %v18083_v32 = vunpack.i.h.bf16 %v21524_v14  ;;  %v18082_v4 = vunpack.i.l.bf16 %v21524_v14  ;;  %v18086_v15 = vpop.permute.xlu1 %18085  ;;  %v16689_v23 = vpack.c.bf16 %v3996_v9, %v3987_v43  ;;  %v26130_v9 = vunpack.i.l.bf16 %v21211_v31 }
 0x1ca   : > { %4558 = vrot.lane.b32.xlu1 %v26107_v13, %s19291_s19  ;;  %v18088_v52 = vunpack.i.h.bf16 %v18086_v15  ;;  %v18087_v63 = vunpack.i.l.bf16 %v18086_v15  ;;  %v26132_v31 = vunpack.i.l.bf16 %v21235_v1 }
 0x1cb   : > { %v3986_v56 = vsel %vm3963_vm6, %v18082_v4, %v18072_v35  ;;  %v3995_v13 = vsel %vm3963_vm6, %v18083_v32, %v18077_v45  ;;  %16690 = vmatprep.subr.bf16.mxu0 %v16689_v23  ;;  %v26131_v35 = vunpack.i.h.bf16 %v21030_v11 }
 0x1cc   : > { %v3369_v39 = vsel %vm3362_vm5, %v26129_v24, %v18087_v63  ;;  %v3349_v43 = vpop.permute.xlu0 %3348  ;;  %v16691_v34 = vpack.c.bf16 %v3995_v13, %v3986_v56  ;;  %v3370_v44 = vsel %vm3362_vm5, %v18087_v63, %v26130_v9  ;;  %v3379_v23 = vsel %vm3362_vm5, %v18088_v52, %v26132_v31  ;;  %v19256_v56 = vld [vmem:[%s19375_s29 + $0x178] sm:$0xff] }
 0x1cd   : > { %18265 = vrot.lane.b32.xlu0 %v18264_v0, %s19292_s15  ;;  %v3378_v45 = vsel %vm3362_vm5, %v26131_v35, %v18088_v52  ;;  %v21553_v15 = vpop.permute.xlu1 %18090  ;;  %v3402_v62 = vsel %vm3362_vm5, %v3349_v43, %v21268_v50  ;;  %v3401_v0 = vsel %vm3362_vm5, %v21056_v30, %v3349_v43  ;;  %v19257_v30 = vld [vmem:[%s19375_s29 + $0xd0] sm:$0xff] }
 0x1ce   : > { %18270 = vrot.lane.b32.xlu1 %v18269_v58, %s19292_s15  ;;  %3544 = vmatprep.subr.mxu1 %v3402_v62  ;;  %v16653_v58 = vpack.c.bf16 %v3379_v23, %v3370_v44  ;;  %v18093_v11 = vunpack.i.h.bf16 %v21553_v15  ;;  %v18092_v63 = vunpack.i.l.bf16 %v21553_v15  ;;  %v16655_v50 = vpack.c.bf16 %v3378_v45, %v3369_v39  ;;  %v19258_v39 = vld [vmem:[%s19375_s29 + $0x128] sm:$0xff] }
 0x1cf   : > { %16692 = vmatpush1.bf16.msra.mxu0 %v16691_v34  ;;  %3545 = vmatpush1.msra.mxu1 %v3401_v0  ;;  %v18274_v1 = vpack.i.bf16 %v21242_v46, %v19257_v30  ;;  %v18279_v43 = vpack.i.bf16 %v21245_v42, %v19258_v39  ;;  %v26135_v30 = vunpack.i.l.bf16 %v21286_v27  ;;  %v19259_v39 = vld [vmem:[%s19375_s29 + $0x180] sm:$0xff]  ;;  %v19295_v15 = vmov 3  }
 0x1d0   : > { %16654 = vmatprep.subr.bf16.mxu1 %v16653_v58  ;;  %15840 = vmatmul.mubr.msk.f32.vlgmr.msra.gmra.mrb[0].mxu1 %vm577_vm1, %v21131_v40  ;;  %v3972_v46 = vsel %vm3963_vm6, %v18092_v63, %v18093_v11 }
 0x1d1   : > { %5147 = vrot.lane.b32.xlu0 %v21150_v29, %s19292_s15  ;;  %v21570_v52 = vpop.permute.xlu0 %18095  ;;  %16656 = vmatpush1.bf16.msra.mxu1 %v16655_v50  ;;  %v26134_v50 = vunpack.i.h.bf16 %v21164_v21 }
 0x1d2   : > { %5149 = vrot.lane.b32.xlu1 %v19256_v56, %s19292_s15  ;;  %v18098_v29 = vunpack.i.h.bf16 %v21570_v52  ;;  %v18097_v13 = vunpack.i.l.bf16 %v21570_v52  ;;  %v3954_v24 = vpop.permute.xlu1 %3953  ;;  %3606 = vmatprep.mubr.f32.mxu1 %v20903_v57 }
 0x1d4   : > { %v3981_v34 = vsel %vm3963_vm6, %v18097_v13, %v18098_v29  ;;  %15841 = vmatmul.mubr.msk.f32.gmra.mrb[2].mxu1 %vm577_vm1, %v21184_v61  ;;  %v26136_v29 = vunpack.i.l.bf16 %v21300_v8 }
 0x1d5   : > { %5145 = vrot.lane.b32.xlu0 %v21207_v6, %s19292_s15  ;;  %v21588_v9 = vpop.permute.xlu0 %3955  ;;  %3754 = vmatprep.mubr.f32.mxu1 %v20903_v57  ;;  %v16701_v35 = vpack.c.bf16 %v3981_v34, %v3972_v46 }
 0x1d6   : > { %18275 = vrot.lane.b32.xlu1 %v18274_v1, %s19292_s15  ;;  %v21592_v44 = vpop.permute.xlu1 %3951  ;;  %v4005_v6 = vsel %vm3963_vm6, %v3954_v24, %v21588_v9 }
 0x1d7   : > { %4222 = vmatprep.subr.mxu0 %v4005_v6  ;;  %v4004_v42 = vsel %vm3963_vm6, %v21592_v44, %v3954_v24 }
 0x1d8   : > { %4223 = vmatpush1.msra.mxu0 %v4004_v42  ;;  %v19260_v42 = vld [vmem:[%s19375_s29 + $0x40] sm:$0xff] }
 0x1d9   : > { %18280 = vrot.lane.b32.xlu0 %v18279_v43, %s19292_s15  ;;  %v18101_v45 = vpop.permute.xlu0 %18100  ;;  %16702 = vmatprep.subr.bf16.mxu0 %v16701_v35 }
 0x1da   : > { %18285 = vrot.lane.b32.xlu1 %v21071_v22, %s19292_s15  ;;  %v18103_v62 = vunpack.i.h.bf16 %v18101_v45  ;;  %v18102_v0 = vunpack.i.l.bf16 %v18101_v45  ;;  %v21602_v31 = vpop.permute.xlu1 %18105  ;;  %15854 = vmatmul.mubr.msk.f32.vlgmr.msra.gmra.mrb[4].mxu0 %vm577_vm1, %v21478_v19  ;;  %v26133_v22 = vunpack.i.h.bf16 %v21126_v53 }
 0x1db   : > { %v18108_v23 = vunpack.i.h.bf16 %v21602_v31  ;;  %v18107_v58 = vunpack.i.l.bf16 %v21602_v31  ;;  %16704 = vmatpush3.bf16.msra.mxu0 %v16701_v35  ;;  %4284 = vmatprep.mubr.f32.mxu0 %v20903_v57  ;;  %v18304_v35 = vpack.i.bf16 %v21279_v25, %v19260_v42 }
 0x1dc   : > { %v3387_v11 = vsel %vm3362_vm5, %v26133_v22, %v18102_v0  ;;  %v3396_v56 = vsel %vm3362_vm5, %v26134_v50, %v18103_v62  ;;  %v3388_v1 = vsel %vm3362_vm5, %v18102_v0, %v26135_v30  ;;  %v3397_v24 = vsel %vm3362_vm5, %v18103_v62, %v26136_v29  ;;  %v19261_v22 = vld [vmem:[%s19375_s29 + $0x98] sm:$0xff]  ;;  %v19262_v29 = vld [vmem:[%s19375_s29 + $0xf0] sm:$0xff] }
 0x1dd   : > { %18290 = vrot.lane.b32.xlu0 %v21084_v41, %s19292_s15  ;;  %v21625_v41 = vpop.permute.xlu0 %18110  ;;  %v16657_v53 = vpack.c.bf16 %v3397_v24, %v3388_v1  ;;  %v16659_v43 = vpack.c.bf16 %v3396_v56, %v3387_v11  ;;  %v3990_v27 = vsel %vm3963_vm6, %v18107_v58, %v18108_v23  ;;  %v26138_v50 = vunpack.i.h.bf16 %v21345_v51 }
 0x1de   : > { %5151 = vrot.lane.b32.xlu1 %v19259_v39, %s19292_s15  ;;  %v18113_v21 = vunpack.i.h.bf16 %v21625_v41  ;;  %v18112_v46 = vunpack.i.l.bf16 %v21625_v41  ;;  %v3357_v34 = vpop.permute.xlu1 %3356  ;;  %15855 = vmatmul.mubr.msk.f32.gmra.mrb[6].mxu0 %vm577_vm1, %v21501_v3 }
 0x1df   : > { %16658 = vmatprep.subr.bf16.mxu1 %v16657_v53  ;;  %16288 = vmatprep.mubr.msk.f32.mxu0 %vm577_vm1, %v21478_v19  ;;  %v3406_v8 = vsel %vm3362_vm5, %v3357_v34, %v21317_v49  ;;  %v18309_v49 = vpack.i.bf16 %v21291_v7, %v19261_v22  ;;  %v3405_v11 = vsel %vm3362_vm5, %v21265_v10, %v3357_v34  ;;  %v26139_v10 = vunpack.i.h.bf16 %v21455_v38  ;;  %v21697_v34 = vld [vmem:[#allocation2] sm:$0xff] }
 0x1e0   : > { %16660 = vmatpush1.bf16.msra.mxu1 %v16659_v43  ;;  %v3999_v6 = vsel %vm3963_vm6, %v18112_v46, %v18113_v21  ;;  %vm6407_vm5 = vcmask 588800  }
 0x1e1   : > { %5153 = vrot.lane.b32.xlu0 %v21356_v5, %s19292_s15  ;;  %v18116_v45 = vpop.permute.xlu0 %18115  ;;  %3698 = vmatprep.subr.mxu1 %v3406_v8  ;;  %v16705_v62 = vpack.c.bf16 %v3999_v6, %v3990_v27 }
 0x1e2   : > { %18295 = vrot.lane.b32.xlu1 %v21192_v17, %s19292_s15  ;;  %v18118_v0 = vunpack.i.h.bf16 %v18116_v45  ;;  %v18117_v23 = vunpack.i.l.bf16 %v18116_v45  ;;  %v21647_v5 = vpop.permute.xlu1 %3959  ;;  %v26137_v17 = vunpack.i.h.bf16 %v21337_v28  ;;  %v19266_v45 = vld [vmem:[%s19375_s29 + $0x1a0] sm:$0xff] }
 0x1e3   : > { %16706 = vmatprep.subr.bf16.mxu0 %v16705_v62 }
 0x1e4   : > { %v3966_v25 = vsel %vm3963_vm6, %v26137_v17, %v18117_v23  ;;  %v3975_v56 = vsel %vm3963_vm6, %v26138_v50, %v18118_v0  ;;  %3699 = vmatpush1.msra.mxu1 %v3405_v11  ;;  %v3967_v7 = vsel %vm3963_vm6, %v18117_v23, %v18062_v55  ;;  %16708 = vmatpush3.bf16.msra.mxu0 %v16705_v62 }
 0x1e5   : > { %18300 = vrot.lane.b32.xlu0 %v21233_v60, %s19292_s15  ;;  %v3976_v60 = vsel %vm3963_vm6, %v18118_v0, %v26139_v10  ;;  %15844 = vmatmul.mubr.msk.f32.vlgmr.msra.gmra.mrb[4].mxu1 %vm577_vm1, %v21131_v40  ;;  %v16679_v51 = vpack.c.bf16 %v3975_v56, %v3966_v25  ;;  %v26140_v0 = vld [vmem:[#allocation11_spill] sm:$0xff]  ;;  %v26141_v56 = vld [vmem:[#allocation12_spill] sm:$0xff] }
 0x1e6   : > { %18305 = vrot.lane.b32.xlu1 %v18304_v35, %s19292_s15  ;;  %v16677_v28 = vpack.c.bf16 %v3976_v60, %v3967_v7  ;;  %3760 = vmatprep.mubr.f32.mxu1 %v20903_v57  ;;  %v18314_v57 = vpack.i.bf16 %v21361_v48, %v19262_v29  ;;  %v19264_v48 = vld [vmem:[%s19375_s29 + $0x148] sm:$0xff]  ;;  %v18324_v23 = vpack.i.bf16 %v26140_v0, %v21282_v20  ;;  %v26142_v7 = vld [vmem:[#allocation7_spill] sm:$0xff]  ;;  %v26143_v60 = vunpack.i.h.bf16 %v21381_v16 }
 0x1e7   : > { %v3962_v30 = vpop.permute.xlu0 %3961  ;;  %v18319_v43 = vpack.i.bf16 %v21374_v37, %v19264_v48  ;;  %v18329_v10 = vpack.i.bf16 %v26142_v7, %v26141_v56  ;;  %v26144_v20 = vunpack.i.h.bf16 %v21394_v59 }
 0x1e8   : > { %v21672_v55 = vpop.permute.xlu1 %18120  ;;  %16678 = vmatprep.subr.bf16.mxu1 %v16677_v28  ;;  %v4008_v1 = vsel %vm3963_vm6, %v21647_v5, %v3962_v30 }
 0x1e9   : > { %18310 = vrot.lane.b32.xlu0 %v18309_v49, %s19292_s15  ;;  %v18123_v38 = vunpack.i.h.bf16 %v21672_v55  ;;  %v18122_v40 = vunpack.i.l.bf16 %v21672_v55  ;;  %16286 = vmatprep.subr.mxu0 %v4008_v1 }
 0x1ea   : > { %5155 = vrot.lane.b32.xlu1 %v21333_v54, %s19292_s15  ;;  %16680 = vmatpush1.bf16.msra.mxu1 %v16679_v51  ;;  %v19263_v54 = vld [vmem:[%s19375_s29 + $0x198] sm:$0xff]  ;;  %s19299_s29 = smov 74  }
 0x1eb   : > { %16287 = vmatpush3.msra.mxu0 %v4008_v1  ;;  %v21682_v24 = vpop.permute.xlu0 %18125  ;;  %15845 = vmatmul.mubr.msk.f32.gmra.mrb[6].mxu1 %vm577_vm1, %v21184_v61  ;;  %v4566_v21 = vsel %vm4564_vm7, %v18122_v40, %v18123_v38 }
 0x1ec   : > { %16289 = vmatmul.mubr.msk.f32.vlgmr.msra.gmra.mrb[8].mxu0 %vm577_vm1, %v21501_v3  ;;  %v18128_v39 = vunpack.i.h.bf16 %v21682_v24  ;;  %v18127_v53 = vunpack.i.l.bf16 %v21682_v24  ;;  %4201 = vmatprep.mubr.f32.mxu1 %v21697_v34 }
 0x1ed   : > { %5157 = vrot.lane.b32.xlu0 %v19263_v54, %s19292_s15  ;;  %v18131_v61 = vpop.permute.xlu1 %18130  ;;  %4725 = vmatprep.mubr.f32.mxu0 %v21697_v34 }
 0x1ee   : > { %18315 = vrot.lane.b32.xlu1 %v18314_v57, %s19292_s15  ;;  %v18133_v27 = vunpack.i.h.bf16 %v18131_v61  ;;  %v18132_v8 = vunpack.i.l.bf16 %v18131_v61  ;;  %v4575_v6 = vsel %vm4564_vm7, %v18127_v53, %v18128_v39 }
 0x1ef   : > { %v16709_v37 = vpack.c.bf16 %v4575_v6, %v4566_v21 }
 0x1f0   : > { %v4574_v42 = vsel %vm4564_vm7, %v18133_v27, %v18127_v53  ;;  %v4565_v35 = vsel %vm4564_vm7, %v18132_v8, %v18122_v40  ;;  %v19293_v53 = vmov 1   ;;  %v19294_v27 = vmov 0  }
 0x1f1   : > { %18320 = vrot.lane.b32.xlu0 %v18319_v43, %s19292_s15  ;;  %16710 = vmatprep.subr.bf16.mxu0 %v16709_v37  ;;  %v16711_v22 = vpack.c.bf16 %v4574_v42, %v4565_v35 }
 0x1f2   : > { %5159 = vrot.lane.b32.xlu1 %v19266_v45, %s19292_s15  ;;  %v18136_v62 = vpop.permute.xlu0 %18135  ;;  %18334 = vset.pattern.permute.xlu0 %v19293_v53 }
 0x1f3   : > { %v18138_v49 = vunpack.i.h.bf16 %v18136_v62  ;;  %v18137_v11 = vunpack.i.l.bf16 %v18136_v62  ;;  %v21712_v17 = vpop.permute.xlu1 %18140  ;;  %16712 = vmatpush1.bf16.msra.mxu0 %v16711_v22  ;;  %18335 = vset.pattern.permute.xlu1 %v19294_v27  ;;  %v26145_v62 = vld [vmem:[#allocation21_spill] sm:$0xff]  ;;  %v26147_v22 = vld [vmem:[#allocation14_spill] sm:$0xff] }
 0x1f4   : > { %v18143_v25 = vunpack.i.h.bf16 %v21712_v17  ;;  %v18142_v50 = vunpack.i.l.bf16 %v21712_v17  ;;  %v26146_v0 = vunpack.i.h.bf16 %v26145_v62 }
 0x1f5   : > { %v3984_v28 = vsel %vm3963_vm6, %v26143_v60, %v18137_v11  ;;  %v3993_v51 = vsel %vm3963_vm6, %v26144_v20, %v18138_v49  ;;  %5161 = vrot.lane.b32.xlu0 %v21433_v26, %s19292_s15  ;;  %v3985_v30 = vsel %vm3963_vm6, %v18137_v11, %v18082_v4  ;;  %v3994_v1 = vsel %vm3963_vm6, %v18138_v49, %v18083_v32 }
 0x1f6   : > { %18325 = vrot.lane.b32.xlu1 %v18324_v23, %s19292_s15  ;;  %v16681_v16 = vpack.c.bf16 %v3994_v1, %v3985_v30  ;;  %v16683_v40 = vpack.c.bf16 %v3993_v51, %v3984_v28  ;;  %v4584_v26 = vsel %vm4564_vm7, %v18142_v50, %v18143_v25  ;;  %v26148_v49 = vunpack.i.h.bf16 %v26147_v22 }
 0x1f7   : > { %v21733_v29 = vpop.permute.xlu0 %18145  ;;  %v19296_v20 = vmov 2  }
 0x1f8   : > { %v18148_v59 = vunpack.i.h.bf16 %v21733_v29  ;;  %v18147_v57 = vunpack.i.l.bf16 %v21733_v29  ;;  %v18151_v54 = vpop.permute.xlu1 %18150  ;;  %16682 = vmatprep.subr.bf16.mxu1 %v16681_v16 }
 0x1f9   : > { %v18153_v4 = vunpack.i.h.bf16 %v18151_v54  ;;  %v18152_v14 = vunpack.i.l.bf16 %v18151_v54  ;;  %18330 = vrot.lane.b32.xlu0 %v18329_v10, %s19292_s15  ;;  %16684 = vmatpush1.bf16.msra.mxu1 %v16683_v40 }
 0x1fa   : > { %5163 = vrot.lane.b32.xlu1 %v21441_v47, %s19292_s15  ;;  %v4593_v32 = vsel %vm4564_vm7, %v18147_v57, %v18148_v59  ;;  %v5663_v47 = vld [vmem:[%s25774_s5] sm:$0xff] }
 0x1fb   : > { %v4592_v48 = vsel %vm4564_vm7, %v18153_v4, %v18147_v57  ;;  %v4583_v43 = vsel %vm4564_vm7, %v18152_v14, %v18142_v50  ;;  %v18156_v21 = vpop.permute.xlu0 %18155  ;;  %v16713_v61 = vpack.c.bf16 %v4593_v32, %v4584_v26  ;;  %v21798_v4 = vld [vmem:[%s25770_s1 + $0x70] sm:$0xff]  ;;  %v19297_v14 = vmov 4  }
 0x1fc   : > { %v18158_v8 = vunpack.i.h.bf16 %v18156_v21  ;;  %v18157_v6 = vunpack.i.l.bf16 %v18156_v21  ;;  %v3950_v37 = vpop.permute.xlu1 %3949  ;;  %v16715_v42 = vpack.c.bf16 %v4592_v48, %v4583_v43 }
 0x1fd   : > { %v4003_v35 = vsel %vm3963_vm6, %v3950_v37, %v21592_v44  ;;  %16714 = vmatprep.subr.bf16.mxu0 %v16713_v61  ;;  %v4002_v45 = vsel %vm3963_vm6, %v21451_v12, %v3950_v37  ;;  %5679 = vperm.xlu0 %18334, %v5663_v47   ;;  %v21811_v37 = vld [vmem:[%s25770_s1 + $0x78] sm:$0xff] }
 0x1fe   : > { %v3970_v23 = vsel %vm3963_vm6, %v26146_v0, %v18157_v6  ;;  %v3979_v11 = vsel %vm3963_vm6, %v26148_v49, %v18158_v8  ;;  %4145 = vmatprep.subr.mxu1 %v4003_v35  ;;  %16716 = vmatpush1.bf16.msra.mxu0 %v16715_v42  ;;  %v3971_v50 = vsel %vm3963_vm6, %v18157_v6, %v18092_v63 }
 0x1ff   : > { %4146 = vmatpush1.msra.mxu1 %v4002_v45  ;;  %v21764_v44 = vpop.permute.xlu0 %18160  ;;  %v3980_v12 = vsel %vm3963_vm6, %v18158_v8, %v18097_v13  ;;  %v16695_v56 = vpack.c.bf16 %v3979_v11, %v3970_v23  ;;  %5666 = vperm.xlu1 %18335, %v5663_v47  }
 0x200   : > { %v21769_v7 = vpop.permute.xlu1 %18165  ;;  %v16693_v10 = vpack.c.bf16 %v3980_v12, %v3971_v50  ;;  %15852 = vmatmul.mubr.msk.f32.vlgmr.msra.gmra.mrb[0].mxu1 %vm577_vm1, %v21478_v19  ;;  %v18163_v63 = vunpack.i.h.bf16 %v21764_v44  ;;  %v18162_v60 = vunpack.i.l.bf16 %v21764_v44 }
 0x201   : > { %4207 = vmatprep.mubr.f32.mxu1 %v21697_v34  ;;  %18337 = vset.pattern.permute.xlu0 %v19295_v15  ;;  %v18168_v52 = vunpack.i.h.bf16 %v21769_v7  ;;  %v18167_v13 = vunpack.i.l.bf16 %v21769_v7 }
 0x202   : > { %16694 = vmatprep.subr.bf16.mxu1 %v16693_v10  ;;  %6200 = vperm.xlu0 %18337, %v5663_v47   ;;  %v4570_v1 = vsel %vm4564_vm7, %v18162_v60, %v18163_v63 }
 0x203   : > { %16696 = vmatpush1.bf16.msra.mxu1 %v16695_v56  ;;  %v4547_v28 = vpop.permute.xlu0 %4546  ;;  %18336 = vset.pattern.permute.xlu1 %v19296_v20  ;;  %v4579_v16 = vsel %vm4564_vm7, %v18167_v13, %v18168_v52 }
 0x204   : > { %v21778_v51 = vpop.permute.xlu1 %4548  ;;  %15853 = vmatmul.mubr.msk.f32.gmra.mrb[2].mxu1 %vm577_vm1, %v21501_v3  ;;  %6187 = vperm.xlu1 %18336, %v5663_v47   ;;  %v16725_v53 = vpack.c.bf16 %v4579_v16, %v4570_v1 }
 0x205   : > { %v4602_v30 = vsel %vm4564_vm7, %v4547_v28, %v21778_v51  ;;  %4355 = vmatprep.mubr.f32.mxu1 %v21697_v34 }
 0x206   : > { %4669 = vmatprep.subr.mxu0 %v4602_v30 }
 0x207   : > { %v21791_v40 = vpop.permute.xlu0 %18170 }
 0x208   : > { %v18173_v57 = vunpack.i.h.bf16 %v21791_v40  ;;  %v18172_v54 = vunpack.i.l.bf16 %v21791_v40  ;;  %v4545_v26 = vpop.permute.xlu1 %4544  ;;  %18338 = vset.pattern.permute.xlu1 %v19297_v14 }
 0x209   : > { %v4601_v32 = vsel %vm4564_vm7, %v4545_v26, %v4547_v28  ;;  %6213 = vperm.xlu1 %18338, %v5663_v47  }
 0x20a   : > { %v4569_v48 = vsel %vm4564_vm7, %v18172_v54, %v18162_v60  ;;  %v4578_v43 = vsel %vm4564_vm7, %v18173_v57, %v18167_v13  ;;  %4670 = vmatpush1.msra.mxu0 %v4601_v32 }
 0x20b   : > { %16726 = vmatprep.subr.bf16.mxu0 %v16725_v53  ;;  %v18176_v21 = vpop.permute.xlu0 %18175  ;;  %15862 = vmatmul.mubr.msk.f32.vlgmr.msra.gmra.mrb[0].mxu0 %vm577_vm1, %v21798_v4  ;;  %v16727_v61 = vpack.c.bf16 %v4578_v43, %v4569_v48 }
 0x20c   : > { %v18178_v27 = vunpack.i.h.bf16 %v18176_v21  ;;  %v18177_v8 = vunpack.i.l.bf16 %v18176_v21  ;;  %v21805_v6 = vpop.permute.xlu1 %18180  ;;  %4731 = vmatprep.mubr.f32.mxu0 %v21697_v34 }
 0x20d   : > { %v18183_v42 = vunpack.i.h.bf16 %v21805_v6  ;;  %v18182_v47 = vunpack.i.l.bf16 %v21805_v6  ;;  %16728 = vmatpush1.bf16.msra.mxu0 %v16727_v61 }
 0x20e   : > { %v3988_v35 = vsel %vm3963_vm6, %v18073_v33, %v18177_v8  ;;  %v3997_v45 = vsel %vm3963_vm6, %v18078_v18, %v18178_v27  ;;  %v3989_v62 = vsel %vm3963_vm6, %v18177_v8, %v18107_v58  ;;  %v3998_v0 = vsel %vm3963_vm6, %v18178_v27, %v18112_v46 }
 0x20f   : > { %v21827_v23 = vpop.permute.xlu0 %18185  ;;  %v16697_v22 = vpack.c.bf16 %v3998_v0, %v3989_v62  ;;  %v16699_v49 = vpack.c.bf16 %v3997_v45, %v3988_v35  ;;  %15863 = vmatmul.mubr.msk.f32.gmra.mrb[2].mxu0 %vm577_vm1, %v21811_v37  ;;  %v4588_v18 = vsel %vm4564_vm7, %v18182_v47, %v18183_v42 }
 0x210   : > { %v18188_v2 = vunpack.i.h.bf16 %v21827_v23  ;;  %v18187_v33 = vunpack.i.l.bf16 %v21827_v23  ;;  %v18191_v36 = vpop.permute.xlu1 %18190  ;;  %4879 = vmatprep.mubr.f32.mxu0 %v21697_v34 }
 0x211   : > { %v18193_v31 = vunpack.i.h.bf16 %v18191_v36  ;;  %v18192_v58 = vunpack.i.l.bf16 %v18191_v36  ;;  %16698 = vmatprep.subr.bf16.mxu1 %v16697_v22 }
 0x212   : > { %16700 = vmatpush1.bf16.msra.mxu1 %v16699_v49  ;;  %v4597_v41 = vsel %vm4564_vm7, %v18187_v33, %v18188_v2 }
 0x213   : > { %v4596_v46 = vsel %vm4564_vm7, %v18193_v31, %v18187_v33  ;;  %v4587_v11 = vsel %vm4564_vm7, %v18192_v58, %v18182_v47  ;;  %v3958_v50 = vpop.permute.xlu0 %3957  ;;  %v16729_v12 = vpack.c.bf16 %v4597_v41, %v4588_v18 }
 0x214   : > { %v18196_v56 = vpop.permute.xlu1 %18195  ;;  %v4007_v10 = vsel %vm3963_vm6, %v3958_v50, %v21647_v5  ;;  %v4006_v15 = vsel %vm3963_vm6, %v21588_v9, %v3958_v50  ;;  %v16731_v60 = vpack.c.bf16 %v4596_v46, %v4587_v11 }
 0x215   : > { %v18198_v13 = vunpack.i.h.bf16 %v18196_v56  ;;  %v18197_v28 = vunpack.i.l.bf16 %v18196_v56  ;;  %4299 = vmatprep.subr.mxu1 %v4007_v10  ;;  %16730 = vmatprep.subr.bf16.mxu0 %v16729_v12 }
 0x216   : > { %4300 = vmatpush1.msra.mxu1 %v4006_v15  ;;  %16732 = vmatpush1.bf16.msra.mxu0 %v16731_v60 }
 0x217   : > { %v4576_v20 = vsel %vm4564_vm7, %v18128_v39, %v18198_v13  ;;  %v4567_v30 = vsel %vm4564_vm7, %v18123_v38, %v18197_v28  ;;  %v21852_v1 = vpop.permute.xlu0 %18200  ;;  %v4568_v5 = vsel %vm4564_vm7, %v18197_v28, %v18172_v54  ;;  %v4577_v9 = vsel %vm4564_vm7, %v18198_v13, %v18173_v57  ;;  %15856 = vmatmul.mubr.msk.f32.vlgmr.msra.gmra.mrb[4].mxu1 %vm577_vm1, %v21478_v19 }
 0x218   : > { %v21858_v16 = vpop.permute.xlu1 %18205  ;;  %v16717_v40 = vpack.c.bf16 %v4577_v9, %v4568_v5  ;;  %v16719_v26 = vpack.c.bf16 %v4576_v20, %v4567_v30  ;;  %4361 = vmatprep.mubr.f32.mxu1 %v21697_v34  ;;  %v18203_v24 = vunpack.i.h.bf16 %v21852_v1  ;;  %v18202_v55 = vunpack.i.l.bf16 %v21852_v1 }
 0x219   : > { %v18208_v38 = vunpack.i.h.bf16 %v21858_v16  ;;  %v18207_v39 = vunpack.i.l.bf16 %v21858_v16 }
 0x21a   : > { %16718 = vmatprep.subr.bf16.mxu1 %v16717_v40  ;;  %v4573_v14 = vsel %vm4564_vm7, %v18202_v55, %v18203_v24 }
 0x21b   : > { %16720 = vmatpush1.bf16.msra.mxu1 %v16719_v26  ;;  %v4555_v57 = vpop.permute.xlu0 %4554  ;;  %v4582_v32 = vsel %vm4564_vm7, %v18207_v39, %v18208_v38 }
 0x21c   : > { %v21865_v54 = vpop.permute.xlu1 %4556  ;;  %15857 = vmatmul.mubr.msk.f32.gmra.mrb[6].mxu1 %vm577_vm1, %v21501_v3  ;;  %v16741_v21 = vpack.c.bf16 %v4582_v32, %v4573_v14 }
 0x21d   : > { %v4606_v19 = vsel %vm4564_vm7, %v4555_v57, %v21865_v54  ;;  %4802 = vmatprep.mubr.f32.mxu1 %v21697_v34 }
 0x21e   : > { %4823 = vmatprep.subr.mxu0 %v4606_v19 }
 0x21f   : > { %v4553_v53 = vpop.permute.xlu0 %4552 }
 0x220   : > { %v18211_v48 = vpop.permute.xlu1 %18210  ;;  %v4605_v43 = vsel %vm4564_vm7, %v4553_v53, %v4555_v57 }
 0x221   : > { %v18213_v61 = vunpack.i.h.bf16 %v18211_v48  ;;  %v18212_v27 = vunpack.i.l.bf16 %v18211_v48  ;;  %4824 = vmatpush1.msra.mxu0 %v4605_v43 }
 0x222   : > { %16742 = vmatprep.subr.bf16.mxu0 %v16741_v21  ;;  %15866 = vmatmul.mubr.msk.f32.vlgmr.msra.gmra.mrb[4].mxu0 %vm577_vm1, %v21798_v4 }
 0x223   : > { %v4594_v3 = vsel %vm4564_vm7, %v18148_v59, %v18213_v61  ;;  %v4585_v8 = vsel %vm4564_vm7, %v18143_v25, %v18212_v27  ;;  %v21883_v47 = vpop.permute.xlu0 %18215  ;;  %16744 = vmatpush3.bf16.msra.mxu0 %v16741_v21  ;;  %v4586_v35 = vsel %vm4564_vm7, %v18212_v27, %v18192_v58  ;;  %v4595_v45 = vsel %vm4564_vm7, %v18213_v61, %v18193_v31 }
 0x224   : > { %v18218_v62 = vunpack.i.h.bf16 %v21883_v47  ;;  %v18217_v0 = vunpack.i.l.bf16 %v21883_v47  ;;  %v21889_v22 = vpop.permute.xlu1 %18220  ;;  %v16721_v29 = vpack.c.bf16 %v4595_v45, %v4586_v35  ;;  %v16723_v49 = vpack.c.bf16 %v4594_v3, %v4585_v8  ;;  %4885 = vmatprep.mubr.f32.mxu0 %v21697_v34 }
 0x225   : > { %v18223_v17 = vunpack.i.h.bf16 %v21889_v22  ;;  %v18222_v25 = vunpack.i.l.bf16 %v21889_v22 }
 0x226   : > { %16722 = vmatprep.subr.bf16.mxu1 %v16721_v29  ;;  %v4591_v59 = vsel %vm4564_vm7, %v18217_v0, %v18218_v62  ;;  %15867 = vmatmul.mubr.msk.f32.gmra.mrb[6].mxu0 %vm577_vm1, %v21811_v37 }
 0x227   : > { %16724 = vmatpush1.bf16.msra.mxu1 %v16723_v49  ;;  %v18226_v33 = vpop.permute.xlu0 %18225  ;;  %v4600_v36 = vsel %vm4564_vm7, %v18222_v25, %v18223_v17  ;;  %16301 = vmatprep.mubr.msk.f32.mxu0 %vm577_vm1, %v21798_v4 }
 0x228   : > { %v18228_v18 = vunpack.i.h.bf16 %v18226_v33  ;;  %v18227_v31 = vunpack.i.l.bf16 %v18226_v33  ;;  %v4551_v58 = vpop.permute.xlu1 %4550  ;;  %v16745_v41 = vpack.c.bf16 %v4600_v36, %v4591_v59 }
 0x229   : > { %v4604_v46 = vsel %vm4564_vm7, %v4551_v58, %v4553_v53  ;;  %v4603_v11 = vsel %vm4564_vm7, %v21778_v51, %v4551_v58 }
 0x22a   : > { %v4571_v50 = vsel %vm4564_vm7, %v18163_v63, %v18227_v31  ;;  %v4580_v12 = vsel %vm4564_vm7, %v18168_v52, %v18228_v18  ;;  %4746 = vmatprep.subr.mxu1 %v4604_v46  ;;  %16746 = vmatprep.subr.bf16.mxu0 %v16745_v41  ;;  %v4572_v56 = vsel %vm4564_vm7, %v18227_v31, %v18202_v55 }
 0x22b   : > { %4747 = vmatpush1.msra.mxu1 %v4603_v11  ;;  %16748 = vmatpush3.bf16.msra.mxu0 %v16745_v41  ;;  %v4561_v10 = vpop.permute.xlu0 %4560  ;;  %v4581_v15 = vsel %vm4564_vm7, %v18228_v18, %v18207_v39  ;;  %v16735_v60 = vpack.c.bf16 %v4580_v12, %v4571_v50 }
 0x22c   : > { %v4563_v13 = vpop.permute.xlu1 %4562  ;;  %v16733_v51 = vpack.c.bf16 %v4581_v15, %v4572_v56  ;;  %15864 = vmatmul.mubr.msk.f32.vlgmr.msra.gmra.mrb[0].mxu1 %vm577_vm1, %v21798_v4 }
 0x22d   : > { %v4609_v44 = vsel %vm4564_vm7, %v4561_v10, %v4563_v13  ;;  %4808 = vmatprep.mubr.f32.mxu1 %v21697_v34 }
 0x22e   : > { %16734 = vmatprep.subr.bf16.mxu1 %v16733_v51  ;;  %16299 = vmatprep.subr.mxu0 %v4609_v44 }
 0x22f   : > { %16736 = vmatpush1.bf16.msra.mxu1 %v16735_v60  ;;  %16300 = vmatpush3.msra.mxu0 %v4609_v44  ;;  %v21917_v7 = vpop.permute.xlu0 %18230  ;;  %v21976_v60 = vld [vmem:[%s25770_s1 + $0x80] sm:$0xff] }
 0x230   : > { %v18233_v63 = vunpack.i.h.bf16 %v21917_v7  ;;  %v18232_v52 = vunpack.i.l.bf16 %v21917_v7  ;;  %v21921_v28 = vpop.permute.xlu1 %18235  ;;  %16302 = vmatmul.mubr.msk.f32.vlgmr.msra.gmra.mrb[8].mxu0 %vm577_vm1, %v21811_v37  ;;  %15865 = vmatmul.mubr.msk.f32.gmra.mrb[2].mxu1 %vm577_vm1, %v21811_v37 }
 0x231   : > { %v18238_v20 = vunpack.i.h.bf16 %v21921_v28  ;;  %v18237_v30 = vunpack.i.l.bf16 %v21921_v28  ;;  %4956 = vmatprep.mubr.f32.mxu1 %v21697_v34  ;;  %5326 = vmatprep.mubr.f32.mxu0 %v21697_v34 }
 0x232   : > { %v5167_v1 = vsel %vm5165_vm8, %v18232_v52, %v18233_v63 }
 0x233   : > { %v18241_v5 = vpop.permute.xlu0 %18240  ;;  %v5176_v9 = vsel %vm5165_vm8, %v18237_v30, %v18238_v20 }
 0x234   : > { %v18243_v16 = vunpack.i.h.bf16 %v18241_v5  ;;  %v18242_v40 = vunpack.i.l.bf16 %v18241_v5  ;;  %v18246_v26 = vpop.permute.xlu1 %18245  ;;  %v16749_v24 = vpack.c.bf16 %v5176_v9, %v5167_v1 }
 0x235   : > { %v18248_v55 = vunpack.i.h.bf16 %v18246_v26  ;;  %v18247_v38 = vunpack.i.l.bf16 %v18246_v26 }
 0x236   : > { %v5166_v39 = vsel %vm5165_vm8, %v18242_v40, %v18232_v52  ;;  %v5175_v57 = vsel %vm5165_vm8, %v18243_v16, %v18237_v30  ;;  %16750 = vmatprep.subr.bf16.mxu0 %v16749_v24 }
 0x237   : > { %v4598_v19 = vsel %vm4564_vm7, %v18188_v2, %v18248_v55  ;;  %v4589_v14 = vsel %vm4564_vm7, %v18183_v42, %v18247_v38  ;;  %v21941_v32 = vpop.permute.xlu0 %18250  ;;  %v4590_v53 = vsel %vm4564_vm7, %v18247_v38, %v18217_v0  ;;  %v4599_v48 = vsel %vm4564_vm7, %v18248_v55, %v18222_v25 }
 0x238   : > { %v18253_v43 = vunpack.i.h.bf16 %v21941_v32  ;;  %v18252_v21 = vunpack.i.l.bf16 %v21941_v32  ;;  %v21949_v61 = vpop.permute.xlu1 %18255  ;;  %v16737_v23 = vpack.c.bf16 %v4599_v48, %v4590_v53  ;;  %v16751_v2 = vpack.c.bf16 %v5175_v57, %v5166_v39 }
 0x239   : > { %v18258_v6 = vunpack.i.h.bf16 %v21949_v61  ;;  %v18257_v42 = vunpack.i.l.bf16 %v21949_v61  ;;  %v16739_v27 = vpack.c.bf16 %v4598_v19, %v4589_v14 }
 0x23a   : > { %16738 = vmatprep.subr.bf16.mxu1 %v16737_v23  ;;  %16752 = vmatpush1.bf16.msra.mxu0 %v16751_v2  ;;  %v5185_v3 = vsel %vm5165_vm8, %v18252_v21, %v18253_v43 }
 0x23b   : > { %16740 = vmatpush1.bf16.msra.mxu1 %v16739_v27  ;;  %v18261_v8 = vpop.permute.xlu0 %18260  ;;  %v5194_v47 = vsel %vm5165_vm8, %v18257_v42, %v18258_v6 }
 0x23c   : > { %v18263_v35 = vunpack.i.h.bf16 %v18261_v8  ;;  %v18262_v45 = vunpack.i.l.bf16 %v18261_v8  ;;  %v4559_v62 = vpop.permute.xlu1 %4558  ;;  %v16753_v0 = vpack.c.bf16 %v5194_v47, %v5185_v3 }
 0x23d   : > { %v4608_v22 = vsel %vm4564_vm7, %v4559_v62, %v4561_v10  ;;  %v4607_v29 = vsel %vm4564_vm7, %v21865_v54, %v4559_v62  ;;  %vm6444_vm7 = vcmask 130048  }
 0x23e   : > { %v5184_v49 = vsel %vm5165_vm8, %v18262_v45, %v18252_v21  ;;  %v5193_v17 = vsel %vm5165_vm8, %v18263_v35, %v18257_v42  ;;  %4900 = vmatprep.subr.mxu1 %v4608_v22  ;;  %16754 = vmatprep.subr.bf16.mxu0 %v16753_v0 }
 0x23f   : > { %4901 = vmatpush1.msra.mxu1 %v4607_v29  ;;  %v18266_v25 = vpop.permute.xlu0 %18265  ;;  %v16755_v59 = vpack.c.bf16 %v5193_v17, %v5184_v49 }
 0x240   : > { %v18268_v33 = vunpack.i.h.bf16 %v18266_v25  ;;  %v18267_v36 = vunpack.i.l.bf16 %v18266_v25  ;;  %v18271_v18 = vpop.permute.xlu1 %18270  ;;  %15868 = vmatmul.mubr.msk.f32.vlgmr.msra.gmra.mrb[4].mxu1 %vm577_vm1, %v21798_v4 }
 0x241   : > { %v18273_v31 = vunpack.i.h.bf16 %v18271_v18  ;;  %v18272_v58 = vunpack.i.l.bf16 %v18271_v18  ;;  %16756 = vmatpush1.bf16.msra.mxu0 %v16755_v59  ;;  %4962 = vmatprep.mubr.f32.mxu1 %v21697_v34 }
 0x242   : > { %v5168_v54 = vsel %vm5165_vm8, %v18233_v63, %v18267_v36  ;;  %v5169_v41 = vsel %vm5165_vm8, %v18267_v36, %v18268_v33  ;;  %v21985_v63 = vld [vmem:[%s25770_s1 + $0x88] sm:$0xff] }
 0x243   : > { %v5177_v46 = vsel %vm5165_vm8, %v18238_v20, %v18272_v58  ;;  %v5148_v11 = vpop.permute.xlu0 %5147  ;;  %v5178_v50 = vsel %vm5165_vm8, %v18272_v58, %v18273_v31 }
 0x244   : > { %v5150_v12 = vpop.permute.xlu1 %5149  ;;  %v16757_v56 = vpack.c.bf16 %v5178_v50, %v5169_v41  ;;  %v16759_v10 = vpack.c.bf16 %v5177_v46, %v5168_v54  ;;  %15869 = vmatmul.mubr.msk.f32.gmra.mrb[6].mxu1 %vm577_vm1, %v21811_v37 }
 0x245   : > { %v5203_v4 = vsel %vm5165_vm8, %v5148_v11, %v5150_v12  ;;  %5403 = vmatprep.mubr.f32.mxu1 %v21697_v34 }
 0x246   : > { %5270 = vmatprep.subr.mxu0 %v5203_v4  ;;  %16758 = vmatprep.subr.bf16.mxu1 %v16757_v56 }
 0x247   : > { %16760 = vmatpush1.bf16.msra.mxu1 %v16759_v10  ;;  %v5146_v15 = vpop.permute.xlu0 %5145 }
 0x248   : > { %v5202_v13 = vsel %vm5165_vm8, %v5146_v15, %v5148_v11  ;;  %v18276_v51 = vpop.permute.xlu1 %18275 }
 0x249   : > { %v18278_v44 = vunpack.i.h.bf16 %v18276_v51  ;;  %5271 = vmatpush1.msra.mxu0 %v5202_v13  ;;  %v18277_v7 = vunpack.i.l.bf16 %v18276_v51 }
 0x24a   : > { %15874 = vmatmul.mubr.msk.f32.vlgmr.msra.gmra.mrb[0].mxu0 %vm577_vm1, %v21976_v60 }
 0x24b   : > { %v18281_v37 = vpop.permute.xlu0 %18280  ;;  %5332 = vmatprep.mubr.f32.mxu0 %v21697_v34  ;;  %v5187_v30 = vsel %vm5165_vm8, %v18277_v7, %v18278_v44  ;;  %v5186_v5 = vsel %vm5165_vm8, %v18253_v43, %v18277_v7 }
 0x24c   : > { %v18283_v52 = vunpack.i.h.bf16 %v18281_v37  ;;  %v18282_v28 = vunpack.i.l.bf16 %v18281_v37  ;;  %v18286_v20 = vpop.permute.xlu1 %18285 }
 0x24d   : > { %v18288_v1 = vunpack.i.h.bf16 %v18286_v20  ;;  %v18287_v16 = vunpack.i.l.bf16 %v18286_v20 }
 0x24e   : > { %v5195_v9 = vsel %vm5165_vm8, %v18258_v6, %v18282_v28  ;;  %15875 = vmatmul.mubr.msk.f32.gmra.mrb[2].mxu0 %vm577_vm1, %v21985_v63  ;;  %v5196_v40 = vsel %vm5165_vm8, %v18282_v28, %v18283_v52 }
 0x24f   : > { %v18291_v26 = vpop.permute.xlu0 %18290  ;;  %v16761_v24 = vpack.c.bf16 %v5196_v40, %v5187_v30  ;;  %v16763_v55 = vpack.c.bf16 %v5195_v9, %v5186_v5  ;;  %5480 = vmatprep.mubr.f32.mxu0 %v21697_v34  ;;  %v5171_v19 = vsel %vm5165_vm8, %v18287_v16, %v18288_v1  ;;  %v5170_v14 = vsel %vm5165_vm8, %v18268_v33, %v18287_v16 }
 0x250   : > { %v18293_v38 = vunpack.i.h.bf16 %v18291_v26  ;;  %v18292_v39 = vunpack.i.l.bf16 %v18291_v26  ;;  %v5152_v57 = vpop.permute.xlu1 %5151 }
 0x251   : > { %16762 = vmatprep.subr.bf16.mxu1 %v16761_v24  ;;  %v5204_v6 = vsel %vm5165_vm8, %v5150_v12, %v5152_v57 }
 0x252   : > { %v5179_v32 = vsel %vm5165_vm8, %v18273_v31, %v18292_v39  ;;  %16764 = vmatpush1.bf16.msra.mxu1 %v16763_v55  ;;  %v5180_v53 = vsel %vm5165_vm8, %v18292_v39, %v18293_v38 }
 0x253   : > { %v5154_v48 = vpop.permute.xlu0 %5153  ;;  %v16765_v43 = vpack.c.bf16 %v5180_v53, %v5171_v19  ;;  %v16767_v21 = vpack.c.bf16 %v5179_v32, %v5170_v14 }
 0x254   : > { %v18296_v61 = vpop.permute.xlu1 %18295  ;;  %v5205_v23 = vsel %vm5165_vm8, %v5152_v57, %v5154_v48 }
 0x255   : > { %v18298_v2 = vunpack.i.h.bf16 %v18296_v61  ;;  %5347 = vmatprep.subr.mxu1 %v5205_v23  ;;  %16766 = vmatprep.subr.bf16.mxu0 %v16765_v43  ;;  %v18297_v42 = vunpack.i.l.bf16 %v18296_v61 }
 0x256   : > { %5348 = vmatpush1.msra.mxu1 %v5204_v6  ;;  %16768 = vmatpush1.bf16.msra.mxu0 %v16767_v21 }
 0x257   : > { %v18301_v27 = vpop.permute.xlu0 %18300  ;;  %15876 = vmatmul.mubr.msk.f32.vlgmr.msra.gmra.mrb[0].mxu1 %vm577_vm1, %v21976_v60  ;;  %v5189_v35 = vsel %vm5165_vm8, %v18297_v42, %v18298_v2  ;;  %v5188_v62 = vsel %vm5165_vm8, %v18278_v44, %v18297_v42 }
 0x258   : > { %v18303_v3 = vunpack.i.h.bf16 %v18301_v27  ;;  %v18302_v8 = vunpack.i.l.bf16 %v18301_v27  ;;  %v18306_v47 = vpop.permute.xlu1 %18305  ;;  %5409 = vmatprep.mubr.f32.mxu1 %v21697_v34 }
 0x259   : > { %v18308_v45 = vunpack.i.h.bf16 %v18306_v47  ;;  %v18307_v22 = vunpack.i.l.bf16 %v18306_v47 }
 0x25a   : > { %v5197_v0 = vsel %vm5165_vm8, %v18283_v52, %v18302_v8  ;;  %v5198_v29 = vsel %vm5165_vm8, %v18302_v8, %v18303_v3 }
 0x25b   : > { %v18311_v49 = vpop.permute.xlu0 %18310  ;;  %15877 = vmatmul.mubr.msk.f32.gmra.mrb[2].mxu1 %vm577_vm1, %v21985_v63  ;;  %v16769_v17 = vpack.c.bf16 %v5198_v29, %v5189_v35  ;;  %v16771_v25 = vpack.c.bf16 %v5197_v0, %v5188_v62  ;;  %v5173_v18 = vsel %vm5165_vm8, %v18307_v22, %v18308_v45  ;;  %v5172_v31 = vsel %vm5165_vm8, %v18288_v1, %v18307_v22 }
 0x25c   : > { %v18313_v59 = vunpack.i.h.bf16 %v18311_v49  ;;  %v18312_v33 = vunpack.i.l.bf16 %v18311_v49  ;;  %v5156_v36 = vpop.permute.xlu1 %5155  ;;  %5557 = vmatprep.mubr.f32.mxu1 %v21697_v34 }
 0x25d   : > { %16770 = vmatprep.subr.bf16.mxu0 %v16769_v17  ;;  %v5206_v10 = vsel %vm5165_vm8, %v5154_v48, %v5156_v36 }
 0x25e   : > { %v5181_v58 = vsel %vm5165_vm8, %v18293_v38, %v18312_v33  ;;  %16772 = vmatpush1.bf16.msra.mxu0 %v16771_v25  ;;  %v5182_v54 = vsel %vm5165_vm8, %v18312_v33, %v18313_v59 }
 0x25f   : > { %v5158_v41 = vpop.permute.xlu0 %5157  ;;  %v16773_v46 = vpack.c.bf16 %v5182_v54, %v5173_v18  ;;  %v16775_v11 = vpack.c.bf16 %v5181_v58, %v5172_v31 }
 0x260   : > { %v18316_v50 = vpop.permute.xlu1 %18315  ;;  %v5207_v12 = vsel %vm5165_vm8, %v5156_v36, %v5158_v41 }
 0x261   : > { %v18318_v56 = vunpack.i.h.bf16 %v18316_v50  ;;  %5424 = vmatprep.subr.mxu0 %v5207_v12  ;;  %16774 = vmatprep.subr.bf16.mxu1 %v16773_v46  ;;  %v18317_v4 = vunpack.i.l.bf16 %v18316_v50 }
 0x262   : > { %5425 = vmatpush1.msra.mxu0 %v5206_v10  ;;  %16776 = vmatpush1.bf16.msra.mxu1 %v16775_v11 }
 0x263   : > { %v18321_v15 = vpop.permute.xlu0 %18320  ;;  %15878 = vmatmul.mubr.msk.f32.vlgmr.msra.gmra.mrb[4].mxu0 %vm577_vm1, %v21976_v60  ;;  %v5191_v7 = vsel %vm5165_vm8, %v18317_v4, %v18318_v56  ;;  %v5190_v37 = vsel %vm5165_vm8, %v18298_v2, %v18317_v4 }
 0x264   : > { %v18323_v13 = vunpack.i.h.bf16 %v18321_v15  ;;  %v18322_v51 = vunpack.i.l.bf16 %v18321_v15  ;;  %v5160_v44 = vpop.permute.xlu1 %5159  ;;  %5486 = vmatprep.mubr.f32.mxu0 %v21697_v34 }
 0x265   : > { %v5208_v57 = vsel %vm5165_vm8, %v5158_v41, %v5160_v44 }
 0x266   : > { %v5199_v52 = vsel %vm5165_vm8, %v18303_v3, %v18322_v51  ;;  %v5200_v28 = vsel %vm5165_vm8, %v18322_v51, %v18323_v13 }
 0x267   : > { %v5162_v20 = vpop.permute.xlu0 %5161  ;;  %15879 = vmatmul.mubr.msk.f32.gmra.mrb[6].mxu0 %vm577_vm1, %v21985_v63  ;;  %v16777_v30 = vpack.c.bf16 %v5200_v28, %v5191_v7  ;;  %v16779_v1 = vpack.c.bf16 %v5199_v52, %v5190_v37 }
 0x268   : > { %v18326_v5 = vpop.permute.xlu1 %18325  ;;  %11473 = vmatprep.mubr.f32.mxu0 %v21697_v34  ;;  %v5209_v40 = vsel %vm5165_vm8, %v5160_v44, %v5162_v20  ;;  %v6241_v44 = vlaneseq }
 0x269   : > { %v18328_v9 = vunpack.i.h.bf16 %v18326_v5  ;;  %v18327_v16 = vunpack.i.l.bf16 %v18326_v5  ;;  %16778 = vmatprep.subr.bf16.mxu1 %v16777_v30 }
 0x26a   : > { %16780 = vmatpush1.bf16.msra.mxu1 %v16779_v1  ;;  %v22119_v5 = vshrl.u32 %v6241_v44, 7 }
 0x26b   : > { %v18331_v26 = vpop.permute.xlu0 %18330  ;;  %5501 = vmatprep.subr.mxu1 %v5209_v40  ;;  %v5174_v24 = vsel %vm5165_vm8, %v18308_v45, %v18327_v16  ;;  %v5183_v55 = vsel %vm5165_vm8, %v18313_v59, %v18328_v9 }
 0x26c   : > { %v18333_v38 = vunpack.i.h.bf16 %v18331_v26  ;;  %v18332_v39 = vunpack.i.l.bf16 %v18331_v26  ;;  %v16781_v19 = vpack.c.bf16 %v5183_v55, %v5174_v24  ;;  %v5164_v48 = vpop.permute.xlu1 %5163 }
 0x26d   : > { %v5210_v43 = vsel %vm5165_vm8, %v5162_v20, %v5164_v48  ;;  %v6247_v48 = vsub.s32 1, %v22119_v5 }
 0x26e   : > { %5502 = vmatpush1.msra.mxu1 %v5208_v57  ;;  %v5192_v14 = vsel %vm5165_vm8, %v18318_v56, %v18332_v39  ;;  %v5201_v32 = vsel %vm5165_vm8, %v18323_v13, %v18333_v38  ;;  %v6243_v57 = vsub.s32 0, %v22119_v5 }
 0x26f   : > { %15880 = vmatmul.mubr.msk.f32.vlgmr.msra.gmra.mrb[4].mxu1 %vm577_vm1, %v21976_v60  ;;  %16782 = vmatprep.subr.bf16.mxu1 %v16781_v19  ;;  %v16785_v53 = vpack.c.bf16 %v5201_v32, %v5192_v14 }
 0x270   : > { %16784 = vmatpush3.bf16.msra.mxu1 %v16781_v19  ;;  %5563 = vmatprep.mubr.f32.mxu1 %v21697_v34 }
 0x271   : > { %16786 = vmatprep.subr.bf16.mxu1 %v16785_v53 }
 0x273   : > { %15881 = vmatmul.mubr.msk.f32.gmra.mrb[6].mxu1 %vm577_vm1, %v21985_v63 }
 0x274   : > { %16788 = vmatpush3.bf16.msra.mxu1 %v16785_v53  ;;  %16314 = vmatprep.mubr.msk.f32.mxu1 %vm577_vm1, %v21976_v60  ;;  %v22150_v53 = vld [vmem:[%s25775_s6] sm:$0xff] }
 0x275   : > { %16312 = vmatprep.subr.mxu1 %v5210_v43  ;;  %26151 = vst [vmem:[#allocation22_spill] sm:$0xff] %v22150_v53 }
 0x278   : > { %16313 = vmatpush3.msra.mxu1 %v5210_v43 }
 0x279   : > { %16315 = vmatmul.mubr.msk.f32.vlgmr.msra.gmra.mrb[8].mxu1 %vm577_vm1, %v21985_v63 }
 0x27a   : > { %6515 = vmatprep.mubr.f32.mxu1 %v21697_v34 }
 0x27c   : > { %v22057_v27 = vpop.permute.xlu0 %5679 }
 0x27e   : > { %v22049_v23 = vpop.permute.xlu1 %5666 }
 0x27f   : > { %26150 = vst [vmem:[#allocation25_spill] sm:$0xff] %v22049_v23 }
 0x303   : > { %v22045_v21 = vpop.f32.mrb[8].mxu0 }
 0x304   : > { %v22047_v61 = vpop.f32.mrb[9].mxu0 }
 0x305   : > { %26149 = vst [vmem:[#allocation13_spill] sm:$0xff] %v22047_v61 }
 0x31d   : > { %v5328_v2 = vpop.f32.mrb[0].mxu0 }
 0x31e   : > { %v22052_v6 = vadd.f32 %v22049_v23, %v5328_v2  ;;  %v5330_v42 = vpop.f32.mrb[1].mxu0 }
 0x31f   : > { %v22055_v60 = vadd.f32 %v22049_v23, %v5330_v42 }
 0x320   : > { %v5970_v34 = vmul.f32 %v22052_v6, %v22052_v6 }
 0x321   : > { %v5334_v3 = vpop.f32.mrb[2].mxu0  ;;  %v5971_v35 = vmul.f32 %v22055_v60, %v22055_v60 }
 0x322   : > { %v22060_v63 = vadd.f32 %v22057_v27, %v5334_v3  ;;  %v5336_v8 = vpop.f32.mrb[3].mxu0 }
 0x323   : > { %v22065_v47 = vadd.f32 %v22057_v27, %v5336_v8 }
 0x324   : > { %18955 = vrsqrt.f32 %v22060_v63  ;;  %v22071_v45 = vadd.f32 %v5970_v34, %v22060_v63 }
 0x325   : > { %18957 = vrsqrt.f32 %v22065_v47  ;;  %v22075_v62 = vadd.f32 %v5971_v35, %v22065_v47  ;;  %v22165_v35 = vrot.slane %v22150_v53, %v6243_v57 }
 0x327   : > { %26153 = vst [vmem:[#allocation15_spill] sm:$0xff] %v22165_v35 }
 0x32a   : > { %v5405_v0 = vpop.f32.mrb[0].mxu1 }
 0x32b   : > { %v5407_v22 = vpop.f32.mrb[1].mxu1  ;;  %v22078_v29 = vadd.f32 %v22049_v23, %v5405_v0 }
 0x32c   : > { %v22081_v49 = vadd.f32 %v22049_v23, %v5407_v22 }
 0x32d   : > { %v5972_v58 = vmul.f32 %v22078_v29, %v22078_v29 }
 0x32e   : > { %v18956_v17 = vpop.eup %18955  ;;  %v5411_v25 = vpop.f32.mrb[2].mxu1  ;;  %v5973_v11 = vmul.f32 %v22081_v49, %v22081_v49 }
 0x32f   : > { %v22083_v59 = vpop.eup %18957  ;;  %v22086_v33 = vmul.f32 %v18956_v17, %v22052_v6  ;;  %v22089_v36 = vadd.f32 %v22057_v27, %v5411_v25  ;;  %v5413_v18 = vpop.f32.mrb[3].mxu1  ;;  %v5700_v22 = vmul.f32 %v18956_v17, %v22060_v63 }
 0x330   : > { %v22093_v31 = vmul.f32 %v22083_v59, %v22055_v60  ;;  %v22098_v54 = vadd.f32 %v22057_v27, %v5413_v18 }
 0x331   : > { %v5718_v41 = vmul.f32 -0.5, %v22086_v33  ;;  %v5763_v46 = vand.u32 2147483647, %v22086_v33  ;;  %18959 = vrsqrt.f32 %v22089_v36  ;;  %v22108_v56 = vadd.f32 %v5972_v58, %v22089_v36 }
 0x332   : > { %v5719_v50 = vmul.f32 -0.5, %v22093_v31  ;;  %v5764_v12 = vand.u32 2147483647, %v22093_v31  ;;  %18961 = vrsqrt.f32 %v22098_v54  ;;  %v22113_v15 = vadd.f32 %v5973_v11, %v22098_v54 }
 0x333   : > { %v5727_v10 = vmul.f32 %v5718_v41, %v22086_v33  ;;  %v5772_v4 = vmul.f32 0.23164189, %v5763_v46  ;;  %v22173_v58 = vrot.slane %v22150_v53, %v6247_v48  ;;  %v5701_v11 = vmul.f32 %v22083_v59, %v22065_v47  ;;  %v22192_v59 = vld [vmem:[#allocation2] sm:$0xff] }
 0x334   : > { %v5728_v13 = vmul.f32 %v5719_v50, %v22093_v31  ;;  %v5773_v51 = vmul.f32 0.23164189, %v5764_v12  ;;  %26155 = vst [vmem:[#allocation17_spill] sm:$0xff] %v22192_v59  ;;  %vm5907_vm9 = vcmp.ge.f32.partialorder %v22086_v33, 0.0  ;;  %vm5908_vm10 = vcmp.ge.f32.partialorder %v22093_v31, 0.0 }
 0x335   : > { %v5736_v7 = vmul.f32 1.442695, %v5727_v10  ;;  %v5781_v37 = vadd.f32 1.0, %v5772_v4  ;;  %26154 = vst [vmem:[#allocation16_spill] sm:$0xff] %v22173_v58 }
 0x336   : > { %v5738_v52 = vmul.f32 1.442695, %v5728_v13  ;;  %v5782_v28 = vadd.f32 1.0, %v5773_v51  ;;  %v5482_v20 = vpop.f32.mrb[4].mxu0 }
 0x337   : > { %18963 = vpow2.f32 %v5736_v7  ;;  %v22117_v30 = vadd.f32 %v22049_v23, %v5482_v20  ;;  %v5484_v1 = vpop.f32.mrb[5].mxu0 }
 0x338   : > { %18965 = vrcp.f32 %v5781_v37  ;;  %v22122_v9 = vadd.f32 %v22049_v23, %v5484_v1 }
 0x339   : > { %18967 = vpow2.f32 %v5738_v52  ;;  %v5974_v24 = vmul.f32 %v22117_v30, %v22117_v30  ;;  %v22196_v52 = vpack.i.bf16 %v22192_v59, %v22192_v59 }
 0x33a   : > { %18969 = vrcp.f32 %v5782_v28  ;;  %v5488_v16 = vpop.f32.mrb[6].mxu0  ;;  %v5975_v32 = vmul.f32 %v22122_v9, %v22122_v9 }
 0x33b   : > { %v22124_v40 = vpop.eup %18959  ;;  %v22127_v26 = vadd.f32 %v22057_v27, %v5488_v16  ;;  %v5490_v55 = vpop.f32.mrb[7].mxu0  ;;  %26156 = vst [vmem:[#allocation19_spill] sm:$0xff] %v22196_v52 }
 0x33c   : > { %v22133_v38 = vmul.f32 %v22124_v40, %v22078_v29  ;;  %v22136_v39 = vadd.f32 %v22057_v27, %v5490_v55  ;;  %v22139_v19 = vpop.eup %18961 }
 0x33d   : > { %18971 = vrsqrt.f32 %v22127_v26  ;;  %v22143_v14 = vadd.f32 %v5974_v24, %v22127_v26  ;;  %v22157_v42 = vmul.f32 %v22139_v19, %v22081_v49 }
 0x33e   : > { %v5720_v43 = vmul.f32 -0.5, %v22133_v38  ;;  %v5765_v2 = vand.u32 2147483647, %v22133_v38  ;;  %18973 = vrsqrt.f32 %v22136_v39  ;;  %v22161_v3 = vadd.f32 %v5975_v32, %v22136_v39 }
 0x33f   : > { %v5721_v25 = vmul.f32 -0.5, %v22157_v42  ;;  %v5766_v18 = vand.u32 2147483647, %v22157_v42  ;;  %vm5909_vm11 = vcmp.ge.f32.partialorder %v22133_v38, 0.0  ;;  %vm5910_vm12 = vcmp.ge.f32.partialorder %v22157_v42, 0.0 }
 0x340   : > { %26152 = vst [vmem:[#allocation23_spill] sm:$0xff] %v22161_v3  ;;  %v5729_v34 = vmul.f32 %v5720_v43, %v22133_v38  ;;  %v5774_v8 = vmul.f32 0.23164189, %v5765_v2 }
 0x341   : > { %v22167_v0 = vpop.eup %18963  ;;  %v5730_v17 = vmul.f32 %v5721_v25, %v22157_v42  ;;  %v5775_v13 = vmul.f32 0.23164189, %v5766_v18  ;;  %v6251_v18 = vsub.s32 2, %v22119_v5 }
 0x342   : > { %v22175_v41 = vpop.eup %18965  ;;  %v5754_v46 = vmul.f32 0.3989423, %v22167_v0  ;;  %v5740_v50 = vmul.f32 1.442695, %v5729_v34  ;;  %v5783_v12 = vadd.f32 1.0, %v5774_v8  ;;  %v5559_v10 = vpop.f32.mrb[4].mxu1 }
 0x343   : > { %v22180_v4 = vpop.eup %18967  ;;  %v5808_v63 = vmul.f32 1.0614054, %v22175_v41  ;;  %v22185_v51 = vadd.f32 %v22049_v23, %v5559_v10  ;;  %v5561_v44 = vpop.f32.mrb[5].mxu1  ;;  %v5742_v1 = vmul.f32 1.442695, %v5730_v17  ;;  %v5784_v55 = vadd.f32 1.0, %v5775_v13 }
 0x344   : > { %v22187_v7 = vpop.eup %18969  ;;  %v22189_v37 = vmul.f32 %v5754_v46, %v5700_v22  ;;  %v5755_v47 = vmul.f32 0.3989423, %v22180_v4  ;;  %18975 = vpow2.f32 %v5740_v50  ;;  %v22232_v17 = vadd.f32 %v22049_v23, %v5561_v44 }
 0x345   : > { %v5817_v28 = vadd.f32 -1.4531521, %v5808_v63  ;;  %v5809_v20 = vmul.f32 1.0614054, %v22187_v7  ;;  %18977 = vrcp.f32 %v5783_v12  ;;  %v5976_v32 = vmul.f32 %v22185_v51, %v22185_v51 }
 0x346   : > { %v22201_v16 = vmul.f32 %v22189_v37, %v22052_v6  ;;  %v22203_v24 = vmul.f32 %v5755_v47, %v5701_v11  ;;  %v5565_v57 = vpop.f32.mrb[6].mxu1  ;;  %18979 = vpow2.f32 %v5742_v1  ;;  %26158 = vst [vmem:[#allocation26_spill] sm:$0xff] %v22232_v17  ;;  %v6255_v13 = vsub.s32 3, %v22119_v5 }
 0x347   : > { %v22207_v48 = vpop.eup %18971  ;;  %v5826_v43 = vmul.f32 %v22175_v41, %v5817_v28  ;;  %v5818_v2 = vadd.f32 -1.4531521, %v5809_v20  ;;  %v22211_v34 = vadd.f32 %v22057_v27, %v5565_v57  ;;  %v5567_v8 = vpop.f32.mrb[7].mxu1  ;;  %18981 = vrcp.f32 %v5784_v55 }
 0x348   : > { %v22215_v22 = vmul.f32 %v22203_v24, %v22055_v60  ;;  %v22219_v25 = vmul.f32 %v22207_v48, %v22117_v30  ;;  %v22222_v46 = vpop.eup %18973  ;;  %v22241_v1 = vadd.f32 %v22057_v27, %v5567_v8  ;;  %v5702_v55 = vmul.f32 %v22124_v40, %v22089_v36 }
 0x349   : > { %v5835_v11 = vadd.f32 1.4214138, %v5826_v43  ;;  %v5827_v50 = vmul.f32 %v22187_v7, %v5818_v2  ;;  %18983 = vrsqrt.f32 %v22211_v34  ;;  %v22227_v12 = vadd.f32 %v5976_v32, %v22211_v34 }
 0x34a   : > { %v5722_v10 = vmul.f32 -0.5, %v22219_v25  ;;  %v5767_v63 = vand.u32 2147483647, %v22219_v25  ;;  %v22238_v20 = vmul.f32 %v22222_v46, %v22122_v9  ;;  %v5703_v57 = vmul.f32 %v22139_v19, %v22098_v54 }
 0x34b   : > { %26157 = vst [vmem:[#allocation20_spill] sm:$0xff] %v22227_v12  ;;  %v5844_v47 = vmul.f32 %v22175_v41, %v5835_v11  ;;  %v5836_v28 = vadd.f32 1.4214138, %v5827_v50  ;;  %18985 = vrsqrt.f32 %v22241_v1  ;;  %v5977_v54 = vmul.f32 %v22232_v17, %v22232_v17 }
 0x34c   : > { %v5731_v44 = vmul.f32 %v5722_v10, %v22219_v25  ;;  %v5776_v32 = vmul.f32 0.23164189, %v5767_v63  ;;  %v16316_v43 = vpop.f32.mrb[8].mxu1  ;;  %v5723_v50 = vmul.f32 -0.5, %v22238_v20  ;;  %v5768_v59 = vand.u32 2147483647, %v22238_v20 }
 0x34d   : > { %v5853_v2 = vadd.f32 -0.28449672, %v5844_v47  ;;  %v5845_v11 = vmul.f32 %v22187_v7, %v5836_v28  ;;  %v22251_v52 = vpop.f32.mrb[9].mxu1  ;;  %vm5911_vm13 = vcmp.ge.f32.partialorder %v22219_v25, 0.0  ;;  %vm5912_vm14 = vcmp.ge.f32.partialorder %v22238_v20, 0.0 }
 0x34e   : > { %26159 = vst [vmem:[#allocation27_spill] sm:$0xff] %v22251_v52  ;;  %v22253_v8 = vpop.eup %18975  ;;  %v5744_v12 = vmul.f32 1.442695, %v5731_v44  ;;  %v5785_v36 = vadd.f32 1.0, %v5776_v32  ;;  %v5732_v47 = vmul.f32 %v5723_v50, %v22238_v20  ;;  %v5777_v58 = vmul.f32 0.23164189, %v5768_v59 }
 0x34f   : > { %v22258_v40 = vpop.eup %18977  ;;  %v5862_v19 = vmul.f32 %v22175_v41, %v5853_v2  ;;  %v5854_v10 = vadd.f32 -0.28449672, %v5845_v11  ;;  %v5756_v63 = vmul.f32 0.3989423, %v22253_v8  ;;  %v22265_v44 = vadd.f32 %v5977_v54, %v22241_v1 }
 0x350   : > { %v5810_v28 = vmul.f32 1.0614054, %v22258_v40  ;;  %18987 = vpow2.f32 %v5744_v12  ;;  %v22267_v32 = vpop.eup %18979  ;;  %v5746_v12 = vmul.f32 1.442695, %v5732_v47  ;;  %v22277_v59 = vadd.f32 %v16316_v43, %v22045_v21 }
 0x351   : > { %26160 = vst [vmem:[#allocation28_spill] sm:$0xff] %v22265_v44  ;;  %v5871_v35 = vadd.f32 0.2548296, %v5862_v19  ;;  %v5863_v23 = vmul.f32 %v22187_v7, %v5854_v10  ;;  %v22270_v52 = vmul.f32 %v5756_v63, %v5702_v55  ;;  %18989 = vrcp.f32 %v5785_v36  ;;  %v22272_v2 = vpop.eup %18981 }
 0x352   : > { %v5819_v11 = vadd.f32 -1.4531521, %v5810_v28  ;;  %v5757_v50 = vmul.f32 0.3989423, %v22267_v32  ;;  %v5811_v36 = vmul.f32 1.0614054, %v22272_v2  ;;  %18991 = vpow2.f32 %v5746_v12 }
 0x353   : > { %v22279_v54 = vpop.eup %18983  ;;  %v5880_v19 = vmul.f32 %v22175_v41, %v5871_v35  ;;  %v5872_v44 = vadd.f32 0.2548296, %v5863_v23  ;;  %v22284_v55 = vmul.f32 %v22270_v52, %v22078_v29  ;;  %v5786_v21 = vadd.f32 1.0, %v5777_v58 }
 0x354   : > { %v5828_v10 = vmul.f32 %v22258_v40, %v5819_v11  ;;  %v22289_v63 = vmul.f32 %v5757_v50, %v5703_v57  ;;  %v5820_v35 = vadd.f32 -1.4531521, %v5811_v36  ;;  %v22294_v23 = vrot.slane %v22150_v53, %v6251_v18 }
 0x355   : > { %v5889_v43 = vmul.f32 %v22167_v0, %v5880_v19  ;;  %v5881_v47 = vmul.f32 %v22187_v7, %v5872_v44  ;;  %18993 = vrcp.f32 %v5786_v21  ;;  %v22302_v57 = vmul.f32 %v22279_v54, %v22185_v51  ;;  %v22309_v18 = vpop.eup %18985 }
 0x356   : > { %26161 = vst [vmem:[#allocation24_spill] sm:$0xff] %v22294_v23  ;;  %v5837_v41 = vadd.f32 1.4214138, %v5828_v10  ;;  %v22298_v28 = vmul.f32 %v22289_v63, %v22081_v49  ;;  %v5829_v0 = vmul.f32 %v22272_v2, %v5820_v35  ;;  %v22307_v7 = vrot.slane %v22150_v53, %v6255_v13 }
 0x357   : > { %26162 = vst [vmem:[#allocation29_spill] sm:$0xff] %v22302_v57  ;;  %v5898_v11 = vsub.f32 1.0, %v5889_v43  ;;  %v5890_v58 = vmul.f32 %v22180_v4, %v5881_v47  ;;  %v5704_v50 = vmul.f32 %v22207_v48, %v22127_v26  ;;  %v5724_v12 = vmul.f32 -0.5, %v22302_v57 }
 0x358   : > { %26163 = vst [vmem:[#allocation30_spill] sm:$0xff] %v22307_v7  ;;  %v5846_v44 = vmul.f32 %v22258_v40, %v5837_v41  ;;  %v5769_v19 = vand.u32 2147483647, %v22302_v57  ;;  %v5838_v21 = vadd.f32 1.4214138, %v5829_v0  ;;  %v22318_v4 = vmul.f32 %v22222_v46, %v22136_v39 }
 0x359   : > { %v5916_v36 = vsub.f32 0.0, %v5898_v11  ;;  %v5899_v10 = vsub.f32 1.0, %v5890_v58  ;;  %v5733_v47 = vmul.f32 %v5724_v12, %v22302_v57  ;;  %v22325_v26 = vmul.f32 %v22309_v18, %v22232_v17 }
 0x35a   : > { %v22320_v13 = vpop.eup %18987  ;;  %v5855_v43 = vadd.f32 -0.28449672, %v5846_v44  ;;  %v5778_v35 = vmul.f32 0.23164189, %v5769_v19  ;;  %v5847_v0 = vmul.f32 %v22272_v2, %v5838_v21 }
 0x35b   : > { %v22327_v48 = vpop.eup %18989  ;;  %v5925_v41 = vsel %vm5907_vm9, %v5898_v11, %v5916_v36  ;;  %v5917_v58 = vsub.f32 0.0, %v5899_v10  ;;  %v5758_v39 = vmul.f32 0.3989423, %v22320_v13  ;;  %v5748_v19 = vmul.f32 1.442695, %v5733_v47 }
 0x35c   : > { %v5934_v46 = vadd.f32 1.0, %v5925_v41  ;;  %v5864_v44 = vmul.f32 %v22258_v40, %v5855_v43  ;;  %v5812_v12 = vmul.f32 1.0614054, %v22327_v48  ;;  %v5856_v23 = vadd.f32 -0.28449672, %v5847_v0  ;;  %v22341_v33 = vpop.eup %18991 }
 0x35d   : > { %v5926_v7 = vsel %vm5908_vm10, %v5899_v10, %v5917_v58  ;;  %v22337_v53 = vmul.f32 %v5758_v39, %v5704_v50  ;;  %v22339_v17 = vadd.f32 1.0, %v5778_v35  ;;  %v5759_v31 = vmul.f32 0.3989423, %v22341_v33 }
 0x35e   : > { %v5943_v11 = vmul.f32 0.5, %v5934_v46  ;;  %v5935_v36 = vadd.f32 1.0, %v5926_v7  ;;  %v5873_v21 = vadd.f32 0.2548296, %v5864_v44  ;;  %v5821_v61 = vadd.f32 -1.4531521, %v5812_v12 }
 0x35f   : > { %v5865_v41 = vmul.f32 %v22272_v2, %v5856_v23  ;;  %v22346_v43 = vmul.f32 %v22337_v53, %v22117_v30  ;;  %18995 = vpow2.f32 %v5748_v19  ;;  %v22349_v10 = vpop.eup %18993  ;;  %vm5914_vm1 = vcmp.ge.f32.partialorder %v22325_v26, 0.0 }
 0x360   : > { %v5952_v50 = vsub.f32 1.0, %v5943_v11  ;;  %v5997_v47 = vmul.f32 %v5943_v11, %v22052_v6  ;;  %v6015_v35 = vmul.f32 %v22071_v45, %v5943_v11  ;;  %v5944_v58 = vmul.f32 0.5, %v5935_v36 }
 0x361   : > { %v5882_v7 = vmul.f32 %v22258_v40, %v5873_v21  ;;  %v5874_v0 = vadd.f32 0.2548296, %v5865_v41  ;;  %v5830_v23 = vmul.f32 %v22327_v48, %v5821_v61  ;;  %v5813_v39 = vmul.f32 1.0614054, %v22349_v10 }
 0x362   : > { %v22357_v46 = vadd.f32 %v5997_v47, %v22189_v37  ;;  %v6024_v44 = vadd.f32 %v6015_v35, %v22201_v16  ;;  %v6051_v12 = vmul.f32 %v5952_v50, %v22052_v6  ;;  %v6069_v19 = vmul.f32 %v22071_v45, %v5952_v50 }
 0x363   : > { %v5953_v57 = vsub.f32 1.0, %v5944_v58  ;;  %v5998_v11 = vmul.f32 %v5944_v58, %v22055_v60  ;;  %v6016_v36 = vmul.f32 %v22075_v62, %v5944_v58  ;;  %v5891_v40 = vmul.f32 %v22253_v8, %v5882_v7 }
 0x364   : > { %v6033_v61 = vmul.f32 %v22357_v46, %v22357_v46  ;;  %v6060_v21 = vsub.f32 %v22189_v37, %v6051_v12  ;;  %v6078_v41 = vsub.f32 %v6069_v19, %v22201_v16  ;;  %v6105_v6 = vsub.f32 0.0, %v22357_v46 }
 0x365   : > { %v22372_v45 = vadd.f32 %v5998_v11, %v22203_v24  ;;  %v6025_v50 = vadd.f32 %v6016_v36, %v22215_v22  ;;  %v6052_v47 = vmul.f32 %v5953_v57, %v22055_v60  ;;  %v6070_v8 = vmul.f32 %v22075_v62, %v5953_v57 }
 0x366   : > { %v6042_v35 = vsub.f32 %v6024_v44, %v6033_v61  ;;  %v6087_v58 = vmul.f32 %v6060_v21, %v6060_v21  ;;  %v6114_v7 = vmul.f32 %v6105_v6, %v6060_v21  ;;  %v22377_v3 = vmul.f32 0.01, %v6060_v21 }
 0x367   : > { %v6034_v37 = vmul.f32 %v22372_v45, %v22372_v45  ;;  %v6061_v16 = vsub.f32 %v22203_v24, %v6052_v47  ;;  %v6079_v12 = vsub.f32 %v6070_v8, %v22215_v22  ;;  %v6106_v19 = vsub.f32 0.0, %v22372_v45 }
 0x368   : > { %v6096_v11 = vsub.f32 %v6078_v41, %v6087_v58  ;;  %v22386_v36 = vmul.f32 0.02, %v6114_v7  ;;  %v5900_v62 = vsub.f32 1.0, %v5891_v40  ;;  %v5883_v47 = vmul.f32 %v22272_v2, %v5874_v0 }
 0x369   : > { %v22388_v57 = vpop.eup %18995  ;;  %v6043_v44 = vsub.f32 %v6025_v50, %v6034_v37  ;;  %v6088_v61 = vmul.f32 %v6061_v16, %v6061_v16  ;;  %v6115_v21 = vmul.f32 %v6106_v19, %v6061_v16  ;;  %v22390_v6 = vmul.f32 0.01, %v6061_v16 }
 0x36a   : > { %v6141_v24 = vmul.f32 0.0001, %v6096_v11  ;;  %v5918_v22 = vsub.f32 0.0, %v5900_v62  ;;  %v5839_v41 = vadd.f32 1.4214138, %v5830_v23  ;;  %v5892_v37 = vmul.f32 %v22267_v32, %v5883_v47 }
 0x36b   : > { %v6097_v8 = vsub.f32 %v6079_v12, %v6088_v61  ;;  %v6133_v58 = vsub.f32 %v22372_v45, %v22390_v6  ;;  %v22396_v7 = vmul.f32 0.02, %v6115_v21  ;;  %v5822_v40 = vadd.f32 -1.4531521, %v5813_v39 }
 0x36c   : > { %v22398_v60 = vadd.f32 %v6141_v24, %v6042_v35  ;;  %v5927_v50 = vsel %vm5909_vm11, %v5900_v62, %v5918_v22  ;;  %v5848_v16 = vmul.f32 %v22327_v48, %v5839_v41  ;;  %v22406_v0 = vmul.f32 %v5759_v31, %v22318_v4 }
 0x36d   : > { %v6142_v19 = vmul.f32 0.0001, %v6097_v8  ;;  %v5936_v11 = vadd.f32 1.0, %v5927_v50  ;;  %v5831_v2 = vmul.f32 %v22349_v10, %v5822_v40  ;;  %v5901_v39 = vsub.f32 1.0, %v5892_v37 }
 0x36e   : > { %v6168_v23 = vsub.f32 %v22398_v60, %v22386_v36  ;;  %v5857_v35 = vadd.f32 -0.28449672, %v5848_v16  ;;  %v5760_v12 = vmul.f32 0.3989423, %v22388_v57  ;;  %v22415_v61 = vmul.f32 %v22406_v0, %v22122_v9 }
 0x36f   : > { %v22411_v38 = vadd.f32 %v6142_v19, %v6043_v44  ;;  %v5945_v62 = vmul.f32 0.5, %v5936_v11  ;;  %v5840_v32 = vadd.f32 1.4214138, %v5831_v2  ;;  %v5919_v21 = vsub.f32 0.0, %v5901_v39 }
 0x370   : > { %v5866_v24 = vmul.f32 %v22327_v48, %v5857_v35  ;;  %v5706_v4 = vmul.f32 %v22279_v54, %v22211_v34  ;;  %18997 = vrcp.f32 %v22339_v17  ;;  %v6259_v37 = vsub.s32 4, %v22119_v5 }
 0x371   : > { %v6169_v31 = vsub.f32 %v22411_v38, %v22396_v7  ;;  %v5954_v22 = vsub.f32 1.0, %v5945_v62  ;;  %v5999_v44 = vmul.f32 %v5945_v62, %v22078_v29  ;;  %v6017_v47 = vmul.f32 %v22108_v56, %v5945_v62 }
 0x372   : > { %v5928_v41 = vsel %vm5910_vm12, %v5901_v39, %v5919_v21  ;;  %v5875_v8 = vadd.f32 0.2548296, %v5866_v24  ;;  %v5849_v40 = vmul.f32 %v22349_v10, %v5840_v32  ;;  %v22428_v50 = vmul.f32 %v5760_v12, %v5706_v4 }
 0x373   : > { %v22431_v34 = vadd.f32 %v5999_v44, %v22270_v52  ;;  %v6026_v17 = vadd.f32 %v6017_v47, %v22284_v55  ;;  %v6053_v54 = vmul.f32 %v5954_v22, %v22078_v29  ;;  %v6071_v16 = vmul.f32 %v22108_v56, %v5954_v22 }
 0x374   : > { %v5937_v19 = vadd.f32 1.0, %v5928_v41  ;;  %v5884_v42 = vmul.f32 %v22327_v48, %v5875_v8  ;;  %v5858_v11 = vadd.f32 -0.28449672, %v5849_v40  ;;  %v22445_v29 = vmul.f32 %v22428_v50, %v22185_v51 }
 0x375   : > { %v6035_v2 = vmul.f32 %v22431_v34, %v22431_v34  ;;  %v6062_v39 = vsub.f32 %v22270_v52, %v6053_v54  ;;  %v6107_v35 = vsub.f32 0.0, %v22431_v34  ;;  %v6080_v12 = vsub.f32 %v6071_v16, %v22284_v55 }
 0x376   : > { %v5946_v56 = vmul.f32 0.5, %v5937_v19  ;;  %v5893_v62 = vmul.f32 %v22320_v13, %v5884_v42  ;;  %v5867_v48 = vmul.f32 %v22349_v10, %v5858_v11  ;;  %v6263_v6 = vsub.s32 5, %v22119_v5 }
 0x377   : > { %v6044_v32 = vsub.f32 %v6026_v17, %v6035_v2  ;;  %v6089_v21 = vmul.f32 %v6062_v39, %v6062_v39  ;;  %v6116_v24 = vmul.f32 %v6107_v35, %v6062_v39  ;;  %v22450_v4 = vmul.f32 0.01, %v6062_v39 }
 0x378   : > { %v5955_v22 = vsub.f32 1.0, %v5946_v56  ;;  %v6000_v52 = vmul.f32 %v5946_v56, %v22081_v49  ;;  %v6018_v44 = vmul.f32 %v22113_v15, %v5946_v56  ;;  %v5902_v47 = vsub.f32 1.0, %v5893_v62 }
 0x379   : > { %v6098_v41 = vsub.f32 %v6080_v12, %v6089_v21  ;;  %v6134_v55 = vsub.f32 %v22431_v34, %v22450_v4  ;;  %v22456_v8 = vmul.f32 0.02, %v6116_v24  ;;  %v5876_v13 = vadd.f32 0.2548296, %v5867_v48 }
 0x37a   : > { %v22458_v40 = vpop.eup %18997  ;;  %v22461_v17 = vadd.f32 %v6000_v52, %v22289_v63  ;;  %v6027_v54 = vadd.f32 %v6018_v44, %v22298_v28  ;;  %v6054_v16 = vmul.f32 %v5955_v22, %v22081_v49  ;;  %v6072_v19 = vmul.f32 %v22113_v15, %v5955_v22 }
 0x37b   : > { %v6143_v42 = vmul.f32 0.0001, %v6098_v41  ;;  %v5920_v11 = vsub.f32 0.0, %v5902_v47  ;;  %v5885_v2 = vmul.f32 %v22349_v10, %v5876_v13  ;;  %v5814_v39 = vmul.f32 1.0614054, %v22458_v40 }
 0x37c   : > { %v6036_v35 = vmul.f32 %v22461_v17, %v22461_v17  ;;  %v6063_v12 = vsub.f32 %v22289_v63, %v6054_v16  ;;  %v6081_v56 = vsub.f32 %v6072_v19, %v22298_v28  ;;  %v6108_v62 = vsub.f32 0.0, %v22461_v17 }
 0x37d   : > { %v22474_v49 = vadd.f32 %v6143_v42, %v6044_v32  ;;  %v5929_v15 = vsel %vm5911_vm13, %v5902_v47, %v5920_v11  ;;  %v5894_v48 = vmul.f32 %v22341_v33, %v5885_v2  ;;  %v5823_v21 = vadd.f32 -1.4531521, %v5814_v39 }
 0x37e   : > { %v6045_v10 = vsub.f32 %v6027_v54, %v6036_v35  ;;  %v6090_v24 = vmul.f32 %v6063_v12, %v6063_v12  ;;  %v6117_v22 = vmul.f32 %v6108_v62, %v6063_v12  ;;  %v22479_v52 = vmul.f32 0.01, %v6063_v12 }
 0x37f   : > { %v6170_v63 = vsub.f32 %v22474_v49, %v22456_v8  ;;  %v5938_v44 = vadd.f32 1.0, %v5929_v15  ;;  %v5903_v28 = vsub.f32 1.0, %v5894_v48  ;;  %v5832_v41 = vmul.f32 %v22458_v40, %v5823_v21 }
 0x380   : > { %v6099_v32 = vsub.f32 %v6081_v56, %v6090_v24  ;;  %v6135_v25 = vsub.f32 %v22461_v17, %v22479_v52  ;;  %v5725_v47 = vmul.f32 -0.5, %v22325_v26  ;;  %v22489_v33 = vadd.f32 %v22277_v59, %v22057_v27 }
 0x381   : > { %v5947_v13 = vmul.f32 0.5, %v5938_v44  ;;  %v5921_v54 = vsub.f32 0.0, %v5903_v28  ;;  %v5841_v16 = vadd.f32 1.4214138, %v5832_v41  ;;  %v22493_v19 = vmul.f32 %v22309_v18, %v22241_v1 }
 0x382   : > { %v22498_v42 = vmax.f32 %v6168_v23, 0.0  ;;  %v6144_v11 = vmul.f32 0.0001, %v6099_v32  ;;  %v22500_v2 = vmul.f32 0.02, %v6117_v22  ;;  %v5734_v39 = vmul.f32 %v5725_v47, %v22325_v26 }
 0x383   : > { %v5956_v35 = vsub.f32 1.0, %v5947_v13  ;;  %v6001_v27 = vmul.f32 %v5947_v13, %v22117_v30  ;;  %v6019_v59 = vmul.f32 %v22143_v14, %v5947_v13  ;;  %v5930_v12 = vsel %vm5912_vm14, %v5903_v28, %v5921_v54 }
 0x384   : > { %v6153_v1 = vadd.f32 %v6144_v11, %v6045_v10  ;;  %v5939_v18 = vadd.f32 1.0, %v5930_v12  ;;  %v5850_v56 = vmul.f32 %v22458_v40, %v5841_v16  ;;  %v5750_v60 = vmul.f32 1.442695, %v5734_v39 }
 0x385   : > { %v22509_v36 = vadd.f32 %v6001_v27, %v22337_v53  ;;  %v6028_v23 = vadd.f32 %v6019_v59, %v22346_v43  ;;  %v6055_v62 = vmul.f32 %v5956_v35, %v22117_v30  ;;  %v6073_v15 = vmul.f32 %v22143_v14, %v5956_v35  ;;  %v26164_v30 = vld [vmem:[#allocation23_spill] sm:$0xff] }
 0x386   : > { %v6171_v48 = vsub.f32 %v6153_v1, %v22500_v2  ;;  %v5948_v21 = vmul.f32 0.5, %v5939_v18  ;;  %v5859_v24 = vadd.f32 -0.28449672, %v5850_v56  ;;  %18999 = vpow2.f32 %v5750_v60 }
 0x387   : > { %v6037_v20 = vmul.f32 %v22509_v36, %v22509_v36  ;;  %v6064_v10 = vsub.f32 %v22337_v53, %v6055_v62  ;;  %v6082_v22 = vsub.f32 %v6073_v15, %v22346_v43  ;;  %v6109_v44 = vsub.f32 0.0, %v22509_v36 }
 0x388   : > { %v5957_v28 = vsub.f32 1.0, %v5948_v21  ;;  %v6002_v41 = vmul.f32 %v5948_v21, %v22122_v9  ;;  %v6020_v32 = vmul.f32 %v26164_v30, %v5948_v21  ;;  %v5770_v14 = vand.u32 2147483647, %v22325_v26 }
 0x389   : > { %v6046_v47 = vsub.f32 %v6028_v23, %v6037_v20  ;;  %v6091_v13 = vmul.f32 %v6064_v10, %v6064_v10  ;;  %v6118_v54 = vmul.f32 %v6109_v44, %v6064_v10  ;;  %v6127_v16 = vmul.f32 0.01, %v6064_v10  ;;  %v26165_v10 = vld [vmem:[#allocation29_spill] sm:$0xff] }
 0x38a   : > { %v6011_v11 = vadd.f32 %v6002_v41, %v22406_v0  ;;  %v6029_v2 = vadd.f32 %v6020_v32, %v22415_v61  ;;  %v6056_v53 = vmul.f32 %v5957_v28, %v22122_v9  ;;  %v6074_v43 = vmul.f32 %v26164_v30, %v5957_v28  ;;  %v26166_v44 = vld [vmem:[#allocation13_spill] sm:$0xff] }
 0x38b   : > { %v6100_v39 = vsub.f32 %v6082_v22, %v6091_v13  ;;  %v6136_v35 = vsub.f32 %v22509_v36, %v6127_v16  ;;  %v6163_v27 = vmul.f32 0.02, %v6118_v54  ;;  %v5868_v59 = vmul.f32 %v22458_v40, %v5859_v24 }
 0x38c   : > { %v6038_v12 = vmul.f32 %v6011_v11, %v6011_v11  ;;  %v6065_v1 = vsub.f32 %v22406_v0, %v6056_v53  ;;  %v6083_v18 = vsub.f32 %v6074_v43, %v22415_v61  ;;  %v6110_v56 = vsub.f32 0.0, %v6011_v11  ;;  %v26167_v0 = vld [vmem:[#allocation27_spill] sm:$0xff] }
 0x38d   : > { %v6145_v60 = vmul.f32 0.0001, %v6100_v39  ;;  %v5877_v23 = vadd.f32 0.2548296, %v5868_v59  ;;  %v5779_v62 = vmul.f32 0.23164189, %v5770_v14  ;;  %19001 = vrsqrt.f32 %v22489_v33  ;;  %v22576_v39 = vpop.permute.xlu0 %6200 }
 0x38e   : > { %v6047_v9 = vsub.f32 %v6029_v2, %v6038_v12  ;;  %v6092_v15 = vmul.f32 %v6065_v1, %v6065_v1  ;;  %v6119_v21 = vmul.f32 %v6110_v56, %v6065_v1  ;;  %v6128_v20 = vmul.f32 0.01, %v6065_v1  ;;  %v26171_v56 = vld [vmem:[#allocation22_spill] sm:$0xff] }
 0x38f   : > { %vm5913_vm15 = vcmp.ge.f32.partialorder %v26165_v10, 0.0  ;;  %v6154_v36 = vadd.f32 %v6145_v60, %v6046_v47  ;;  %v5886_v24 = vmul.f32 %v22458_v40, %v5877_v23  ;;  %v5788_v22 = vadd.f32 1.0, %v5779_v62  ;;  %v22548_v47 = vpop.permute.xlu1 %6187 }
 0x390   : > { %v17110_v28 = vadd.f32 %v26167_v0, %v26166_v44  ;;  %v22536_v61 = vpop.eup %18999  ;;  %v22541_v41 = vmax.f32 %v6169_v31, 0.0  ;;  %v22546_v30 = vmax.f32 %v6170_v63, 0.0  ;;  %v6101_v32 = vsub.f32 %v6083_v18, %v6092_v15  ;;  %v26168_v31 = vld [vmem:[#allocation25_spill] sm:$0xff]  ;;  %v26176_v0 = vld [vmem:[#allocation16_spill] sm:$0xff] }
 0x391   : > { %v6137_v14 = vsub.f32 %v6011_v11, %v6128_v20  ;;  %v6172_v40 = vsub.f32 %v6154_v36, %v6163_v27  ;;  %v5895_v13 = vmul.f32 %v22388_v57, %v5886_v24  ;;  %v5761_v54 = vmul.f32 0.3989423, %v22536_v61 }
 0x392   : > { %19003 = vrcp.f32 %v5788_v22  ;;  %v22552_v16 = vmax.f32 %v6171_v48, 0.0  ;;  %v6146_v7 = vmul.f32 0.0001, %v6101_v32  ;;  %v6164_v38 = vmul.f32 0.02, %v6119_v21 }
 0x393   : > { %v22555_v2 = vadd.f32 %v17110_v28, %v26168_v31  ;;  %v5904_v8 = vsub.f32 1.0, %v5895_v13  ;;  %v22558_v49 = vmul.f32 %v5761_v54, %v22493_v19  ;;  %v26169_v63 = vsub.f32 %v22357_v46, %v22377_v3  ;;  %v26170_v46 = vld [vmem:[#allocation26_spill] sm:$0xff]  ;;  %v26178_v31 = vld [vmem:[#allocation24_spill] sm:$0xff] }
 0x394   : > { %v6191_v57 = vmul.f32 %v22548_v47, %v6133_v58  ;;  %v22568_v48 = vmax.f32 %v6172_v40, 0.0  ;;  %v6155_v53 = vadd.f32 %v6146_v7, %v6047_v9  ;;  %v6192_v19 = vmul.f32 %v22548_v47, %v6134_v55  ;;  %v26177_v40 = vld [vmem:[#allocation20_spill] sm:$0xff] }
 0x395   : > { %v6190_v11 = vmul.f32 %v22548_v47, %v26169_v63  ;;  %v5978_v43 = vmul.f32 %v22555_v2, %v22555_v2  ;;  %v5922_v3 = vsub.f32 0.0, %v5904_v8  ;;  %v22580_v27 = vmul.f32 %v22558_v49, %v26170_v46  ;;  %v26179_v63 = vld [vmem:[#allocation30_spill] sm:$0xff] }
 0x396   : > { %v6193_v45 = vmul.f32 %v22548_v47, %v6135_v25  ;;  %v6173_v58 = vsub.f32 %v6155_v53, %v6164_v38  ;;  %v6194_v34 = vmul.f32 %v22548_v47, %v6136_v35  ;;  %v6267_v4 = vsub.s32 6, %v22119_v5 }
 0x397   : > { %v22588_v59 = vadd.f32 %v5978_v43, %v22489_v33  ;;  %v19002_v55 = vpop.eup %19001  ;;  %v5931_v12 = vsel %vm5913_vm15, %v5904_v8, %v5922_v3  ;;  %v6195_v1 = vmul.f32 %v22548_v47, %v6137_v14  ;;  %v6203_v17 = vadd.f32 %v22576_v39, %v6190_v11  ;;  %v22644_v3 = vpop.permute.xlu1 %6213 }
 0x398   : > { %v6204_v52 = vadd.f32 %v22576_v39, %v6191_v57  ;;  %v5940_v25 = vadd.f32 1.0, %v5931_v12  ;;  %v22598_v18 = vmul.f32 %v19002_v55, %v22555_v2  ;;  %v22603_v35 = vrot.slane %v26171_v56, %v6259_v37 }
 0x399   : > { %v22606_v60 = vrot.slane %v26171_v56, %v6263_v6  ;;  %v6182_v23 = vmax.f32 %v6173_v58, 0.0  ;;  %v22609_v62 = vmul.f32 %v19002_v55, %v22489_v33  ;;  %v6205_v9 = vadd.f32 %v22576_v39, %v6192_v19  ;;  %v26175_v33 = vld [vmem:[#allocation15_spill] sm:$0xff] }
 0x39a   : > { %26172 = vst [vmem:[#allocation31_spill] sm:$0xff] %v22603_v35  ;;  %v6206_v15 = vadd.f32 %v22576_v39, %v6193_v45  ;;  %v5949_v21 = vmul.f32 0.5, %v5940_v25  ;;  %v5726_v20 = vmul.f32 -0.5, %v22598_v18  ;;  %v5771_v10 = vand.u32 2147483647, %v22598_v18 }
 0x39b   : > { %26173 = vst [vmem:[#allocation18_spill] sm:$0xff] %v22606_v60  ;;  %v22616_v36 = vrot.slane %v26171_v56, %v6267_v4  ;;  %v6207_v24 = vadd.f32 %v22576_v39, %v6194_v34  ;;  %v6208_v22 = vadd.f32 %v22576_v39, %v6195_v1  ;;  %v22623_v44 = vmul.f32 %v26175_v33, %v6203_v17 }
 0x39c   : > { %v22618_v37 = vpop.eup %19003  ;;  %v22626_v28 = vmul.f32 %v26176_v0, %v6204_v52  ;;  %v5958_v32 = vsub.f32 1.0, %v5949_v21  ;;  %v6003_v14 = vmul.f32 %v5949_v21, %v22185_v51  ;;  %v6021_v13 = vmul.f32 %v26177_v40, %v5949_v21 }
 0x39d   : > { %26174 = vst [vmem:[#allocation6_spill] sm:$0xff] %v22616_v36  ;;  %v5815_v54 = vmul.f32 1.0614054, %v22618_v37  ;;  %v5735_v7 = vmul.f32 %v5726_v20, %v22598_v18  ;;  %v5780_v38 = vmul.f32 0.23164189, %v5771_v10  ;;  %v22633_v8 = vmul.f32 %v26178_v31, %v6205_v9  ;;  %6304 = vst [vmem:[#allocation2 + $0x8] sm:$0xff] %v22623_v44 }
 0x39e   : > { %v22636_v11 = vmul.f32 %v26179_v63, %v6206_v15  ;;  %6305 = vst [vmem:[#allocation2 + $0x10] sm:$0xff] %v22626_v28  ;;  %v6012_v57 = vadd.f32 %v6003_v14, %v22428_v50  ;;  %v6030_v53 = vadd.f32 %v6021_v13, %v22445_v29  ;;  %v6057_v43 = vmul.f32 %v5958_v32, %v22185_v51 }
 0x39f   : > { %v6075_v19 = vmul.f32 %v26177_v40, %v5958_v32  ;;  %v5824_v45 = vadd.f32 -1.4531521, %v5815_v54  ;;  %v5752_v6 = vmul.f32 1.442695, %v5735_v7  ;;  %v5789_v58 = vadd.f32 1.0, %v5780_v38  ;;  %6306 = vst [vmem:[#allocation2 + $0x18] sm:$0xff] %v22633_v8 }
 0x3a0   : > { %v22647_v34 = vmul.f32 %v22603_v35, %v6207_v24  ;;  %6307 = vst [vmem:[#allocation2 + $0x20] sm:$0xff] %v22636_v11  ;;  %v6039_v4 = vmul.f32 %v6012_v57, %v6012_v57  ;;  %v6066_v55 = vsub.f32 %v22428_v50, %v6057_v43  ;;  %v6111_v51 = vsub.f32 0.0, %v6012_v57 }
 0x3a1   : > { %v6084_v12 = vsub.f32 %v6075_v19, %v22445_v29  ;;  %v5833_v1 = vmul.f32 %v22618_v37, %v5824_v45  ;;  %19005 = vpow2.f32 %v5752_v6  ;;  %v22655_v17 = vmul.f32 %v22606_v60, %v6208_v22 }
 0x3a2   : > { %6308 = vst [vmem:[#allocation2 + $0x28] sm:$0xff] %v22647_v34  ;;  %v6216_v52 = vmul.f32 %v22644_v3, %v22498_v42  ;;  %v6048_v25 = vsub.f32 %v6030_v53, %v6039_v4  ;;  %v6093_v56 = vmul.f32 %v6066_v55, %v6066_v55  ;;  %v6120_v9 = vmul.f32 %v6111_v51, %v6066_v55 }
 0x3a3   : > { %v6129_v15 = vmul.f32 0.01, %v6066_v55  ;;  %v5842_v21 = vadd.f32 1.4214138, %v5833_v1  ;;  %19007 = vrcp.f32 %v5789_v58  ;;  %6309 = vst [vmem:[#allocation2 + $0x30] sm:$0xff] %v22655_v17  ;;  %v6217_v50 = vmul.f32 %v22644_v3, %v22541_v41 }
 0x3a4   : > { %v6218_v29 = vmul.f32 %v22644_v3, %v22546_v30  ;;  %v6102_v20 = vsub.f32 %v6084_v12, %v6093_v56  ;;  %v6165_v24 = vmul.f32 0.02, %v6120_v9  ;;  %v6219_v42 = vmul.f32 %v22644_v3, %v22552_v16 }
 0x3a5   : > { %v6138_v10 = vsub.f32 %v6012_v57, %v6129_v15  ;;  %v5851_v22 = vmul.f32 %v22618_v37, %v5842_v21  ;;  %v6220_v32 = vmul.f32 %v22644_v3, %v22568_v48  ;;  %v6221_v14 = vmul.f32 %v22644_v3, %v6182_v23 }
 0x3a6   : > { %v22672_v40 = vmul.f32 %v26175_v33, %v6216_v52  ;;  %v6147_v41 = vmul.f32 0.0001, %v6102_v20  ;;  %v22676_v30 = vmul.f32 %v26176_v0, %v6217_v50  ;;  %v22679_v54 = vmul.f32 %v26178_v31, %v6218_v29 }
 0x3a7   : > { %v6196_v13 = vmul.f32 %v22548_v47, %v6138_v10  ;;  %v5860_v16 = vadd.f32 -0.28449672, %v5851_v22  ;;  %v22682_v7 = vmul.f32 %v26179_v63, %v6219_v42  ;;  %v22685_v48 = vmul.f32 %v22603_v35, %v6220_v32 }
 0x3a8   : > { %v22688_v23 = vmul.f32 %v22606_v60, %v6221_v14  ;;  %6313 = vst [vmem:[#allocation2 + $0x60] sm:$0xff] %v22672_v40  ;;  %v6156_v38 = vadd.f32 %v6147_v41, %v6048_v25  ;;  %6314 = vst [vmem:[#allocation2 + $0x68] sm:$0xff] %v22676_v30  ;;  %v22696_v53 = vpack.i.bf16 %v22626_v28, %v22623_v44  ;;  %v26180_v14 = vld [vmem:[#allocation19_spill] sm:$0xff]  ;;  %v6271_v35 = vsub.s32 7, %v22119_v5 }
 0x3a9   : > { %v6209_v57 = vadd.f32 %v22576_v39, %v6196_v13  ;;  %6315 = vst [vmem:[#allocation2 + $0x70] sm:$0xff] %v22679_v54  ;;  %v22700_v43 = vpack.i.bf16 %v22676_v30, %v22672_v40  ;;  %v5869_v19 = vmul.f32 %v22618_v37, %v5860_v16  ;;  %6316 = vst [vmem:[#allocation2 + $0x78] sm:$0xff] %v22682_v7  ;;  %vm5915_vm4 = vcmp.ge.f32.partialorder %v22598_v18, 0.0 }
 0x3aa   : > { %6317 = vst [vmem:[#allocation2 + $0x80] sm:$0xff] %v22685_v48  ;;  %6318 = vst [vmem:[#allocation2 + $0x88] sm:$0xff] %v22688_v23  ;;  %v22708_v45 = vpack.i.bf16 %v22636_v11, %v22633_v8  ;;  %v22712_v6 = vpack.i.bf16 %v22682_v7, %v22679_v54  ;;  %v22716_v58 = vpack.i.bf16 %v22655_v17, %v22647_v34  ;;  %18340 = vrot.lane.b32.xlu1 %v22696_v53, %s19298_s14  ;;  %vm7342_vm9 = vcmask 572416  }
 0x3ab   : > { %v6174_v4 = vsub.f32 %v6156_v38, %v6165_v24  ;;  %v22719_v55 = vmul.f32 %v22616_v36, %v6209_v57  ;;  %18345 = vrot.lane.b32.xlu0 %v22700_v43, %s19298_s14  ;;  %v22727_v12 = vpack.i.bf16 %v22688_v23, %v22685_v48  ;;  %v22729_v51 = vpop.eup %19005  ;;  %v5878_v1 = vadd.f32 0.2548296, %v5869_v19 }
 0x3ac   : > { %v22733_v52 = vpack.i.bf16 %v22633_v8, %v22626_v28  ;;  %v22737_v25 = vpack.i.bf16 %v22672_v40, %v22623_v44  ;;  %v22741_v56 = vpack.i.bf16 %v22679_v54, %v22676_v30  ;;  %v5762_v15 = vmul.f32 0.3989423, %v22729_v51 }
 0x3ad   : > { %v6183_v9 = vmax.f32 %v6174_v4, 0.0  ;;  %6310 = vst [vmem:[#allocation2 + $0x38] sm:$0xff] %v22719_v55  ;;  %v22747_v21 = vpack.i.bf16 %v22685_v48, %v22682_v7  ;;  %v22751_v50 = vpack.i.bf16 %v22647_v34, %v22636_v11  ;;  %v19008_v29 = vpop.eup %19007  ;;  %v5887_v20 = vmul.f32 %v22618_v37, %v5878_v1  ;;  %v26181_v37 = vld [vmem:[#allocation17_spill] sm:$0xff] }
 0x3ae   : > { %v22756_v10 = vpack.i.bf16 %v22719_v55, %v22655_v17  ;;  %v5816_v42 = vmul.f32 1.0614054, %v19008_v29  ;;  %v22761_v22 = vmul.f32 %v5762_v15, %v22609_v62  ;;  %18350 = vrot.lane.b32.xlu1 %v26180_v14, %s19298_s14  ;;  %6237 = vst.msk [vmem:[#allocation2 + $0x50] sm:$0xff] %vm6236_vm0, %v26181_v37  ;;  %6238 = vst.msk [vmem:[#allocation2 + $0xa8] sm:$0xff] %vm6236_vm0, %v26181_v37  ;;  %v26182_v62 = vld [vmem:[#allocation28_spill] sm:$0xff]  ;;  %vm7829_vm10 = vcmask 15360  }
 0x3af   : > { %v6222_v32 = vmul.f32 %v22644_v3, %v6183_v9  ;;  %18355 = vrot.lane.b32.xlu0 %v22708_v45, %s19298_s14  ;;  %11244 = vst.msk [vmem:[#allocation3 + $0x50] sm:$0xff] %vm6236_vm0, %v26181_v37  ;;  %11245 = vst.msk [vmem:[#allocation3 + $0xa8] sm:$0xff] %vm6236_vm0, %v26181_v37  ;;  %v5896_v41 = vmul.f32 %v22536_v61, %v5887_v20  ;;  %vm8766_vm11 = vcmask 1031168   ;;  %vm9253_vm12 = vcmask 474112  }
 0x3b0   : > { %v5825_v57 = vadd.f32 -1.4531521, %v5816_v42  ;;  %v22787_v19 = vmul.f32 %v22761_v22, %v22555_v2  ;;  %vm9740_vm13 = vcmask 457728   ;;  %vm10227_vm14 = vcmask 441344  }
 0x3b1   : > { %v22790_v4 = vmul.f32 %v22616_v36, %v6222_v32  ;;  %v5905_v1 = vsub.f32 1.0, %v5896_v41 }
 0x3b2   : > { %v5834_v9 = vmul.f32 %v19008_v29, %v5825_v57  ;;  %18360 = vrot.lane.b32.xlu1 %v22712_v6, %s19298_s14 }
 0x3b3   : > { %6319 = vst [vmem:[#allocation2 + $0x90] sm:$0xff] %v22790_v4  ;;  %18365 = vrot.lane.b32.xlu0 %v22716_v58, %s19298_s14  ;;  %v22801_v15 = vpack.i.bf16 %v22790_v4, %v22688_v23  ;;  %v5923_v42 = vsub.f32 0.0, %v5905_v1 }
 0x3b4   : > { %v5843_v32 = vadd.f32 1.4214138, %v5834_v9 }
 0x3b5   : > { %v5932_v37 = vsel %vm5914_vm1, %v5905_v1, %v5923_v42 }
 0x3b6   : > { %v5941_v41 = vadd.f32 1.0, %v5932_v37  ;;  %v5852_v57 = vmul.f32 %v19008_v29, %v5843_v32  ;;  %18370 = vrot.lane.b32.xlu1 %v22727_v12, %s19298_s14 }
 0x3b8   : > { %v5950_v61 = vmul.f32 0.5, %v5941_v41  ;;  %v5861_v38 = vadd.f32 -0.28449672, %v5852_v57 }
 0x3ba   : > { %v5959_v16 = vsub.f32 1.0, %v5950_v61  ;;  %v6004_v13 = vmul.f32 %v5950_v61, %v26170_v46  ;;  %v6022_v24 = vmul.f32 %v26182_v62, %v5950_v61  ;;  %v5870_v36 = vmul.f32 %v19008_v29, %v5861_v38 }
 0x3bc   : > { %v6013_v20 = vadd.f32 %v6004_v13, %v22558_v49  ;;  %v6031_v60 = vadd.f32 %v6022_v24, %v22580_v27  ;;  %v6058_v26 = vmul.f32 %v5959_v16, %v26170_v46  ;;  %v6076_v1 = vmul.f32 %v26182_v62, %v5959_v16 }
 0x3bd   : > { %v5879_v9 = vadd.f32 0.2548296, %v5870_v36 }
 0x3be   : > { %v6040_v42 = vmul.f32 %v6013_v20, %v6013_v20  ;;  %v6067_v32 = vsub.f32 %v22558_v49, %v6058_v26  ;;  %v6085_v37 = vsub.f32 %v6076_v1, %v22580_v27  ;;  %v6112_v41 = vsub.f32 0.0, %v6013_v20  ;;  %v19268_v49 = vld [vmem:[%s25775_s6] sm:$0xff] }
 0x3bf   : > { %v5888_v57 = vmul.f32 %v19008_v29, %v5879_v9  ;;  %v22822_v27 = vrot.slane %v19268_v49, %v6271_v35 }
 0x3c0   : > { %v6049_v61 = vsub.f32 %v6031_v60, %v6040_v42  ;;  %v6094_v38 = vmul.f32 %v6067_v32, %v6067_v32  ;;  %v6121_v63 = vmul.f32 %v6112_v41, %v6067_v32  ;;  %v6130_v13 = vmul.f32 0.01, %v6067_v32 }
 0x3c1   : > { %v5897_v24 = vmul.f32 %v22729_v51, %v5888_v57  ;;  %26183 = vst [vmem:[#allocation34_spill] sm:$0xff] %v22822_v27 }
 0x3c2   : > { %v6103_v31 = vsub.f32 %v6085_v37, %v6094_v38  ;;  %v6139_v46 = vsub.f32 %v6013_v20, %v6130_v13  ;;  %v6166_v60 = vmul.f32 0.02, %v6121_v63 }
 0x3c3   : > { %v5906_v0 = vsub.f32 1.0, %v5897_v24 }
 0x3c4   : > { %v6148_v62 = vmul.f32 0.0001, %v6103_v31  ;;  %v6197_v36 = vmul.f32 %v22548_v47, %v6139_v46 }
 0x3c5   : > { %v5924_v29 = vsub.f32 0.0, %v5906_v0 }
 0x3c6   : > { %v6157_v5 = vadd.f32 %v6148_v62, %v6049_v61  ;;  %v6210_v16 = vadd.f32 %v22576_v39, %v6197_v36 }
 0x3c7   : > { %v5933_v51 = vsel %vm5915_vm4, %v5906_v0, %v5924_v29 }
 0x3c8   : > { %v6175_v26 = vsub.f32 %v6157_v5, %v6166_v60  ;;  %v5942_v20 = vadd.f32 1.0, %v5933_v51  ;;  %v22827_v31 = vmul.f32 %v22822_v27, %v6210_v16  ;;  %v15884_v16 = vld [vmem:[%s25775_s6 + $0x8] ss:$0 sm:$0xff] }
 0x3ca   : > { %v6184_v1 = vmax.f32 %v6175_v26, 0.0  ;;  %v5951_v9 = vmul.f32 0.5, %v5942_v20  ;;  %6311 = vst [vmem:[#allocation2 + $0x40] sm:$0xff] %v22827_v31  ;;  %v22832_v35 = vpack.i.bf16 %v22827_v31, %v22719_v55 }
 0x3cc   : > { %v5960_v42 = vsub.f32 1.0, %v5951_v9  ;;  %v6005_v63 = vmul.f32 %v5951_v9, %v22555_v2  ;;  %v6023_v18 = vmul.f32 %v22588_v59, %v5951_v9  ;;  %v6223_v0 = vmul.f32 %v22644_v3, %v6184_v1  ;;  %18375 = vrot.lane.b32.xlu0 %v22832_v35, %s19298_s14 }
 0x3ce   : > { %v6014_v32 = vadd.f32 %v6005_v63, %v22761_v22  ;;  %v6032_v37 = vadd.f32 %v6023_v18, %v22787_v19  ;;  %v6059_v41 = vmul.f32 %v5960_v42, %v22555_v2  ;;  %v6077_v57 = vmul.f32 %v22588_v59, %v5960_v42 }
 0x3cf   : > { %v22844_v61 = vmul.f32 %v22822_v27, %v6223_v0 }
 0x3d0   : > { %v6041_v38 = vmul.f32 %v6014_v32, %v6014_v32  ;;  %v6068_v13 = vsub.f32 %v22761_v22, %v6059_v41  ;;  %v6086_v24 = vsub.f32 %v6077_v57, %v22787_v19  ;;  %v6113_v46 = vsub.f32 0.0, %v6014_v32 }
 0x3d1   : > { %6320 = vst [vmem:[#allocation2 + $0x98] sm:$0xff] %v22844_v61  ;;  %v18379_v62 = vpack.i.bf16 %v22844_v61, %v22790_v4  ;;  %v16881_v36 = vpack.c.bf16 %v22844_v61, %v22827_v31 }
 0x3d2   : > { %v6050_v2 = vsub.f32 %v6032_v37, %v6041_v38  ;;  %v6095_v49 = vmul.f32 %v6068_v13, %v6068_v13  ;;  %v6122_v59 = vmul.f32 %v6113_v46, %v6068_v13  ;;  %v6131_v29 = vmul.f32 0.01, %v6068_v13 }
 0x3d3   : > { %18380 = vrot.lane.b32.xlu1 %v18379_v62, %s19298_s14 }
 0x3d4   : > { %v6104_v5 = vsub.f32 %v6086_v24, %v6095_v49  ;;  %v6140_v60 = vsub.f32 %v6014_v32, %v6131_v29  ;;  %v6167_v26 = vmul.f32 0.02, %v6122_v59 }
 0x3d6   : > { %v6149_v22 = vmul.f32 0.0001, %v6104_v5  ;;  %v6198_v19 = vmul.f32 %v22548_v47, %v6140_v60 }
 0x3d7   : > { %18390 = vrot.lane.b32.xlu1 %v22696_v53, %s19299_s29 }
 0x3d8   : > { %v6158_v51 = vadd.f32 %v6149_v22, %v6050_v2  ;;  %v6211_v20 = vadd.f32 %v22576_v39, %v6198_v19  ;;  %v22926_v19 = vld [vmem:[%s25771_s2 + $0x10] sm:$0xff] }
 0x3da   : > { %v6176_v1 = vsub.f32 %v6158_v51, %v6167_v26  ;;  %v6294_v9 = vmul.f32 %v15884_v16, %v6211_v20 }
 0x3db   : > { %18400 = vrot.lane.b32.xlu1 %v26180_v14, %s19299_s29 }
 0x3dc   : > { %v6185_v42 = vmax.f32 %v6176_v1, 0.0  ;;  %6312 = vst [vmem:[#allocation2 + $0x48] sm:$0xff] %v6294_v9  ;;  %v22864_v47 = vpack.i.bf16 %v6294_v9, %v22827_v31 }
 0x3de   : > { %v6224_v63 = vmul.f32 %v22644_v3, %v6185_v42 }
 0x3df   : > { %18410 = vrot.lane.b32.xlu1 %v22712_v6, %s19299_s29 }
 0x3e0   : > { %v6303_v18 = vmul.f32 %v15884_v16, %v6224_v63 }
 0x3e2   : > { %6321 = vst [vmem:[#allocation2 + $0xa0] sm:$0xff] %v6303_v18  ;;  %v18384_v0 = vpack.i.bf16 %v6303_v18, %v6294_v9  ;;  %v22870_v39 = vpack.i.bf16 %v6303_v18, %v22844_v61  ;;  %v22872_v32 = vpack.c.bf16 %v6303_v18, %v6294_v9 }
 0x3e3   : > { %18420 = vrot.lane.b32.xlu1 %v22727_v12, %s19299_s29 }
 0x3e4   : > { %18385 = vrot.lane.b32.xlu0 %v18384_v0, %s19298_s14 }
 0x3e7   : > { %18430 = vrot.lane.b32.xlu1 %v18379_v62, %s19299_s29 }
 0x3e8   : > { %18395 = vrot.lane.b32.xlu0 %v22700_v43, %s19299_s29 }
 0x3eb   : > { %18440 = vrot.lane.b32.xlu1 %v22696_v53, %s19300_s21 }
 0x3ec   : > { %18405 = vrot.lane.b32.xlu0 %v22708_v45, %s19299_s29 }
 0x3ef   : > { %18450 = vrot.lane.b32.xlu1 %v26180_v14, %s19300_s21 }
 0x3f0   : > { %18415 = vrot.lane.b32.xlu0 %v22716_v58, %s19299_s29 }
 0x3f3   : > { %18460 = vrot.lane.b32.xlu1 %v22712_v6, %s19300_s21 }
 0x3f4   : > { %18425 = vrot.lane.b32.xlu0 %v22832_v35, %s19299_s29 }
 0x3f7   : > { %18470 = vrot.lane.b32.xlu1 %v22727_v12, %s19300_s21 }
 0x3f8   : > { %18435 = vrot.lane.b32.xlu0 %v18384_v0, %s19299_s29 }
 0x3fb   : > { %18480 = vrot.lane.b32.xlu1 %v18379_v62, %s19300_s21 }
 0x3fc   : > { %18445 = vrot.lane.b32.xlu0 %v22700_v43, %s19300_s21 }
 0x3ff   : > { %18490 = vrot.lane.b32.xlu1 %v22696_v53, %s19301_s22 }
 0x400   : > { %18455 = vrot.lane.b32.xlu0 %v22708_v45, %s19300_s21 }
 0x403   : > { %18500 = vrot.lane.b32.xlu1 %v26180_v14, %s19301_s22 }
 0x404   : > { %18465 = vrot.lane.b32.xlu0 %v22716_v58, %s19300_s21 }
 0x407   : > { %18510 = vrot.lane.b32.xlu1 %v22712_v6, %s19301_s22 }
 0x408   : > { %18475 = vrot.lane.b32.xlu0 %v22832_v35, %s19300_s21 }
 0x40b   : > { %18520 = vrot.lane.b32.xlu1 %v22727_v12, %s19301_s22 }
 0x40c   : > { %18485 = vrot.lane.b32.xlu0 %v18384_v0, %s19300_s21 }
 0x40f   : > { %18530 = vrot.lane.b32.xlu1 %v18379_v62, %s19301_s22 }
 0x410   : > { %18495 = vrot.lane.b32.xlu0 %v22700_v43, %s19301_s22 }
 0x413   : > { %18540 = vrot.lane.b32.xlu1 %v22733_v52, %s19302_s23 }
 0x414   : > { %18505 = vrot.lane.b32.xlu0 %v22708_v45, %s19301_s22 }
 0x417   : > { %18550 = vrot.lane.b32.xlu1 %v22737_v25, %s19302_s23 }
 0x418   : > { %18515 = vrot.lane.b32.xlu0 %v22716_v58, %s19301_s22 }
 0x41b   : > { %18560 = vrot.lane.b32.xlu1 %v22747_v21, %s19302_s23 }
 0x41c   : > { %18525 = vrot.lane.b32.xlu0 %v22832_v35, %s19301_s22  ;;  %v18341_v3 = vpop.permute.xlu1 %18340 }
 0x41d   : > { %v18346_v53 = vpop.permute.xlu0 %18345  ;;  %v18343_v43 = vunpack.i.h.bf16 %v18341_v3  ;;  %v18342_v6 = vunpack.i.l.bf16 %v18341_v3  ;;  %v22944_v3 = vld [vmem:[%s25771_s2 + $0x18] sm:$0xff] }
 0x41e   : > { %v18348_v12 = vunpack.i.h.bf16 %v18346_v53  ;;  %v18347_v14 = vunpack.i.l.bf16 %v18346_v53 }
 0x41f   : > { %18570 = vrot.lane.b32.xlu1 %v22801_v15, %s19302_s23  ;;  %v6409_v45 = vsel %vm6407_vm5, %v18342_v6, %v18343_v43 }
 0x420   : > { %v6418_v37 = vsel %vm6407_vm5, %v18347_v14, %v18348_v12  ;;  %18535 = vrot.lane.b32.xlu0 %v18384_v0, %s19301_s22  ;;  %v18351_v58 = vpop.permute.xlu1 %18350  ;;  %v22938_v0 = vld [vmem:[#allocation2] sm:$0xff] }
 0x421   : > { %v16789_v41 = vpack.c.bf16 %v6418_v37, %v6409_v45  ;;  %v18356_v57 = vpop.permute.xlu0 %18355  ;;  %v18353_v38 = vunpack.i.h.bf16 %v18351_v58  ;;  %v18352_v35 = vunpack.i.l.bf16 %v18351_v58  ;;  %v8705_v45 = vld [vmem:[#allocation2 + $0xa8] sm:$0xff] }
 0x422   : > { %v18358_v13 = vunpack.i.h.bf16 %v18356_v57  ;;  %v18357_v24 = vunpack.i.l.bf16 %v18356_v57 }
 0x423   : > { %16790 = vmatprep.subr.bf16.mxu1 %v16789_v41  ;;  %v6408_v46 = vsel %vm6407_vm5, %v18352_v35, %v18342_v6  ;;  %v6417_v62 = vsel %vm6407_vm5, %v18353_v38, %v18347_v14  ;;  %18580 = vrot.lane.b32.xlu1 %v22870_v39, %s19302_s23  ;;  %v8695_v14 = vld [vmem:[#allocation2 + $0x50] sm:$0xff] }
 0x424   : > { %18545 = vrot.lane.b32.xlu0 %v22741_v56, %s19302_s23  ;;  %v16791_v2 = vpack.c.bf16 %v6417_v62, %v6408_v46  ;;  %v18361_v49 = vpop.permute.xlu1 %18360  ;;  %v6410_v60 = vsel %vm6407_vm5, %v18343_v43, %v18357_v24  ;;  %v6411_v22 = vsel %vm6407_vm5, %v18357_v24, %v18358_v13  ;;  %v22961_v41 = vpack.i.bf16 %v8705_v45, %v8695_v14 }
 0x425   : > { %v22919_v59 = vpop.permute.xlu0 %18365  ;;  %v18363_v29 = vunpack.i.h.bf16 %v18361_v49  ;;  %v18362_v5 = vunpack.i.l.bf16 %v18361_v49 }
 0x426   : > { %16792 = vmatpush1.bf16.msra.mxu1 %v16791_v2  ;;  %v18368_v26 = vunpack.i.h.bf16 %v22919_v59  ;;  %v18367_v20 = vunpack.i.l.bf16 %v22919_v59 }
 0x427   : > { %18590 = vrot.lane.b32.xlu1 %v22733_v52, %s19303_s27  ;;  %v6419_v16 = vsel %vm6407_vm5, %v18348_v12, %v18362_v5  ;;  %v6420_v51 = vsel %vm6407_vm5, %v18362_v5, %v18363_v29 }
 0x428   : > { %18555 = vrot.lane.b32.xlu0 %v22751_v50, %s19302_s23  ;;  %v16793_v1 = vpack.c.bf16 %v6420_v51, %v6411_v22  ;;  %v16795_v9 = vpack.c.bf16 %v6419_v16, %v6410_v60  ;;  %v18371_v42 = vpop.permute.xlu1 %18370  ;;  %v6413_v43 = vsel %vm6407_vm5, %v18367_v20, %v18368_v26  ;;  %v6412_v37 = vsel %vm6407_vm5, %v18358_v13, %v18367_v20 }
 0x429   : > { %15887 = vmatmul.mubr.msk.f32.vlgmr.msra.gmra.mrb[10].mxu1 %vm6444_vm7, %v22926_v19  ;;  %v18373_v63 = vunpack.i.h.bf16 %v18371_v42  ;;  %v18372_v18 = vunpack.i.l.bf16 %v18371_v42 }
 0x42a   : > { %16794 = vmatprep.subr.bf16.mxu1 %v16793_v1  ;;  %6521 = vmatprep.mubr.f32.mxu1 %v22938_v0 }
 0x42b   : > { %18600 = vrot.lane.b32.xlu1 %v22737_v25, %s19303_s27  ;;  %16796 = vmatpush1.bf16.msra.mxu1 %v16795_v9  ;;  %v6421_v53 = vsel %vm6407_vm5, %v18363_v29, %v18372_v18  ;;  %v6422_v6 = vsel %vm6407_vm5, %v18372_v18, %v18373_v63 }
 0x42c   : > { %18565 = vrot.lane.b32.xlu0 %v22756_v10, %s19302_s23  ;;  %v16797_v12 = vpack.c.bf16 %v6422_v6, %v6413_v43  ;;  %v16799_v58 = vpack.c.bf16 %v6421_v53, %v6412_v37 }
 0x42d   : > { %15888 = vmatmul.mubr.msk.f32.gmra.mrb[12].mxu1 %vm6444_vm7, %v22944_v3 }
 0x42e   : > { %6592 = vmatprep.mubr.f32.mxu1 %v22938_v0  ;;  %16798 = vmatprep.subr.bf16.mxu1 %v16797_v12 }
 0x42f   : > { %18610 = vrot.lane.b32.xlu1 %v22747_v21, %s19303_s27 }
 0x430   : > { %18575 = vrot.lane.b32.xlu0 %v22864_v47, %s19302_s23 }
 0x431   : > { %15889 = vmatmul.mubr.msk.f32.vlgmr.msra.gmra.mrb[14].mxu1 %vm6444_vm7, %v22926_v19 }
 0x432   : > { %16800 = vmatpush1.bf16.msra.mxu1 %v16799_v58  ;;  %6598 = vmatprep.mubr.f32.mxu1 %v22938_v0 }
 0x433   : > { %18620 = vrot.lane.b32.xlu1 %v22801_v15, %s19303_s27 }
 0x434   : > { %18585 = vrot.lane.b32.xlu0 %v22961_v41, %s19302_s23 }
 0x435   : > { %15890 = vmatmul.mubr.msk.f32.gmra.mrb[16].mxu1 %vm6444_vm7, %v22944_v3 }
 0x436   : > { %6669 = vmatprep.mubr.f32.mxu1 %v22938_v0 }
 0x437   : > { %18630 = vrot.lane.b32.xlu1 %v22870_v39, %s19303_s27 }
 0x438   : > { %18595 = vrot.lane.b32.xlu0 %v22741_v56, %s19303_s27 }
 0x439   : > { %15891 = vmatmul.mubr.msk.f32.vlgmr.msra.gmra.mrb[18].mxu1 %vm6444_vm7, %v22926_v19 }
 0x43a   : > { %6675 = vmatprep.mubr.f32.mxu1 %v22938_v0 }
 0x43b   : > { %18640 = vrot.lane.b32.xlu1 %v22733_v52, %s19304_s10 }
 0x43c   : > { %18605 = vrot.lane.b32.xlu0 %v22751_v50, %s19303_s27 }
 0x43d   : > { %15892 = vmatmul.mubr.msk.f32.gmra.mrb[20].mxu1 %vm6444_vm7, %v22944_v3 }
 0x43e   : > { %6746 = vmatprep.mubr.f32.mxu1 %v22938_v0  ;;  %v18376_v57 = vpop.permute.xlu0 %18375 }
 0x43f   : > { %18650 = vrot.lane.b32.xlu1 %v22737_v25, %s19304_s10  ;;  %v18378_v38 = vunpack.i.h.bf16 %v18376_v57  ;;  %v18377_v35 = vunpack.i.l.bf16 %v18376_v57 }
 0x440   : > { %18615 = vrot.lane.b32.xlu0 %v22756_v10, %s19303_s27 }
 0x441   : > { %v6414_v62 = vsel %vm6407_vm5, %v18368_v26, %v18377_v35  ;;  %v6415_v49 = vsel %vm6407_vm5, %v18377_v35, %v18378_v38 }
 0x443   : > { %18660 = vrot.lane.b32.xlu1 %v22747_v21, %s19304_s10 }
 0x444   : > { %18625 = vrot.lane.b32.xlu0 %v22864_v47, %s19303_s27 }
 0x445   : > { %v18381_v13 = vpop.permute.xlu1 %18380 }
 0x446   : > { %v18383_v24 = vunpack.i.h.bf16 %v18381_v13  ;;  %v18382_v46 = vunpack.i.l.bf16 %v18381_v13 }
 0x447   : > { %18670 = vrot.lane.b32.xlu1 %v22801_v15, %s19304_s10 }
 0x448   : > { %18635 = vrot.lane.b32.xlu0 %v22961_v41, %s19303_s27  ;;  %v6423_v2 = vsel %vm6407_vm5, %v18373_v63, %v18382_v46  ;;  %v6424_v59 = vsel %vm6407_vm5, %v18382_v46, %v18383_v24 }
 0x449   : > { %v16801_v29 = vpack.c.bf16 %v6424_v59, %v6415_v49  ;;  %v16803_v5 = vpack.c.bf16 %v6423_v2, %v6414_v62  ;;  %v18391_v60 = vpop.permute.xlu1 %18390 }
 0x44a   : > { %v18393_v20 = vunpack.i.h.bf16 %v18391_v60  ;;  %v18392_v1 = vunpack.i.l.bf16 %v18391_v60 }
 0x44b   : > { %18680 = vrot.lane.b32.xlu1 %v22870_v39, %s19304_s10  ;;  %16802 = vmatprep.subr.bf16.mxu1 %v16801_v29 }
 0x44c   : > { %18645 = vrot.lane.b32.xlu0 %v22741_v56, %s19304_s10  ;;  %16804 = vmatpush1.bf16.msra.mxu1 %v16803_v5  ;;  %v6875_v37 = vsel %vm6236_vm0, %v18392_v1, %v18393_v20 }
 0x44d   : > { %v18401_v22 = vpop.permute.xlu1 %18400 }
 0x44e   : > { %v18402_v9 = vunpack.i.l.bf16 %v18401_v22 }
 0x44f   : > { %18690 = vrot.lane.b32.xlu1 %v22733_v52, %s19305_s11  ;;  %15893 = vmatmul.mubr.msk.f32.vlgmr.msra.gmra.mrb[22].mxu1 %vm6444_vm7, %v22926_v19 }
 0x450   : > { %18655 = vrot.lane.b32.xlu0 %v22751_v50, %s19304_s10  ;;  %6752 = vmatprep.mubr.f32.mxu1 %v22938_v0  ;;  %v6874_v12 = vsel %vm6236_vm0, %v18402_v9, %v18392_v1 }
 0x451   : > { %v23022_v26 = vpop.permute.xlu1 %18410 }
 0x452   : > { %v18412_v6 = vunpack.i.l.bf16 %v23022_v26 }
 0x453   : > { %18700 = vrot.lane.b32.xlu1 %v22737_v25, %s19305_s11  ;;  %15894 = vmatmul.mubr.msk.f32.gmra.mrb[24].mxu1 %vm6444_vm7, %v22944_v3  ;;  %v18403_v25 = vunpack.i.h.bf16 %v18401_v22 }
 0x454   : > { %18665 = vrot.lane.b32.xlu0 %v22756_v10, %s19304_s10  ;;  %16321 = vmatprep.mubr.msk.f32.mxu1 %vm6444_vm7, %v22926_v19 }
 0x455   : > { %v23038_v45 = vpop.permute.xlu1 %18420 }
 0x456   : > { %v18386_v52 = vpop.permute.xlu0 %18385  ;;  %v18422_v49 = vunpack.i.l.bf16 %v23038_v45 }
 0x457   : > { %v18388_v16 = vunpack.i.h.bf16 %v18386_v52  ;;  %v18387_v51 = vunpack.i.l.bf16 %v18386_v52  ;;  %18710 = vrot.lane.b32.xlu1 %v22747_v21, %s19305_s11  ;;  %v18413_v21 = vunpack.i.h.bf16 %v23022_v26 }
 0x458   : > { %18675 = vrot.lane.b32.xlu0 %v22864_v47, %s19304_s10 }
 0x459   : > { %v6416_v42 = vsel %vm6407_vm5, %v18378_v38, %v18387_v51  ;;  %v6425_v63 = vsel %vm6407_vm5, %v18383_v24, %v18388_v16  ;;  %v18423_v24 = vunpack.i.h.bf16 %v23038_v45  ;;  %v6886_v46 = vsel %vm6236_vm0, %v18412_v6, %v18413_v21 }
 0x45a   : > { %v18396_v19 = vpop.permute.xlu0 %18395  ;;  %v16805_v18 = vpack.c.bf16 %v6425_v63, %v6416_v42 }
 0x45b   : > { %v18398_v53 = vunpack.i.h.bf16 %v18396_v19  ;;  %v18397_v43 = vunpack.i.l.bf16 %v18396_v19  ;;  %18720 = vrot.lane.b32.xlu1 %v22801_v15, %s19305_s11  ;;  %v6888_v16 = vsel %vm6236_vm0, %v18422_v49, %v18423_v24  ;;  %v6887_v19 = vsel %vm6236_vm0, %v18413_v21, %v18422_v49 }
 0x45c   : > { %18685 = vrot.lane.b32.xlu0 %v22961_v41, %s19304_s10  ;;  %16806 = vmatprep.subr.bf16.mxu1 %v16805_v18 }
 0x45d   : > { %v6883_v14 = vsel %vm6236_vm0, %v18403_v25, %v18397_v43  ;;  %16808 = vmatpush3.bf16.msra.mxu1 %v16805_v18  ;;  %v6884_v58 = vsel %vm6236_vm0, %v18397_v43, %v18398_v53  ;;  %v6885_v62 = vsel %vm6236_vm0, %v18398_v53, %v18412_v6 }
 0x45e   : > { %v18406_v15 = vpop.permute.xlu0 %18405  ;;  %v16809_v57 = vpack.c.bf16 %v6884_v58, %v6875_v37  ;;  %v16811_v38 = vpack.c.bf16 %v6883_v14, %v6874_v12 }
 0x45f   : > { %v18408_v35 = vunpack.i.h.bf16 %v18406_v15  ;;  %v18407_v13 = vunpack.i.l.bf16 %v18406_v15  ;;  %18730 = vrot.lane.b32.xlu1 %v22870_v39, %s19305_s11 }
 0x460   : > { %18695 = vrot.lane.b32.xlu0 %v22741_v56, %s19305_s11  ;;  %16810 = vmatprep.subr.bf16.mxu1 %v16809_v57  ;;  %v23058_v56 = vld [vmem:[%s25771_s2] sm:$0xff] }
 0x461   : > { %v6876_v2 = vsel %vm6236_vm0, %v18393_v20, %v18407_v13  ;;  %16322 = vmatmul.mubr.msk.f32.vlgmr.msra.gmra.mrb[26].mxu1 %vm6444_vm7, %v22944_v3  ;;  %v6877_v59 = vsel %vm6236_vm0, %v18407_v13, %v18408_v35  ;;  %v18431_v3 = vpop.permute.xlu1 %18430  ;;  %v23070_v20 = vld [vmem:[%s25771_s2 + $0x8] sm:$0xff] }
 0x462   : > { %16812 = vmatpush1.bf16.msra.mxu1 %v16811_v38  ;;  %v18416_v39 = vpop.permute.xlu0 %18415  ;;  %6980 = vmatprep.mubr.f32.mxu1 %v22938_v0  ;;  %v16813_v29 = vpack.c.bf16 %v6886_v46, %v6877_v59  ;;  %v16815_v5 = vpack.c.bf16 %v6885_v62, %v6876_v2  ;;  %v18433_v25 = vunpack.i.h.bf16 %v18431_v3  ;;  %v18432_v9 = vunpack.i.l.bf16 %v18431_v3 }
 0x463   : > { %v18418_v60 = vunpack.i.h.bf16 %v18416_v39  ;;  %v18417_v22 = vunpack.i.l.bf16 %v18416_v39 }
 0x464   : > { %18705 = vrot.lane.b32.xlu0 %v22751_v50, %s19305_s11  ;;  %16814 = vmatprep.subr.bf16.mxu1 %v16813_v29  ;;  %v6890_v43 = vsel %vm6236_vm0, %v18432_v9, %v18433_v25  ;;  %v6889_v37 = vsel %vm6236_vm0, %v18423_v24, %v18432_v9 }
 0x465   : > { %15897 = vmatmul.mubr.msk.f32.vlgmr.msra.gmra.mrb[10].mxu1 %vm6444_vm7, %v23058_v56  ;;  %v6879_v52 = vsel %vm6236_vm0, %v18417_v22, %v18418_v60  ;;  %v6878_v42 = vsel %vm6236_vm0, %v18408_v35, %v18417_v22  ;;  %v18441_v14 = vpop.permute.xlu1 %18440 }
 0x466   : > { %16816 = vmatpush1.bf16.msra.mxu1 %v16815_v5  ;;  %v18426_v51 = vpop.permute.xlu0 %18425  ;;  %6986 = vmatprep.mubr.f32.mxu1 %v22938_v0  ;;  %v16817_v26 = vpack.c.bf16 %v6888_v16, %v6879_v52  ;;  %v16819_v53 = vpack.c.bf16 %v6887_v19, %v6878_v42  ;;  %v18443_v13 = vunpack.i.h.bf16 %v18441_v14  ;;  %v18442_v46 = vunpack.i.l.bf16 %v18441_v14 }
 0x467   : > { %v18428_v50 = vunpack.i.h.bf16 %v18426_v51  ;;  %v18427_v1 = vunpack.i.l.bf16 %v18426_v51 }
 0x468   : > { %18715 = vrot.lane.b32.xlu0 %v22756_v10, %s19305_s11  ;;  %16818 = vmatprep.subr.bf16.mxu1 %v16817_v26  ;;  %v7344_v49 = vsel %vm7342_vm9, %v18442_v46, %v18443_v13 }
 0x469   : > { %15898 = vmatmul.mubr.msk.f32.gmra.mrb[12].mxu1 %vm6444_vm7, %v23070_v20  ;;  %v6881_v63 = vsel %vm6236_vm0, %v18427_v1, %v18428_v50  ;;  %v6880_v21 = vsel %vm6236_vm0, %v18418_v60, %v18427_v1  ;;  %v18451_v57 = vpop.permute.xlu1 %18450 }
 0x46a   : > { %7057 = vmatprep.mubr.f32.mxu1 %v22938_v0  ;;  %v18436_v18 = vpop.permute.xlu0 %18435  ;;  %v16821_v10 = vpack.c.bf16 %v6890_v43, %v6881_v63  ;;  %v16823_v15 = vpack.c.bf16 %v6889_v37, %v6880_v21  ;;  %v18453_v59 = vunpack.i.h.bf16 %v18451_v57  ;;  %v18452_v60 = vunpack.i.l.bf16 %v18451_v57  ;;  %v23132_v37 = vld [vmem:[%s25771_s2 + $0x28] sm:$0xff] }
 0x46b   : > { %v18438_v6 = vunpack.i.h.bf16 %v18436_v18  ;;  %v18437_v12 = vunpack.i.l.bf16 %v18436_v18 }
 0x46c   : > { %18725 = vrot.lane.b32.xlu0 %v22864_v47, %s19305_s11 }
 0x46d   : > { %15899 = vmatmul.mubr.msk.f32.vlgmr.msra.gmra.mrb[14].mxu1 %vm6444_vm7, %v23058_v56  ;;  %v6882_v47 = vsel %vm6236_vm0, %v18428_v50, %v18437_v12  ;;  %v6891_v45 = vsel %vm6236_vm0, %v18433_v25, %v18438_v6  ;;  %v18461_v2 = vpop.permute.xlu1 %18460  ;;  %v7343_v25 = vsel %vm7342_vm9, %v18452_v60, %v18442_v46 }
 0x46e   : > { %16820 = vmatpush1.bf16.msra.mxu1 %v16819_v53  ;;  %7063 = vmatprep.mubr.f32.mxu1 %v22938_v0  ;;  %v18446_v58 = vpop.permute.xlu0 %18445  ;;  %v18463_v3 = vunpack.i.h.bf16 %v18461_v2  ;;  %v18462_v52 = vunpack.i.l.bf16 %v18461_v2 }
 0x46f   : > { %16822 = vmatprep.subr.bf16.mxu1 %v16821_v10  ;;  %v18448_v38 = vunpack.i.h.bf16 %v18446_v58  ;;  %v18447_v35 = vunpack.i.l.bf16 %v18446_v58 }
 0x470   : > { %18735 = vrot.lane.b32.xlu0 %v22961_v41, %s19305_s11  ;;  %v16825_v41 = vpack.c.bf16 %v6891_v45, %v6882_v47  ;;  %v7355_v19 = vsel %vm7342_vm9, %v18462_v52, %v18463_v3 }
 0x471   : > { %15900 = vmatmul.mubr.msk.f32.gmra.mrb[16].mxu1 %vm6444_vm7, %v23070_v20  ;;  %v7353_v24 = vsel %vm7342_vm9, %v18447_v35, %v18448_v38  ;;  %v7352_v16 = vsel %vm7342_vm9, %v18453_v59, %v18447_v35  ;;  %v18471_v51 = vpop.permute.xlu1 %18470  ;;  %v7354_v10 = vsel %vm7342_vm9, %v18448_v38, %v18462_v52 }
 0x472   : > { %7134 = vmatprep.mubr.f32.mxu1 %v22938_v0  ;;  %v18456_v62 = vpop.permute.xlu0 %18455  ;;  %v16829_v39 = vpack.c.bf16 %v7353_v24, %v7344_v49  ;;  %v18473_v9 = vunpack.i.h.bf16 %v18471_v51  ;;  %v18472_v42 = vunpack.i.l.bf16 %v18471_v51  ;;  %v16831_v63 = vpack.c.bf16 %v7352_v16, %v7343_v25 }
 0x473   : > { %v18458_v29 = vunpack.i.h.bf16 %v18456_v62  ;;  %v18457_v5 = vunpack.i.l.bf16 %v18456_v62 }
 0x474   : > { %v7357_v14 = vsel %vm7342_vm9, %v18472_v42, %v18473_v9  ;;  %v7356_v38 = vsel %vm7342_vm9, %v18463_v3, %v18472_v42 }
 0x475   : > { %15901 = vmatmul.mubr.msk.f32.vlgmr.msra.gmra.mrb[18].mxu1 %vm6444_vm7, %v23058_v56  ;;  %v7346_v1 = vsel %vm7342_vm9, %v18457_v5, %v18458_v29  ;;  %v7345_v18 = vsel %vm7342_vm9, %v18443_v13, %v18457_v5  ;;  %v18481_v21 = vpop.permute.xlu1 %18480 }
 0x476   : > { %16824 = vmatpush1.bf16.msra.mxu1 %v16823_v15  ;;  %7140 = vmatprep.mubr.f32.mxu1 %v22938_v0  ;;  %v18466_v22 = vpop.permute.xlu0 %18465  ;;  %v16833_v53 = vpack.c.bf16 %v7355_v19, %v7346_v1  ;;  %v16835_v12 = vpack.c.bf16 %v7354_v10, %v7345_v18  ;;  %v18483_v58 = vunpack.i.h.bf16 %v18481_v21  ;;  %v18482_v15 = vunpack.i.l.bf16 %v18481_v21 }
 0x477   : > { %16826 = vmatprep.subr.bf16.mxu1 %v16825_v41  ;;  %v18468_v26 = vunpack.i.h.bf16 %v18466_v22  ;;  %v18467_v50 = vunpack.i.l.bf16 %v18466_v22 }
 0x478   : > { %v7359_v46 = vsel %vm7342_vm9, %v18482_v15, %v18483_v58  ;;  %v7358_v5 = vsel %vm7342_vm9, %v18473_v9, %v18482_v15 }
 0x479   : > { %15902 = vmatmul.mubr.msk.f32.gmra.mrb[20].mxu1 %vm6444_vm7, %v23070_v20  ;;  %v7348_v43 = vsel %vm7342_vm9, %v18467_v50, %v18468_v26  ;;  %v7347_v57 = vsel %vm7342_vm9, %v18458_v29, %v18467_v50  ;;  %v18491_v49 = vpop.permute.xlu1 %18490 }
 0x47a   : > { %7211 = vmatprep.mubr.f32.mxu1 %v22938_v0  ;;  %v18476_v6 = vpop.permute.xlu0 %18475  ;;  %v16839_v13 = vpack.c.bf16 %v7356_v38, %v7347_v57  ;;  %v18492_v50 = vunpack.i.l.bf16 %v18491_v49 }
 0x47b   : > { %v18478_v47 = vunpack.i.h.bf16 %v18476_v6  ;;  %v18477_v45 = vunpack.i.l.bf16 %v18476_v6 }
 0x47d   : > { %15903 = vmatmul.mubr.msk.f32.vlgmr.msra.gmra.mrb[22].mxu1 %vm6444_vm7, %v23058_v56  ;;  %v7349_v59 = vsel %vm7342_vm9, %v18468_v26, %v18477_v45  ;;  %v18501_v3 = vpop.permute.xlu1 %18500  ;;  %v18493_v26 = vunpack.i.h.bf16 %v18491_v49 }
 0x47e   : > { %16828 = vmatpush3.bf16.msra.mxu1 %v16825_v41  ;;  %7217 = vmatprep.mubr.f32.mxu1 %v22938_v0  ;;  %v7350_v41 = vsel %vm7342_vm9, %v18477_v45, %v18478_v47  ;;  %v18486_v35 = vpop.permute.xlu0 %18485  ;;  %v16843_v22 = vpack.c.bf16 %v7358_v5, %v7349_v59  ;;  %v15920_v5 = vld [vmem:[%s25771_s2 + $0x38] sm:$0xff] }
 0x47f   : > { %16830 = vmatprep.subr.bf16.mxu1 %v16829_v39  ;;  %v16841_v62 = vpack.c.bf16 %v7359_v46, %v7350_v41  ;;  %v18488_v24 = vunpack.i.h.bf16 %v18486_v35  ;;  %v18487_v2 = vunpack.i.l.bf16 %v18486_v35  ;;  %v7831_v42 = vsel %vm7829_vm10, %v18492_v50, %v18493_v26 }
 0x481   : > { %15904 = vmatmul.mubr.msk.f32.gmra.mrb[24].mxu1 %vm6444_vm7, %v23070_v20  ;;  %v7351_v39 = vsel %vm7342_vm9, %v18478_v47, %v18487_v2  ;;  %v7360_v29 = vsel %vm7342_vm9, %v18483_v58, %v18488_v24  ;;  %v18511_v9 = vpop.permute.xlu1 %18510 }
 0x482   : > { %16328 = vmatprep.mubr.msk.f32.mxu1 %vm6444_vm7, %v23058_v56  ;;  %v23121_v56 = vld [vmem:[%s25771_s2 + $0x20] sm:$0xff]  ;;  %v18496_v60 = vpop.permute.xlu0 %18495  ;;  %v16845_v52 = vpack.c.bf16 %v7360_v29, %v7351_v39  ;;  %v18513_v6 = vunpack.i.h.bf16 %v18511_v9 }
 0x483   : > { %v18498_v16 = vunpack.i.h.bf16 %v18496_v60  ;;  %v18497_v51 = vunpack.i.l.bf16 %v18496_v60 }
 0x485   : > { %16329 = vmatmul.mubr.msk.f32.vlgmr.msra.gmra.mrb[26].mxu1 %vm6444_vm7, %v23070_v20  ;;  %v16837_v20 = vpack.c.bf16 %v7357_v14, %v7348_v43  ;;  %v7840_v25 = vsel %vm7829_vm10, %v18497_v51, %v18498_v16  ;;  %v18502_v43 = vunpack.i.l.bf16 %v18501_v3  ;;  %v18521_v21 = vpop.permute.xlu1 %18520 }
 0x486   : > { %16832 = vmatpush1.bf16.msra.mxu1 %v16831_v63  ;;  %7449 = vmatprep.mubr.f32.mxu1 %v22938_v0  ;;  %v18506_v1 = vpop.permute.xlu0 %18505  ;;  %v18503_v63 = vunpack.i.h.bf16 %v18501_v3  ;;  %v16849_v19 = vpack.c.bf16 %v7840_v25, %v7831_v42  ;;  %v18523_v15 = vunpack.i.h.bf16 %v18521_v21  ;;  %v18522_v57 = vunpack.i.l.bf16 %v18521_v21 }
 0x487   : > { %16834 = vmatprep.subr.bf16.mxu1 %v16833_v53  ;;  %v18508_v18 = vunpack.i.h.bf16 %v18506_v1  ;;  %v18507_v53 = vunpack.i.l.bf16 %v18506_v1  ;;  %v7830_v58 = vsel %vm7829_vm10, %v18502_v43, %v18492_v50 }
 0x488   : > { %v7839_v14 = vsel %vm7829_vm10, %v18503_v63, %v18497_v51  ;;  %v7844_v49 = vsel %vm7829_vm10, %v18522_v57, %v18523_v15 }
 0x489   : > { %15909 = vmatmul.mubr.msk.f32.vlgmr.msra.gmra.mrb[10].mxu1 %vm6444_vm7, %v23121_v56  ;;  %v7833_v45 = vsel %vm7829_vm10, %v18507_v53, %v18508_v18  ;;  %v16851_v41 = vpack.c.bf16 %v7839_v14, %v7830_v58  ;;  %v7832_v35 = vsel %vm7829_vm10, %v18493_v26, %v18507_v53  ;;  %v18531_v59 = vpop.permute.xlu1 %18530 }
 0x48a   : > { %16836 = vmatpush1.bf16.msra.mxu1 %v16835_v12  ;;  %7455 = vmatprep.mubr.f32.mxu1 %v22938_v0  ;;  %v18516_v10 = vpop.permute.xlu0 %18515  ;;  %v18512_v12 = vunpack.i.l.bf16 %v18511_v9  ;;  %v18533_v60 = vunpack.i.h.bf16 %v18531_v59 }
 0x48b   : > { %16838 = vmatprep.subr.bf16.mxu1 %v16837_v20  ;;  %v18518_v20 = vunpack.i.h.bf16 %v18516_v10  ;;  %v18517_v47 = vunpack.i.l.bf16 %v18516_v10  ;;  %v26184_v10 = vpack.c.bf16 %v22676_v30, %v22626_v28  ;;  %v26186_v28 = vpack.c.bf16 %v22682_v7, %v22636_v11 }
 0x48c   : > { %v7842_v38 = vsel %vm7829_vm10, %v18512_v12, %v18513_v6  ;;  %v26187_v30 = vpack.c.bf16 %v22679_v54, %v22633_v8  ;;  %v26189_v8 = vpack.c.bf16 %v22685_v48, %v22647_v34  ;;  %v26190_v34 = vpack.c.bf16 %v22790_v4, %v22719_v55 }
 0x48d   : > { %15910 = vmatmul.mubr.msk.f32.gmra.mrb[12].mxu1 %vm6444_vm7, %v23132_v37  ;;  %v7835_v46 = vsel %vm7829_vm10, %v18517_v47, %v18518_v20  ;;  %v7834_v3 = vsel %vm7829_vm10, %v18508_v18, %v18517_v47  ;;  %v18541_v11 = vpop.permute.xlu1 %18540 }
 0x48e   : > { %7526 = vmatprep.mubr.f32.mxu1 %v22938_v0  ;;  %v18526_v24 = vpop.permute.xlu0 %18525  ;;  %v18543_v48 = vunpack.i.h.bf16 %v18541_v11  ;;  %v18542_v31 = vunpack.i.l.bf16 %v18541_v11 }
 0x48f   : > { %v18528_v39 = vunpack.i.h.bf16 %v18526_v24  ;;  %v18527_v29 = vunpack.i.l.bf16 %v18526_v24 }
 0x490   : > { %v8768_v21 = vsel %vm8766_vm11, %v18542_v31, %v18543_v48 }
 0x491   : > { %15911 = vmatmul.mubr.msk.f32.vlgmr.msra.gmra.mrb[14].mxu1 %vm6444_vm7, %v23121_v56  ;;  %v7836_v42 = vsel %vm7829_vm10, %v18518_v20, %v18527_v29  ;;  %v18551_v54 = vpop.permute.xlu1 %18550 }
 0x492   : > { %16840 = vmatpush1.bf16.msra.mxu1 %v16839_v13  ;;  %7532 = vmatprep.mubr.f32.mxu1 %v22938_v0  ;;  %v16853_v13 = vpack.c.bf16 %v7842_v38, %v7833_v45  ;;  %v18536_v51 = vpop.permute.xlu0 %18535  ;;  %v18553_v47 = vunpack.i.h.bf16 %v18551_v54  ;;  %v18552_v45 = vunpack.i.l.bf16 %v18551_v54 }
 0x493   : > { %16842 = vmatprep.subr.bf16.mxu1 %v16841_v62  ;;  %v7841_v62 = vsel %vm7829_vm10, %v18498_v16, %v18512_v12  ;;  %v7843_v16 = vsel %vm7829_vm10, %v18513_v6, %v18522_v57  ;;  %v18538_v25 = vunpack.i.h.bf16 %v18536_v51  ;;  %v18537_v9 = vunpack.i.l.bf16 %v18536_v51  ;;  %v15931_v12 = vld [vmem:[%s25771_s2 + $0x40] sm:$0xff] }
 0x494   : > { %v16855_v2 = vpack.c.bf16 %v7841_v62, %v7832_v35  ;;  %v16859_v26 = vpack.c.bf16 %v7843_v16, %v7834_v3  ;;  %v26185_v6 = vpack.c.bf16 %v22672_v40, %v22623_v44  ;;  %v15932_v44 = vld [vmem:[%s25771_s2 + $0x48] sm:$0xff]  ;;  %v26188_v40 = vpack.c.bf16 %v22688_v23, %v22655_v17 }
 0x495   : > { %15912 = vmatmul.mubr.msk.f32.gmra.mrb[16].mxu1 %vm6444_vm7, %v23132_v37  ;;  %v7838_v63 = vsel %vm7829_vm10, %v18528_v39, %v18537_v9  ;;  %v18561_v14 = vpop.permute.xlu1 %18560 }
 0x496   : > { %7603 = vmatprep.mubr.f32.mxu1 %v22938_v0  ;;  %v18546_v17 = vpop.permute.xlu0 %18545  ;;  %v18562_v57 = vunpack.i.l.bf16 %v18561_v14 }
 0x497   : > { %v18548_v7 = vunpack.i.h.bf16 %v18546_v17  ;;  %v18547_v23 = vunpack.i.l.bf16 %v18546_v17  ;;  %v19307_v17 = vmov 6  }
 0x498   : > { %18739 = vset.pattern.permute.xlu1 %v19307_v17 }
 0x499   : > { %15913 = vmatmul.mubr.msk.f32.vlgmr.msra.gmra.mrb[18].mxu1 %vm6444_vm7, %v23121_v56  ;;  %v18571_v38 = vpop.permute.xlu1 %18570 }
 0x49a   : > { %16844 = vmatpush1.bf16.msra.mxu1 %v16843_v22  ;;  %7609 = vmatprep.mubr.f32.mxu1 %v22938_v0  ;;  %v18532_v22 = vunpack.i.l.bf16 %v18531_v59  ;;  %v18556_v61 = vpop.permute.xlu0 %18555  ;;  %v18573_v62 = vunpack.i.h.bf16 %v18571_v38  ;;  %v18572_v24 = vunpack.i.l.bf16 %v18571_v38 }
 0x49b   : > { %16846 = vmatprep.subr.bf16.mxu1 %v16845_v52  ;;  %v18558_v4 = vunpack.i.h.bf16 %v18556_v61  ;;  %v18557_v20 = vunpack.i.l.bf16 %v18556_v61 }
 0x49c   : > { %v7846_v50 = vsel %vm7829_vm10, %v18532_v22, %v18533_v60  ;;  %v7845_v18 = vsel %vm7829_vm10, %v18523_v15, %v18532_v22  ;;  %v18563_v15 = vunpack.i.h.bf16 %v18561_v14  ;;  %v8781_v22 = vsel %vm8766_vm11, %v18572_v24, %v18573_v62 }
 0x49d   : > { %15914 = vmatmul.mubr.msk.f32.gmra.mrb[20].mxu1 %vm6444_vm7, %v23132_v37  ;;  %v16863_v53 = vpack.c.bf16 %v7845_v18, %v7836_v42  ;;  %v18581_v3 = vpop.permute.xlu1 %18580  ;;  %v19309_v14 = vmov 7  }
 0x49e   : > { %7680 = vmatprep.mubr.f32.mxu1 %v22938_v0  ;;  %v18566_v58 = vpop.permute.xlu0 %18565  ;;  %v8780_v42 = vsel %vm8766_vm11, %v18563_v15, %v18572_v24 }
 0x49f   : > { %v18568_v35 = vunpack.i.h.bf16 %v18566_v58 }
 0x4a1   : > { %15915 = vmatmul.mubr.msk.f32.vlgmr.msra.gmra.mrb[22].mxu1 %vm6444_vm7, %v23121_v56 }
 0x4a2   : > { %16848 = vmatpush3.bf16.msra.mxu1 %v16845_v52  ;;  %7686 = vmatprep.mubr.f32.mxu1 %v22938_v0  ;;  %v7837_v52 = vsel %vm7829_vm10, %v18527_v29, %v18528_v39  ;;  %v8778_v29 = vsel %vm8766_vm11, %v18548_v7, %v18562_v57 }
 0x4a3   : > { %16850 = vmatprep.subr.bf16.mxu1 %v16849_v19  ;;  %v16861_v1 = vpack.c.bf16 %v7846_v50, %v7837_v52  ;;  %v7847_v19 = vsel %vm7829_vm10, %v18533_v60, %v18538_v25  ;;  %v18583_v50 = vunpack.i.h.bf16 %v18581_v3 }
 0x4a4   : > { %v16865_v43 = vpack.c.bf16 %v7847_v19, %v7838_v63 }
 0x4a5   : > { %15916 = vmatmul.mubr.msk.f32.gmra.mrb[24].mxu1 %vm6444_vm7, %v23132_v37 }
 0x4a6   : > { %16335 = vmatprep.mubr.msk.f32.mxu1 %vm6444_vm7, %v23121_v56  ;;  %v15919_v56 = vld [vmem:[%s25771_s2 + $0x30] sm:$0xff] }
 0x4a9   : > { %16336 = vmatmul.mubr.msk.f32.vlgmr.msra.gmra.mrb[26].mxu1 %vm6444_vm7, %v23132_v37  ;;  %v16857_v37 = vpack.c.bf16 %v7844_v49, %v7835_v46  ;;  %v8769_v49 = vsel %vm8766_vm11, %v18543_v48, %v18557_v20 }
 0x4aa   : > { %16852 = vmatpush1.bf16.msra.mxu1 %v16851_v41  ;;  %7936 = vmatprep.mubr.f32.mxu1 %v22938_v0  ;;  %v8776_v41 = vsel %vm8766_vm11, %v18553_v47, %v18547_v23  ;;  %v16895_v60 = vpack.c.bf16 %v8778_v29, %v8769_v49 }
 0x4ab   : > { %16854 = vmatprep.subr.bf16.mxu1 %v16853_v13  ;;  %v18567_v13 = vunpack.i.l.bf16 %v18566_v58 }
 0x4ad   : > { %15921 = vmatmul.mubr.msk.f32.vlgmr.msra.gmra.mrb[10].mxu1 %vm6444_vm7, %v15919_v56  ;;  %v8772_v39 = vsel %vm8766_vm11, %v18567_v13, %v18568_v35  ;;  %v8771_v25 = vsel %vm8766_vm11, %v18558_v4, %v18567_v13 }
 0x4ae   : > { %16856 = vmatpush1.bf16.msra.mxu1 %v16855_v2  ;;  %7942 = vmatprep.mubr.f32.mxu1 %v22938_v0  ;;  %v8779_v2 = vsel %vm8766_vm11, %v18562_v57, %v18563_v15  ;;  %v16897_v52 = vpack.c.bf16 %v8781_v22, %v8772_v39  ;;  %v16899_v19 = vpack.c.bf16 %v8780_v42, %v8771_v25 }
 0x4af   : > { %16858 = vmatprep.subr.bf16.mxu1 %v16857_v37  ;;  %v23269_v37 = vld [vmem:[%s25771_s2 + $0x50] sm:$0xff] }
 0x4b1   : > { %15922 = vmatmul.mubr.msk.f32.gmra.mrb[12].mxu1 %vm6444_vm7, %v15920_v5 }
 0x4b2   : > { %8013 = vmatprep.mubr.f32.mxu1 %v22938_v0 }
 0x4b5   : > { %15923 = vmatmul.mubr.msk.f32.vlgmr.msra.gmra.mrb[14].mxu1 %vm6444_vm7, %v15919_v56 }
 0x4b6   : > { %16860 = vmatpush1.bf16.msra.mxu1 %v16859_v26  ;;  %8019 = vmatprep.mubr.f32.mxu1 %v22938_v0  ;;  %v23280_v26 = vld [vmem:[%s25771_s2 + $0x58] sm:$0xff] }
 0x4b7   : > { %16862 = vmatprep.subr.bf16.mxu1 %v16861_v1  ;;  %v18582_v1 = vunpack.i.l.bf16 %v18581_v3 }
 0x4b9   : > { %15924 = vmatmul.mubr.msk.f32.gmra.mrb[16].mxu1 %vm6444_vm7, %v15920_v5  ;;  %v8783_v18 = vsel %vm8766_vm11, %v18582_v1, %v18583_v50 }
 0x4ba   : > { %8090 = vmatprep.mubr.f32.mxu1 %v22938_v0 }
 0x4bd   : > { %15925 = vmatmul.mubr.msk.f32.vlgmr.msra.gmra.mrb[18].mxu1 %vm6444_vm7, %v15919_v56 }
 0x4be   : > { %16864 = vmatpush1.bf16.msra.mxu1 %v16863_v53  ;;  %8096 = vmatprep.mubr.f32.mxu1 %v22938_v0 }
 0x4bf   : > { %16866 = vmatprep.subr.bf16.mxu1 %v16865_v43 }
 0x4c1   : > { %15926 = vmatmul.mubr.msk.f32.gmra.mrb[20].mxu1 %vm6444_vm7, %v15920_v5 }
 0x4c2   : > { %8167 = vmatprep.mubr.f32.mxu1 %v22938_v0 }
 0x4c5   : > { %15927 = vmatmul.mubr.msk.f32.vlgmr.msra.gmra.mrb[22].mxu1 %vm6444_vm7, %v15919_v56 }
 0x4c6   : > { %16868 = vmatpush3.bf16.msra.mxu1 %v16865_v43  ;;  %8173 = vmatprep.mubr.f32.mxu1 %v22938_v0 }
 0x4c7   : > { %16870 = vmatprep.subr.bf16.mxu1 %v26184_v10 }
 0x4c9   : > { %15928 = vmatmul.mubr.msk.f32.gmra.mrb[24].mxu1 %vm6444_vm7, %v15920_v5 }
 0x4ca   : > { %16342 = vmatprep.mubr.msk.f32.mxu1 %vm6444_vm7, %v15919_v56  ;;  %v8770_v56 = vsel %vm8766_vm11, %v18557_v20, %v18558_v4 }
 0x4cb   : > { %v16893_v59 = vpack.c.bf16 %v8779_v2, %v8770_v56 }
 0x4cd   : > { %16343 = vmatmul.mubr.msk.f32.vlgmr.msra.gmra.mrb[26].mxu1 %vm6444_vm7, %v15920_v5  ;;  %v18576_v5 = vpop.permute.xlu0 %18575 }
 0x4ce   : > { %16872 = vmatpush1.bf16.msra.mxu1 %v26185_v6  ;;  %8346 = vmatprep.mubr.f32.mxu1 %v22938_v0  ;;  %v18578_v16 = vunpack.i.h.bf16 %v18576_v5  ;;  %v18577_v51 = vunpack.i.l.bf16 %v18576_v5  ;;  %v23292_v6 = vpop.permute.xlu1 %18590 }
 0x4cf   : > { %16874 = vmatprep.subr.bf16.mxu1 %v26186_v28  ;;  %v10671_v28 = vld [vmem:[%s25774_s5] sm:$0xff]  ;;  %v18593_v61 = vunpack.i.h.bf16 %v23292_v6 }
 0x4d0   : > { %v8774_v9 = vsel %vm8766_vm11, %v18577_v51, %v18578_v16  ;;  %10687 = vperm.xlu1 %18739, %v10671_v28  }
 0x4d1   : > { %15933 = vmatmul.mubr.msk.f32.vlgmr.msra.gmra.mrb[10].mxu1 %vm6444_vm7, %v15931_v12  ;;  %v18586_v63 = vpop.permute.xlu0 %18585  ;;  %v16901_v53 = vpack.c.bf16 %v8783_v18, %v8774_v9  ;;  %v23349_v9 = vld [vmem:[%s25771_s2 + $0x68] sm:$0xff] }
 0x4d2   : > { %16876 = vmatpush1.bf16.msra.mxu1 %v26187_v30  ;;  %8352 = vmatprep.mubr.f32.mxu1 %v22938_v0  ;;  %v18588_v43 = vunpack.i.h.bf16 %v18586_v63  ;;  %v18587_v10 = vunpack.i.l.bf16 %v18586_v63 }
 0x4d3   : > { %16878 = vmatprep.subr.bf16.mxu1 %v26188_v40  ;;  %v19306_v40 = vmov 5  }
 0x4d4   : > { %v8775_v30 = vsel %vm8766_vm11, %v18578_v16, %v18587_v10  ;;  %18740 = vset.pattern.permute.xlu0 %v19306_v40  ;;  %18741 = vset.pattern.permute.xlu1 %v19309_v14 }
 0x4d5   : > { %15934 = vmatmul.mubr.msk.f32.gmra.mrb[12].mxu1 %vm6444_vm7, %v15932_v44  ;;  %v23304_v11 = vpop.permute.xlu0 %18595  ;;  %10674 = vperm.xlu0 %18740, %v10671_v28  }
 0x4d6   : > { %8423 = vmatprep.mubr.f32.mxu1 %v22938_v0  ;;  %v18597_v48 = vunpack.i.l.bf16 %v23304_v11  ;;  %11195 = vperm.xlu1 %18741, %v10671_v28  }
 0x4d9   : > { %15935 = vmatmul.mubr.msk.f32.vlgmr.msra.gmra.mrb[14].mxu1 %vm6444_vm7, %v15931_v12 }
 0x4da   : > { %16880 = vmatpush1.bf16.msra.mxu1 %v26189_v8  ;;  %8429 = vmatprep.mubr.f32.mxu1 %v22938_v0  ;;  %v8782_v8 = vsel %vm8766_vm11, %v18573_v62, %v18582_v1 }
 0x4db   : > { %16882 = vmatprep.subr.bf16.mxu1 %v16881_v36  ;;  %v8777_v36 = vsel %vm8766_vm11, %v18547_v23, %v18548_v7  ;;  %v18601_v7 = vpop.permute.xlu1 %18600 }
 0x4dc   : > { %v16889_v55 = vpack.c.bf16 %v8777_v36, %v8768_v21  ;;  %v18592_v36 = vunpack.i.l.bf16 %v23292_v6  ;;  %v18606_v21 = vpop.permute.xlu0 %18605  ;;  %v18603_v57 = vunpack.i.h.bf16 %v18601_v7 }
 0x4dd   : > { %15936 = vmatmul.mubr.msk.f32.gmra.mrb[16].mxu1 %vm6444_vm7, %v15932_v44  ;;  %v18608_v58 = vunpack.i.h.bf16 %v18606_v21  ;;  %v18607_v15 = vunpack.i.l.bf16 %v18606_v21 }
 0x4de   : > { %8500 = vmatprep.mubr.f32.mxu1 %v22938_v0  ;;  %v9255_v20 = vsel %vm9253_vm12, %v18592_v36, %v18593_v61  ;;  %v9263_v56 = vsel %vm9253_vm12, %v18603_v57, %v18597_v48 }
 0x4df   : > { %v18611_v4 = vpop.permute.xlu1 %18610  ;;  %v9256_v29 = vsel %vm9253_vm12, %v18593_v61, %v18607_v15 }
 0x4e0   : > { %v18616_v38 = vpop.permute.xlu0 %18615  ;;  %v18612_v13 = vunpack.i.l.bf16 %v18611_v4 }
 0x4e1   : > { %15937 = vmatmul.mubr.msk.f32.vlgmr.msra.gmra.mrb[18].mxu1 %vm6444_vm7, %v15931_v12  ;;  %v18617_v62 = vunpack.i.l.bf16 %v18616_v38 }
 0x4e2   : > { %16884 = vmatpush1.bf16.msra.mxu1 %v26190_v34  ;;  %8506 = vmatprep.mubr.f32.mxu1 %v22938_v0  ;;  %v18598_v34 = vunpack.i.h.bf16 %v23304_v11 }
 0x4e3   : > { %16886 = vmatprep.subr.bf16.mxu1 %v22872_v32 }
 0x4e4   : > { %v9265_v3 = vsel %vm9253_vm12, %v18598_v34, %v18612_v13 }
 0x4e5   : > { %15938 = vmatmul.mubr.msk.f32.gmra.mrb[20].mxu1 %vm6444_vm7, %v15932_v44  ;;  %v16915_v16 = vpack.c.bf16 %v9265_v3, %v9256_v29  ;;  %v23394_v29 = vld [vmem:[%s25771_s2 + $0x70] sm:$0xff] }
 0x4e6   : > { %8577 = vmatprep.mubr.f32.mxu1 %v22938_v0 }
 0x4e9   : > { %15939 = vmatmul.mubr.msk.f32.vlgmr.msra.gmra.mrb[22].mxu1 %vm6444_vm7, %v15931_v12 }
 0x4ea   : > { %16888 = vmatpush3.bf16.msra.mxu1 %v22872_v32  ;;  %8583 = vmatprep.mubr.f32.mxu1 %v22938_v0  ;;  %v8767_v32 = vsel %vm8766_vm11, %v18552_v45, %v18542_v31  ;;  %v19308_v31 = vmov 9   ;;  %v19310_v45 = vmov 8  }
 0x4eb   : > { %16890 = vmatprep.subr.bf16.mxu1 %v16889_v55  ;;  %v16891_v46 = vpack.c.bf16 %v8776_v41, %v8767_v32  ;;  %18743 = vset.pattern.permute.xlu0 %v19308_v31  ;;  %v9264_v55 = vsel %vm9253_vm12, %v18597_v48, %v18598_v34  ;;  %v18602_v41 = vunpack.i.l.bf16 %v18601_v7  ;;  %v18621_v32 = vpop.permute.xlu1 %18620 }
 0x4ec   : > { %11221 = vperm.xlu0 %18743, %v10671_v28   ;;  %v16909_v47 = vpack.c.bf16 %v9264_v55, %v9255_v20  ;;  %18742 = vset.pattern.permute.xlu1 %v19310_v45  ;;  %v18623_v49 = vunpack.i.h.bf16 %v18621_v32 }
 0x4ed   : > { %15940 = vmatmul.mubr.msk.f32.gmra.mrb[24].mxu1 %vm6444_vm7, %v15932_v44  ;;  %11208 = vperm.xlu1 %18742, %v10671_v28   ;;  %v9254_v24 = vsel %vm9253_vm12, %v18602_v41, %v18592_v36 }
 0x4ee   : > { %16349 = vmatprep.mubr.msk.f32.mxu1 %vm6444_vm7, %v15931_v12  ;;  %v8773_v12 = vsel %vm8766_vm11, %v18568_v35, %v18577_v51  ;;  %v18613_v35 = vunpack.i.h.bf16 %v18611_v4  ;;  %v16911_v2 = vpack.c.bf16 %v9263_v56, %v9254_v24 }
 0x4ef   : > { %v16903_v54 = vpack.c.bf16 %v8782_v8, %v8773_v12 }
 0x4f0   : > { %v9266_v39 = vsel %vm9253_vm12, %v18612_v13, %v18613_v35 }
 0x4f1   : > { %16350 = vmatmul.mubr.msk.f32.vlgmr.msra.gmra.mrb[26].mxu1 %vm6444_vm7, %v15932_v44  ;;  %v8784_v44 = vsel %vm8766_vm11, %v18583_v50, %v18588_v43 }
 0x4f2   : > { %16892 = vmatpush1.bf16.msra.mxu1 %v16891_v46  ;;  %8873 = vmatprep.mubr.f32.mxu1 %v22938_v0  ;;  %v16905_v23 = vpack.c.bf16 %v8784_v44, %v8775_v30  ;;  %v18618_v46 = vunpack.i.h.bf16 %v18616_v38 }
 0x4f3   : > { %16894 = vmatprep.subr.bf16.mxu1 %v16893_v59  ;;  %v18622_v59 = vunpack.i.l.bf16 %v18621_v32 }
 0x4f4   : > { %v9259_v22 = vsel %vm9253_vm12, %v18617_v62, %v18618_v46 }
 0x4f5   : > { %15945 = vmatmul.mubr.msk.f32.vlgmr.msra.gmra.mrb[10].mxu1 %vm6444_vm7, %v23269_v37  ;;  %v9268_v51 = vsel %vm9253_vm12, %v18622_v59, %v18623_v49 }
 0x4f6   : > { %16896 = vmatpush1.bf16.msra.mxu1 %v16895_v60  ;;  %8879 = vmatprep.mubr.f32.mxu1 %v22938_v0  ;;  %v23332_v60 = vld [vmem:[#allocation2] sm:$0xff]  ;;  %v16917_v50 = vpack.c.bf16 %v9268_v51, %v9259_v22 }
 0x4f7   : > { %16898 = vmatprep.subr.bf16.mxu1 %v16897_v52  ;;  %v18626_v52 = vpop.permute.xlu0 %18625 }
 0x4f8   : > { %v18628_v1 = vunpack.i.h.bf16 %v18626_v52  ;;  %v18627_v25 = vunpack.i.l.bf16 %v18626_v52 }
 0x4f9   : > { %15946 = vmatmul.mubr.msk.f32.gmra.mrb[12].mxu1 %vm6444_vm7, %v23280_v26 }
 0x4fa   : > { %8950 = vmatprep.mubr.f32.mxu1 %v22938_v0  ;;  %v9261_v18 = vsel %vm9253_vm12, %v18627_v25, %v18628_v1  ;;  %v9260_v40 = vsel %vm9253_vm12, %v18618_v46, %v18627_v25 }
 0x4fb   : > { %v18636_v43 = vpop.permute.xlu0 %18635 }
 0x4fc   : > { %v18638_v28 = vunpack.i.h.bf16 %v18636_v43  ;;  %v18637_v30 = vunpack.i.l.bf16 %v18636_v43 }
 0x4fd   : > { %15947 = vmatmul.mubr.msk.f32.vlgmr.msra.gmra.mrb[14].mxu1 %vm6444_vm7, %v23269_v37 }
 0x4fe   : > { %16900 = vmatpush1.bf16.msra.mxu1 %v16899_v19  ;;  %8956 = vmatprep.mubr.f32.mxu1 %v22938_v0  ;;  %v9258_v19 = vsel %vm9253_vm12, %v18608_v58, %v18617_v62  ;;  %v9262_v8 = vsel %vm9253_vm12, %v18628_v1, %v18637_v30  ;;  %v23405_v1 = vld [vmem:[%s25771_s2 + $0x78] sm:$0xff] }
 0x4ff   : > { %16902 = vmatprep.subr.bf16.mxu1 %v16901_v53  ;;  %v9267_v53 = vsel %vm9253_vm12, %v18613_v35, %v18622_v59 }
 0x500   : > { %v16919_v10 = vpack.c.bf16 %v9267_v53, %v9258_v19 }
 0x501   : > { %15948 = vmatmul.mubr.msk.f32.gmra.mrb[16].mxu1 %vm6444_vm7, %v23280_v26 }
 0x502   : > { %9027 = vmatprep.mubr.f32.mxu1 %v22938_v0 }
 0x505   : > { %15949 = vmatmul.mubr.msk.f32.vlgmr.msra.gmra.mrb[18].mxu1 %vm6444_vm7, %v23269_v37 }
 0x506   : > { %16904 = vmatpush1.bf16.msra.mxu1 %v16903_v54  ;;  %9033 = vmatprep.mubr.f32.mxu1 %v22938_v0  ;;  %v18646_v54 = vpop.permute.xlu0 %18645 }
 0x507   : > { %16906 = vmatprep.subr.bf16.mxu1 %v16905_v23  ;;  %v18648_v48 = vunpack.i.h.bf16 %v18646_v54  ;;  %v18647_v31 = vunpack.i.l.bf16 %v18646_v54 }
 0x509   : > { %15950 = vmatmul.mubr.msk.f32.gmra.mrb[20].mxu1 %vm6444_vm7, %v23280_v26  ;;  %v9751_v21 = vsel %vm9740_vm13, %v18647_v31, %v18648_v48 }
 0x50a   : > { %9104 = vmatprep.mubr.f32.mxu1 %v22938_v0  ;;  %v18656_v14 = vpop.permute.xlu0 %18655 }
 0x50b   : > { %v18657_v45 = vunpack.i.l.bf16 %v18656_v14 }
 0x50d   : > { %15951 = vmatmul.mubr.msk.f32.vlgmr.msra.gmra.mrb[22].mxu1 %vm6444_vm7, %v23269_v37 }
 0x50e   : > { %16908 = vmatpush3.bf16.msra.mxu1 %v16905_v23  ;;  %9110 = vmatprep.mubr.f32.mxu1 %v22938_v0  ;;  %v9257_v0 = vsel %vm9253_vm12, %v18607_v15, %v18608_v58  ;;  %v18666_v57 = vpop.permute.xlu0 %18665 }
 0x50f   : > { %16910 = vmatprep.subr.bf16.mxu1 %v16909_v47  ;;  %v16913_v5 = vpack.c.bf16 %v9266_v39, %v9257_v0  ;;  %v18658_v47 = vunpack.i.h.bf16 %v18656_v14  ;;  %v18668_v56 = vunpack.i.h.bf16 %v18666_v57  ;;  %v18667_v32 = vunpack.i.l.bf16 %v18666_v57 }
 0x511   : > { %15952 = vmatmul.mubr.msk.f32.gmra.mrb[24].mxu1 %vm6444_vm7, %v23280_v26  ;;  %v9744_v46 = vsel %vm9740_vm13, %v18657_v45, %v18658_v47 }
 0x512   : > { %16356 = vmatprep.mubr.msk.f32.mxu1 %vm6444_vm7, %v23269_v37  ;;  %v23338_v37 = vld [vmem:[%s25771_s2 + $0x60] sm:$0xff]  ;;  %v18676_v22 = vpop.permute.xlu0 %18675 }
 0x515   : > { %16357 = vmatmul.mubr.msk.f32.vlgmr.msra.gmra.mrb[26].mxu1 %vm6444_vm7, %v23280_v26  ;;  %v18631_v26 = vpop.permute.xlu1 %18630 }
 0x516   : > { %16912 = vmatpush1.bf16.msra.mxu1 %v16911_v2  ;;  %9360 = vmatprep.mubr.f32.mxu1 %v23332_v60  ;;  %v18633_v42 = vunpack.i.h.bf16 %v18631_v26  ;;  %v18632_v63 = vunpack.i.l.bf16 %v18631_v26  ;;  %v18678_v26 = vunpack.i.h.bf16 %v18676_v22 }
 0x517   : > { %16914 = vmatprep.subr.bf16.mxu1 %v16913_v5  ;;  %v9746_v5 = vsel %vm9740_vm13, %v18667_v32, %v18668_v56 }
 0x518   : > { %v9270_v6 = vsel %vm9253_vm12, %v18632_v63, %v18633_v42  ;;  %v9271_v11 = vsel %vm9253_vm12, %v18633_v42, %v18638_v28  ;;  %v9269_v17 = vsel %vm9253_vm12, %v18623_v49, %v18632_v63  ;;  %v9745_v42 = vsel %vm9740_vm13, %v18658_v47, %v18667_v32 }
 0x519   : > { %15957 = vmatmul.mubr.msk.f32.vlgmr.msra.gmra.mrb[10].mxu1 %vm6444_vm7, %v23338_v37  ;;  %v16921_v12 = vpack.c.bf16 %v9270_v6, %v9261_v18  ;;  %v18641_v44 = vpop.permute.xlu1 %18640  ;;  %v16923_v7 = vpack.c.bf16 %v9269_v17, %v9260_v40  ;;  %v16925_v34 = vpack.c.bf16 %v9271_v11, %v9262_v8  ;;  %v18686_v18 = vpop.permute.xlu0 %18685 }
 0x51a   : > { %16916 = vmatpush1.bf16.msra.mxu1 %v16915_v16  ;;  %9366 = vmatprep.mubr.f32.mxu1 %v23332_v60  ;;  %v18643_v61 = vunpack.i.h.bf16 %v18641_v44  ;;  %v18642_v36 = vunpack.i.l.bf16 %v18641_v44  ;;  %v18688_v6 = vunpack.i.h.bf16 %v18686_v18 }
 0x51b   : > { %16918 = vmatprep.subr.bf16.mxu1 %v16917_v50  ;;  %v18677_v50 = vunpack.i.l.bf16 %v18676_v22 }
 0x51c   : > { %v9742_v4 = vsel %vm9740_vm13, %v18642_v36, %v18643_v61  ;;  %v9743_v59 = vsel %vm9740_vm13, %v18643_v61, %v18657_v45 }
 0x51d   : > { %15958 = vmatmul.mubr.msk.f32.gmra.mrb[12].mxu1 %vm6444_vm7, %v23349_v9  ;;  %v18651_v23 = vpop.permute.xlu1 %18650  ;;  %v16929_v20 = vpack.c.bf16 %v9751_v21, %v9742_v4  ;;  %v9748_v63 = vsel %vm9740_vm13, %v18677_v50, %v18678_v26  ;;  %v9747_v30 = vsel %vm9740_vm13, %v18668_v56, %v18677_v50  ;;  %v18696_v11 = vpop.permute.xlu0 %18695 }
 0x51e   : > { %9437 = vmatprep.mubr.f32.mxu1 %v23332_v60  ;;  %v18653_v58 = vunpack.i.h.bf16 %v18651_v23  ;;  %v18652_v15 = vunpack.i.l.bf16 %v18651_v23  ;;  %v18698_v23 = vunpack.i.h.bf16 %v18696_v11 }
 0x520   : > { %v9750_v35 = vsel %vm9740_vm13, %v18653_v58, %v18647_v31  ;;  %v9741_v62 = vsel %vm9740_vm13, %v18652_v15, %v18642_v36 }
 0x521   : > { %15959 = vmatmul.mubr.msk.f32.vlgmr.msra.gmra.mrb[14].mxu1 %vm6444_vm7, %v23338_v37  ;;  %v18661_v55 = vpop.permute.xlu1 %18660  ;;  %v16931_v0 = vpack.c.bf16 %v9750_v35, %v9741_v62  ;;  %v18706_v61 = vpop.permute.xlu0 %18705 }
 0x522   : > { %16920 = vmatpush1.bf16.msra.mxu1 %v16919_v10  ;;  %9443 = vmatprep.mubr.f32.mxu1 %v23332_v60  ;;  %v18663_v41 = vunpack.i.h.bf16 %v18661_v55  ;;  %v18662_v38 = vunpack.i.l.bf16 %v18661_v55  ;;  %v18708_v4 = vunpack.i.h.bf16 %v18706_v61 }
 0x523   : > { %16922 = vmatprep.subr.bf16.mxu1 %v16921_v12  ;;  %v18687_v12 = vunpack.i.l.bf16 %v18686_v18 }
 0x524   : > { %v9753_v49 = vsel %vm9740_vm13, %v18662_v38, %v18663_v41 }
 0x525   : > { %15960 = vmatmul.mubr.msk.f32.gmra.mrb[16].mxu1 %vm6444_vm7, %v23349_v9  ;;  %v18671_v13 = vpop.permute.xlu1 %18670  ;;  %v16933_v39 = vpack.c.bf16 %v9753_v49, %v9744_v46  ;;  %v9749_v44 = vsel %vm9740_vm13, %v18678_v26, %v18687_v12  ;;  %v18716_v58 = vpop.permute.xlu0 %18715  ;;  %v15980_v26 = vld [vmem:[%s25771_s2 + $0x88] sm:$0xff] }
 0x526   : > { %9514 = vmatprep.mubr.f32.mxu1 %v23332_v60  ;;  %v18673_v24 = vunpack.i.h.bf16 %v18671_v13  ;;  %v18672_v2 = vunpack.i.l.bf16 %v18671_v13  ;;  %v18718_v35 = vunpack.i.h.bf16 %v18716_v58  ;;  %v18717_v13 = vunpack.i.l.bf16 %v18716_v58 }
 0x528   : > { %v9755_v52 = vsel %vm9740_vm13, %v18672_v2, %v18673_v24  ;;  %v9754_v19 = vsel %vm9740_vm13, %v18663_v41, %v18672_v2 }
 0x529   : > { %15961 = vmatmul.mubr.msk.f32.vlgmr.msra.gmra.mrb[18].mxu1 %vm6444_vm7, %v23338_v37  ;;  %v18681_v16 = vpop.permute.xlu1 %18680  ;;  %v16937_v51 = vpack.c.bf16 %v9755_v52, %v9746_v5  ;;  %v16939_v53 = vpack.c.bf16 %v9754_v19, %v9745_v42  ;;  %v18726_v5 = vpop.permute.xlu0 %18725 }
 0x52a   : > { %16924 = vmatpush1.bf16.msra.mxu1 %v16923_v7  ;;  %9520 = vmatprep.mubr.f32.mxu1 %v23332_v60  ;;  %v18683_v25 = vunpack.i.h.bf16 %v18681_v16 }
 0x52b   : > { %16926 = vmatprep.subr.bf16.mxu1 %v16925_v34 }
 0x52c   : > { %v9758_v40 = vsel %vm9740_vm13, %v18683_v25, %v18688_v6 }
 0x52d   : > { %15962 = vmatmul.mubr.msk.f32.gmra.mrb[20].mxu1 %vm6444_vm7, %v23349_v9  ;;  %v18691_v28 = vpop.permute.xlu1 %18690  ;;  %v16945_v7 = vpack.c.bf16 %v9758_v40, %v9749_v44 }
 0x52e   : > { %9591 = vmatprep.mubr.f32.mxu1 %v23332_v60  ;;  %v18692_v31 = vunpack.i.l.bf16 %v18691_v28 }
 0x531   : > { %15963 = vmatmul.mubr.msk.f32.vlgmr.msra.gmra.mrb[22].mxu1 %vm6444_vm7, %v23338_v37  ;;  %v18701_v54 = vpop.permute.xlu1 %18700 }
 0x532   : > { %16928 = vmatpush3.bf16.msra.mxu1 %v16925_v34  ;;  %9597 = vmatprep.mubr.f32.mxu1 %v23332_v60  ;;  %v18697_v34 = vunpack.i.l.bf16 %v18696_v11  ;;  %v18703_v47 = vunpack.i.h.bf16 %v18701_v54  ;;  %v18702_v45 = vunpack.i.l.bf16 %v18701_v54 }
 0x533   : > { %16930 = vmatprep.subr.bf16.mxu1 %v16929_v20  ;;  %v18707_v20 = vunpack.i.l.bf16 %v18706_v61 }
 0x534   : > { %v10238_v36 = vsel %vm10227_vm14, %v18697_v34, %v18698_v23  ;;  %v10237_v41 = vsel %vm10227_vm14, %v18703_v47, %v18697_v34  ;;  %v10228_v32 = vsel %vm10227_vm14, %v18702_v45, %v18692_v31 }
 0x535   : > { %15964 = vmatmul.mubr.msk.f32.gmra.mrb[24].mxu1 %vm6444_vm7, %v23349_v9  ;;  %v18711_v14 = vpop.permute.xlu1 %18710  ;;  %v10231_v56 = vsel %vm10227_vm14, %v18707_v20, %v18708_v4  ;;  %v16951_v46 = vpack.c.bf16 %v10237_v41, %v10228_v32 }
 0x536   : > { %16363 = vmatprep.mubr.msk.f32.mxu1 %vm6444_vm7, %v23338_v37  ;;  %v9752_v37 = vsel %vm9740_vm13, %v18648_v48, %v18662_v38  ;;  %v18693_v48 = vunpack.i.h.bf16 %v18691_v28  ;;  %v18713_v15 = vunpack.i.h.bf16 %v18711_v14  ;;  %v18712_v57 = vunpack.i.l.bf16 %v18711_v14 }
 0x537   : > { %v16935_v3 = vpack.c.bf16 %v9752_v37, %v9743_v59  ;;  %v15979_v59 = vld [vmem:[%s25771_s2 + $0x80] sm:$0xff] }
 0x538   : > { %v10229_v21 = vsel %vm10227_vm14, %v18692_v31, %v18693_v48  ;;  %v10230_v2 = vsel %vm10227_vm14, %v18693_v48, %v18707_v20 }
 0x539   : > { %16364 = vmatmul.mubr.msk.f32.vlgmr.msra.gmra.mrb[26].mxu1 %vm6444_vm7, %v23349_v9  ;;  %v18682_v9 = vunpack.i.l.bf16 %v18681_v16  ;;  %v16949_v55 = vpack.c.bf16 %v10238_v36, %v10229_v21  ;;  %v18721_v38 = vpop.permute.xlu1 %18720  ;;  %v18728_v16 = vunpack.i.h.bf16 %v18726_v5 }
 0x53a   : > { %16932 = vmatpush1.bf16.msra.mxu1 %v16931_v0  ;;  %9847 = vmatprep.mubr.f32.mxu1 %v23332_v60  ;;  %v18723_v62 = vunpack.i.h.bf16 %v18721_v38  ;;  %v18722_v0 = vunpack.i.l.bf16 %v18721_v38 }
 0x53b   : > { %16934 = vmatprep.subr.bf16.mxu1 %v16933_v39  ;;  %v9757_v43 = vsel %vm9740_vm13, %v18682_v9, %v18683_v25  ;;  %v9756_v8 = vsel %vm9740_vm13, %v18673_v24, %v18682_v9  ;;  %v10240_v24 = vsel %vm10227_vm14, %v18712_v57, %v18713_v15  ;;  %v10233_v39 = vsel %vm10227_vm14, %v18717_v13, %v18718_v35 }
 0x53c   : > { %v16941_v10 = vpack.c.bf16 %v9757_v43, %v9748_v63  ;;  %v16943_v17 = vpack.c.bf16 %v9756_v8, %v9747_v30  ;;  %v16953_v49 = vpack.c.bf16 %v10240_v24, %v10231_v56  ;;  %v10242_v22 = vsel %vm10227_vm14, %v18722_v0, %v18723_v62  ;;  %v18736_v63 = vpop.permute.xlu0 %18735 }
 0x53d   : > { %15969 = vmatmul.mubr.msk.f32.vlgmr.msra.gmra.mrb[10].mxu1 %vm6444_vm7, %v23394_v29  ;;  %v16957_v52 = vpack.c.bf16 %v10242_v22, %v10233_v39  ;;  %v10232_v25 = vsel %vm10227_vm14, %v18708_v4, %v18717_v13  ;;  %v10241_v42 = vsel %vm10227_vm14, %v18713_v15, %v18722_v0  ;;  %v18738_v43 = vunpack.i.h.bf16 %v18736_v63 }
 0x53e   : > { %16936 = vmatpush1.bf16.msra.mxu1 %v16935_v3  ;;  %9853 = vmatprep.mubr.f32.mxu1 %v23332_v60  ;;  %v18731_v3 = vpop.permute.xlu1 %18730  ;;  %v16959_v19 = vpack.c.bf16 %v10241_v42, %v10232_v25 }
 0x53f   : > { %16938 = vmatprep.subr.bf16.mxu1 %v16937_v51  ;;  %v18727_v51 = vunpack.i.l.bf16 %v18726_v5  ;;  %v18733_v50 = vunpack.i.h.bf16 %v18731_v3 }
 0x541   : > { %15970 = vmatmul.mubr.msk.f32.gmra.mrb[12].mxu1 %vm6444_vm7, %v23405_v1  ;;  %v10235_v9 = vsel %vm10227_vm14, %v18727_v51, %v18728_v16  ;;  %v10234_v6 = vsel %vm10227_vm14, %v18718_v35, %v18727_v51  ;;  %v10245_v28 = vsel %vm10227_vm14, %v18733_v50, %v18738_v43 }
 0x542   : > { %9924 = vmatprep.mubr.f32.mxu1 %v23332_v60 }
 0x545   : > { %15971 = vmatmul.mubr.msk.f32.vlgmr.msra.gmra.mrb[14].mxu1 %vm6444_vm7, %v23394_v29 }
 0x546   : > { %16940 = vmatpush1.bf16.msra.mxu1 %v16939_v53  ;;  %9930 = vmatprep.mubr.f32.mxu1 %v23332_v60 }
 0x547   : > { %16942 = vmatprep.subr.bf16.mxu1 %v16941_v10  ;;  %v18737_v10 = vunpack.i.l.bf16 %v18736_v63 }
 0x549   : > { %15972 = vmatmul.mubr.msk.f32.gmra.mrb[16].mxu1 %vm6444_vm7, %v23405_v1  ;;  %v10236_v12 = vsel %vm10227_vm14, %v18728_v16, %v18737_v10 }
 0x54a   : > { %10001 = vmatprep.mubr.f32.mxu1 %v23332_v60  ;;  %v16965_v40 = vpack.c.bf16 %v10245_v28, %v10236_v12 }
 0x54d   : > { %15973 = vmatmul.mubr.msk.f32.vlgmr.msra.gmra.mrb[18].mxu1 %vm6444_vm7, %v23394_v29 }
 0x54e   : > { %16944 = vmatpush1.bf16.msra.mxu1 %v16943_v17  ;;  %10007 = vmatprep.mubr.f32.mxu1 %v23332_v60 }
 0x54f   : > { %16946 = vmatprep.subr.bf16.mxu1 %v16945_v7 }
 0x551   : > { %15974 = vmatmul.mubr.msk.f32.gmra.mrb[20].mxu1 %vm6444_vm7, %v23405_v1 }
 0x552   : > { %10078 = vmatprep.mubr.f32.mxu1 %v23332_v60 }
 0x554   : > { %v23481_v8 = vpop.permute.xlu0 %10674 }
 0x555   : > { %15975 = vmatmul.mubr.msk.f32.vlgmr.msra.gmra.mrb[22].mxu1 %vm6444_vm7, %v23394_v29 }
 0x556   : > { %16948 = vmatpush3.bf16.msra.mxu1 %v16945_v7  ;;  %10084 = vmatprep.mubr.f32.mxu1 %v23332_v60 }
 0x557   : > { %16950 = vmatprep.subr.bf16.mxu1 %v16949_v55 }
 0x559   : > { %15976 = vmatmul.mubr.msk.f32.gmra.mrb[24].mxu1 %vm6444_vm7, %v23405_v1 }
 0x55a   : > { %16370 = vmatprep.mubr.msk.f32.mxu1 %vm6444_vm7, %v23394_v29  ;;  %v10239_v29 = vsel %vm10227_vm14, %v18698_v23, %v18712_v57  ;;  %v23489_v23 = vpop.permute.xlu1 %10687 }
 0x55b   : > { %v16955_v37 = vpack.c.bf16 %v10239_v29, %v10230_v2 }
 0x55d   : > { %16371 = vmatmul.mubr.msk.f32.vlgmr.msra.gmra.mrb[26].mxu1 %vm6444_vm7, %v23405_v1  ;;  %v18732_v1 = vunpack.i.l.bf16 %v18731_v3 }
 0x55e   : > { %16952 = vmatpush1.bf16.msra.mxu1 %v16951_v46  ;;  %10334 = vmatprep.mubr.f32.mxu1 %v23332_v60 }
 0x55f   : > { %16954 = vmatprep.subr.bf16.mxu1 %v16953_v49  ;;  %v10244_v18 = vsel %vm10227_vm14, %v18732_v1, %v18733_v50  ;;  %v10243_v30 = vsel %vm10227_vm14, %v18723_v62, %v18732_v1 }
 0x560   : > { %v16961_v53 = vpack.c.bf16 %v10244_v18, %v10235_v9  ;;  %v16963_v44 = vpack.c.bf16 %v10243_v30, %v10234_v6 }
 0x561   : > { %15981 = vmatmul.mubr.msk.f32.vlgmr.msra.gmra.mrb[10].mxu1 %vm6444_vm7, %v15979_v59 }
 0x562   : > { %16956 = vmatpush1.bf16.msra.mxu1 %v16955_v37  ;;  %10340 = vmatprep.mubr.f32.mxu1 %v23332_v60 }
 0x563   : > { %16958 = vmatprep.subr.bf16.mxu1 %v16957_v52 }
 0x565   : > { %15982 = vmatmul.mubr.msk.f32.gmra.mrb[12].mxu1 %vm6444_vm7, %v15980_v26 }
 0x566   : > { %10411 = vmatprep.mubr.f32.mxu1 %v23332_v60 }
 0x569   : > { %15983 = vmatmul.mubr.msk.f32.vlgmr.msra.gmra.mrb[14].mxu1 %vm6444_vm7, %v15979_v59 }
 0x56a   : > { %16960 = vmatpush1.bf16.msra.mxu1 %v16959_v19  ;;  %10417 = vmatprep.mubr.f32.mxu1 %v23332_v60 }
 0x56b   : > { %16962 = vmatprep.subr.bf16.mxu1 %v16961_v53 }
 0x56d   : > { %15984 = vmatmul.mubr.msk.f32.gmra.mrb[16].mxu1 %vm6444_vm7, %v15980_v26 }
 0x56e   : > { %10488 = vmatprep.mubr.f32.mxu1 %v23332_v60 }
 0x571   : > { %15985 = vmatmul.mubr.msk.f32.vlgmr.msra.gmra.mrb[18].mxu1 %vm6444_vm7, %v15979_v59 }
 0x572   : > { %16964 = vmatpush1.bf16.msra.mxu1 %v16963_v44  ;;  %10494 = vmatprep.mubr.f32.mxu1 %v23332_v60 }
 0x573   : > { %16966 = vmatprep.subr.bf16.mxu1 %v16965_v40 }
 0x575   : > { %15986 = vmatmul.mubr.msk.f32.gmra.mrb[20].mxu1 %vm6444_vm7, %v15980_v26 }
 0x576   : > { %10565 = vmatprep.mubr.f32.mxu1 %v23332_v60 }
 0x579   : > { %15987 = vmatmul.mubr.msk.f32.vlgmr.msra.gmra.mrb[22].mxu1 %vm6444_vm7, %v15979_v59 }
 0x57a   : > { %16968 = vmatpush3.bf16.msra.mxu1 %v16965_v40  ;;  %10571 = vmatprep.mubr.f32.mxu1 %v23332_v60 }
 0x57d   : > { %15988 = vmatmul.mubr.msk.f32.gmra.mrb[24].mxu1 %vm6444_vm7, %v15980_v26 }
 0x57e   : > { %16377 = vmatprep.mubr.msk.f32.mxu1 %vm6444_vm7, %v15979_v59 }
 0x581   : > { %16378 = vmatmul.mubr.msk.f32.vlgmr.msra.gmra.mrb[26].mxu1 %vm6444_vm7, %v15980_v26 }
 0x634   : > { %v10336_v11 = vpop.f32.mrb[10].mxu1 }
 0x635   : > { %v23484_v17 = vadd.f32 %v23481_v8, %v10336_v11  ;;  %v10338_v54 = vpop.f32.mrb[11].mxu1 }
 0x636   : > { %v23487_v7 = vadd.f32 %v23481_v8, %v10338_v54 }
 0x637   : > { %v10978_v31 = vmul.f32 %v23484_v17, %v23484_v17 }
 0x638   : > { %v10342_v34 = vpop.f32.mrb[12].mxu1  ;;  %v10979_v14 = vmul.f32 %v23487_v7, %v23487_v7 }
 0x639   : > { %v23492_v48 = vadd.f32 %v23489_v23, %v10342_v34  ;;  %v10344_v61 = vpop.f32.mrb[13].mxu1 }
 0x63a   : > { %v23497_v36 = vadd.f32 %v23489_v23, %v10344_v61 }
 0x63b   : > { %19009 = vrsqrt.f32 %v23492_v48  ;;  %v23503_v21 = vadd.f32 %v10978_v31, %v23492_v48 }
 0x63c   : > { %19011 = vrsqrt.f32 %v23497_v36  ;;  %v23507_v55 = vadd.f32 %v10979_v14, %v23497_v36  ;;  %v10413_v4 = vpop.f32.mrb[14].mxu1 }
 0x63d   : > { %v23510_v20 = vadd.f32 %v23481_v8, %v10413_v4  ;;  %v10415_v47 = vpop.f32.mrb[15].mxu1 }
 0x63e   : > { %v23513_v45 = vadd.f32 %v23481_v8, %v10415_v47 }
 0x63f   : > { %v10980_v57 = vmul.f32 %v23510_v20, %v23510_v20 }
 0x640   : > { %v10419_v58 = vpop.f32.mrb[16].mxu1  ;;  %v10981_v35 = vmul.f32 %v23513_v45, %v23513_v45 }
 0x641   : > { %v23516_v15 = vadd.f32 %v23489_v23, %v10419_v58  ;;  %v10421_v41 = vpop.f32.mrb[17].mxu1 }
 0x642   : > { %v23521_v38 = vadd.f32 %v23489_v23, %v10421_v41 }
 0x643   : > { %19013 = vrsqrt.f32 %v23516_v15  ;;  %v23527_v13 = vadd.f32 %v10980_v57, %v23516_v15 }
 0x644   : > { %19015 = vrsqrt.f32 %v23521_v38  ;;  %v23531_v56 = vadd.f32 %v10981_v35, %v23521_v38  ;;  %v10490_v32 = vpop.f32.mrb[18].mxu1 }
 0x645   : > { %v23533_v46 = vpop.eup %19009  ;;  %v23536_v62 = vadd.f32 %v23481_v8, %v10490_v32  ;;  %v10492_v0 = vpop.f32.mrb[19].mxu1 }
 0x646   : > { %v23538_v24 = vpop.eup %19011  ;;  %v23542_v2 = vmul.f32 %v23533_v46, %v23484_v17  ;;  %v23545_v49 = vadd.f32 %v23481_v8, %v10492_v0 }
 0x647   : > { %v23549_v59 = vmul.f32 %v23538_v24, %v23487_v7  ;;  %v10982_v52 = vmul.f32 %v23536_v62, %v23536_v62 }
 0x648   : > { %v10726_v39 = vmul.f32 -0.5, %v23542_v2  ;;  %v10771_v29 = vand.u32 2147483647, %v23542_v2  ;;  %v10496_v5 = vpop.f32.mrb[20].mxu1  ;;  %v10983_v1 = vmul.f32 %v23545_v49, %v23545_v49  ;;  %vm10915_vm15 = vcmp.ge.f32.partialorder %v23542_v2, 0.0 }
 0x649   : > { %v10727_v37 = vmul.f32 -0.5, %v23549_v59  ;;  %v10772_v22 = vand.u32 2147483647, %v23549_v59  ;;  %v23556_v3 = vadd.f32 %v23489_v23, %v10496_v5  ;;  %v10498_v16 = vpop.f32.mrb[21].mxu1  ;;  %vm10916_vm0 = vcmp.ge.f32.partialorder %v23549_v59, 0.0 }
 0x64a   : > { %v10735_v51 = vmul.f32 %v10726_v39, %v23542_v2  ;;  %v10780_v26 = vmul.f32 0.23164189, %v10771_v29  ;;  %v23562_v50 = vadd.f32 %v23489_v23, %v10498_v16  ;;  %v23605_v29 = vpack.i.bf16 %v23332_v60, %v23332_v60 }
 0x64b   : > { %v10736_v25 = vmul.f32 %v10727_v37, %v23549_v59  ;;  %v10781_v9 = vmul.f32 0.23164189, %v10772_v22  ;;  %19017 = vrsqrt.f32 %v23556_v3  ;;  %v23569_v42 = vadd.f32 %v10982_v52, %v23556_v3 }
 0x64c   : > { %v10744_v63 = vmul.f32 1.442695, %v10735_v51  ;;  %v10789_v19 = vadd.f32 1.0, %v10780_v26  ;;  %19019 = vrsqrt.f32 %v23562_v50  ;;  %v23573_v18 = vadd.f32 %v10983_v1, %v23562_v50  ;;  %v10567_v53 = vpop.f32.mrb[22].mxu1  ;;  %26193 = vst [vmem:[#allocation33_spill] sm:$0xff] %v23605_v29  ;;  %18755 = vrot.lane.b32.xlu0 %v23605_v29, %s19287_s9 }
 0x64d   : > { %v19014_v43 = vpop.eup %19013  ;;  %v10746_v10 = vmul.f32 1.442695, %v10736_v25  ;;  %v10790_v6 = vadd.f32 1.0, %v10781_v9  ;;  %v23576_v12 = vadd.f32 %v23481_v8, %v10567_v53  ;;  %v10569_v28 = vpop.f32.mrb[23].mxu1  ;;  %v10708_v9 = vmul.f32 %v23533_v46, %v23492_v48 }
 0x64e   : > { %26191 = vst [vmem:[#allocation5_spill] sm:$0xff] %v23573_v18  ;;  %v19016_v30 = vpop.eup %19015  ;;  %19021 = vpow2.f32 %v10744_v63  ;;  %v23579_v44 = vmul.f32 %v19014_v43, %v23510_v20  ;;  %v23585_v11 = vadd.f32 %v23481_v8, %v10569_v28  ;;  %v10710_v53 = vmul.f32 %v19014_v43, %v23516_v15 }
 0x64f   : > { %19023 = vrcp.f32 %v10789_v19  ;;  %v23582_v40 = vmul.f32 %v19016_v30, %v23513_v45  ;;  %v10984_v4 = vmul.f32 %v23576_v12, %v23576_v12  ;;  %v10709_v19 = vmul.f32 %v23538_v24, %v23497_v36 }
 0x650   : > { %26192 = vst [vmem:[#allocation32_spill] sm:$0xff] %v23585_v11  ;;  %19025 = vpow2.f32 %v10746_v10  ;;  %v10728_v54 = vmul.f32 -0.5, %v23579_v44  ;;  %v10773_v34 = vand.u32 2147483647, %v23579_v44  ;;  %v10573_v31 = vpop.f32.mrb[24].mxu1  ;;  %v10985_v39 = vmul.f32 %v23585_v11, %v23585_v11 }
 0x651   : > { %19027 = vrcp.f32 %v10790_v6  ;;  %v10729_v61 = vmul.f32 -0.5, %v23582_v40  ;;  %v10774_v14 = vand.u32 2147483647, %v23582_v40  ;;  %v10575_v47 = vpop.f32.mrb[25].mxu1  ;;  %v23595_v41 = vadd.f32 %v23489_v23, %v10573_v31 }
 0x652   : > { %v10737_v58 = vmul.f32 %v10728_v54, %v23579_v44  ;;  %v10782_v57 = vmul.f32 0.23164189, %v10773_v34  ;;  %v23598_v35 = vadd.f32 %v23489_v23, %v10575_v47  ;;  %v10711_v28 = vmul.f32 %v19016_v30, %v23521_v38 }
 0x653   : > { %v10738_v32 = vmul.f32 %v10729_v61, %v23582_v40  ;;  %v10783_v0 = vmul.f32 0.23164189, %v10774_v14  ;;  %19029 = vrsqrt.f32 %v23595_v41  ;;  %v23609_v22 = vadd.f32 %v10984_v4, %v23595_v41 }
 0x654   : > { %v10748_v5 = vmul.f32 1.442695, %v10737_v58  ;;  %v10791_v37 = vadd.f32 1.0, %v10782_v57  ;;  %v16379_v52 = vpop.f32.mrb[26].mxu1  ;;  %19031 = vrsqrt.f32 %v23598_v35  ;;  %v23613_v1 = vadd.f32 %v10985_v39, %v23598_v35 }
 0x655   : > { %26194 = vst [vmem:[#allocation8_spill] sm:$0xff] %v23609_v22  ;;  %v19018_v16 = vpop.eup %19017  ;;  %v10750_v51 = vmul.f32 1.442695, %v10738_v32  ;;  %v10792_v26 = vadd.f32 1.0, %v10783_v0  ;;  %v10644_v25 = vpop.f32.mrb[27].mxu1  ;;  %v23653_v39 = vadd.f32 %v16379_v52, %v23489_v23  ;;  %vm10917_vm1 = vcmp.ge.f32.partialorder %v23579_v44, 0.0 }
 0x656   : > { %26195 = vst [vmem:[#allocation9_spill] sm:$0xff] %v23613_v1  ;;  %v19020_v60 = vpop.eup %19019  ;;  %19033 = vpow2.f32 %v10748_v5  ;;  %v23620_v63 = vmul.f32 %v19018_v16, %v23536_v62  ;;  %v23642_v38 = vmul.f32 %v19018_v16, %v23556_v3  ;;  %vm10918_vm4 = vcmp.ge.f32.partialorder %v23582_v40, 0.0 }
 0x657   : > { %19035 = vrcp.f32 %v10791_v37  ;;  %v23626_v10 = vmul.f32 %v19020_v60, %v23545_v49  ;;  %26196 = vst [vmem:[#allocation10_spill] sm:$0xff] %v23653_v39  ;;  %v23667_v23 = vmul.f32 %v19020_v60, %v23562_v50 }
 0x658   : > { %v23628_v6 = vpop.eup %19021  ;;  %19037 = vpow2.f32 %v10750_v51  ;;  %v10730_v48 = vmul.f32 -0.5, %v23620_v63  ;;  %v10775_v46 = vand.u32 2147483647, %v23620_v63  ;;  %vm10919_vm5 = vcmp.ge.f32.partialorder %v23620_v63, 0.0 }
 0x659   : > { %v23633_v54 = vpop.eup %19023  ;;  %v10762_v34 = vmul.f32 0.3989423, %v23628_v6  ;;  %19039 = vrcp.f32 %v10792_v26  ;;  %v10731_v36 = vmul.f32 -0.5, %v23626_v10  ;;  %v10776_v15 = vand.u32 2147483647, %v23626_v10 }
 0x65a   : > { %v23638_v24 = vpop.eup %19025  ;;  %v10816_v43 = vmul.f32 1.0614054, %v23633_v54  ;;  %v10739_v30 = vmul.f32 %v10730_v48, %v23620_v63  ;;  %v10784_v31 = vmul.f32 0.23164189, %v10775_v46  ;;  %vm10920_vm9 = vcmp.ge.f32.partialorder %v23626_v10, 0.0 }
 0x65b   : > { %v23645_v61 = vpop.eup %19027  ;;  %v23647_v14 = vmul.f32 %v10762_v34, %v10708_v9  ;;  %v10763_v4 = vmul.f32 0.3989423, %v23638_v24  ;;  %v10740_v47 = vmul.f32 %v10731_v36, %v23626_v10  ;;  %v10785_v58 = vmul.f32 0.23164189, %v10776_v15 }
 0x65c   : > { %v10825_v57 = vadd.f32 -1.4531521, %v10816_v43  ;;  %v10817_v32 = vmul.f32 1.0614054, %v23645_v61  ;;  %v10752_v0 = vmul.f32 1.442695, %v10739_v30  ;;  %v23676_v43 = vadd.f32 %v23481_v8, %v10644_v25 }
 0x65d   : > { %v23657_v3 = vmul.f32 %v23647_v14, %v23484_v17  ;;  %v23659_v5 = vmul.f32 %v10763_v4, %v10709_v19  ;;  %v10793_v37 = vadd.f32 1.0, %v10784_v31  ;;  %v10754_v16 = vmul.f32 1.442695, %v10740_v47  ;;  %v19030_v51 = vpop.eup %19029 }
 0x65e   : > { %v10834_v26 = vmul.f32 %v23633_v54, %v10825_v57  ;;  %v10826_v9 = vadd.f32 -1.4531521, %v10817_v32  ;;  %19041 = vpow2.f32 %v10752_v0  ;;  %v10794_v48 = vadd.f32 1.0, %v10785_v58  ;;  %v19032_v46 = vpop.eup %19031  ;;  %26197 = vst [vmem:[#allocation11_spill] sm:$0xff] %v23676_v43 }
 0x65f   : > { %v23664_v34 = vmul.f32 %v23659_v5, %v23487_v7  ;;  %19043 = vrcp.f32 %v10793_v37  ;;  %v23670_v52 = vmul.f32 %v19030_v51, %v23576_v12 }
 0x660   : > { %v23672_v19 = vpop.eup %19033  ;;  %v10843_v36 = vadd.f32 1.4214138, %v10834_v26  ;;  %v10835_v15 = vmul.f32 %v23645_v61, %v10826_v9  ;;  %19045 = vpow2.f32 %v10754_v16 }
 0x661   : > { %v23678_v30 = vpop.eup %19035  ;;  %v10764_v31 = vmul.f32 0.3989423, %v23672_v19  ;;  %19047 = vrcp.f32 %v10794_v48  ;;  %v10732_v50 = vmul.f32 -0.5, %v23670_v52  ;;  %v10777_v60 = vand.u32 2147483647, %v23670_v52 }
 0x662   : > { %v23683_v4 = vpop.eup %19037  ;;  %v10852_v47 = vmul.f32 %v23633_v54, %v10843_v36  ;;  %v10844_v58 = vadd.f32 1.4214138, %v10835_v15  ;;  %v10818_v57 = vmul.f32 1.0614054, %v23678_v30  ;;  %19049 = vrsqrt.f32 %v23653_v39 }
 0x663   : > { %v23688_v8 = vpop.eup %19039  ;;  %v23690_v25 = vmul.f32 %v10764_v31, %v10710_v53  ;;  %v10765_v32 = vmul.f32 0.3989423, %v23683_v4  ;;  %v10741_v0 = vmul.f32 %v10732_v50, %v23670_v52  ;;  %v10786_v37 = vmul.f32 0.23164189, %v10777_v60 }
 0x664   : > { %v10861_v16 = vadd.f32 -0.28449672, %v10852_v47  ;;  %v10853_v26 = vmul.f32 %v23645_v61, %v10844_v58  ;;  %v10827_v9 = vadd.f32 -1.4531521, %v10818_v57  ;;  %v10819_v48 = vmul.f32 1.0614054, %v23688_v8 }
 0x665   : > { %v23698_v36 = vmul.f32 %v23690_v25, %v23510_v20  ;;  %v23700_v15 = vmul.f32 %v10765_v32, %v10711_v28  ;;  %v10756_v29 = vmul.f32 1.442695, %v10741_v0  ;;  %v10795_v53 = vadd.f32 1.0, %v10786_v37 }
 0x666   : > { %v10870_v31 = vmul.f32 %v23633_v54, %v10861_v16  ;;  %v10862_v27 = vadd.f32 -0.28449672, %v10853_v26  ;;  %v10836_v50 = vmul.f32 %v23678_v30, %v10827_v9  ;;  %v10828_v60 = vadd.f32 -1.4531521, %v10819_v48 }
 0x667   : > { %v23706_v47 = vmul.f32 %v23700_v15, %v23513_v45  ;;  %v23709_v58 = vmul.f32 %v19030_v51, %v23595_v41  ;;  %19051 = vpow2.f32 %v10756_v29  ;;  %v23712_v57 = vmul.f32 %v19032_v46, %v23585_v11 }
 0x668   : > { %v23714_v28 = vpop.eup %19041  ;;  %v10879_v32 = vadd.f32 0.2548296, %v10870_v31  ;;  %v10871_v0 = vmul.f32 %v23645_v61, %v10862_v27  ;;  %v10845_v37 = vadd.f32 1.4214138, %v10836_v50  ;;  %v10837_v16 = vmul.f32 %v23688_v8, %v10828_v60 }
 0x669   : > { %v23718_v26 = vpop.eup %19043  ;;  %v10766_v9 = vmul.f32 0.3989423, %v23714_v28  ;;  %19053 = vrcp.f32 %v10795_v53  ;;  %v23723_v41 = vmul.f32 %v19032_v46, %v23598_v35  ;;  %v10733_v29 = vmul.f32 -0.5, %v23712_v57 }
 0x66a   : > { %v23726_v51 = vpop.eup %19045  ;;  %v10888_v48 = vmul.f32 %v23633_v54, %v10879_v32  ;;  %v10880_v27 = vadd.f32 0.2548296, %v10871_v0  ;;  %v10854_v31 = vmul.f32 %v23678_v30, %v10845_v37  ;;  %v10846_v50 = vadd.f32 1.4214138, %v10837_v16 }
 0x66b   : > { %v23730_v60 = vpop.eup %19047  ;;  %v10820_v1 = vmul.f32 1.0614054, %v23718_v26  ;;  %v23735_v53 = vmul.f32 %v10766_v9, %v23642_v38  ;;  %v10767_v35 = vmul.f32 0.3989423, %v23726_v51  ;;  %v10742_v46 = vmul.f32 %v10733_v29, %v23712_v57 }
 0x66c   : > { %v23739_v33 = vpop.eup %19049  ;;  %v10897_v54 = vmul.f32 %v23628_v6, %v10888_v48  ;;  %v10889_v32 = vmul.f32 %v23645_v61, %v10880_v27  ;;  %v10863_v0 = vadd.f32 -0.28449672, %v10854_v31  ;;  %v10855_v37 = vmul.f32 %v23688_v8, %v10846_v50 }
 0x66d   : > { %v10829_v16 = vadd.f32 -1.4531521, %v10820_v1  ;;  %v23746_v22 = vmul.f32 %v23735_v53, %v23536_v62  ;;  %v10821_v38 = vmul.f32 1.0614054, %v23730_v60  ;;  %v23750_v9 = vmul.f32 %v10767_v35, %v23667_v23 }
 0x66e   : > { %v10906_v29 = vsub.f32 1.0, %v10897_v54  ;;  %v10898_v43 = vmul.f32 %v23638_v24, %v10889_v32  ;;  %v10872_v6 = vmul.f32 %v23678_v30, %v10863_v0  ;;  %v10864_v48 = vadd.f32 -0.28449672, %v10855_v37 }
 0x66f   : > { %v10838_v61 = vmul.f32 %v23718_v26, %v10829_v16  ;;  %v10830_v27 = vadd.f32 -1.4531521, %v10821_v38  ;;  %v23757_v1 = vmul.f32 %v23750_v9, %v23545_v49  ;;  %v10758_v31 = vmul.f32 1.442695, %v10742_v46 }
 0x670   : > { %v10924_v50 = vsub.f32 0.0, %v10906_v29  ;;  %v10907_v11 = vsub.f32 1.0, %v10898_v43  ;;  %v10881_v18 = vadd.f32 0.2548296, %v10872_v6  ;;  %v10873_v23 = vmul.f32 %v23688_v8, %v10864_v48 }
 0x671   : > { %v23760_v35 = vpop.eup %19051  ;;  %v10847_v24 = vadd.f32 1.4214138, %v10838_v61  ;;  %v10839_v54 = vmul.f32 %v23730_v60, %v10830_v27  ;;  %v23767_v0 = vmul.f32 %v23739_v33, %v23653_v39  ;;  %19055 = vpow2.f32 %v10758_v31 }
 0x672   : > { %v10933_v46 = vsel %vm10915_vm15, %v10906_v29, %v10924_v50  ;;  %v10925_v43 = vsub.f32 0.0, %v10907_v11  ;;  %v10890_v37 = vmul.f32 %v23678_v30, %v10881_v18  ;;  %v10882_v16 = vadd.f32 0.2548296, %v10873_v23 }
 0x673   : > { %26198 = vst [vmem:[#allocation12_spill] sm:$0xff] %v23767_v0  ;;  %v23772_v38 = vpop.eup %19053  ;;  %v10942_v6 = vadd.f32 1.0, %v10933_v46  ;;  %v10856_v48 = vmul.f32 %v23718_v26, %v10847_v24  ;;  %v10848_v61 = vadd.f32 1.4214138, %v10839_v54  ;;  %v10768_v27 = vmul.f32 0.3989423, %v23760_v35 }
 0x674   : > { %v10934_v32 = vsel %vm10916_vm0, %v10907_v11, %v10925_v43  ;;  %v10899_v0 = vmul.f32 %v23672_v19, %v10890_v37  ;;  %v10891_v2 = vmul.f32 %v23688_v8, %v10882_v16  ;;  %v10822_v24 = vmul.f32 1.0614054, %v23772_v38 }
 0x675   : > { %v10951_v29 = vmul.f32 0.5, %v10942_v6  ;;  %v10943_v50 = vadd.f32 1.0, %v10934_v32  ;;  %v10865_v18 = vadd.f32 -0.28449672, %v10856_v48  ;;  %v10857_v30 = vmul.f32 %v23730_v60, %v10848_v61 }
 0x676   : > { %v10908_v23 = vsub.f32 1.0, %v10899_v0  ;;  %v10900_v46 = vmul.f32 %v23683_v4, %v10891_v2  ;;  %v23784_v54 = vmul.f32 %v10768_v27, %v23709_v58  ;;  %vm10921_vm10 = vcmp.ge.f32.partialorder %v23670_v52, 0.0 }
 0x677   : > { %v10960_v59 = vsub.f32 1.0, %v10951_v29  ;;  %v11005_v11 = vmul.f32 %v10951_v29, %v23484_v17  ;;  %v11023_v19 = vmul.f32 %v23503_v21, %v10951_v29  ;;  %v10952_v8 = vmul.f32 0.5, %v10943_v50 }
 0x678   : > { %v10926_v31 = vsub.f32 0.0, %v10908_v23  ;;  %v10909_v43 = vsub.f32 1.0, %v10900_v46  ;;  %v10874_v32 = vmul.f32 %v23718_v26, %v10865_v18  ;;  %v10866_v37 = vadd.f32 -0.28449672, %v10857_v30 }
 0x679   : > { %v23790_v0 = vadd.f32 %v11005_v11, %v23647_v14  ;;  %v11032_v4 = vadd.f32 %v11023_v19, %v23657_v3  ;;  %v11059_v16 = vmul.f32 %v10960_v59, %v23484_v17  ;;  %v11077_v58 = vmul.f32 %v23503_v21, %v10960_v59 }
 0x67a   : > { %v10961_v6 = vsub.f32 1.0, %v10952_v8  ;;  %v11006_v48 = vmul.f32 %v10952_v8, %v23487_v7  ;;  %v11024_v61 = vmul.f32 %v23507_v55, %v10952_v8  ;;  %v10935_v27 = vsel %vm10917_vm1, %v10908_v23, %v10926_v31 }
 0x67b   : > { %v11041_v2 = vmul.f32 %v23790_v0, %v23790_v0  ;;  %v11068_v29 = vsub.f32 %v23647_v14, %v11059_v16  ;;  %v11086_v50 = vsub.f32 %v11077_v58, %v23657_v3  ;;  %v11113_v18 = vsub.f32 0.0, %v23790_v0  ;;  %v23813_v14 = vpop.eup %19055 }
 0x67c   : > { %v23806_v17 = vadd.f32 %v11006_v48, %v23659_v5  ;;  %v11033_v21 = vadd.f32 %v11024_v61, %v23664_v34  ;;  %v11060_v30 = vmul.f32 %v10961_v6, %v23487_v7  ;;  %v11078_v44 = vmul.f32 %v23507_v55, %v10961_v6 }
 0x67d   : > { %v11050_v23 = vsub.f32 %v11032_v4, %v11041_v2  ;;  %v11095_v46 = vmul.f32 %v11068_v29, %v11068_v29  ;;  %v11122_v59 = vmul.f32 %v11113_v18, %v11068_v29  ;;  %v23811_v11 = vmul.f32 0.01, %v11068_v29 }
 0x67e   : > { %v11042_v3 = vmul.f32 %v23806_v17, %v23806_v17  ;;  %v11069_v19 = vsub.f32 %v23659_v5, %v11060_v30  ;;  %v11087_v8 = vsub.f32 %v11078_v44, %v23664_v34  ;;  %v11114_v31 = vsub.f32 0.0, %v23806_v17 }
 0x67f   : > { %v11104_v16 = vsub.f32 %v11086_v50, %v11095_v46  ;;  %v11140_v7 = vsub.f32 %v23790_v0, %v23811_v11  ;;  %v10944_v55 = vadd.f32 1.0, %v10935_v27  ;;  %v10831_v4 = vadd.f32 -1.4531521, %v10822_v24  ;;  %v26204_v0 = vld [vmem:[#allocation8_spill] sm:$0xff] }
 0x680   : > { %v11051_v58 = vsub.f32 %v11033_v21, %v11042_v3  ;;  %v11096_v6 = vmul.f32 %v11069_v19, %v11069_v19  ;;  %v11123_v48 = vmul.f32 %v11114_v31, %v11069_v19  ;;  %v23822_v61 = vmul.f32 0.01, %v11069_v19 }
 0x681   : > { %v11149_v2 = vmul.f32 0.0001, %v11104_v16  ;;  %v10953_v29 = vmul.f32 0.5, %v10944_v55  ;;  %v10927_v18 = vsub.f32 0.0, %v10909_v43  ;;  %v10883_v39 = vadd.f32 0.2548296, %v10874_v32 }
 0x682   : > { %v23824_v5 = vmul.f32 0.02, %v11122_v59  ;;  %v11105_v34 = vsub.f32 %v11087_v8, %v11096_v6  ;;  %v11141_v50 = vsub.f32 %v23806_v17, %v23822_v61  ;;  %v10875_v30 = vmul.f32 %v23730_v60, %v10866_v37 }
 0x683   : > { %v11158_v44 = vadd.f32 %v11149_v2, %v11050_v23  ;;  %v10962_v27 = vsub.f32 1.0, %v10953_v29  ;;  %v11007_v24 = vmul.f32 %v10953_v29, %v23510_v20  ;;  %v11025_v21 = vmul.f32 %v23527_v13, %v10953_v29 }
 0x684   : > { %v11150_v46 = vmul.f32 0.0001, %v11105_v34  ;;  %v23831_v3 = vmul.f32 0.02, %v11123_v48  ;;  %v10936_v32 = vsel %vm10918_vm4, %v10909_v43, %v10927_v18  ;;  %v10892_v59 = vmul.f32 %v23718_v26, %v10883_v39 }
 0x685   : > { %v11176_v19 = vsub.f32 %v11158_v44, %v23824_v5  ;;  %v23839_v37 = vadd.f32 %v11007_v24, %v23690_v25  ;;  %v11034_v23 = vadd.f32 %v11025_v21, %v23698_v36  ;;  %v11061_v8 = vmul.f32 %v10962_v27, %v23510_v20 }
 0x686   : > { %v23843_v31 = vadd.f32 %v11150_v46, %v11051_v58  ;;  %v11079_v16 = vmul.f32 %v23527_v13, %v10962_v27  ;;  %v10945_v55 = vadd.f32 1.0, %v10936_v32  ;;  %v10901_v40 = vmul.f32 %v23714_v28, %v10892_v59 }
 0x687   : > { %v11043_v39 = vmul.f32 %v23839_v37, %v23839_v37  ;;  %v11070_v26 = vsub.f32 %v23690_v25, %v11061_v8  ;;  %v11115_v43 = vsub.f32 0.0, %v23839_v37  ;;  %v10884_v6 = vadd.f32 0.2548296, %v10875_v30 }
 0x688   : > { %v11177_v48 = vsub.f32 %v23843_v31, %v23831_v3  ;;  %v11088_v20 = vsub.f32 %v11079_v16, %v23698_v36  ;;  %v10954_v58 = vmul.f32 0.5, %v10945_v55  ;;  %v10910_v2 = vsub.f32 1.0, %v10901_v40  ;;  %v26200_v31 = vld [vmem:[#allocation5_spill] sm:$0xff] }
 0x689   : > { %v11052_v29 = vsub.f32 %v11034_v23, %v11043_v39  ;;  %v11097_v13 = vmul.f32 %v11070_v26, %v11070_v26  ;;  %v11124_v18 = vmul.f32 %v11115_v43, %v11070_v26  ;;  %v23854_v5 = vmul.f32 0.01, %v11070_v26 }
 0x68a   : > { %v10963_v28 = vsub.f32 1.0, %v10954_v58  ;;  %v11008_v34 = vmul.f32 %v10954_v58, %v23513_v45  ;;  %v11026_v25 = vmul.f32 %v23531_v56, %v10954_v58  ;;  %v26199_v44 = vand.u32 2147483647, %v23712_v57 }
 0x68b   : > { %v11106_v27 = vsub.f32 %v11088_v20, %v11097_v13  ;;  %v11142_v24 = vsub.f32 %v23839_v37, %v23854_v5  ;;  %v11169_v36 = vmul.f32 0.02, %v11124_v18  ;;  %v10928_v21 = vsub.f32 0.0, %v10910_v2 }
 0x68c   : > { %v10787_v30 = vmul.f32 0.23164189, %v26199_v44  ;;  %v23863_v46 = vadd.f32 %v11008_v34, %v23700_v15  ;;  %v11035_v32 = vadd.f32 %v11026_v25, %v23706_v47  ;;  %v11062_v59 = vmul.f32 %v10963_v28, %v23513_v45 }
 0x68d   : > { %v11080_v23 = vmul.f32 %v23531_v56, %v10963_v28  ;;  %v11151_v8 = vmul.f32 0.0001, %v11106_v27  ;;  %v10937_v16 = vsel %vm10919_vm5, %v10910_v2, %v10928_v21  ;;  %v10893_v55 = vmul.f32 %v23730_v60, %v10884_v6 }
 0x68e   : > { %v10840_v40 = vmul.f32 %v23772_v38, %v10831_v4  ;;  %v11044_v39 = vmul.f32 %v23863_v46, %v23863_v46  ;;  %v11071_v26 = vsub.f32 %v23700_v15, %v11062_v59  ;;  %v11116_v45 = vsub.f32 0.0, %v23863_v46 }
 0x68f   : > { %v11089_v43 = vsub.f32 %v11080_v23, %v23706_v47  ;;  %v11160_v56 = vadd.f32 %v11151_v8, %v11052_v29  ;;  %v10946_v20 = vadd.f32 1.0, %v10937_v16  ;;  %v10902_v63 = vmul.f32 %v23726_v51, %v10893_v55 }
 0x690   : > { %v10849_v58 = vadd.f32 1.4214138, %v10840_v40  ;;  %v11053_v2 = vsub.f32 %v11035_v32, %v11044_v39  ;;  %v11098_v60 = vmul.f32 %v11071_v26, %v11071_v26  ;;  %v11125_v6 = vmul.f32 %v11116_v45, %v11071_v26 }
 0x691   : > { %v23879_v13 = vmul.f32 0.01, %v11071_v26  ;;  %v11178_v4 = vsub.f32 %v11160_v56, %v11169_v36  ;;  %v10955_v18 = vmul.f32 0.5, %v10946_v20  ;;  %v10911_v28 = vsub.f32 1.0, %v10902_v63 }
 0x692   : > { %v10858_v34 = vmul.f32 %v23772_v38, %v10849_v58  ;;  %v23882_v15 = vmax.f32 %v11176_v19, 0.0  ;;  %v11107_v47 = vsub.f32 %v11089_v43, %v11098_v60  ;;  %v23888_v51 = vmul.f32 %v23784_v54, %v23576_v12 }
 0x693   : > { %v11143_v29 = vsub.f32 %v23863_v46, %v23879_v13  ;;  %v23890_v25 = vmul.f32 0.02, %v11125_v6  ;;  %v10964_v44 = vsub.f32 1.0, %v10955_v18  ;;  %v11009_v27 = vmul.f32 %v10955_v18, %v23536_v62 }
 0x694   : > { %v11027_v36 = vmul.f32 %v23569_v42, %v10955_v18  ;;  %v11152_v21 = vmul.f32 0.0001, %v11107_v47  ;;  %v10929_v32 = vsub.f32 0.0, %v10911_v28  ;;  %v10867_v59 = vadd.f32 -0.28449672, %v10858_v34 }
 0x695   : > { %v10796_v19 = vadd.f32 1.0, %v10787_v30  ;;  %v23895_v23 = vadd.f32 %v11009_v27, %v23735_v53  ;;  %v11063_v16 = vmul.f32 %v10964_v44, %v23536_v62  ;;  %v11081_v55 = vmul.f32 %v23569_v42, %v10964_v44 }
 0x696   : > { %v11036_v8 = vadd.f32 %v11027_v36, %v23746_v22  ;;  %v11161_v40 = vadd.f32 %v11152_v21, %v11053_v2  ;;  %v10938_v39 = vsel %vm10920_vm9, %v10911_v28, %v10929_v32  ;;  %v10876_v26 = vmul.f32 %v23772_v38, %v10867_v59  ;;  %v26201_v36 = vld [vmem:[#allocation32_spill] sm:$0xff]  ;;  %v26202_v21 = vld [vmem:[#allocation11_spill] sm:$0xff] }
 0x697   : > { %v10769_v43 = vmul.f32 0.3989423, %v23813_v14  ;;  %v11045_v30 = vmul.f32 %v23895_v23, %v23895_v23  ;;  %v11072_v45 = vsub.f32 %v23735_v53, %v11063_v16  ;;  %v11090_v56 = vsub.f32 %v11081_v55, %v23746_v22 }
 0x698   : > { %v11117_v20 = vsub.f32 0.0, %v23895_v23  ;;  %v11179_v62 = vsub.f32 %v11161_v40, %v23890_v25  ;;  %v10947_v42 = vadd.f32 1.0, %v10938_v39  ;;  %v10885_v63 = vadd.f32 0.2548296, %v10876_v26 }
 0x699   : > { %19057 = vrcp.f32 %v10796_v19  ;;  %v11054_v10 = vsub.f32 %v11036_v8, %v11045_v30  ;;  %v11099_v58 = vmul.f32 %v11072_v45, %v11072_v45  ;;  %v23910_v60 = vmul.f32 0.01, %v11072_v45 }
 0x69a   : > { %v11126_v2 = vmul.f32 %v11117_v20, %v11072_v45  ;;  %v23915_v6 = vmax.f32 %v11177_v48, 0.0  ;;  %v23917_v53 = vmax.f32 %v11178_v4, 0.0  ;;  %v10956_v22 = vmul.f32 0.5, %v10947_v42 }
 0x69b   : > { %v10894_v18 = vmul.f32 %v23772_v38, %v10885_v63  ;;  %v11108_v28 = vsub.f32 %v11090_v56, %v11099_v58  ;;  %v11144_v34 = vsub.f32 %v23895_v23, %v23910_v60  ;;  %v23924_v25 = vmul.f32 %v10769_v43, %v23723_v41 }
 0x69c   : > { %v11171_v47 = vmul.f32 0.02, %v11126_v2  ;;  %v10965_v44 = vsub.f32 1.0, %v10956_v22  ;;  %v11010_v3 = vmul.f32 %v10956_v22, %v23545_v49  ;;  %v11028_v48 = vmul.f32 %v26200_v31, %v10956_v22  ;;  %v23950_v2 = vpop.permute.xlu1 %11195 }
 0x69d   : > { %v10903_v4 = vmul.f32 %v23760_v35, %v10894_v18  ;;  %v11153_v27 = vmul.f32 0.0001, %v11108_v28  ;;  %v23931_v38 = vmul.f32 %v23924_v25, %v26201_v36  ;;  %v23935_v32 = vmul.f32 %v23739_v33, %v26202_v21 }
 0x69e   : > { %v10986_v41 = vmul.f32 %v26202_v21, %v26202_v21  ;;  %v11019_v59 = vadd.f32 %v11010_v3, %v23750_v9  ;;  %v11037_v19 = vadd.f32 %v11028_v48, %v23757_v1  ;;  %v11064_v23 = vmul.f32 %v10965_v44, %v23545_v49 }
 0x69f   : > { %v11082_v35 = vmul.f32 %v26200_v31, %v10965_v44  ;;  %v11162_v8 = vadd.f32 %v11153_v27, %v11054_v10  ;;  %v10912_v16 = vsub.f32 1.0, %v10903_v4  ;;  %v10734_v55 = vmul.f32 -0.5, %v23935_v32 }
 0x6a0   : > { %v10779_v40 = vand.u32 2147483647, %v23935_v32  ;;  %v11046_v39 = vmul.f32 %v11019_v59, %v11019_v59  ;;  %v11073_v33 = vsub.f32 %v23750_v9, %v11064_v23  ;;  %v11118_v43 = vsub.f32 0.0, %v11019_v59 }
 0x6a1   : > { %v11091_v26 = vsub.f32 %v11082_v35, %v23757_v1  ;;  %v11180_v30 = vsub.f32 %v11162_v8, %v11171_v47  ;;  %v10930_v45 = vsub.f32 0.0, %v10912_v16  ;;  %v10743_v56 = vmul.f32 %v10734_v55, %v23935_v32 }
 0x6a2   : > { %v10788_v20 = vmul.f32 0.23164189, %v10779_v40  ;;  %v11055_v42 = vsub.f32 %v11037_v19, %v11046_v39  ;;  %v11100_v63 = vmul.f32 %v11073_v33, %v11073_v33  ;;  %v11127_v10 = vmul.f32 %v11118_v43, %v11073_v33  ;;  %v26203_v19 = vld [vmem:[#allocation10_spill] sm:$0xff] }
 0x6a3   : > { %v23948_v49 = vpop.eup %19057  ;;  %v11136_v58 = vmul.f32 0.01, %v11073_v33  ;;  %v23952_v60 = vmax.f32 %v11179_v62, 0.0  ;;  %v10939_v9 = vsel %vm10921_vm10, %v10912_v16, %v10930_v45  ;;  %v10760_v22 = vmul.f32 1.442695, %v10743_v56 }
 0x6a4   : > { %v10823_v1 = vmul.f32 1.0614054, %v23948_v49  ;;  %v23957_v18 = vmax.f32 %v11180_v30, 0.0  ;;  %v11109_v28 = vsub.f32 %v11091_v26, %v11100_v63  ;;  %v10948_v44 = vadd.f32 1.0, %v10939_v9 }
 0x6a5   : > { %v11145_v47 = vsub.f32 %v11019_v59, %v11136_v58  ;;  %v11172_v3 = vmul.f32 0.02, %v11127_v10  ;;  %19059 = vpow2.f32 %v10760_v22  ;;  %v10797_v48 = vadd.f32 1.0, %v10788_v20  ;;  %v26205_v22 = vld [vmem:[#allocation15_spill] sm:$0xff] }
 0x6a6   : > { %v10832_v31 = vadd.f32 -1.4531521, %v10823_v1  ;;  %v11154_v4 = vmul.f32 0.0001, %v11109_v28  ;;  %v10957_v27 = vmul.f32 0.5, %v10948_v44  ;;  %v23960_v62 = vadd.f32 %v10986_v41, %v26203_v19 }
 0x6a7   : > { %v11198_v52 = vmul.f32 %v23950_v2, %v11140_v7  ;;  %19061 = vrcp.f32 %v10797_v48  ;;  %v11199_v59 = vmul.f32 %v23950_v2, %v11141_v50  ;;  %v11200_v35 = vmul.f32 %v23950_v2, %v11142_v24  ;;  %v23977_v7 = vpop.permute.xlu1 %11208 }
 0x6a8   : > { %v10841_v23 = vmul.f32 %v23948_v49, %v10832_v31  ;;  %v11163_v41 = vadd.f32 %v11154_v4, %v11055_v42  ;;  %v10966_v8 = vsub.f32 1.0, %v10957_v27  ;;  %v11011_v16 = vmul.f32 %v10957_v27, %v23576_v12  ;;  %v24005_v31 = vpop.permute.xlu0 %11221 }
 0x6a9   : > { %v11029_v11 = vmul.f32 %v26204_v0, %v10957_v27  ;;  %v11201_v17 = vmul.f32 %v23950_v2, %v11143_v29  ;;  %v11202_v61 = vmul.f32 %v23950_v2, %v11144_v34  ;;  %v11203_v50 = vmul.f32 %v23950_v2, %v11145_v47  ;;  %v26206_v27 = vld [vmem:[#allocation16_spill] sm:$0xff] }
 0x6aa   : > { %v10850_v55 = vadd.f32 1.4214138, %v10841_v23  ;;  %v11181_v37 = vsub.f32 %v11163_v41, %v11172_v3  ;;  %v11020_v5 = vadd.f32 %v11011_v16, %v23784_v54  ;;  %v11065_v40 = vmul.f32 %v10966_v8, %v23576_v12  ;;  %v26209_v16 = vld [vmem:[#allocation12_spill] sm:$0xff] }
 0x6ab   : > { %v11038_v24 = vadd.f32 %v11029_v11, %v23888_v51  ;;  %v11083_v39 = vmul.f32 %v26204_v0, %v10966_v8  ;;  %v11211_v26 = vadd.f32 %v23977_v7, %v11198_v52  ;;  %v11212_v46 = vadd.f32 %v23977_v7, %v11199_v59  ;;  %v26207_v52 = vld [vmem:[#allocation24_spill] sm:$0xff]  ;;  %v26208_v59 = vld [vmem:[#allocation30_spill] sm:$0xff] }
 0x6ac   : > { %v10859_v33 = vmul.f32 %v23948_v49, %v10850_v55  ;;  %v11190_v13 = vmax.f32 %v11181_v37, 0.0  ;;  %v11047_v29 = vmul.f32 %v11020_v5, %v11020_v5  ;;  %v11074_v34 = vsub.f32 %v23784_v54, %v11065_v40 }
 0x6ad   : > { %v11119_v43 = vsub.f32 0.0, %v11020_v5  ;;  %v11092_v30 = vsub.f32 %v11083_v39, %v23888_v51  ;;  %v11213_v56 = vadd.f32 %v23977_v7, %v11200_v35  ;;  %v11214_v12 = vadd.f32 %v23977_v7, %v11201_v17  ;;  %v26210_v17 = vld [vmem:[#allocation31_spill] sm:$0xff] }
 0x6ae   : > { %v10868_v45 = vadd.f32 -0.28449672, %v10859_v33  ;;  %v11056_v20 = vsub.f32 %v11038_v24, %v11047_v29  ;;  %v11101_v42 = vmul.f32 %v11074_v34, %v11074_v34  ;;  %v11137_v10 = vmul.f32 0.01, %v11074_v34 }
 0x6af   : > { %v11128_v63 = vmul.f32 %v11119_v43, %v11074_v34  ;;  %v23996_v58 = vpop.eup %19059  ;;  %v11215_v1 = vadd.f32 %v23977_v7, %v11202_v61  ;;  %v11216_v54 = vadd.f32 %v23977_v7, %v11203_v50  ;;  %v24002_v28 = vmul.f32 %v11211_v26, %v26205_v22  ;;  %v26211_v50 = vld [vmem:[#allocation18_spill] sm:$0xff] }
 0x6b0   : > { %v10877_v9 = vmul.f32 %v23948_v49, %v10868_v45  ;;  %v11110_v51 = vsub.f32 %v11092_v30, %v11101_v42  ;;  %v11146_v47 = vsub.f32 %v11020_v5, %v11137_v10  ;;  %v10770_v3 = vmul.f32 0.3989423, %v23996_v58  ;;  %v26212_v43 = vld [vmem:[#allocation6_spill] sm:$0xff] }
 0x6b1   : > { %v11173_v44 = vmul.f32 0.02, %v11128_v63  ;;  %v24007_v48 = vpop.eup %19061  ;;  %v24010_v19 = vmul.f32 %v11212_v46, %v26206_v27  ;;  %v11248_v23 = vmul.f32 %v11213_v56, %v26207_v52  ;;  %v24014_v35 = vmul.f32 %v11214_v12, %v26208_v59 }
 0x6b2   : > { %v10886_v4 = vadd.f32 0.2548296, %v10877_v9  ;;  %v11155_v41 = vmul.f32 0.0001, %v11110_v51  ;;  %vm10922_vm11 = vcmp.ge.f32.partialorder %v23712_v57, 0.0  ;;  %v24019_v0 = vmul.f32 %v10770_v3, %v26209_v16 }
 0x6b3   : > { %v10824_v8 = vmul.f32 1.0614054, %v24007_v48  ;;  %v11204_v11 = vmul.f32 %v23950_v2, %v11146_v47  ;;  %v11250_v61 = vmul.f32 %v11215_v1, %v26210_v17  ;;  %v11251_v37 = vmul.f32 %v11216_v54, %v26211_v50  ;;  %11266 = vst [vmem:[#allocation3 + $0x18] sm:$0xff] %v11248_v23 }
 0x6b4   : > { %v10895_v55 = vmul.f32 %v23948_v49, %v10886_v4  ;;  %v11224_v5 = vmul.f32 %v24005_v31, %v23882_v15  ;;  %v11164_v24 = vadd.f32 %v11155_v41, %v11056_v20  ;;  %v24029_v39 = vmul.f32 %v24019_v0, %v26202_v21 }
 0x6b5   : > { %v10833_v40 = vadd.f32 -1.4531521, %v10824_v8  ;;  %v11217_v33 = vadd.f32 %v23977_v7, %v11204_v11  ;;  %11268 = vst [vmem:[#allocation3 + $0x28] sm:$0xff] %v11250_v61  ;;  %11269 = vst [vmem:[#allocation3 + $0x30] sm:$0xff] %v11251_v37  ;;  %v11225_v49 = vmul.f32 %v24005_v31, %v23915_v6  ;;  %v11226_v46 = vmul.f32 %v24005_v31, %v23917_v53 }
 0x6b6   : > { %v10904_v26 = vmul.f32 %v23813_v14, %v10895_v55  ;;  %v11227_v15 = vmul.f32 %v24005_v31, %v23952_v60  ;;  %v11182_v29 = vsub.f32 %v11164_v24, %v11173_v44  ;;  %v11228_v14 = vmul.f32 %v24005_v31, %v23957_v18 }
 0x6b7   : > { %v10842_v34 = vmul.f32 %v24007_v48, %v10833_v40  ;;  %v24041_v30 = vmul.f32 %v11217_v33, %v26212_v43  ;;  %v11229_v56 = vmul.f32 %v24005_v31, %v11190_v13  ;;  %v24047_v6 = vmul.f32 %v11224_v5, %v26205_v22 }
 0x6b8   : > { %v10913_v45 = vsub.f32 1.0, %v10904_v26  ;;  %v24050_v53 = vmul.f32 %v11225_v49, %v26206_v27  ;;  %v11191_v12 = vmax.f32 %v11182_v29, 0.0  ;;  %v24054_v20 = vmul.f32 %v11226_v46, %v26207_v52  ;;  %v26213_v29 = vld [vmem:[#allocation9_spill] sm:$0xff] }
 0x6b9   : > { %v10851_v60 = vadd.f32 1.4214138, %v10842_v34  ;;  %11270 = vst [vmem:[#allocation3 + $0x38] sm:$0xff] %v24041_v30  ;;  %v24057_v42 = vmul.f32 %v11227_v15, %v26208_v59  ;;  %v11259_v63 = vmul.f32 %v11228_v14, %v26210_v17  ;;  %v24061_v13 = vmul.f32 %v11229_v56, %v26211_v50 }
 0x6ba   : > { %v10931_v18 = vsub.f32 0.0, %v10913_v45  ;;  %v24065_v10 = vpack.i.bf16 %v24010_v19, %v24002_v28  ;;  %v11230_v1 = vmul.f32 %v24005_v31, %v11191_v12  ;;  %v24071_v54 = vpack.i.bf16 %v24050_v53, %v24047_v6 }
 0x6bb   : > { %v10860_v9 = vmul.f32 %v24007_v48, %v10851_v60  ;;  %v24074_v51 = vpack.i.bf16 %v24014_v35, %v11248_v23  ;;  %11277 = vst [vmem:[#allocation3 + $0x80] sm:$0xff] %v11259_v63  ;;  %v24082_v44 = vpack.i.bf16 %v24057_v42, %v24054_v20  ;;  %v24084_v3 = vpack.i.bf16 %v11251_v37, %v11250_v61 }
 0x6bc   : > { %v10940_v47 = vsel %vm10922_vm11, %v10913_v45, %v10931_v18  ;;  %18745 = vrot.lane.b32.xlu1 %v24065_v10, %s19287_s9  ;;  %v24087_v4 = vpack.i.bf16 %v24061_v13, %v11259_v63  ;;  %v24090_v16 = vmul.f32 %v11230_v1, %v26212_v43  ;;  %v24093_v57 = vpack.i.bf16 %v11248_v23, %v24010_v19 }
 0x6bd   : > { %v10949_v41 = vadd.f32 1.0, %v10940_v47  ;;  %v10869_v8 = vadd.f32 -0.28449672, %v10860_v9  ;;  %18765 = vrot.lane.b32.xlu0 %v24082_v44, %s19287_s9  ;;  %v24099_v11 = vpack.i.bf16 %v24054_v20, %v24050_v53  ;;  %v24103_v55 = vpack.i.bf16 %v24047_v6, %v24002_v28 }
 0x6be   : > { %v24106_v5 = vpack.i.bf16 %v11250_v61, %v24014_v35  ;;  %v24109_v24 = vpack.i.bf16 %v11259_v63, %v24057_v42  ;;  %v24113_v33 = vpack.i.bf16 %v24041_v30, %v11251_v37  ;;  %v24117_v26 = vpack.i.bf16 %v24090_v16, %v24061_v13 }
 0x6bf   : > { %v10958_v40 = vmul.f32 0.5, %v10949_v41  ;;  %v10878_v23 = vmul.f32 %v24007_v48, %v10869_v8  ;;  %v17049_v61 = vpack.c.bf16 %v24050_v53, %v24010_v19  ;;  %v17051_v49 = vpack.c.bf16 %v24047_v6, %v24002_v28  ;;  %v16038_v28 = vld [vmem:[%s25773_s4 + $0x18] sm:$0xff] }
 0x6c0   : > { %18750 = vrot.lane.b32.xlu1 %v24071_v54, %s19287_s9  ;;  %v17053_v14 = vpack.c.bf16 %v24057_v42, %v24014_v35  ;;  %vm10923_vm12 = vcmp.ge.f32.partialorder %v23935_v32, 0.0  ;;  %v13907_v6 = vld [vmem:[#allocation3 + $0x28] sm:$0xff] }
 0x6c1   : > { %v10967_v46 = vsub.f32 1.0, %v10958_v40  ;;  %v11012_v15 = vmul.f32 %v10958_v40, %v26201_v36  ;;  %v11030_v34 = vmul.f32 %v26213_v29, %v10958_v40  ;;  %v10887_v37 = vadd.f32 0.2548296, %v10878_v23  ;;  %18775 = vrot.lane.b32.xlu0 %v24087_v4, %s19287_s9 }
 0x6c2   : > { %v19273_v42 = vld [vmem:[#allocation3 + $0x80] sm:$0xff] }
 0x6c3   : > { %v11021_v45 = vadd.f32 %v11012_v15, %v23924_v25  ;;  %v11039_v56 = vadd.f32 %v11030_v34, %v23931_v38  ;;  %v11066_v12 = vmul.f32 %v10967_v46, %v26201_v36  ;;  %v11084_v60 = vmul.f32 %v26213_v29, %v10967_v46 }
 0x6c4   : > { %v10896_v18 = vmul.f32 %v24007_v48, %v10887_v37  ;;  %18760 = vrot.lane.b32.xlu1 %v24074_v51, %s19287_s9 }
 0x6c5   : > { %v11048_v63 = vmul.f32 %v11021_v45, %v11021_v45  ;;  %v11075_v9 = vsub.f32 %v23924_v25, %v11066_v12  ;;  %v11093_v1 = vsub.f32 %v11084_v60, %v23931_v38  ;;  %v11120_v47 = vsub.f32 0.0, %v11021_v45 }
 0x6c6   : > { %v10905_v41 = vmul.f32 %v23996_v58, %v10896_v18 }
 0x6c7   : > { %v11057_v8 = vsub.f32 %v11039_v56, %v11048_v63  ;;  %v11102_v40 = vmul.f32 %v11075_v9, %v11075_v9  ;;  %v11129_v23 = vmul.f32 %v11120_v47, %v11075_v9  ;;  %v11138_v15 = vmul.f32 0.01, %v11075_v9  ;;  %v26214_v63 = vld [vmem:[#allocation34_spill] sm:$0xff] }
 0x6c8   : > { %v10914_v36 = vsub.f32 1.0, %v10905_v41  ;;  %18770 = vrot.lane.b32.xlu1 %v24084_v3, %s19287_s9 }
 0x6c9   : > { %v11111_v48 = vsub.f32 %v11093_v1, %v11102_v40  ;;  %v11147_v46 = vsub.f32 %v11021_v45, %v11138_v15  ;;  %v11174_v12 = vmul.f32 0.02, %v11129_v23 }
 0x6ca   : > { %v10932_v29 = vsub.f32 0.0, %v10914_v36 }
 0x6cb   : > { %v11156_v34 = vmul.f32 0.0001, %v11111_v48  ;;  %v11205_v25 = vmul.f32 %v23950_v2, %v11147_v46 }
 0x6cc   : > { %v10941_v38 = vsel %vm10923_vm12, %v10914_v36, %v10932_v29 }
 0x6cd   : > { %v11165_v37 = vadd.f32 %v11156_v34, %v11057_v8  ;;  %v10950_v58 = vadd.f32 1.0, %v10941_v38  ;;  %v11218_v56 = vadd.f32 %v23977_v7, %v11205_v25 }
 0x6cf   : > { %v11183_v60 = vsub.f32 %v11165_v37, %v11174_v12  ;;  %v10959_v18 = vmul.f32 0.5, %v10950_v58  ;;  %v11253_v9 = vmul.f32 %v11218_v56, %v26214_v63 }
 0x6d1   : > { %v11192_v47 = vmax.f32 %v11183_v60, 0.0  ;;  %v10968_v41 = vsub.f32 1.0, %v10959_v18  ;;  %v11013_v45 = vmul.f32 %v10959_v18, %v26202_v21  ;;  %v11031_v1 = vmul.f32 %v23960_v62, %v10959_v18  ;;  %11271 = vst [vmem:[#allocation3 + $0x40] sm:$0xff] %v11253_v9 }
 0x6d2   : > { %v18779_v32 = vpack.i.bf16 %v11253_v9, %v24041_v30 }
 0x6d3   : > { %v11022_v40 = vadd.f32 %v11013_v45, %v24019_v0  ;;  %v11040_v8 = vadd.f32 %v11031_v1, %v24029_v39  ;;  %v11067_v23 = vmul.f32 %v10968_v41, %v26202_v21  ;;  %v11085_v15 = vmul.f32 %v23960_v62, %v10968_v41  ;;  %v19271_v41 = vld [vmem:[%s25775_s6 + $0x8] ss:$0 sm:$0xff] }
 0x6d4   : > { %v11231_v36 = vmul.f32 %v24005_v31, %v11192_v47  ;;  %18780 = vrot.lane.b32.xlu1 %v18779_v32, %s19287_s9 }
 0x6d5   : > { %v11049_v48 = vmul.f32 %v11022_v40, %v11022_v40  ;;  %v11076_v46 = vsub.f32 %v24019_v0, %v11067_v23  ;;  %v11094_v29 = vsub.f32 %v11085_v15, %v24029_v39  ;;  %v11121_v34 = vsub.f32 0.0, %v11022_v40 }
 0x6d6   : > { %v24159_v30 = vmul.f32 %v11231_v36, %v26214_v63 }
 0x6d7   : > { %v11058_v25 = vsub.f32 %v11040_v8, %v11049_v48  ;;  %v11103_v38 = vmul.f32 %v11076_v46, %v11076_v46  ;;  %v11130_v37 = vmul.f32 %v11121_v34, %v11076_v46  ;;  %v11139_v12 = vmul.f32 0.01, %v11076_v46  ;;  %v26215_v8 = vld [vmem:[#allocation33_spill] sm:$0xff] }
 0x6d8   : > { %v18784_v21 = vpack.i.bf16 %v24159_v30, %v24090_v16  ;;  %v13910_v35 = vld [vmem:[#allocation3 + $0x40] sm:$0xff] }
 0x6d9   : > { %v11112_v62 = vsub.f32 %v11094_v29, %v11103_v38  ;;  %v11148_v58 = vsub.f32 %v11022_v40, %v11139_v12  ;;  %v11175_v39 = vmul.f32 0.02, %v11130_v37 }
 0x6da   : > { %18785 = vrot.lane.b32.xlu0 %v18784_v21, %s19287_s9 }
 0x6db   : > { %v11157_v56 = vmul.f32 0.0001, %v11112_v62  ;;  %v11206_v0 = vmul.f32 %v23950_v2, %v11148_v58 }
 0x6dd   : > { %v11166_v60 = vadd.f32 %v11157_v56, %v11058_v25  ;;  %v11219_v18 = vadd.f32 %v23977_v7, %v11206_v0 }
 0x6de   : > { %18790 = vrot.lane.b32.xlu0 %v24065_v10, %s19286_s8 }
 0x6df   : > { %v11184_v47 = vsub.f32 %v11166_v60, %v11175_v39  ;;  %v11254_v45 = vmul.f32 %v19271_v41, %v11219_v18  ;;  %v15991_v60 = vld [vmem:[%s25772_s3 + $0x10] sm:$0xff] }
 0x6e1   : > { %v11193_v1 = vmax.f32 %v11184_v47, 0.0  ;;  %11272 = vst [vmem:[#allocation3 + $0x48] sm:$0xff] %v11254_v45  ;;  %v18879_v40 = vpack.i.bf16 %v11254_v45, %v11253_v9 }
 0x6e2   : > { %18805 = vrot.lane.b32.xlu0 %v26215_v8, %s19286_s8  ;;  %v24236_v8 = vld [vmem:[#allocation2] sm:$0xff] }
 0x6e3   : > { %v11232_v2 = vmul.f32 %v24005_v31, %v11193_v1  ;;  %v12269_v31 = vld [vmem:[#allocation3 + $0x50] sm:$0xff] }
 0x6e5   : > { %v11263_v23 = vmul.f32 %v19271_v41, %v11232_v2  ;;  %v24242_v2 = vld [vmem:[%s25772_s3 + $0x18] sm:$0xff] }
 0x6e6   : > { %18815 = vrot.lane.b32.xlu0 %v24082_v44, %s19286_s8  ;;  %v18756_v44 = vpop.permute.xlu0 %18755 }
 0x6e7   : > { %11281 = vst [vmem:[#allocation3 + $0xa0] sm:$0xff] %v11263_v23  ;;  %v18794_v7 = vpack.i.bf16 %v11263_v23, %v11254_v45  ;;  %v18884_v10 = vpack.i.bf16 %v11263_v23, %v24159_v30 }
 0x6e9   : > { %18795 = vrot.lane.b32.xlu1 %v18794_v7, %s19287_s9 }
 0x6ea   : > { %18825 = vrot.lane.b32.xlu0 %v24087_v4, %s19286_s8 }
 0x6ed   : > { %18800 = vrot.lane.b32.xlu1 %v24071_v54, %s19286_s8  ;;  %v12279_v54 = vld [vmem:[#allocation3 + $0xa8] sm:$0xff] }
 0x6ee   : > { %18835 = vrot.lane.b32.xlu0 %v18784_v21, %s19286_s8 }
 0x6f1   : > { %18810 = vrot.lane.b32.xlu1 %v24074_v51, %s19286_s8  ;;  %v18889_v51 = vpack.i.bf16 %v12279_v54, %v12269_v31 }
 0x6f2   : > { %18840 = vrot.lane.b32.xlu0 %v24093_v57, %s19290_s12 }
 0x6f5   : > { %18820 = vrot.lane.b32.xlu1 %v24084_v3, %s19286_s8 }
 0x6f6   : > { %18855 = vrot.lane.b32.xlu0 %v24103_v55, %s19290_s12 }
 0x6f9   : > { %18830 = vrot.lane.b32.xlu1 %v18779_v32, %s19286_s8 }
 0x6fa   : > { %18865 = vrot.lane.b32.xlu0 %v24109_v24, %s19290_s12 }
 0x6fd   : > { %18845 = vrot.lane.b32.xlu1 %v18794_v7, %s19286_s8 }
 0x6fe   : > { %18875 = vrot.lane.b32.xlu0 %v24117_v26, %s19290_s12 }
 0x701   : > { %18850 = vrot.lane.b32.xlu1 %v24099_v11, %s19290_s12 }
 0x702   : > { %18885 = vrot.lane.b32.xlu0 %v18884_v10, %s19290_s12 }
 0x705   : > { %18860 = vrot.lane.b32.xlu1 %v24106_v5, %s19290_s12 }
 0x706   : > { %18895 = vrot.lane.b32.xlu0 %v24093_v57, %s19292_s15  ;;  %v18758_v57 = vunpack.i.h.bf16 %v18756_v44 }
 0x709   : > { %18870 = vrot.lane.b32.xlu1 %v24113_v33, %s19290_s12 }
 0x70a   : > { %18905 = vrot.lane.b32.xlu0 %v24103_v55, %s19292_s15  ;;  %v18757_v55 = vunpack.i.l.bf16 %v18756_v44 }
 0x70d   : > { %18880 = vrot.lane.b32.xlu1 %v18879_v40, %s19290_s12 }
 0x70e   : > { %18915 = vrot.lane.b32.xlu0 %v24109_v24, %s19292_s15 }
 0x711   : > { %18890 = vrot.lane.b32.xlu1 %v18889_v51, %s19290_s12 }
 0x712   : > { %18925 = vrot.lane.b32.xlu0 %v24117_v26, %s19292_s15 }
 0x715   : > { %18900 = vrot.lane.b32.xlu1 %v24099_v11, %s19292_s15 }
 0x716   : > { %18935 = vrot.lane.b32.xlu0 %v18884_v10, %s19292_s15 }
 0x719   : > { %18910 = vrot.lane.b32.xlu1 %v24106_v5, %s19292_s15 }
 0x71d   : > { %18920 = vrot.lane.b32.xlu1 %v24113_v33, %s19292_s15 }
 0x721   : > { %18930 = vrot.lane.b32.xlu1 %v18879_v40, %s19292_s15 }
 0x725   : > { %18940 = vrot.lane.b32.xlu1 %v18889_v51, %s19292_s15 }
 0x72e   : > { %v18746_v3 = vpop.permute.xlu1 %18745 }
 0x72f   : > { %v18766_v4 = vpop.permute.xlu0 %18765  ;;  %v18748_v24 = vunpack.i.h.bf16 %v18746_v3  ;;  %v18747_v26 = vunpack.i.l.bf16 %v18746_v3 }
 0x730   : > { %v18768_v9 = vunpack.i.h.bf16 %v18766_v4  ;;  %v18767_v32 = vunpack.i.l.bf16 %v18766_v4 }
 0x731   : > { %v11367_v48 = vsel %vm1650_vm3, %v18757_v55, %v18747_v26  ;;  %v11368_v46 = vsel %vm1650_vm3, %v18747_v26, %v18748_v24 }
 0x732   : > { %v18751_v11 = vpop.permute.xlu1 %18750  ;;  %v11379_v12 = vsel %vm1650_vm3, %v18767_v32, %v18768_v9 }
 0x733   : > { %v18753_v15 = vunpack.i.h.bf16 %v18751_v11  ;;  %v18752_v36 = vunpack.i.l.bf16 %v18751_v11  ;;  %v18776_v5 = vpop.permute.xlu0 %18775 }
 0x734   : > { %v18778_v58 = vunpack.i.h.bf16 %v18776_v5  ;;  %v18777_v56 = vunpack.i.l.bf16 %v18776_v5 }
 0x735   : > { %v11376_v33 = vsel %vm1650_vm3, %v18758_v57, %v18752_v36  ;;  %v11377_v29 = vsel %vm1650_vm3, %v18752_v36, %v18753_v15  ;;  %v11378_v37 = vsel %vm1650_vm3, %v18753_v15, %v18767_v32 }
 0x736   : > { %v16971_v34 = vpack.c.bf16 %v11376_v33, %v11367_v48  ;;  %v18761_v25 = vpop.permute.xlu1 %18760  ;;  %v16969_v38 = vpack.c.bf16 %v11377_v29, %v11368_v46  ;;  %v11381_v40 = vsel %vm1650_vm3, %v18777_v56, %v18778_v58  ;;  %v11380_v7 = vsel %vm1650_vm3, %v18768_v9, %v18777_v56 }
 0x737   : > { %v18763_v21 = vunpack.i.h.bf16 %v18761_v25  ;;  %v18762_v62 = vunpack.i.l.bf16 %v18761_v25 }
 0x738   : > { %16970 = vmatprep.subr.bf16.mxu0 %v16969_v38 }
 0x739   : > { %v11369_v0 = vsel %vm1650_vm3, %v18748_v24, %v18762_v62  ;;  %16972 = vmatpush1.bf16.msra.mxu0 %v16971_v34  ;;  %v11370_v39 = vsel %vm1650_vm3, %v18762_v62, %v18763_v21 }
 0x73a   : > { %v16975_v18 = vpack.c.bf16 %v11378_v37, %v11369_v0  ;;  %v18771_v47 = vpop.permute.xlu1 %18770  ;;  %v16973_v41 = vpack.c.bf16 %v11379_v12, %v11370_v39 }
 0x73b   : > { %v18773_v45 = vunpack.i.h.bf16 %v18771_v47  ;;  %v18772_v1 = vunpack.i.l.bf16 %v18771_v47 }
 0x73c   : > { %15993 = vmatmul.mubr.msk.f32.vlgmr.msra.gmra.mrb[10].mxu0 %vm6444_vm7, %v15991_v60  ;;  %16974 = vmatprep.subr.bf16.mxu0 %v16973_v41 }
 0x73d   : > { %11479 = vmatprep.mubr.f32.mxu0 %v24236_v8  ;;  %16976 = vmatpush1.bf16.msra.mxu0 %v16975_v18  ;;  %v11372_v23 = vsel %vm1650_vm3, %v18772_v1, %v18773_v45  ;;  %v11371_v31 = vsel %vm1650_vm3, %v18763_v21, %v18772_v1 }
 0x73e   : > { %v16977_v10 = vpack.c.bf16 %v11381_v40, %v11372_v23  ;;  %v16979_v54 = vpack.c.bf16 %v11380_v7, %v11371_v31 }
 0x740   : > { %15994 = vmatmul.mubr.msk.f32.gmra.mrb[12].mxu0 %vm6444_vm7, %v24242_v2  ;;  %16978 = vmatprep.subr.bf16.mxu0 %v16977_v10 }
 0x741   : > { %11550 = vmatprep.mubr.f32.mxu0 %v24236_v8 }
 0x744   : > { %15995 = vmatmul.mubr.msk.f32.vlgmr.msra.gmra.mrb[14].mxu0 %vm6444_vm7, %v15991_v60 }
 0x745   : > { %11556 = vmatprep.mubr.f32.mxu0 %v24236_v8  ;;  %16980 = vmatpush1.bf16.msra.mxu0 %v16979_v54 }
 0x746   : > { %v18781_v51 = vpop.permute.xlu1 %18780 }
 0x747   : > { %v18783_v44 = vunpack.i.h.bf16 %v18781_v51  ;;  %v18782_v3 = vunpack.i.l.bf16 %v18781_v51 }
 0x748   : > { %15996 = vmatmul.mubr.msk.f32.gmra.mrb[16].mxu0 %vm6444_vm7, %v24242_v2 }
 0x749   : > { %11627 = vmatprep.mubr.f32.mxu0 %v24236_v8  ;;  %v11373_v24 = vsel %vm1650_vm3, %v18773_v45, %v18782_v3  ;;  %v11374_v11 = vsel %vm1650_vm3, %v18782_v3, %v18783_v44 }
 0x74c   : > { %v18786_v4 = vpop.permute.xlu0 %18785  ;;  %15997 = vmatmul.mubr.msk.f32.vlgmr.msra.gmra.mrb[18].mxu0 %vm6444_vm7, %v15991_v60 }
 0x74d   : > { %v18788_v57 = vunpack.i.h.bf16 %v18786_v4  ;;  %v18787_v55 = vunpack.i.l.bf16 %v18786_v4  ;;  %11633 = vmatprep.mubr.f32.mxu0 %v24236_v8 }
 0x74f   : > { %v11382_v26 = vsel %vm1650_vm3, %v18778_v58, %v18787_v55  ;;  %v11383_v9 = vsel %vm1650_vm3, %v18787_v55, %v18788_v57  ;;  %v24289_v55 = vld [vmem:[%s25772_s3] sm:$0xff] }
 0x750   : > { %v16983_v32 = vpack.c.bf16 %v11382_v26, %v11373_v24  ;;  %v18791_v15 = vpop.permute.xlu0 %18790  ;;  %15998 = vmatmul.mubr.msk.f32.gmra.mrb[20].mxu0 %vm6444_vm7, %v24242_v2  ;;  %v16981_v36 = vpack.c.bf16 %v11383_v9, %v11374_v11 }
 0x751   : > { %11704 = vmatprep.mubr.f32.mxu0 %v24236_v8  ;;  %v18793_v34 = vunpack.i.h.bf16 %v18791_v15  ;;  %v18792_v38 = vunpack.i.l.bf16 %v18791_v15 }
 0x752   : > { %16982 = vmatprep.subr.bf16.mxu0 %v16981_v36 }
 0x753   : > { %16984 = vmatpush1.bf16.msra.mxu0 %v16983_v32  ;;  %v11833_v45 = vsel %vm1067_vm2, %v18792_v38, %v18793_v34 }
 0x754   : > { %v18806_v5 = vpop.permute.xlu0 %18805 }
 0x755   : > { %v18807_v25 = vunpack.i.l.bf16 %v18806_v5  ;;  %v18808_v37 = vunpack.i.h.bf16 %v18806_v5 }
 0x756   : > { %15999 = vmatmul.mubr.msk.f32.vlgmr.msra.gmra.mrb[22].mxu0 %vm6444_vm7, %v15991_v60 }
 0x757   : > { %11710 = vmatprep.mubr.f32.mxu0 %v24236_v8 }
 0x758   : > { %v24266_v48 = vpop.permute.xlu0 %18815 }
 0x759   : > { %v18818_v56 = vunpack.i.h.bf16 %v24266_v48  ;;  %v18817_v0 = vunpack.i.l.bf16 %v24266_v48 }
 0x75a   : > { %16000 = vmatmul.mubr.msk.f32.gmra.mrb[24].mxu0 %vm6444_vm7, %v24242_v2 }
 0x75b   : > { %v18796_v33 = vpop.permute.xlu1 %18795  ;;  %16384 = vmatprep.mubr.msk.f32.mxu0 %vm6444_vm7, %v15991_v60  ;;  %v11832_v60 = vsel %vm1067_vm2, %v18807_v25, %v18792_v38  ;;  %v11844_v10 = vsel %vm1067_vm2, %v18817_v0, %v18818_v56 }
 0x75c   : > { %v18798_v46 = vunpack.i.h.bf16 %v18796_v33  ;;  %v18797_v29 = vunpack.i.l.bf16 %v18796_v33  ;;  %v18826_v47 = vpop.permute.xlu0 %18825  ;;  %v24299_v33 = vld [vmem:[%s25772_s3 + $0x8] sm:$0xff] }
 0x75d   : > { %v18828_v7 = vunpack.i.h.bf16 %v18826_v47 }
 0x75e   : > { %v11375_v12 = vsel %vm1650_vm3, %v18783_v44, %v18797_v29  ;;  %v11384_v21 = vsel %vm1650_vm3, %v18788_v57, %v18798_v46  ;;  %v18827_v44 = vunpack.i.l.bf16 %v18826_v47 }
 0x75f   : > { %v18801_v62 = vpop.permute.xlu1 %18800  ;;  %v16985_v58 = vpack.c.bf16 %v11384_v21, %v11375_v12 }
 0x760   : > { %v18803_v39 = vunpack.i.h.bf16 %v18801_v62  ;;  %v18802_v18 = vunpack.i.l.bf16 %v18801_v62  ;;  %v18836_v11 = vpop.permute.xlu0 %18835 }
 0x761   : > { %16986 = vmatprep.subr.bf16.mxu0 %v16985_v58  ;;  %v18838_v36 = vunpack.i.h.bf16 %v18836_v11  ;;  %v18837_v5 = vunpack.i.l.bf16 %v18836_v11 }
 0x762   : > { %v11841_v41 = vsel %vm1067_vm2, %v18808_v37, %v18802_v18  ;;  %16988 = vmatpush3.bf16.msra.mxu0 %v16985_v58  ;;  %v11842_v1 = vsel %vm1067_vm2, %v18802_v18, %v18803_v39  ;;  %v11843_v3 = vsel %vm1067_vm2, %v18803_v39, %v18817_v0  ;;  %v11845_v37 = vsel %vm1067_vm2, %v18818_v56, %v18827_v44 }
 0x763   : > { %v18811_v40 = vpop.permute.xlu1 %18810  ;;  %v16989_v23 = vpack.c.bf16 %v11842_v1, %v11833_v45  ;;  %v16991_v31 = vpack.c.bf16 %v11841_v41, %v11832_v60  ;;  %v11848_v21 = vsel %vm1067_vm2, %v18837_v5, %v18838_v36  ;;  %v11847_v60 = vsel %vm1067_vm2, %v18828_v7, %v18837_v5 }
 0x764   : > { %v18813_v54 = vunpack.i.h.bf16 %v18811_v40  ;;  %v18812_v51 = vunpack.i.l.bf16 %v18811_v40  ;;  %v24308_v0 = vpop.permute.xlu0 %18840 }
 0x765   : > { %16990 = vmatprep.subr.bf16.mxu0 %v16989_v23  ;;  %16385 = vmatmul.mubr.msk.f32.vlgmr.msra.gmra.mrb[26].mxu0 %vm6444_vm7, %v24242_v2  ;;  %v11846_v2 = vsel %vm1067_vm2, %v18827_v44, %v18828_v7  ;;  %v18843_v7 = vunpack.i.h.bf16 %v24308_v0 }
 0x766   : > { %v11834_v4 = vsel %vm1067_vm2, %v18793_v34, %v18812_v51  ;;  %16992 = vmatpush1.bf16.msra.mxu0 %v16991_v31  ;;  %v11835_v57 = vsel %vm1067_vm2, %v18812_v51, %v18813_v54  ;;  %11938 = vmatprep.mubr.f32.mxu0 %v24236_v8  ;;  %v18842_v51 = vunpack.i.l.bf16 %v24308_v0 }
 0x767   : > { %v18821_v24 = vpop.permute.xlu1 %18820  ;;  %v16993_v26 = vpack.c.bf16 %v11844_v10, %v11835_v57  ;;  %v16995_v9 = vpack.c.bf16 %v11843_v3, %v11834_v4 }
 0x768   : > { %v18823_v32 = vunpack.i.h.bf16 %v18821_v24  ;;  %v18822_v15 = vunpack.i.l.bf16 %v18821_v24  ;;  %v18856_v41 = vpop.permute.xlu0 %18855  ;;  %v12341_v24 = vsel %vm3963_vm6, %v18842_v51, %v18843_v7 }
 0x769   : > { %16994 = vmatprep.subr.bf16.mxu0 %v16993_v26  ;;  %16003 = vmatmul.mubr.msk.f32.vlgmr.msra.gmra.mrb[10].mxu0 %vm6444_vm7, %v24289_v55  ;;  %v18857_v57 = vunpack.i.l.bf16 %v18856_v41  ;;  %v18858_v26 = vunpack.i.h.bf16 %v18856_v41 }
 0x76a   : > { %16996 = vmatpush1.bf16.msra.mxu0 %v16995_v9  ;;  %v11837_v48 = vsel %vm1067_vm2, %v18822_v15, %v18823_v32  ;;  %11944 = vmatprep.mubr.f32.mxu0 %v24236_v8  ;;  %v11836_v38 = vsel %vm1067_vm2, %v18813_v54, %v18822_v15 }
 0x76b   : > { %v18831_v46 = vpop.permute.xlu1 %18830  ;;  %v16997_v29 = vpack.c.bf16 %v11846_v2, %v11837_v48  ;;  %v16999_v58 = vpack.c.bf16 %v11845_v37, %v11836_v38  ;;  %v24344_v48 = vld [vmem:[%s25774_s5] sm:$0xff] }
 0x76c   : > { %v18833_v34 = vunpack.i.h.bf16 %v18831_v46  ;;  %v18832_v25 = vunpack.i.l.bf16 %v18831_v46  ;;  %v24325_v44 = vpop.permute.xlu0 %18865  ;;  %v12340_v46 = vsel %vm3963_vm6, %v18857_v57, %v18842_v51  ;;  %v19313_v57 = vmov 12  }
 0x76d   : > { %16998 = vmatprep.subr.bf16.mxu0 %v16997_v29  ;;  %16004 = vmatmul.mubr.msk.f32.gmra.mrb[12].mxu0 %vm6444_vm7, %v24299_v33  ;;  %v18868_v11 = vunpack.i.h.bf16 %v24325_v44  ;;  %v18867_v9 = vunpack.i.l.bf16 %v24325_v44  ;;  %v19311_v29 = vmov 10  }
 0x76e   : > { %12015 = vmatprep.mubr.f32.mxu0 %v24236_v8  ;;  %v11839_v12 = vsel %vm1067_vm2, %v18832_v25, %v18833_v34  ;;  %v11838_v47 = vsel %vm1067_vm2, %v18823_v32, %v18832_v25  ;;  %18945 = vset.pattern.permute.xlu1 %v19311_v29 }
 0x76f   : > { %v18846_v62 = vpop.permute.xlu1 %18845  ;;  %v17001_v39 = vpack.c.bf16 %v11848_v21, %v11839_v12  ;;  %v17003_v23 = vpack.c.bf16 %v11847_v60, %v11838_v47  ;;  %v12352_v38 = vsel %vm3963_vm6, %v18867_v9, %v18868_v11  ;;  %13272 = vperm.xlu1 %18945, %v24344_v48  }
 0x770   : > { %v18848_v18 = vunpack.i.h.bf16 %v18846_v62  ;;  %v18847_v56 = vunpack.i.l.bf16 %v18846_v62 }
 0x771   : > { %16005 = vmatmul.mubr.msk.f32.vlgmr.msra.gmra.mrb[14].mxu0 %vm6444_vm7, %v24289_v55 }
 0x772   : > { %17000 = vmatpush1.bf16.msra.mxu0 %v16999_v58  ;;  %12021 = vmatprep.mubr.f32.mxu0 %v24236_v8  ;;  %v11840_v45 = vsel %vm1067_vm2, %v18833_v34, %v18847_v56  ;;  %v11849_v1 = vsel %vm1067_vm2, %v18838_v36, %v18848_v18  ;;  %v24336_v36 = vpop.permute.xlu0 %18875  ;;  %v19312_v58 = vmov 11  }
 0x773   : > { %17002 = vmatprep.subr.bf16.mxu0 %v17001_v39  ;;  %v18851_v40 = vpop.permute.xlu1 %18850  ;;  %v17005_v10 = vpack.c.bf16 %v11849_v1, %v11840_v45  ;;  %v18878_v25 = vunpack.i.h.bf16 %v24336_v36  ;;  %v18877_v21 = vunpack.i.l.bf16 %v24336_v36  ;;  %18944 = vset.pattern.permute.xlu0 %v19312_v58 }
 0x774   : > { %v18853_v31 = vunpack.i.h.bf16 %v18851_v40  ;;  %v18852_v54 = vunpack.i.l.bf16 %v18851_v40  ;;  %13285 = vperm.xlu0 %18944, %v24344_v48   ;;  %18946 = vset.pattern.permute.xlu1 %v19313_v57 }
 0x775   : > { %16006 = vmatmul.mubr.msk.f32.gmra.mrb[16].mxu0 %vm6444_vm7, %v24299_v33  ;;  %v12354_v60 = vsel %vm3963_vm6, %v18877_v21, %v18878_v25  ;;  %v12353_v51 = vsel %vm3963_vm6, %v18868_v11, %v18877_v21  ;;  %13793 = vperm.xlu1 %18946, %v24344_v48  }
 0x776   : > { %12092 = vmatprep.mubr.f32.mxu0 %v24236_v8  ;;  %v12350_v4 = vsel %vm3963_vm6, %v18852_v54, %v18853_v31  ;;  %v12349_v34 = vsel %vm3963_vm6, %v18858_v26, %v18852_v54  ;;  %v12351_v18 = vsel %vm3963_vm6, %v18853_v31, %v18867_v9  ;;  %v18886_v45 = vpop.permute.xlu0 %18885  ;;  %v24378_v54 = vld [vmem:[%s25772_s3 + $0x28] sm:$0xff] }
 0x777   : > { %v18861_v3 = vpop.permute.xlu1 %18860  ;;  %v17009_v32 = vpack.c.bf16 %v12350_v4, %v12341_v24  ;;  %v17011_v0 = vpack.c.bf16 %v12349_v34, %v12340_v46  ;;  %v18887_v31 = vunpack.i.l.bf16 %v18886_v45  ;;  %v19314_v24 = vmov 13  }
 0x778   : > { %v18863_v15 = vunpack.i.h.bf16 %v18861_v3  ;;  %v18862_v2 = vunpack.i.l.bf16 %v18861_v3  ;;  %18947 = vset.pattern.permute.xlu0 %v19314_v24 }
 0x779   : > { %16007 = vmatmul.mubr.msk.f32.vlgmr.msra.gmra.mrb[18].mxu0 %vm6444_vm7, %v24289_v55  ;;  %13806 = vperm.xlu0 %18947, %v24344_v48  }
 0x77a   : > { %17004 = vmatpush1.bf16.msra.mxu0 %v17003_v23  ;;  %12098 = vmatprep.mubr.f32.mxu0 %v24236_v8  ;;  %v12343_v62 = vsel %vm3963_vm6, %v18862_v2, %v18863_v15  ;;  %v12342_v39 = vsel %vm3963_vm6, %v18843_v7, %v18862_v2  ;;  %v24387_v9 = vpop.permute.xlu0 %18895  ;;  %v19315_v2 = vmov 14  }
 0x77b   : > { %17006 = vmatprep.subr.bf16.mxu0 %v17005_v10  ;;  %v24339_v5 = vpop.permute.xlu1 %18870  ;;  %v17013_v56 = vpack.c.bf16 %v12352_v38, %v12343_v62  ;;  %v17015_v1 = vpack.c.bf16 %v12351_v18, %v12342_v39  ;;  %18948 = vset.pattern.permute.xlu1 %v19315_v2  ;;  %v18897_v62 = vunpack.i.l.bf16 %v24387_v9 }
 0x77c   : > { %v18873_v37 = vunpack.i.h.bf16 %v24339_v5  ;;  %v18872_v12 = vunpack.i.l.bf16 %v24339_v5  ;;  %v12355_v5 = vsel %vm3963_vm6, %v18878_v25, %v18887_v31  ;;  %13819 = vperm.xlu1 %18948, %v24344_v48   ;;  %v18898_v48 = vunpack.i.h.bf16 %v24387_v9 }
 0x77d   : > { %16008 = vmatmul.mubr.msk.f32.gmra.mrb[20].mxu0 %vm6444_vm7, %v24299_v33 }
 0x77e   : > { %12169 = vmatprep.mubr.f32.mxu0 %v24236_v8  ;;  %v12345_v47 = vsel %vm3963_vm6, %v18872_v12, %v18873_v37  ;;  %v12344_v7 = vsel %vm3963_vm6, %v18863_v15, %v18872_v12  ;;  %v18906_v46 = vpop.permute.xlu0 %18905 }
 0x77f   : > { %v18881_v41 = vpop.permute.xlu1 %18880  ;;  %v17019_v26 = vpack.c.bf16 %v12353_v51, %v12344_v7  ;;  %v18908_v18 = vunpack.i.h.bf16 %v18906_v46 }
 0x780   : > { %v18883_v40 = vunpack.i.h.bf16 %v18881_v41  ;;  %v18882_v23 = vunpack.i.l.bf16 %v18881_v41 }
 0x781   : > { %16009 = vmatmul.mubr.msk.f32.vlgmr.msra.gmra.mrb[22].mxu0 %vm6444_vm7, %v24289_v55 }
 0x782   : > { %17008 = vmatpush3.bf16.msra.mxu0 %v17005_v10  ;;  %12175 = vmatprep.mubr.f32.mxu0 %v24236_v8  ;;  %v18888_v10 = vunpack.i.h.bf16 %v18886_v45  ;;  %v12347_v44 = vsel %vm3963_vm6, %v18882_v23, %v18883_v40  ;;  %v12346_v36 = vsel %vm3963_vm6, %v18873_v37, %v18882_v23  ;;  %v18916_v58 = vpop.permute.xlu0 %18915 }
 0x783   : > { %17010 = vmatprep.subr.bf16.mxu0 %v17009_v32  ;;  %v18891_v4 = vpop.permute.xlu1 %18890  ;;  %v17023_v12 = vpack.c.bf16 %v12355_v5, %v12346_v36  ;;  %v18917_v41 = vunpack.i.l.bf16 %v18916_v58 }
 0x784   : > { %v12356_v3 = vsel %vm3963_vm6, %v18887_v31, %v18888_v10  ;;  %v18893_v32 = vunpack.i.h.bf16 %v18891_v4  ;;  %v18892_v15 = vunpack.i.l.bf16 %v18891_v4 }
 0x785   : > { %16010 = vmatmul.mubr.msk.f32.gmra.mrb[24].mxu0 %vm6444_vm7, %v24299_v33  ;;  %v17021_v11 = vpack.c.bf16 %v12356_v3, %v12347_v44 }
 0x786   : > { %16391 = vmatprep.mubr.msk.f32.mxu0 %vm6444_vm7, %v24289_v55  ;;  %v24368_v55 = vld [vmem:[%s25772_s3 + $0x20] sm:$0xff]  ;;  %v12348_v29 = vsel %vm3963_vm6, %v18883_v40, %v18892_v15  ;;  %v12357_v34 = vsel %vm3963_vm6, %v18888_v10, %v18893_v32  ;;  %v18926_v40 = vpop.permute.xlu0 %18925  ;;  %v16025_v32 = vld [vmem:[%s25772_s3 + $0x30] sm:$0xff] }
 0x787   : > { %v18901_v38 = vpop.permute.xlu1 %18900  ;;  %v17025_v37 = vpack.c.bf16 %v12357_v34, %v12348_v29  ;;  %v18928_v7 = vunpack.i.h.bf16 %v18926_v40  ;;  %v18927_v4 = vunpack.i.l.bf16 %v18926_v40  ;;  %v16037_v40 = vld [vmem:[%s25773_s4 + $0x10] sm:$0xff] }
 0x788   : > { %v18903_v21 = vunpack.i.h.bf16 %v18901_v38  ;;  %v18902_v25 = vunpack.i.l.bf16 %v18901_v38 }
 0x789   : > { %16392 = vmatmul.mubr.msk.f32.vlgmr.msra.gmra.mrb[26].mxu0 %vm6444_vm7, %v24299_v33  ;;  %v17017_v33 = vpack.c.bf16 %v12354_v60, %v12345_v47  ;;  %v18907_v47 = vunpack.i.l.bf16 %v18906_v46  ;;  %v18918_v60 = vunpack.i.h.bf16 %v18916_v58  ;;  %v12840_v15 = vsel %vm5165_vm8, %v18927_v4, %v18928_v7 }
 0x78a   : > { %17012 = vmatpush1.bf16.msra.mxu0 %v17011_v0  ;;  %12446 = vmatprep.mubr.f32.mxu0 %v24236_v8  ;;  %v12836_v39 = vsel %vm5165_vm8, %v18902_v25, %v18903_v21  ;;  %v12835_v31 = vsel %vm5165_vm8, %v18908_v18, %v18902_v25  ;;  %v12837_v9 = vsel %vm5165_vm8, %v18903_v21, %v18917_v41  ;;  %v18936_v36 = vpop.permute.xlu0 %18935 }
 0x78b   : > { %17014 = vmatprep.subr.bf16.mxu0 %v17013_v56  ;;  %v18911_v0 = vpop.permute.xlu1 %18910  ;;  %v12827_v56 = vsel %vm5165_vm8, %v18897_v62, %v18898_v48  ;;  %v12826_v10 = vsel %vm5165_vm8, %v18907_v47, %v18897_v62  ;;  %v12838_v51 = vsel %vm5165_vm8, %v18917_v41, %v18918_v60  ;;  %v18938_v34 = vunpack.i.h.bf16 %v18936_v36 }
 0x78c   : > { %v17029_v45 = vpack.c.bf16 %v12836_v39, %v12827_v56  ;;  %v17031_v24 = vpack.c.bf16 %v12835_v31, %v12826_v10  ;;  %v18937_v38 = vunpack.i.l.bf16 %v18936_v36  ;;  %v12839_v21 = vsel %vm5165_vm8, %v18918_v60, %v18927_v4  ;;  %v13911_v10 = vld [vmem:[#allocation3 + $0x48] sm:$0xff]  ;;  %v13881_v36 = vld [vmem:[%s25773_s4 + $0x8] sm:$0xff] }
 0x78d   : > { %16015 = vmatmul.mubr.msk.f32.vlgmr.msra.gmra.mrb[10].mxu0 %vm6444_vm7, %v24368_v55 }
 0x78e   : > { %17016 = vmatpush1.bf16.msra.mxu0 %v17015_v1  ;;  %12452 = vmatprep.mubr.f32.mxu0 %v24236_v8  ;;  %v18913_v1 = vunpack.i.h.bf16 %v18911_v0  ;;  %v12841_v47 = vsel %vm5165_vm8, %v18928_v7, %v18937_v38  ;;  %v13883_v7 = vld [vmem:[#allocation2 + $0x10] sm:$0xff] }
 0x78f   : > { %17018 = vmatprep.subr.bf16.mxu0 %v17017_v33  ;;  %v18912_v33 = vunpack.i.l.bf16 %v18911_v0  ;;  %v18921_v23 = vpop.permute.xlu1 %18920 }
 0x790   : > { %v18923_v44 = vunpack.i.h.bf16 %v18921_v23  ;;  %v18922_v3 = vunpack.i.l.bf16 %v18921_v23  ;;  %v13908_v23 = vld [vmem:[#allocation3 + $0x30] sm:$0xff] }
 0x791   : > { %16016 = vmatmul.mubr.msk.f32.gmra.mrb[12].mxu0 %vm6444_vm7, %v24378_v54  ;;  %v12829_v57 = vsel %vm5165_vm8, %v18912_v33, %v18913_v1  ;;  %v17057_v53 = vpack.c.bf16 %v24061_v13, %v13908_v23  ;;  %v17061_v13 = vpack.c.bf16 %v24159_v30, %v13910_v35  ;;  %v13892_v30 = vld [vmem:[#allocation2 + $0x68] sm:$0xff] }
 0x792   : > { %12523 = vmatprep.mubr.f32.mxu0 %v24236_v8 }
 0x793   : > { %v18931_v2 = vpop.permute.xlu1 %18930 }
 0x794   : > { %v18932_v29 = vunpack.i.l.bf16 %v18931_v2 }
 0x795   : > { %16017 = vmatmul.mubr.msk.f32.vlgmr.msra.gmra.mrb[14].mxu0 %vm6444_vm7, %v24368_v55 }
 0x796   : > { %17020 = vmatpush1.bf16.msra.mxu0 %v17019_v26  ;;  %12529 = vmatprep.mubr.f32.mxu0 %v24236_v8  ;;  %v12828_v26 = vsel %vm5165_vm8, %v18898_v48, %v18912_v33  ;;  %v12842_v48 = vsel %vm5165_vm8, %v18937_v38, %v18938_v34  ;;  %v12832_v56 = vsel %vm5165_vm8, %v18923_v44, %v18932_v29  ;;  %v13905_v33 = vld [vmem:[#allocation3 + $0x18] sm:$0xff] }
 0x797   : > { %17022 = vmatprep.subr.bf16.mxu0 %v17021_v11  ;;  %v17033_v11 = vpack.c.bf16 %v12838_v51, %v12829_v57  ;;  %v17035_v5 = vpack.c.bf16 %v12837_v9, %v12828_v26  ;;  %v18941_v62 = vpop.permute.xlu1 %18940  ;;  %v17055_v19 = vpack.c.bf16 %v24054_v20, %v13905_v33  ;;  %v17059_v20 = vpack.c.bf16 %v19273_v42, %v13907_v6  ;;  %v13885_v57 = vld [vmem:[#allocation2 + $0x20] sm:$0xff]  ;;  %v13893_v26 = vld [vmem:[#allocation2 + $0x70] sm:$0xff] }
 0x798   : > { %v18943_v39 = vunpack.i.h.bf16 %v18941_v62  ;;  %v18942_v18 = vunpack.i.l.bf16 %v18941_v62  ;;  %v17069_v51 = vpack.c.bf16 %v13892_v30, %v13883_v7  ;;  %v13880_v9 = vld [vmem:[%s25773_s4] sm:$0xff] }
 0x799   : > { %16018 = vmatmul.mubr.msk.f32.gmra.mrb[16].mxu0 %vm6444_vm7, %v24378_v54 }
 0x79a   : > { %12600 = vmatprep.mubr.f32.mxu0 %v24236_v8  ;;  %v12843_v41 = vsel %vm5165_vm8, %v18938_v34, %v18943_v39  ;;  %v13889_v34 = vld [vmem:[#allocation2 + $0x40] sm:$0xff] }
 0x79d   : > { %16019 = vmatmul.mubr.msk.f32.vlgmr.msra.gmra.mrb[18].mxu0 %vm6444_vm7, %v24368_v55 }
 0x79e   : > { %17024 = vmatpush1.bf16.msra.mxu0 %v17023_v12  ;;  %12606 = vmatprep.mubr.f32.mxu0 %v24236_v8  ;;  %v16026_v12 = vld [vmem:[%s25772_s3 + $0x38] sm:$0xff] }
 0x79f   : > { %17026 = vmatprep.subr.bf16.mxu0 %v17025_v37 }
 0x7a1   : > { %16020 = vmatmul.mubr.msk.f32.gmra.mrb[20].mxu0 %vm6444_vm7, %v24378_v54 }
 0x7a2   : > { %12677 = vmatprep.mubr.f32.mxu0 %v24236_v8 }
 0x7a5   : > { %16021 = vmatmul.mubr.msk.f32.vlgmr.msra.gmra.mrb[22].mxu0 %vm6444_vm7, %v24368_v55 }
 0x7a6   : > { %17028 = vmatpush3.bf16.msra.mxu0 %v17025_v37  ;;  %12683 = vmatprep.mubr.f32.mxu0 %v24236_v8  ;;  %v12830_v37 = vsel %vm5165_vm8, %v18913_v1, %v18922_v3 }
 0x7a7   : > { %17030 = vmatprep.subr.bf16.mxu0 %v17029_v45  ;;  %v17039_v58 = vpack.c.bf16 %v12839_v21, %v12830_v37  ;;  %v17043_v45 = vpack.c.bf16 %v12841_v47, %v12832_v56  ;;  %v13899_v37 = vld [vmem:[#allocation2 + $0xa0] sm:$0xff]  ;;  %v13888_v21 = vld [vmem:[#allocation2 + $0x38] sm:$0xff] }
 0x7a9   : > { %16022 = vmatmul.mubr.msk.f32.gmra.mrb[24].mxu0 %vm6444_vm7, %v24378_v54 }
 0x7aa   : > { %16398 = vmatprep.mubr.msk.f32.mxu0 %vm6444_vm7, %v24368_v55  ;;  %v12831_v55 = vsel %vm5165_vm8, %v18922_v3, %v18923_v44  ;;  %v13894_v44 = vld [vmem:[#allocation2 + $0x78] sm:$0xff]  ;;  %v13882_v3 = vld [vmem:[#allocation2 + $0x8] sm:$0xff] }
 0x7ab   : > { %v17037_v46 = vpack.c.bf16 %v12840_v15, %v12831_v55  ;;  %v13887_v15 = vld [vmem:[#allocation2 + $0x30] sm:$0xff] }
 0x7ad   : > { %16399 = vmatmul.mubr.msk.f32.vlgmr.msra.gmra.mrb[26].mxu0 %vm6444_vm7, %v24378_v54  ;;  %v18933_v54 = vunpack.i.h.bf16 %v18931_v2 }
 0x7ae   : > { %17032 = vmatpush1.bf16.msra.mxu0 %v17031_v24  ;;  %12932 = vmatprep.mubr.f32.mxu0 %v24236_v8  ;;  %v17073_v24 = vpack.c.bf16 %v13894_v44, %v13885_v57 }
 0x7af   : > { %17034 = vmatprep.subr.bf16.mxu0 %v17033_v11  ;;  %v12833_v25 = vsel %vm5165_vm8, %v18932_v29, %v18933_v54  ;;  %v12834_v60 = vsel %vm5165_vm8, %v18933_v54, %v18942_v18  ;;  %v13896_v11 = vld [vmem:[#allocation2 + $0x88] sm:$0xff] }
 0x7b0   : > { %v17041_v0 = vpack.c.bf16 %v12842_v48, %v12833_v25  ;;  %v17045_v1 = vpack.c.bf16 %v12843_v41, %v12834_v60  ;;  %v17077_v2 = vpack.c.bf16 %v13896_v11, %v13887_v15  ;;  %v13886_v54 = vld [vmem:[#allocation2 + $0x28] sm:$0xff] }
 0x7b1   : > { %16027 = vmatmul.mubr.msk.f32.vlgmr.msra.gmra.mrb[10].mxu0 %vm6444_vm7, %v16025_v32  ;;  %v13890_v48 = vld [vmem:[#allocation2 + $0x48] sm:$0xff] }
 0x7b2   : > { %17036 = vmatpush1.bf16.msra.mxu0 %v17035_v5  ;;  %12938 = vmatprep.mubr.f32.mxu0 %v24236_v8  ;;  %v13895_v5 = vld [vmem:[#allocation2 + $0x80] sm:$0xff]  ;;  %v17085_v62 = vpack.c.bf16 %v13899_v37, %v13890_v48 }
 0x7b3   : > { %17038 = vmatprep.subr.bf16.mxu0 %v17037_v46  ;;  %v13898_v46 = vld [vmem:[#allocation2 + $0x98] sm:$0xff]  ;;  %v17079_v29 = vpack.c.bf16 %v13895_v5, %v13886_v54 }
 0x7b4   : > { %v17081_v38 = vpack.c.bf16 %v13898_v46, %v13889_v34 }
 0x7b5   : > { %16028 = vmatmul.mubr.msk.f32.gmra.mrb[12].mxu0 %vm6444_vm7, %v16026_v12 }
 0x7b6   : > { %13009 = vmatprep.mubr.f32.mxu0 %v24236_v8 }
 0x7b9   : > { %16029 = vmatmul.mubr.msk.f32.vlgmr.msra.gmra.mrb[14].mxu0 %vm6444_vm7, %v16025_v32 }
 0x7ba   : > { %17040 = vmatpush1.bf16.msra.mxu0 %v17039_v58  ;;  %13015 = vmatprep.mubr.f32.mxu0 %v24236_v8 }
 0x7bb   : > { %17042 = vmatprep.subr.bf16.mxu0 %v17041_v0 }
 0x7bd   : > { %16030 = vmatmul.mubr.msk.f32.gmra.mrb[16].mxu0 %vm6444_vm7, %v16026_v12 }
 0x7be   : > { %13086 = vmatprep.mubr.f32.mxu0 %v24236_v8 }
 0x7c1   : > { %16031 = vmatmul.mubr.msk.f32.vlgmr.msra.gmra.mrb[18].mxu0 %vm6444_vm7, %v16025_v32 }
 0x7c2   : > { %17044 = vmatpush1.bf16.msra.mxu0 %v17043_v45  ;;  %13092 = vmatprep.mubr.f32.mxu0 %v24236_v8 }
 0x7c3   : > { %17046 = vmatprep.subr.bf16.mxu0 %v17045_v1 }
 0x7c5   : > { %16032 = vmatmul.mubr.msk.f32.gmra.mrb[20].mxu0 %vm6444_vm7, %v16026_v12 }
 0x7c6   : > { %13163 = vmatprep.mubr.f32.mxu0 %v24236_v8 }
 0x7c9   : > { %16033 = vmatmul.mubr.msk.f32.vlgmr.msra.gmra.mrb[22].mxu0 %vm6444_vm7, %v16025_v32 }
 0x7ca   : > { %17048 = vmatpush3.bf16.msra.mxu0 %v17045_v1  ;;  %13169 = vmatprep.mubr.f32.mxu0 %v24236_v8 }
 0x7cb   : > { %17050 = vmatprep.subr.bf16.mxu0 %v17049_v61  ;;  %v13909_v61 = vld [vmem:[#allocation3 + $0x38] sm:$0xff] }
 0x7cd   : > { %16034 = vmatmul.mubr.msk.f32.gmra.mrb[24].mxu0 %vm6444_vm7, %v16026_v12 }
 0x7ce   : > { %16405 = vmatprep.mubr.msk.f32.mxu0 %vm6444_vm7, %v16025_v32  ;;  %v13884_v32 = vld [vmem:[#allocation2 + $0x18] sm:$0xff] }
 0x7cf   : > { %v17075_v55 = vpack.c.bf16 %v13893_v26, %v13884_v32 }
 0x7d1   : > { %16406 = vmatmul.mubr.msk.f32.vlgmr.msra.gmra.mrb[26].mxu0 %vm6444_vm7, %v16026_v12  ;;  %v13897_v12 = vld [vmem:[#allocation2 + $0x90] sm:$0xff] }
 0x7d2   : > { %17052 = vmatpush1.bf16.msra.mxu0 %v17051_v49  ;;  %13991 = vmatprep.mubr.f32.mxu0 %v24236_v8  ;;  %v13920_v49 = vld [vmem:[#allocation3 + $0xa0] sm:$0xff]  ;;  %v17083_v25 = vpack.c.bf16 %v13897_v12, %v13888_v21 }
 0x7d3   : > { %17054 = vmatprep.subr.bf16.mxu0 %v17053_v14  ;;  %v17063_v14 = vpack.c.bf16 %v24090_v16, %v13909_v61  ;;  %v17065_v31 = vpack.c.bf16 %v13920_v49, %v13911_v10  ;;  %v13891_v16 = vld [vmem:[#allocation2 + $0x60] sm:$0xff] }
 0x7d4   : > { %v17071_v4 = vpack.c.bf16 %v13891_v16, %v13882_v3 }
 0x7d5   : > { %16039 = vmatmul.mubr.msk.f32.vlgmr.msra.gmra.mrb[28].mxu0 %vm6444_vm7, %v16037_v40 }
 0x7d6   : > { %17056 = vmatpush1.bf16.msra.mxu0 %v17055_v19  ;;  %13997 = vmatprep.mubr.f32.mxu0 %v24236_v8 }
 0x7d7   : > { %17058 = vmatprep.subr.bf16.mxu0 %v17057_v53 }
 0x7d9   : > { %16040 = vmatmul.mubr.msk.f32.gmra.mrb[30].mxu0 %vm6444_vm7, %v16038_v28 }
 0x7da   : > { %14068 = vmatprep.mubr.f32.mxu0 %v24236_v8 }
 0x7dd   : > { %16041 = vmatmul.mubr.msk.f32.vlgmr.msra.gmra.mrb[32].mxu0 %vm6444_vm7, %v16037_v40 }
 0x7de   : > { %17060 = vmatpush1.bf16.msra.mxu0 %v17059_v20  ;;  %14074 = vmatprep.mubr.f32.mxu0 %v24236_v8 }
 0x7df   : > { %17062 = vmatprep.subr.bf16.mxu0 %v17061_v13 }
 0x7e1   : > { %16042 = vmatmul.mubr.msk.f32.gmra.mrb[34].mxu0 %vm6444_vm7, %v16038_v28 }
 0x7e2   : > { %14145 = vmatprep.mubr.f32.mxu0 %v24236_v8 }
 0x7e5   : > { %16043 = vmatmul.mubr.msk.f32.vlgmr.msra.gmra.mrb[36].mxu0 %vm6444_vm7, %v16037_v40 }
 0x7e6   : > { %17064 = vmatpush1.bf16.msra.mxu0 %v17063_v14  ;;  %14151 = vmatprep.mubr.f32.mxu0 %v24236_v8 }
 0x7e7   : > { %17066 = vmatprep.subr.bf16.mxu0 %v17065_v31 }
 0x7e9   : > { %16044 = vmatmul.mubr.msk.f32.gmra.mrb[38].mxu0 %vm6444_vm7, %v16038_v28 }
 0x7ea   : > { %14222 = vmatprep.mubr.f32.mxu0 %v24236_v8 }
 0x7ed   : > { %16045 = vmatmul.mubr.msk.f32.vlgmr.msra.gmra.mrb[40].mxu0 %vm6444_vm7, %v16037_v40 }
 0x7ee   : > { %17068 = vmatpush3.bf16.msra.mxu0 %v17065_v31  ;;  %14228 = vmatprep.mubr.f32.mxu0 %v24236_v8  ;;  %v24523_v58 = vpop.permute.xlu1 %13272 }
 0x7ef   : > { %17070 = vmatprep.subr.bf16.mxu0 %v17069_v51 }
 0x7f1   : > { %16046 = vmatmul.mubr.msk.f32.gmra.mrb[42].mxu0 %vm6444_vm7, %v16038_v28 }
 0x7f2   : > { %16412 = vmatprep.mubr.msk.f32.mxu0 %vm6444_vm7, %v16037_v40 }
 0x7f3   : > { %v24531_v47 = vpop.permute.xlu0 %13285 }
 0x7f5   : > { %16413 = vmatmul.mubr.msk.f32.vlgmr.msra.gmra.mrb[44].mxu0 %vm6444_vm7, %v16038_v28 }
 0x7f6   : > { %17072 = vmatpush1.bf16.msra.mxu0 %v17071_v4  ;;  %14380 = vmatprep.mubr.f32.mxu0 %v24236_v8 }
 0x7f7   : > { %17074 = vmatprep.subr.bf16.mxu0 %v17073_v24 }
 0x7f9   : > { %16049 = vmatmul.mubr.msk.f32.vlgmr.msra.gmra.mrb[28].mxu0 %vm6444_vm7, %v13880_v9 }
 0x7fa   : > { %17076 = vmatpush1.bf16.msra.mxu0 %v17075_v55  ;;  %14386 = vmatprep.mubr.f32.mxu0 %v24236_v8 }
 0x7fb   : > { %17078 = vmatprep.subr.bf16.mxu0 %v17077_v2 }
 0x7fd   : > { %16050 = vmatmul.mubr.msk.f32.gmra.mrb[30].mxu0 %vm6444_vm7, %v13881_v36 }
 0x7fe   : > { %14457 = vmatprep.mubr.f32.mxu0 %v24236_v8 }
 0x801   : > { %16051 = vmatmul.mubr.msk.f32.vlgmr.msra.gmra.mrb[32].mxu0 %vm6444_vm7, %v13880_v9 }
 0x802   : > { %17080 = vmatpush1.bf16.msra.mxu0 %v17079_v29  ;;  %14463 = vmatprep.mubr.f32.mxu0 %v24236_v8 }
 0x803   : > { %17082 = vmatprep.subr.bf16.mxu0 %v17081_v38 }
 0x805   : > { %16052 = vmatmul.mubr.msk.f32.gmra.mrb[34].mxu0 %vm6444_vm7, %v13881_v36 }
 0x806   : > { %14534 = vmatprep.mubr.f32.mxu0 %v24236_v8 }
 0x809   : > { %16053 = vmatmul.mubr.msk.f32.vlgmr.msra.gmra.mrb[36].mxu0 %vm6444_vm7, %v13880_v9 }
 0x80a   : > { %17084 = vmatpush1.bf16.msra.mxu0 %v17083_v25  ;;  %14540 = vmatprep.mubr.f32.mxu0 %v24236_v8 }
 0x80b   : > { %17086 = vmatprep.subr.bf16.mxu0 %v17085_v62 }
 0x80d   : > { %16054 = vmatmul.mubr.msk.f32.gmra.mrb[38].mxu0 %vm6444_vm7, %v13881_v36 }
 0x80e   : > { %14611 = vmatprep.mubr.f32.mxu0 %v24236_v8 }
 0x811   : > { %16055 = vmatmul.mubr.msk.f32.vlgmr.msra.gmra.mrb[40].mxu0 %vm6444_vm7, %v13880_v9 }
 0x812   : > { %17088 = vmatpush3.bf16.msra.mxu0 %v17085_v62  ;;  %14617 = vmatprep.mubr.f32.mxu0 %v24236_v8 }
 0x815   : > { %16056 = vmatmul.mubr.msk.f32.gmra.mrb[42].mxu0 %vm6444_vm7, %v13881_v36 }
 0x816   : > { %16419 = vmatprep.mubr.msk.f32.mxu0 %vm6444_vm7, %v13880_v9 }
 0x819   : > { %16420 = vmatmul.mubr.msk.f32.vlgmr.msra.gmra.mrb[44].mxu0 %vm6444_vm7, %v13881_v36 }
 0x81a   : > { %14790 = vmatprep.mubr.f32.mxu0 %v24236_v8 }
 0x884   : > { %v12934_v0 = vpop.f32.mrb[10].mxu0 }
 0x885   : > { %v24526_v39 = vadd.f32 %v24523_v58, %v12934_v0  ;;  %v12936_v18 = vpop.f32.mrb[11].mxu0 }
 0x886   : > { %v24529_v56 = vadd.f32 %v24523_v58, %v12936_v18 }
 0x887   : > { %v13576_v45 = vmul.f32 %v24526_v39, %v24526_v39 }
 0x888   : > { %v12940_v60 = vpop.f32.mrb[12].mxu0  ;;  %v13577_v33 = vmul.f32 %v24529_v56, %v24529_v56 }
 0x889   : > { %v24534_v41 = vadd.f32 %v24531_v47, %v12940_v60  ;;  %v12942_v8 = vpop.f32.mrb[13].mxu0 }
 0x88a   : > { %v24539_v1 = vadd.f32 %v24531_v47, %v12942_v8 }
 0x88b   : > { %19063 = vrsqrt.f32 %v24534_v41  ;;  %v24545_v40 = vadd.f32 %v13576_v45, %v24534_v41 }
 0x88c   : > { %19065 = vrsqrt.f32 %v24539_v1  ;;  %v24549_v23 = vadd.f32 %v13577_v33, %v24539_v1  ;;  %v13011_v19 = vpop.f32.mrb[14].mxu0 }
 0x88d   : > { %v24552_v53 = vadd.f32 %v24523_v58, %v13011_v19  ;;  %v13013_v28 = vpop.f32.mrb[15].mxu0 }
 0x88e   : > { %v24555_v6 = vadd.f32 %v24523_v58, %v13013_v28 }
 0x88f   : > { %v13578_v20 = vmul.f32 %v24552_v53, %v24552_v53 }
 0x890   : > { %v13017_v35 = vpop.f32.mrb[16].mxu0  ;;  %v13579_v49 = vmul.f32 %v24555_v6, %v24555_v6 }
 0x891   : > { %v24558_v42 = vadd.f32 %v24531_v47, %v13017_v35  ;;  %v13019_v13 = vpop.f32.mrb[17].mxu0 }
 0x892   : > { %v24563_v61 = vadd.f32 %v24531_v47, %v13019_v13 }
 0x893   : > { %19067 = vrsqrt.f32 %v24558_v42  ;;  %v24569_v14 = vadd.f32 %v13578_v20, %v24558_v42 }
 0x894   : > { %19069 = vrsqrt.f32 %v24563_v61  ;;  %v24573_v10 = vadd.f32 %v13579_v49, %v24563_v61  ;;  %v13088_v31 = vpop.f32.mrb[18].mxu0 }
 0x895   : > { %v24575_v30 = vpop.eup %19063  ;;  %v24578_v7 = vadd.f32 %v24523_v58, %v13088_v31  ;;  %v13090_v51 = vpop.f32.mrb[19].mxu0 }
 0x896   : > { %v24580_v16 = vpop.eup %19065  ;;  %v24584_v44 = vmul.f32 %v24575_v30, %v24526_v39  ;;  %v24587_v3 = vadd.f32 %v24523_v58, %v13090_v51 }
 0x897   : > { %v24591_v4 = vmul.f32 %v24580_v16, %v24529_v56  ;;  %v13580_v55 = vmul.f32 %v24578_v7, %v24578_v7 }
 0x898   : > { %v13324_v57 = vmul.f32 -0.5, %v24584_v44  ;;  %v13369_v24 = vand.u32 2147483647, %v24584_v44  ;;  %v13094_v26 = vpop.f32.mrb[20].mxu0  ;;  %v13581_v46 = vmul.f32 %v24587_v3, %v24587_v3  ;;  %vm13513_vm2 = vcmp.ge.f32.partialorder %v24584_v44, 0.0 }
 0x899   : > { %v13325_v9 = vmul.f32 -0.5, %v24591_v4  ;;  %v13370_v11 = vand.u32 2147483647, %v24591_v4  ;;  %v24598_v32 = vadd.f32 %v24531_v47, %v13094_v26  ;;  %v13096_v15 = vpop.f32.mrb[21].mxu0  ;;  %vm13514_vm3 = vcmp.ge.f32.partialorder %v24591_v4, 0.0 }
 0x89a   : > { %v13333_v2 = vmul.f32 %v13324_v57, %v24584_v44  ;;  %v13378_v36 = vmul.f32 0.23164189, %v13369_v24  ;;  %v24604_v5 = vadd.f32 %v24531_v47, %v13096_v15 }
 0x89b   : > { %v13334_v54 = vmul.f32 %v13325_v9, %v24591_v4  ;;  %v13379_v29 = vmul.f32 0.23164189, %v13370_v11  ;;  %19071 = vrsqrt.f32 %v24598_v32  ;;  %v24611_v34 = vadd.f32 %v13580_v55, %v24598_v32 }
 0x89c   : > { %v13342_v38 = vmul.f32 1.442695, %v13333_v2  ;;  %v13387_v12 = vadd.f32 1.0, %v13378_v36  ;;  %19073 = vrsqrt.f32 %v24604_v5  ;;  %v24615_v37 = vadd.f32 %v13581_v46, %v24604_v5  ;;  %v13165_v21 = vpop.f32.mrb[22].mxu0 }
 0x89d   : > { %v19068_v25 = vpop.eup %19067  ;;  %v13344_v48 = vmul.f32 1.442695, %v13334_v54  ;;  %v13388_v62 = vadd.f32 1.0, %v13379_v29  ;;  %v24618_v0 = vadd.f32 %v24523_v58, %v13165_v21  ;;  %v13167_v18 = vpop.f32.mrb[23].mxu0 }
 0x89e   : > { %26216 = vst [vmem:[#allocation7_spill] sm:$0xff] %v24615_v37  ;;  %v19070_v60 = vpop.eup %19069  ;;  %19075 = vpow2.f32 %v13342_v38  ;;  %v24621_v45 = vmul.f32 %v19068_v25, %v24552_v53  ;;  %v24627_v33 = vadd.f32 %v24523_v58, %v13167_v18 }
 0x89f   : > { %19077 = vrcp.f32 %v13387_v12  ;;  %v24624_v8 = vmul.f32 %v19070_v60, %v24555_v6  ;;  %v13582_v49 = vmul.f32 %v24618_v0, %v24618_v0 }
 0x8a0   : > { %26217 = vst [vmem:[#allocation21_spill] sm:$0xff] %v24627_v33  ;;  %19079 = vpow2.f32 %v13344_v48  ;;  %v13326_v19 = vmul.f32 -0.5, %v24621_v45  ;;  %v13371_v28 = vand.u32 2147483647, %v24621_v45  ;;  %v13171_v35 = vpop.f32.mrb[24].mxu0  ;;  %v13583_v55 = vmul.f32 %v24627_v33, %v24627_v33 }
 0x8a1   : > { %19081 = vrcp.f32 %v13388_v62  ;;  %v13327_v20 = vmul.f32 -0.5, %v24624_v8  ;;  %v13372_v13 = vand.u32 2147483647, %v24624_v8  ;;  %v13173_v31 = vpop.f32.mrb[25].mxu0  ;;  %v24637_v24 = vadd.f32 %v24531_v47, %v13171_v35 }
 0x8a2   : > { %v13335_v51 = vmul.f32 %v13326_v19, %v24621_v45  ;;  %v13380_v57 = vmul.f32 0.23164189, %v13371_v28  ;;  %v24640_v26 = vadd.f32 %v24531_v47, %v13173_v31  ;;  %v13306_v62 = vmul.f32 %v24575_v30, %v24534_v41 }
 0x8a3   : > { %v13336_v9 = vmul.f32 %v13327_v20, %v24624_v8  ;;  %v13381_v11 = vmul.f32 0.23164189, %v13372_v13  ;;  %19083 = vrsqrt.f32 %v24637_v24  ;;  %v24647_v36 = vadd.f32 %v13582_v49, %v24637_v24 }
 0x8a4   : > { %v13346_v15 = vmul.f32 1.442695, %v13335_v51  ;;  %v13389_v2 = vadd.f32 1.0, %v13380_v57  ;;  %v16407_v46 = vpop.f32.mrb[26].mxu0  ;;  %19085 = vrsqrt.f32 %v24640_v26  ;;  %v24651_v12 = vadd.f32 %v13583_v55, %v24640_v26 }
 0x8a5   : > { %26218 = vst [vmem:[#allocation14_spill] sm:$0xff] %v24647_v36  ;;  %v19072_v54 = vpop.eup %19071  ;;  %v13348_v29 = vmul.f32 1.442695, %v13336_v9  ;;  %v13390_v38 = vadd.f32 1.0, %v13381_v11  ;;  %v13242_v21 = vpop.f32.mrb[27].mxu0  ;;  %v13307_v19 = vmul.f32 %v24580_v16, %v24539_v1  ;;  %v13308_v28 = vmul.f32 %v19068_v25, %v24558_v42 }
 0x8a6   : > { %26219 = vst [vmem:[#allocation23_spill] sm:$0xff] %v24651_v12  ;;  %v19074_v48 = vpop.eup %19073  ;;  %19087 = vpow2.f32 %v13346_v15  ;;  %v24656_v18 = vmul.f32 %v19072_v54, %v24578_v7  ;;  %v13309_v13 = vmul.f32 %v19070_v60, %v24563_v61  ;;  %v24678_v61 = vmul.f32 %v19072_v54, %v24598_v32 }
 0x8a7   : > { %19089 = vrcp.f32 %v13389_v2  ;;  %v24662_v35 = vmul.f32 %v19074_v48, %v24587_v3  ;;  %v24689_v63 = vadd.f32 %v16407_v46, %v24531_v47  ;;  %v24703_v47 = vmul.f32 %v19074_v48, %v24604_v5 }
 0x8a8   : > { %v24664_v20 = vpop.eup %19075  ;;  %19091 = vpow2.f32 %v13348_v29  ;;  %v13328_v41 = vmul.f32 -0.5, %v24656_v18  ;;  %v13373_v30 = vand.u32 2147483647, %v24656_v18  ;;  %vm13515_vm6 = vcmp.ge.f32.partialorder %v24621_v45, 0.0 }
 0x8a9   : > { %v24669_v49 = vpop.eup %19077  ;;  %v13360_v31 = vmul.f32 0.3989423, %v24664_v20  ;;  %19093 = vrcp.f32 %v13390_v38  ;;  %v13329_v1 = vmul.f32 -0.5, %v24662_v35  ;;  %v13374_v42 = vand.u32 2147483647, %v24662_v35  ;;  %26220 = vst [vmem:[#allocation29_spill] sm:$0xff] %v24689_v63 }
 0x8aa   : > { %v24674_v16 = vpop.eup %19079  ;;  %v13414_v25 = vmul.f32 1.0614054, %v24669_v49  ;;  %v13337_v60 = vmul.f32 %v13328_v41, %v24656_v18  ;;  %v13382_v51 = vmul.f32 0.23164189, %v13373_v30  ;;  %vm13516_vm8 = vcmp.ge.f32.partialorder %v24624_v8, 0.0 }
 0x8ab   : > { %v24681_v57 = vpop.eup %19081  ;;  %v24683_v9 = vmul.f32 %v13360_v31, %v13306_v62  ;;  %v13361_v11 = vmul.f32 0.3989423, %v24674_v16  ;;  %v13338_v55 = vmul.f32 %v13329_v1, %v24662_v35  ;;  %v13383_v15 = vmul.f32 0.23164189, %v13374_v42 }
 0x8ac   : > { %v13423_v2 = vadd.f32 -1.4531521, %v13414_v25  ;;  %v13415_v29 = vmul.f32 1.0614054, %v24681_v57  ;;  %v13350_v38 = vmul.f32 1.442695, %v13337_v60 }
 0x8ad   : > { %v24693_v32 = vmul.f32 %v24683_v9, %v24526_v39  ;;  %v24695_v54 = vmul.f32 %v13361_v11, %v13307_v19  ;;  %v13391_v62 = vadd.f32 1.0, %v13382_v51  ;;  %v13352_v41 = vmul.f32 1.442695, %v13338_v55  ;;  %v19084_v30 = vpop.eup %19083 }
 0x8ae   : > { %v13432_v31 = vmul.f32 %v24669_v49, %v13423_v2  ;;  %v13424_v1 = vadd.f32 -1.4531521, %v13415_v29  ;;  %19095 = vpow2.f32 %v13350_v38  ;;  %v13392_v42 = vadd.f32 1.0, %v13383_v15  ;;  %v19086_v25 = vpop.eup %19085 }
 0x8af   : > { %v24700_v60 = vmul.f32 %v24695_v54, %v24529_v56  ;;  %19097 = vrcp.f32 %v13391_v62  ;;  %v24706_v46 = vmul.f32 %v19084_v30, %v24618_v0  ;;  %v24712_v55 = vadd.f32 %v24523_v58, %v13242_v21 }
 0x8b0   : > { %v24708_v19 = vpop.eup %19087  ;;  %v13441_v51 = vadd.f32 1.4214138, %v13432_v31  ;;  %v13433_v11 = vmul.f32 %v24681_v57, %v13424_v1  ;;  %19099 = vpow2.f32 %v13352_v41  ;;  %vm13517_vm13 = vcmp.ge.f32.partialorder %v24656_v18, 0.0 }
 0x8b1   : > { %26221 = vst [vmem:[#allocation13_spill] sm:$0xff] %v24712_v55  ;;  %v24714_v15 = vpop.eup %19089  ;;  %v13362_v2 = vmul.f32 0.3989423, %v24708_v19  ;;  %19101 = vrcp.f32 %v13392_v42  ;;  %v13330_v5 = vmul.f32 -0.5, %v24706_v46  ;;  %v13375_v48 = vand.u32 2147483647, %v24706_v46 }
 0x8b2   : > { %v24719_v29 = vpop.eup %19091  ;;  %v13450_v38 = vmul.f32 %v24669_v49, %v13441_v51  ;;  %v13442_v62 = vadd.f32 1.4214138, %v13433_v11  ;;  %v13416_v31 = vmul.f32 1.0614054, %v24714_v15  ;;  %19103 = vrsqrt.f32 %v24689_v63 }
 0x8b3   : > { %v24724_v58 = vpop.eup %19093  ;;  %v24726_v21 = vmul.f32 %v13362_v2, %v13308_v28  ;;  %v13363_v41 = vmul.f32 0.3989423, %v24719_v29  ;;  %v13339_v1 = vmul.f32 %v13330_v5, %v24706_v46  ;;  %v13384_v42 = vmul.f32 0.23164189, %v13375_v48 }
 0x8b4   : > { %v13459_v12 = vadd.f32 -0.28449672, %v13450_v38  ;;  %v13451_v43 = vmul.f32 %v24681_v57, %v13442_v62  ;;  %v13425_v50 = vadd.f32 -1.4531521, %v13416_v31  ;;  %v13417_v51 = vmul.f32 1.0614054, %v24724_v58 }
 0x8b5   : > { %v24734_v11 = vmul.f32 %v24726_v21, %v24552_v53  ;;  %v24736_v17 = vmul.f32 %v13363_v41, %v13309_v13  ;;  %v13354_v59 = vmul.f32 1.442695, %v13339_v1  ;;  %v13393_v28 = vadd.f32 1.0, %v13384_v42 }
 0x8b6   : > { %v13468_v2 = vmul.f32 %v24669_v49, %v13459_v12  ;;  %v13460_v52 = vadd.f32 -0.28449672, %v13451_v43  ;;  %v13434_v5 = vmul.f32 %v24714_v15, %v13425_v50  ;;  %v13426_v48 = vadd.f32 -1.4531521, %v13417_v51 }
 0x8b7   : > { %v24742_v38 = vmul.f32 %v24736_v17, %v24555_v6  ;;  %v24745_v62 = vmul.f32 %v19084_v30, %v24637_v24  ;;  %19105 = vpow2.f32 %v13354_v59  ;;  %v24748_v31 = vmul.f32 %v19086_v25, %v24627_v33 }
 0x8b8   : > { %v24750_v13 = vpop.eup %19095  ;;  %v13477_v41 = vadd.f32 0.2548296, %v13468_v2  ;;  %v13469_v12 = vmul.f32 %v24681_v57, %v13460_v52  ;;  %v13443_v43 = vadd.f32 1.4214138, %v13434_v5  ;;  %v13435_v50 = vmul.f32 %v24724_v58, %v13426_v48 }
 0x8b9   : > { %v24754_v1 = vpop.eup %19097  ;;  %v13364_v42 = vmul.f32 0.3989423, %v24750_v13  ;;  %19107 = vrcp.f32 %v13393_v28  ;;  %v24759_v59 = vmul.f32 %v19086_v25, %v24640_v26  ;;  %v13331_v24 = vmul.f32 -0.5, %v24748_v31 }
 0x8ba   : > { %v24762_v30 = vpop.eup %19099  ;;  %v13486_v51 = vmul.f32 %v24669_v49, %v13477_v41  ;;  %v13478_v52 = vadd.f32 0.2548296, %v13469_v12  ;;  %v13452_v2 = vmul.f32 %v24714_v15, %v13443_v43  ;;  %v13444_v5 = vadd.f32 1.4214138, %v13435_v50 }
 0x8bb   : > { %v24766_v48 = vpop.eup %19101  ;;  %v13418_v27 = vmul.f32 1.0614054, %v24754_v1  ;;  %v24771_v28 = vmul.f32 %v13364_v42, %v24678_v61  ;;  %v13365_v26 = vmul.f32 0.3989423, %v24762_v30  ;;  %v13340_v25 = vmul.f32 %v13331_v24, %v24748_v31 }
 0x8bc   : > { %v24775_v22 = vpop.eup %19103  ;;  %v13495_v49 = vmul.f32 %v24664_v20, %v13486_v51  ;;  %v13487_v41 = vmul.f32 %v24681_v57, %v13478_v52  ;;  %v13461_v12 = vadd.f32 -0.28449672, %v13452_v2  ;;  %v13453_v43 = vmul.f32 %v24724_v58, %v13444_v5 }
 0x8bd   : > { %v13427_v50 = vadd.f32 -1.4531521, %v13418_v27  ;;  %v24782_v36 = vmul.f32 %v24771_v28, %v24578_v7  ;;  %v13419_v61 = vmul.f32 1.0614054, %v24766_v48  ;;  %v24786_v42 = vmul.f32 %v13365_v26, %v24703_v47 }
 0x8be   : > { %v13504_v24 = vsub.f32 1.0, %v13495_v49  ;;  %v13496_v55 = vmul.f32 %v24674_v16, %v13487_v41  ;;  %v13470_v20 = vmul.f32 %v24714_v15, %v13461_v12  ;;  %v13462_v51 = vadd.f32 -0.28449672, %v13453_v43 }
 0x8bf   : > { %v13436_v57 = vmul.f32 %v24754_v1, %v13427_v50  ;;  %v13428_v52 = vadd.f32 -1.4531521, %v13419_v61  ;;  %v24793_v27 = vmul.f32 %v24786_v42, %v24587_v3  ;;  %v13356_v2 = vmul.f32 1.442695, %v13340_v25 }
 0x8c0   : > { %v13522_v5 = vsub.f32 0.0, %v13504_v24  ;;  %v13505_v33 = vsub.f32 1.0, %v13496_v55  ;;  %v13479_v37 = vadd.f32 0.2548296, %v13470_v20  ;;  %v13471_v47 = vmul.f32 %v24724_v58, %v13462_v51 }
 0x8c1   : > { %v24796_v26 = vpop.eup %19105  ;;  %v13445_v16 = vadd.f32 1.4214138, %v13436_v57  ;;  %v13437_v49 = vmul.f32 %v24766_v48, %v13428_v52  ;;  %v24803_v12 = vmul.f32 %v24775_v22, %v24689_v63  ;;  %19109 = vpow2.f32 %v13356_v2 }
 0x8c2   : > { %v13531_v25 = vsel %vm13513_vm2, %v13504_v24, %v13522_v5  ;;  %v13523_v55 = vsub.f32 0.0, %v13505_v33  ;;  %v13488_v43 = vmul.f32 %v24714_v15, %v13479_v37  ;;  %v13480_v50 = vadd.f32 0.2548296, %v13471_v47 }
 0x8c3   : > { %26222 = vst [vmem:[#allocation27_spill] sm:$0xff] %v24803_v12  ;;  %v24808_v61 = vpop.eup %19107  ;;  %v13540_v20 = vadd.f32 1.0, %v13531_v25  ;;  %v13454_v51 = vmul.f32 %v24754_v1, %v13445_v16  ;;  %v13446_v57 = vadd.f32 1.4214138, %v13437_v49  ;;  %v13366_v52 = vmul.f32 0.3989423, %v24796_v26 }
 0x8c4   : > { %v13532_v41 = vsel %vm13514_vm3, %v13505_v33, %v13523_v55  ;;  %v13497_v12 = vmul.f32 %v24708_v19, %v13488_v43  ;;  %v13489_v44 = vmul.f32 %v24724_v58, %v13480_v50  ;;  %v13420_v16 = vmul.f32 1.0614054, %v24808_v61 }
 0x8c5   : > { %v13549_v24 = vmul.f32 0.5, %v13540_v20  ;;  %v13541_v5 = vadd.f32 1.0, %v13532_v41  ;;  %v13463_v37 = vadd.f32 -0.28449672, %v13454_v51  ;;  %v13455_v15 = vmul.f32 %v24766_v48, %v13446_v57 }
 0x8c6   : > { %v13506_v47 = vsub.f32 1.0, %v13497_v12  ;;  %v13498_v25 = vmul.f32 %v24719_v29, %v13489_v44  ;;  %v24820_v49 = vmul.f32 %v13366_v52, %v24745_v62  ;;  %vm13518_vm14 = vcmp.ge.f32.partialorder %v24662_v35, 0.0 }
 0x8c7   : > { %v13558_v4 = vsub.f32 1.0, %v13549_v24  ;;  %v13603_v33 = vmul.f32 %v13549_v24, %v24526_v39  ;;  %v13621_v19 = vmul.f32 %v24545_v40, %v13549_v24  ;;  %v13550_v58 = vmul.f32 0.5, %v13541_v5 }
 0x8c8   : > { %v13524_v2 = vsub.f32 0.0, %v13506_v47  ;;  %v13507_v55 = vsub.f32 1.0, %v13498_v25  ;;  %v13472_v41 = vmul.f32 %v24754_v1, %v13463_v37  ;;  %v13464_v43 = vadd.f32 -0.28449672, %v13455_v15 }
 0x8c9   : > { %v24826_v12 = vadd.f32 %v13603_v33, %v24683_v9  ;;  %v13630_v29 = vadd.f32 %v13621_v19, %v24693_v32  ;;  %v13657_v50 = vmul.f32 %v13558_v4, %v24526_v39  ;;  %v13675_v62 = vmul.f32 %v24545_v40, %v13558_v4 }
 0x8ca   : > { %v13559_v20 = vsub.f32 1.0, %v13550_v58  ;;  %v13604_v51 = vmul.f32 %v13550_v58, %v24529_v56  ;;  %v13622_v57 = vmul.f32 %v24549_v23, %v13550_v58  ;;  %v13533_v52 = vsel %vm13515_vm6, %v13506_v47, %v13524_v2 }
 0x8cb   : > { %v13639_v44 = vmul.f32 %v24826_v12, %v24826_v12  ;;  %v13666_v24 = vsub.f32 %v24683_v9, %v13657_v50  ;;  %v13684_v5 = vsub.f32 %v13675_v62, %v24693_v32  ;;  %v13711_v37 = vsub.f32 0.0, %v24826_v12  ;;  %v24849_v9 = vpop.eup %19109 }
 0x8cc   : > { %v24842_v39 = vadd.f32 %v13604_v51, %v24695_v54  ;;  %v13631_v40 = vadd.f32 %v13622_v57, %v24700_v60  ;;  %v13658_v15 = vmul.f32 %v13559_v20, %v24529_v56  ;;  %v13676_v45 = vmul.f32 %v24549_v23, %v13559_v20 }
 0x8cd   : > { %v13648_v47 = vsub.f32 %v13630_v29, %v13639_v44  ;;  %v13693_v25 = vmul.f32 %v13666_v24, %v13666_v24  ;;  %v13720_v4 = vmul.f32 %v13711_v37, %v13666_v24  ;;  %v24847_v33 = vmul.f32 0.01, %v13666_v24 }
 0x8ce   : > { %v13640_v32 = vmul.f32 %v24842_v39, %v24842_v39  ;;  %v13667_v19 = vsub.f32 %v24695_v54, %v13658_v15  ;;  %v13685_v58 = vsub.f32 %v13676_v45, %v24700_v60  ;;  %v13712_v2 = vsub.f32 0.0, %v24842_v39 }
 0x8cf   : > { %v13702_v50 = vsub.f32 %v13684_v5, %v13693_v25  ;;  %v13738_v56 = vsub.f32 %v24826_v12, %v24847_v33  ;;  %v13542_v23 = vadd.f32 1.0, %v13533_v52  ;;  %v13429_v29 = vadd.f32 -1.4531521, %v13420_v16  ;;  %v26228_v12 = vld [vmem:[#allocation14_spill] sm:$0xff] }
 0x8d0   : > { %v13649_v62 = vsub.f32 %v13631_v40, %v13640_v32  ;;  %v13694_v20 = vmul.f32 %v13667_v19, %v13667_v19  ;;  %v13721_v51 = vmul.f32 %v13712_v2, %v13667_v19  ;;  %v24858_v57 = vmul.f32 0.01, %v13667_v19 }
 0x8d1   : > { %v13747_v44 = vmul.f32 0.0001, %v13702_v50  ;;  %v13551_v24 = vmul.f32 0.5, %v13542_v23  ;;  %v13525_v37 = vsub.f32 0.0, %v13507_v55  ;;  %v13481_v63 = vadd.f32 0.2548296, %v13472_v41 }
 0x8d2   : > { %v24860_v54 = vmul.f32 0.02, %v13720_v4  ;;  %v13703_v60 = vsub.f32 %v13685_v58, %v13694_v20  ;;  %v13739_v5 = vsub.f32 %v24842_v39, %v24858_v57  ;;  %v13473_v15 = vmul.f32 %v24766_v48, %v13464_v43 }
 0x8d3   : > { %v13756_v45 = vadd.f32 %v13747_v44, %v13648_v47  ;;  %v13560_v52 = vsub.f32 1.0, %v13551_v24  ;;  %v13605_v16 = vmul.f32 %v13551_v24, %v24552_v53  ;;  %v13623_v40 = vmul.f32 %v24569_v14, %v13551_v24 }
 0x8d4   : > { %v13748_v25 = vmul.f32 0.0001, %v13703_v60  ;;  %v24867_v32 = vmul.f32 0.02, %v13721_v51  ;;  %v13534_v41 = vsel %vm13516_vm8, %v13507_v55, %v13525_v37  ;;  %v13490_v4 = vmul.f32 %v24754_v1, %v13481_v63 }
 0x8d5   : > { %v13774_v19 = vsub.f32 %v13756_v45, %v24860_v54  ;;  %v24875_v43 = vadd.f32 %v13605_v16, %v24726_v21  ;;  %v13632_v47 = vadd.f32 %v13623_v40, %v24734_v11  ;;  %v13659_v58 = vmul.f32 %v13560_v52, %v24552_v53 }
 0x8d6   : > { %v24879_v2 = vadd.f32 %v13748_v25, %v13649_v62  ;;  %v13677_v50 = vmul.f32 %v24569_v14, %v13560_v52  ;;  %v13543_v23 = vadd.f32 1.0, %v13534_v41  ;;  %v13499_v8 = vmul.f32 %v24750_v13, %v13490_v4 }
 0x8d7   : > { %v13641_v63 = vmul.f32 %v24875_v43, %v24875_v43  ;;  %v13668_v1 = vsub.f32 %v24726_v21, %v13659_v58  ;;  %v13713_v55 = vsub.f32 0.0, %v24875_v43  ;;  %v13482_v20 = vadd.f32 0.2548296, %v13473_v15 }
 0x8d8   : > { %v13775_v51 = vsub.f32 %v24879_v2, %v24867_v32  ;;  %v13686_v53 = vsub.f32 %v13677_v50, %v24734_v11  ;;  %v13552_v62 = vmul.f32 0.5, %v13543_v23  ;;  %v13508_v44 = vsub.f32 1.0, %v13499_v8  ;;  %v26224_v2 = vld [vmem:[#allocation7_spill] sm:$0xff] }
 0x8d9   : > { %v13650_v24 = vsub.f32 %v13632_v47, %v13641_v63  ;;  %v13695_v14 = vmul.f32 %v13668_v1, %v13668_v1  ;;  %v13722_v37 = vmul.f32 %v13713_v55, %v13668_v1  ;;  %v24890_v54 = vmul.f32 0.01, %v13668_v1 }
 0x8da   : > { %v13561_v13 = vsub.f32 1.0, %v13552_v62  ;;  %v13606_v60 = vmul.f32 %v13552_v62, %v24555_v6  ;;  %v13624_v21 = vmul.f32 %v24573_v10, %v13552_v62  ;;  %v26223_v45 = vand.u32 2147483647, %v24748_v31 }
 0x8db   : > { %v13704_v52 = vsub.f32 %v13686_v53, %v13695_v14  ;;  %v13740_v16 = vsub.f32 %v24875_v43, %v24890_v54  ;;  %v13767_v11 = vmul.f32 0.02, %v13722_v37  ;;  %v13526_v40 = vsub.f32 0.0, %v13508_v44 }
 0x8dc   : > { %v13385_v15 = vmul.f32 0.23164189, %v26223_v45  ;;  %v24899_v25 = vadd.f32 %v13606_v60, %v24736_v17  ;;  %v13633_v41 = vadd.f32 %v13624_v21, %v24742_v38  ;;  %v13660_v4 = vmul.f32 %v13561_v13, %v24555_v6 }
 0x8dd   : > { %v13678_v47 = vmul.f32 %v24573_v10, %v13561_v13  ;;  %v13749_v58 = vmul.f32 0.0001, %v13704_v52  ;;  %v13535_v50 = vsel %vm13517_vm13, %v13508_v44, %v13526_v40  ;;  %v13491_v23 = vmul.f32 %v24766_v48, %v13482_v20 }
 0x8de   : > { %v13438_v8 = vmul.f32 %v24808_v61, %v13429_v29  ;;  %v13642_v63 = vmul.f32 %v24899_v25, %v24899_v25  ;;  %v13669_v1 = vsub.f32 %v24736_v17, %v13660_v4  ;;  %v13714_v6 = vsub.f32 0.0, %v24899_v25 }
 0x8df   : > { %v13687_v55 = vsub.f32 %v13678_v47, %v24742_v38  ;;  %v13758_v10 = vadd.f32 %v13749_v58, %v13650_v24  ;;  %v13544_v53 = vadd.f32 1.0, %v13535_v50  ;;  %v13500_v18 = vmul.f32 %v24762_v30, %v13491_v23 }
 0x8e0   : > { %v13447_v62 = vadd.f32 1.4214138, %v13438_v8  ;;  %v13651_v44 = vsub.f32 %v13633_v41, %v13642_v63  ;;  %v13696_v48 = vmul.f32 %v13669_v1, %v13669_v1  ;;  %v13723_v20 = vmul.f32 %v13714_v6, %v13669_v1 }
 0x8e1   : > { %v24915_v14 = vmul.f32 0.01, %v13669_v1  ;;  %v13776_v29 = vsub.f32 %v13758_v10, %v13767_v11  ;;  %v13553_v37 = vmul.f32 0.5, %v13544_v53  ;;  %v13509_v13 = vsub.f32 1.0, %v13500_v18 }
 0x8e2   : > { %v13456_v60 = vmul.f32 %v24808_v61, %v13447_v62  ;;  %v24918_v17 = vmax.f32 %v13774_v19, 0.0  ;;  %v13705_v38 = vsub.f32 %v13687_v55, %v13696_v48  ;;  %v24924_v30 = vmul.f32 %v24820_v49, %v24618_v0 }
 0x8e3   : > { %v13741_v24 = vsub.f32 %v24899_v25, %v24915_v14  ;;  %v24926_v21 = vmul.f32 0.02, %v13723_v20  ;;  %v13562_v45 = vsub.f32 1.0, %v13553_v37  ;;  %v13607_v52 = vmul.f32 %v13553_v37, %v24578_v7 }
 0x8e4   : > { %v13625_v11 = vmul.f32 %v24611_v34, %v13553_v37  ;;  %v13750_v40 = vmul.f32 0.0001, %v13705_v38  ;;  %v13527_v41 = vsub.f32 0.0, %v13509_v13  ;;  %v13465_v4 = vadd.f32 -0.28449672, %v13456_v60 }
 0x8e5   : > { %v13394_v19 = vadd.f32 1.0, %v13385_v15  ;;  %v24931_v47 = vadd.f32 %v13607_v52, %v24771_v28  ;;  %v13661_v50 = vmul.f32 %v13562_v45, %v24578_v7  ;;  %v13679_v23 = vmul.f32 %v24611_v34, %v13562_v45 }
 0x8e6   : > { %v13634_v58 = vadd.f32 %v13625_v11, %v24782_v36  ;;  %v13759_v8 = vadd.f32 %v13750_v40, %v13651_v44  ;;  %v13536_v63 = vsel %vm13518_vm14, %v13509_v13, %v13527_v41  ;;  %v13474_v1 = vmul.f32 %v24808_v61, %v13465_v4  ;;  %v26225_v11 = vld [vmem:[#allocation21_spill] sm:$0xff] }
 0x8e7   : > { %v13367_v55 = vmul.f32 0.3989423, %v24849_v9  ;;  %v13643_v15 = vmul.f32 %v24931_v47, %v24931_v47  ;;  %v13670_v6 = vsub.f32 %v24771_v28, %v13661_v50  ;;  %v13688_v10 = vsub.f32 %v13679_v23, %v24782_v36  ;;  %v26226_v40 = vld [vmem:[#allocation13_spill] sm:$0xff] }
 0x8e8   : > { %v13715_v53 = vsub.f32 0.0, %v24931_v47  ;;  %v13777_v7 = vsub.f32 %v13759_v8, %v24926_v21  ;;  %v13545_v34 = vadd.f32 1.0, %v13536_v63  ;;  %v13483_v18 = vadd.f32 0.2548296, %v13474_v1 }
 0x8e9   : > { %19111 = vrcp.f32 %v13394_v19  ;;  %v13652_v35 = vsub.f32 %v13634_v58, %v13643_v15  ;;  %v13697_v62 = vmul.f32 %v13670_v6, %v13670_v6  ;;  %v24946_v48 = vmul.f32 0.01, %v13670_v6 }
 0x8ea   : > { %v13724_v44 = vmul.f32 %v13715_v53, %v13670_v6  ;;  %v24951_v20 = vmax.f32 %v13775_v51, 0.0  ;;  %v24953_v28 = vmax.f32 %v13776_v29, 0.0  ;;  %v13554_v36 = vmul.f32 0.5, %v13545_v34 }
 0x8eb   : > { %v13492_v37 = vmul.f32 %v24808_v61, %v13483_v18  ;;  %vm13519_vm15 = vcmp.ge.f32.partialorder %v24706_v46, 0.0  ;;  %v13706_v13 = vsub.f32 %v13688_v10, %v13697_v62  ;;  %v13742_v60 = vsub.f32 %v24931_v47, %v24946_v48 }
 0x8ec   : > { %v13769_v38 = vmul.f32 0.02, %v13724_v44  ;;  %v24960_v21 = vmul.f32 %v13367_v55, %v24759_v59  ;;  %v13563_v45 = vsub.f32 1.0, %v13554_v36  ;;  %v13608_v32 = vmul.f32 %v13554_v36, %v24587_v3 }
 0x8ed   : > { %v13626_v51 = vmul.f32 %v26224_v2, %v13554_v36  ;;  %v13501_v29 = vmul.f32 %v24796_v26, %v13492_v37  ;;  %v13751_v52 = vmul.f32 0.0001, %v13706_v13  ;;  %v24971_v41 = vmul.f32 %v24775_v22, %v26226_v40  ;;  %v24991_v36 = vpop.permute.xlu1 %13793 }
 0x8ee   : > { %v24967_v61 = vmul.f32 %v24960_v21, %v26225_v11  ;;  %v13584_v59 = vmul.f32 %v26226_v40, %v26226_v40  ;;  %v13617_v4 = vadd.f32 %v13608_v32, %v24786_v42  ;;  %v13662_v47 = vmul.f32 %v13563_v45, %v24587_v3 }
 0x8ef   : > { %v13635_v19 = vadd.f32 %v13626_v51, %v24793_v27  ;;  %v13680_v26 = vmul.f32 %v26224_v2, %v13563_v45  ;;  %v13760_v58 = vadd.f32 %v13751_v52, %v13652_v35  ;;  %v13510_v50 = vsub.f32 1.0, %v13501_v29  ;;  %v26227_v52 = vld [vmem:[#allocation29_spill] sm:$0xff] }
 0x8f0   : > { %v13332_v23 = vmul.f32 -0.5, %v24971_v41  ;;  %v13377_v8 = vand.u32 2147483647, %v24971_v41  ;;  %v13644_v63 = vmul.f32 %v13617_v4, %v13617_v4  ;;  %v13671_v22 = vsub.f32 %v24786_v42, %v13662_v47 }
 0x8f1   : > { %v13689_v1 = vsub.f32 %v13680_v26, %v24793_v27  ;;  %v13716_v55 = vsub.f32 0.0, %v13617_v4  ;;  %v13778_v15 = vsub.f32 %v13760_v58, %v13769_v38  ;;  %v13528_v6 = vsub.f32 0.0, %v13510_v50 }
 0x8f2   : > { %v13341_v10 = vmul.f32 %v13332_v23, %v24971_v41  ;;  %v13386_v53 = vmul.f32 0.23164189, %v13377_v8  ;;  %v13653_v34 = vsub.f32 %v13635_v19, %v13644_v63  ;;  %v13698_v18 = vmul.f32 %v13671_v22, %v13671_v22 }
 0x8f3   : > { %v24984_v3 = vpop.eup %19111  ;;  %v13725_v35 = vmul.f32 %v13716_v55, %v13671_v22  ;;  %v13734_v62 = vmul.f32 0.01, %v13671_v22  ;;  %v24986_v44 = vmax.f32 %v13777_v7, 0.0  ;;  %v13537_v48 = vsel %vm13519_vm15, %v13510_v50, %v13528_v6 }
 0x8f4   : > { %v13421_v42 = vmul.f32 1.0614054, %v24984_v3  ;;  %v13358_v27 = vmul.f32 1.442695, %v13341_v10  ;;  %v24993_v37 = vmax.f32 %v13778_v15, 0.0  ;;  %v13707_v13 = vsub.f32 %v13689_v1, %v13698_v18 }
 0x8f5   : > { %v13743_v38 = vsub.f32 %v13617_v4, %v13734_v62  ;;  %v13546_v45 = vadd.f32 1.0, %v13537_v48  ;;  %v13770_v32 = vmul.f32 0.02, %v13725_v35  ;;  %v13395_v51 = vadd.f32 1.0, %v13386_v53 }
 0x8f6   : > { %v13430_v2 = vadd.f32 -1.4531521, %v13421_v42  ;;  %19113 = vpow2.f32 %v13358_v27  ;;  %v13752_v29 = vmul.f32 0.0001, %v13707_v13  ;;  %v24996_v19 = vadd.f32 %v13584_v59, %v26227_v52  ;;  %v26229_v27 = vld [vmem:[#allocation15_spill] sm:$0xff] }
 0x8f7   : > { %v13555_v7 = vmul.f32 0.5, %v13546_v45  ;;  %v13796_v46 = vmul.f32 %v24991_v36, %v13738_v56  ;;  %19115 = vrcp.f32 %v13395_v51  ;;  %v13797_v4 = vmul.f32 %v24991_v36, %v13739_v5  ;;  %v25013_v56 = vpop.permute.xlu0 %13806 }
 0x8f8   : > { %v13439_v47 = vmul.f32 %v24984_v3, %v13430_v2  ;;  %v13798_v26 = vmul.f32 %v24991_v36, %v13740_v16  ;;  %v13761_v59 = vadd.f32 %v13752_v29, %v13653_v34  ;;  %v13799_v39 = vmul.f32 %v24991_v36, %v13741_v24  ;;  %v25039_v2 = vpop.permute.xlu1 %13819 }
 0x8f9   : > { %v13564_v58 = vsub.f32 1.0, %v13555_v7  ;;  %v13609_v50 = vmul.f32 %v13555_v7, %v24618_v0  ;;  %v13627_v33 = vmul.f32 %v26228_v12, %v13555_v7  ;;  %v13800_v57 = vmul.f32 %v24991_v36, %v13742_v60  ;;  %v26230_v7 = vld [vmem:[#allocation16_spill] sm:$0xff] }
 0x8fa   : > { %v13448_v23 = vadd.f32 1.4214138, %v13439_v47  ;;  %v13801_v5 = vmul.f32 %v24991_v36, %v13743_v38  ;;  %v13779_v43 = vsub.f32 %v13761_v59, %v13770_v32  ;;  %v13809_v1 = vadd.f32 %v25013_v56, %v13796_v46  ;;  %v26231_v46 = vld [vmem:[#allocation24_spill] sm:$0xff] }
 0x8fb   : > { %v13618_v54 = vadd.f32 %v13609_v50, %v24820_v49  ;;  %v13636_v16 = vadd.f32 %v13627_v33, %v24924_v30  ;;  %v13663_v8 = vmul.f32 %v13564_v58, %v24618_v0  ;;  %v13681_v63 = vmul.f32 %v26228_v12, %v13564_v58  ;;  %v26233_v50 = vld [vmem:[#allocation27_spill] sm:$0xff] }
 0x8fc   : > { %v13457_v22 = vmul.f32 %v24984_v3, %v13448_v23  ;;  %v13810_v25 = vadd.f32 %v25013_v56, %v13797_v4  ;;  %v13788_v14 = vmax.f32 %v13779_v43, 0.0  ;;  %v13811_v10 = vadd.f32 %v25013_v56, %v13798_v26  ;;  %v26232_v4 = vld [vmem:[#allocation30_spill] sm:$0xff] }
 0x8fd   : > { %v13645_v24 = vmul.f32 %v13618_v54, %v13618_v54  ;;  %v13672_v60 = vsub.f32 %v24820_v49, %v13663_v8  ;;  %v13717_v55 = vsub.f32 0.0, %v13618_v54  ;;  %v13690_v15 = vsub.f32 %v13681_v63, %v24924_v30 }
 0x8fe   : > { %v13466_v6 = vadd.f32 -0.28449672, %v13457_v22  ;;  %v13812_v0 = vadd.f32 %v25013_v56, %v13799_v39  ;;  %v13813_v42 = vadd.f32 %v25013_v56, %v13800_v57  ;;  %v13814_v49 = vadd.f32 %v25013_v56, %v13801_v5  ;;  %v26234_v39 = vld [vmem:[#allocation31_spill] sm:$0xff]  ;;  %v26235_v5 = vld [vmem:[#allocation18_spill] sm:$0xff] }
 0x8ff   : > { %v13654_v53 = vsub.f32 %v13636_v16, %v13645_v24  ;;  %v13699_v34 = vmul.f32 %v13672_v60, %v13672_v60  ;;  %v13726_v18 = vmul.f32 %v13717_v55, %v13672_v60  ;;  %v13735_v35 = vmul.f32 0.01, %v13672_v60  ;;  %v26236_v55 = vld [vmem:[#allocation6_spill] sm:$0xff] }
 0x900   : > { %v25032_v62 = vpop.eup %19113  ;;  %v13475_v48 = vmul.f32 %v24984_v3, %v13466_v6  ;;  %v13844_v13 = vmul.f32 %v13809_v1, %v26229_v27  ;;  %v13845_v52 = vmul.f32 %v13810_v25, %v26230_v7  ;;  %v25045_v47 = vmul.f32 %v13811_v10, %v26231_v46 }
 0x901   : > { %v13708_v30 = vsub.f32 %v13690_v15, %v13699_v34  ;;  %v13744_v38 = vsub.f32 %v13618_v54, %v13735_v35  ;;  %v13771_v45 = vmul.f32 0.02, %v13726_v18  ;;  %v13368_v32 = vmul.f32 0.3989423, %v25032_v62  ;;  %v25041_v51 = vpop.eup %19115 }
 0x902   : > { %v13484_v29 = vadd.f32 0.2548296, %v13475_v48  ;;  %v13847_v26 = vmul.f32 %v13812_v0, %v26232_v4  ;;  %vm13520_vm0 = vcmp.ge.f32.partialorder %v24748_v31, 0.0  ;;  %v13422_v58 = vmul.f32 1.0614054, %v25041_v51  ;;  %v25104_v31 = vld [vmem:[%s25773_s4 + $0x20] sm:$0xff] }
 0x903   : > { %v13753_v59 = vmul.f32 0.0001, %v13708_v30  ;;  %v25051_v12 = vmul.f32 %v13368_v32, %v26233_v50  ;;  %v13802_v33 = vmul.f32 %v24991_v36, %v13744_v38  ;;  %v25056_v57 = vmul.f32 %v13813_v42, %v26234_v39 }
 0x904   : > { %v13493_v23 = vmul.f32 %v24984_v3, %v13484_v29  ;;  %v13849_v43 = vmul.f32 %v13814_v49, %v26235_v5  ;;  %v13822_v54 = vmul.f32 %v25039_v2, %v24918_v17  ;;  %v13431_v8 = vadd.f32 -1.4531521, %v13422_v58  ;;  %v15127_v29 = vld [vmem:[%s25774_s5] sm:$0xff] }
 0x905   : > { %v13762_v16 = vadd.f32 %v13753_v59, %v13654_v53  ;;  %v25063_v63 = vmul.f32 %v25051_v12, %v26226_v40  ;;  %v13815_v22 = vadd.f32 %v25013_v56, %v13802_v33  ;;  %v13823_v3 = vmul.f32 %v25039_v2, %v24951_v20  ;;  %v26237_v33 = vld [vmem:[#allocation23_spill] sm:$0xff] }
 0x906   : > { %v13502_v1 = vmul.f32 %v24849_v9, %v13493_v23  ;;  %v13824_v25 = vmul.f32 %v25039_v2, %v24953_v28  ;;  %v13825_v24 = vmul.f32 %v25039_v2, %v24986_v44  ;;  %v13440_v60 = vmul.f32 %v25041_v51, %v13431_v8 }
 0x907   : > { %v13780_v17 = vsub.f32 %v13762_v16, %v13771_v45  ;;  %v25075_v15 = vmul.f32 %v13815_v22, %v26236_v55  ;;  %v13826_v6 = vmul.f32 %v25039_v2, %v24993_v37  ;;  %v13827_v9 = vmul.f32 %v25039_v2, %v13788_v14 }
 0x908   : > { %v13511_v10 = vsub.f32 1.0, %v13502_v1  ;;  %v13853_v20 = vmul.f32 %v13822_v54, %v26229_v27  ;;  %v13854_v0 = vmul.f32 %v13823_v3, %v26230_v7  ;;  %v13449_v53 = vadd.f32 1.4214138, %v13440_v60 }
 0x909   : > { %v13789_v28 = vmax.f32 %v13780_v17, 0.0  ;;  %v13855_v44 = vmul.f32 %v13824_v25, %v26231_v46  ;;  %v13856_v34 = vmul.f32 %v13825_v24, %v26232_v4  ;;  %v25085_v35 = vmul.f32 %v13826_v6, %v26234_v39 }
 0x90a   : > { %v13529_v18 = vsub.f32 0.0, %v13511_v10  ;;  %v13858_v48 = vmul.f32 %v13827_v9, %v26235_v5  ;;  %v17089_v37 = vpack.c.bf16 %v13854_v0, %v13845_v52  ;;  %v13458_v42 = vmul.f32 %v25041_v51, %v13449_v53  ;;  %v25119_v5 = vld [vmem:[%s25773_s4 + $0x28] sm:$0xff] }
 0x90b   : > { %v13828_v14 = vmul.f32 %v25039_v2, %v13789_v28  ;;  %v17091_v49 = vpack.c.bf16 %v13853_v20, %v13844_v13  ;;  %v17093_v27 = vpack.c.bf16 %v13856_v34, %v13847_v26  ;;  %v17095_v38 = vpack.c.bf16 %v13855_v44, %v25045_v47 }
 0x90c   : > { %v13538_v30 = vsel %vm13520_vm0, %v13511_v10, %v13529_v18  ;;  %17090 = vmatprep.subr.bf16.mxu0 %v17089_v37  ;;  %v17097_v45 = vpack.c.bf16 %v13858_v48, %v13849_v43  ;;  %v17099_v32 = vpack.c.bf16 %v25085_v35, %v25056_v57  ;;  %v13467_v52 = vadd.f32 -0.28449672, %v13458_v42  ;;  %v25113_v57 = vld [vmem:[#allocation2] sm:$0xff]  ;;  %v26238_v42 = vld [vmem:[#allocation34_spill] sm:$0xff] }
 0x90d   : > { %v13547_v7 = vadd.f32 1.0, %v13538_v30  ;;  %v25099_v46 = vmul.f32 %v13828_v14, %v26236_v55  ;;  %17092 = vmatpush1.bf16.msra.mxu0 %v17091_v49  ;;  %v19316_v13 = vmov 15   ;;  %v19317_v59 = vmov 16  }
 0x90e   : > { %17094 = vmatprep.subr.bf16.mxu0 %v17093_v27  ;;  %18950 = vset.pattern.permute.xlu0 %v19316_v13  ;;  %v13476_v4 = vmul.f32 %v25041_v51, %v13467_v52  ;;  %v19318_v22 = vmov 18   ;;  %v19319_v3 = vmov 17   ;;  %vm13521_vm1 = vcmp.ge.f32.partialorder %v24971_v41, 0.0 }
 0x90f   : > { %v13556_v47 = vmul.f32 0.5, %v13547_v7  ;;  %v17103_v26 = vpack.c.bf16 %v25099_v46, %v25075_v15  ;;  %15130 = vperm.xlu0 %18950, %v15127_v29   ;;  %18949 = vset.pattern.permute.xlu1 %v19317_v59 }
 0x910   : > { %16061 = vmatmul.mubr.msk.f32.vlgmr.msra.gmra.mrb[28].mxu0 %vm6444_vm7, %v25104_v31  ;;  %15143 = vperm.xlu1 %18949, %v15127_v29   ;;  %v13485_v39 = vadd.f32 0.2548296, %v13476_v4 }
 0x911   : > { %v13565_v58 = vsub.f32 1.0, %v13556_v47  ;;  %v13610_v50 = vmul.f32 %v13556_v47, %v26225_v11  ;;  %v13628_v23 = vmul.f32 %v26237_v33, %v13556_v47  ;;  %14796 = vmatprep.mubr.f32.mxu0 %v25113_v57  ;;  %17096 = vmatpush1.bf16.msra.mxu0 %v17095_v38 }
 0x912   : > { %17098 = vmatprep.subr.bf16.mxu0 %v17097_v45  ;;  %v13494_v1 = vmul.f32 %v25041_v51, %v13485_v39 }
 0x913   : > { %v13619_v43 = vadd.f32 %v13610_v50, %v24960_v21  ;;  %v13637_v54 = vadd.f32 %v13628_v23, %v24967_v61  ;;  %v13664_v16 = vmul.f32 %v13565_v58, %v26225_v11  ;;  %v13682_v8 = vmul.f32 %v26237_v33, %v13565_v58  ;;  %18953 = vset.pattern.permute.xlu0 %v19318_v22  ;;  %v19275_v22 = vld [vmem:[%s25775_s6 + $0x8] ss:$0 sm:$0xff] }
 0x914   : > { %16062 = vmatmul.mubr.msk.f32.gmra.mrb[30].mxu0 %vm6444_vm7, %v25119_v5  ;;  %18951 = vset.pattern.permute.xlu1 %v19319_v3  ;;  %v13503_v11 = vmul.f32 %v25032_v62, %v13494_v1 }
 0x915   : > { %v13646_v25 = vmul.f32 %v13619_v43, %v13619_v43  ;;  %v13673_v24 = vsub.f32 %v24960_v21, %v13664_v16  ;;  %v13691_v17 = vsub.f32 %v13682_v8, %v24967_v61  ;;  %v13718_v60 = vsub.f32 0.0, %v13619_v43  ;;  %14867 = vmatprep.mubr.f32.mxu0 %v25113_v57  ;;  %15651 = vperm.xlu1 %18951, %v15127_v29  }
 0x916   : > { %15664 = vperm.xlu0 %18953, %v15127_v29   ;;  %v13512_v9 = vsub.f32 1.0, %v13503_v11  ;;  %v19320_v61 = vmov 19  }
 0x917   : > { %v13655_v55 = vsub.f32 %v13637_v54, %v13646_v25  ;;  %v13700_v6 = vmul.f32 %v13673_v24, %v13673_v24  ;;  %v13727_v51 = vmul.f32 %v13718_v60, %v13673_v24  ;;  %v13736_v10 = vmul.f32 0.01, %v13673_v24 }
 0x918   : > { %16063 = vmatmul.mubr.msk.f32.vlgmr.msra.gmra.mrb[32].mxu0 %vm6444_vm7, %v25104_v31  ;;  %v13530_v21 = vsub.f32 0.0, %v13512_v9 }
 0x919   : > { %v13709_v20 = vsub.f32 %v13691_v17, %v13700_v6  ;;  %v13745_v0 = vsub.f32 %v13619_v43, %v13736_v10  ;;  %14873 = vmatprep.mubr.f32.mxu0 %v25113_v57  ;;  %17100 = vmatpush1.bf16.msra.mxu0 %v17099_v32  ;;  %v13772_v34 = vmul.f32 0.02, %v13727_v51 }
 0x91a   : > { %18952 = vset.pattern.permute.xlu1 %v19320_v61  ;;  %18954 = vset.pattern.permute.xlu0 %v19320_v61  ;;  %v13539_v53 = vsel %vm13521_vm1, %v13512_v9, %v13530_v21 }
 0x91b   : > { %v13754_v28 = vmul.f32 0.0001, %v13709_v20  ;;  %v13803_v62 = vmul.f32 %v24991_v36, %v13745_v0  ;;  %15677 = vperm.xlu1 %18952, %v15127_v29   ;;  %v13548_v18 = vadd.f32 1.0, %v13539_v53 }
 0x91c   : > { %16064 = vmatmul.mubr.msk.f32.gmra.mrb[34].mxu0 %vm6444_vm7, %v25119_v5 }
 0x91d   : > { %v13763_v44 = vadd.f32 %v13754_v28, %v13655_v55  ;;  %v13816_v35 = vadd.f32 %v25013_v56, %v13803_v62  ;;  %14944 = vmatprep.mubr.f32.mxu0 %v25113_v57  ;;  %v13557_v37 = vmul.f32 0.5, %v13548_v18 }
 0x91f   : > { %v13781_v48 = vsub.f32 %v13763_v44, %v13772_v34  ;;  %v13851_v14 = vmul.f32 %v13816_v35, %v26238_v42  ;;  %v13566_v49 = vsub.f32 1.0, %v13557_v37  ;;  %v13611_v27 = vmul.f32 %v13557_v37, %v26226_v40 }
 0x920   : > { %16065 = vmatmul.mubr.msk.f32.vlgmr.msra.gmra.mrb[36].mxu0 %vm6444_vm7, %v25104_v31  ;;  %v13629_v30 = vmul.f32 %v24996_v19, %v13557_v37 }
 0x921   : > { %v13790_v41 = vmax.f32 %v13781_v48, 0.0  ;;  %14950 = vmatprep.mubr.f32.mxu0 %v25113_v57  ;;  %v13620_v38 = vadd.f32 %v13611_v27, %v25051_v12  ;;  %v13665_v32 = vmul.f32 %v13566_v49, %v26226_v40  ;;  %v13683_v29 = vmul.f32 %v24996_v19, %v13566_v49 }
 0x922   : > { %v13638_v45 = vadd.f32 %v13629_v30, %v25063_v63 }
 0x923   : > { %v13829_v7 = vmul.f32 %v25039_v2, %v13790_v41  ;;  %v13647_v52 = vmul.f32 %v13620_v38, %v13620_v38  ;;  %v13674_v13 = vsub.f32 %v25051_v12, %v13665_v32  ;;  %v13692_v47 = vsub.f32 %v13683_v29, %v25063_v63 }
 0x924   : > { %16066 = vmatmul.mubr.msk.f32.gmra.mrb[38].mxu0 %vm6444_vm7, %v25119_v5  ;;  %v13719_v4 = vsub.f32 0.0, %v13620_v38 }
 0x925   : > { %15021 = vmatprep.mubr.f32.mxu0 %v25113_v57  ;;  %v13860_v59 = vmul.f32 %v13829_v7, %v26238_v42  ;;  %v13656_v58 = vsub.f32 %v13638_v45, %v13647_v52  ;;  %v13701_v50 = vmul.f32 %v13674_v13, %v13674_v13  ;;  %v13737_v33 = vmul.f32 0.01, %v13674_v13 }
 0x926   : > { %v13728_v40 = vmul.f32 %v13719_v4, %v13674_v13 }
 0x927   : > { %v17101_v19 = vpack.c.bf16 %v13860_v59, %v13851_v14  ;;  %v13710_v23 = vsub.f32 %v13692_v47, %v13701_v50  ;;  %v13746_v39 = vsub.f32 %v13620_v38, %v13737_v33 }
 0x928   : > { %v13773_v63 = vmul.f32 0.02, %v13728_v40 }
 0x929   : > { %17102 = vmatprep.subr.bf16.mxu0 %v17101_v19  ;;  %v13755_v43 = vmul.f32 0.0001, %v13710_v23  ;;  %v13804_v54 = vmul.f32 %v24991_v36, %v13746_v39 }
 0x92a   : > { %17104 = vmatpush1.bf16.msra.mxu0 %v17103_v26 }
 0x92b   : > { %v13764_v12 = vadd.f32 %v13755_v43, %v13656_v58  ;;  %v13817_v16 = vadd.f32 %v25013_v56, %v13804_v54 }
 0x92d   : > { %16067 = vmatmul.mubr.msk.f32.vlgmr.msra.gmra.mrb[40].mxu0 %vm6444_vm7, %v25104_v31  ;;  %v13782_v8 = vsub.f32 %v13764_v12, %v13773_v63  ;;  %v13852_v1 = vmul.f32 %v19275_v22, %v13817_v16 }
 0x92e   : > { %15027 = vmatprep.mubr.f32.mxu0 %v25113_v57 }
 0x92f   : > { %v13791_v36 = vmax.f32 %v13782_v8, 0.0 }
 0x931   : > { %16068 = vmatmul.mubr.msk.f32.gmra.mrb[42].mxu0 %vm6444_vm7, %v25119_v5  ;;  %v13830_v15 = vmul.f32 %v25039_v2, %v13791_v36 }
 0x932   : > { %16426 = vmatprep.mubr.msk.f32.mxu0 %vm6444_vm7, %v25104_v31 }
 0x933   : > { %v13861_v56 = vmul.f32 %v19275_v22, %v13830_v15 }
 0x935   : > { %v17105_v46 = vpack.c.bf16 %v13861_v56, %v13852_v1 }
 0x937   : > { %17106 = vmatprep.subr.bf16.mxu0 %v17105_v46 }
 0x938   : > { %17108 = vmatpush3.bf16.msra.mxu0 %v17105_v46 }
 0x93b   : > { %16427 = vmatmul.mubr.msk.f32.vlgmr.msra.gmra.mrb[44].mxu0 %vm6444_vm7, %v25119_v5 }
 0x98e   : > { %v25176_v26 = vpop.permute.xlu0 %15130 }
 0x98f   : > { %v25184_v2 = vpop.permute.xlu1 %15143 }
 0x9e3   : > { %v14792_v3 = vpop.f32.mrb[28].mxu0 }
 0x9e4   : > { %v25179_v57 = vadd.f32 %v25176_v26, %v14792_v3  ;;  %v14794_v25 = vpop.f32.mrb[29].mxu0 }
 0x9e5   : > { %v25182_v24 = vadd.f32 %v25176_v26, %v14794_v25 }
 0x9e6   : > { %v15434_v60 = vmul.f32 %v25179_v57, %v25179_v57 }
 0x9e7   : > { %v14798_v31 = vpop.f32.mrb[30].mxu0  ;;  %v15435_v55 = vmul.f32 %v25182_v24, %v25182_v24 }
 0x9e8   : > { %v25187_v17 = vadd.f32 %v25184_v2, %v14798_v31  ;;  %v14800_v5 = vpop.f32.mrb[31].mxu0 }
 0x9e9   : > { %v25192_v11 = vadd.f32 %v25184_v2, %v14800_v5 }
 0x9ea   : > { %19117 = vrsqrt.f32 %v25187_v17  ;;  %v25198_v6 = vadd.f32 %v15434_v60, %v25187_v17 }
 0x9eb   : > { %19119 = vrsqrt.f32 %v25192_v11  ;;  %v25202_v51 = vadd.f32 %v15435_v55, %v25192_v11  ;;  %v14869_v10 = vpop.f32.mrb[32].mxu0 }
 0x9ec   : > { %v25205_v9 = vadd.f32 %v25176_v26, %v14869_v10  ;;  %v14871_v20 = vpop.f32.mrb[33].mxu0 }
 0x9ed   : > { %v25208_v0 = vadd.f32 %v25176_v26, %v14871_v20 }
 0x9ee   : > { %v15436_v28 = vmul.f32 %v25205_v9, %v25205_v9 }
 0x9ef   : > { %v14875_v21 = vpop.f32.mrb[34].mxu0  ;;  %v15437_v44 = vmul.f32 %v25208_v0, %v25208_v0 }
 0x9f0   : > { %v25211_v61 = vadd.f32 %v25184_v2, %v14875_v21  ;;  %v14877_v62 = vpop.f32.mrb[35].mxu0 }
 0x9f1   : > { %v25216_v53 = vadd.f32 %v25184_v2, %v14877_v62 }
 0x9f2   : > { %19121 = vrsqrt.f32 %v25211_v61  ;;  %v25222_v34 = vadd.f32 %v15436_v28, %v25211_v61 }
 0x9f3   : > { %19123 = vrsqrt.f32 %v25216_v53  ;;  %v25226_v18 = vadd.f32 %v15437_v44, %v25216_v53  ;;  %v14946_v35 = vpop.f32.mrb[36].mxu0 }
 0x9f4   : > { %v19118_v48 = vpop.eup %19117  ;;  %v25229_v37 = vadd.f32 %v25176_v26, %v14946_v35  ;;  %v14948_v42 = vpop.f32.mrb[37].mxu0 }
 0x9f5   : > { %v19120_v14 = vpop.eup %19119  ;;  %v25232_v41 = vmul.f32 %v19118_v48, %v25179_v57  ;;  %v25235_v49 = vadd.f32 %v25176_v26, %v14948_v42  ;;  %v15164_v44 = vmul.f32 %v19118_v48, %v25187_v17 }
 0x9f6   : > { %v25238_v27 = vmul.f32 %v19120_v14, %v25182_v24  ;;  %v15438_v52 = vmul.f32 %v25229_v37, %v25229_v37 }
 0x9f7   : > { %v15182_v30 = vmul.f32 -0.5, %v25232_v41  ;;  %v15227_v38 = vand.u32 2147483647, %v25232_v41  ;;  %v14952_v45 = vpop.f32.mrb[38].mxu0  ;;  %v15439_v58 = vmul.f32 %v25235_v49, %v25235_v49  ;;  %vm15371_vm7 = vcmp.ge.f32.partialorder %v25232_v41, 0.0 }
 0x9f8   : > { %v15183_v32 = vmul.f32 -0.5, %v25238_v27  ;;  %v15228_v29 = vand.u32 2147483647, %v25238_v27  ;;  %v25245_v7 = vadd.f32 %v25184_v2, %v14952_v45  ;;  %v14954_v13 = vpop.f32.mrb[39].mxu0  ;;  %vm15372_vm4 = vcmp.ge.f32.partialorder %v25238_v27, 0.0 }
 0x9f9   : > { %v15191_v47 = vmul.f32 %v15182_v30, %v25232_v41  ;;  %v15236_v4 = vmul.f32 0.23164189, %v15227_v38  ;;  %v25251_v59 = vadd.f32 %v25184_v2, %v14954_v13  ;;  %v15165_v38 = vmul.f32 %v19120_v14, %v25192_v11 }
 0x9fa   : > { %v15192_v50 = vmul.f32 %v15183_v32, %v25238_v27  ;;  %v15237_v40 = vmul.f32 0.23164189, %v15228_v29  ;;  %19125 = vrsqrt.f32 %v25245_v7  ;;  %v25258_v33 = vadd.f32 %v15438_v52, %v25245_v7 }
 0x9fb   : > { %v15200_v19 = vmul.f32 1.442695, %v15191_v47  ;;  %v15245_v23 = vadd.f32 1.0, %v15236_v4  ;;  %19127 = vrsqrt.f32 %v25251_v59  ;;  %v25262_v39 = vadd.f32 %v15439_v58, %v25251_v59 }
 0x9fc   : > { %v25264_v43 = vpop.eup %19121  ;;  %v15202_v54 = vmul.f32 1.442695, %v15192_v50  ;;  %v15246_v12 = vadd.f32 1.0, %v15237_v40 }
 0x9fd   : > { %26239 = vst [vmem:[#allocation25_spill] sm:$0xff] %v25262_v39  ;;  %v25266_v63 = vpop.eup %19123  ;;  %19129 = vpow2.f32 %v15200_v19  ;;  %v25270_v16 = vmul.f32 %v25264_v43, %v25205_v9 }
 0x9fe   : > { %19131 = vrcp.f32 %v15245_v23  ;;  %v25274_v8 = vmul.f32 %v25266_v63, %v25208_v0 }
 0x9ff   : > { %19133 = vpow2.f32 %v15202_v54  ;;  %v15184_v22 = vmul.f32 -0.5, %v25270_v16  ;;  %v15229_v1 = vand.u32 2147483647, %v25270_v16  ;;  %vm15373_vm5 = vcmp.ge.f32.partialorder %v25270_v16, 0.0 }
 0xa00   : > { %19135 = vrcp.f32 %v15246_v12  ;;  %v15185_v36 = vmul.f32 -0.5, %v25274_v8  ;;  %v15230_v15 = vand.u32 2147483647, %v25274_v8  ;;  %v15023_v3 = vpop.f32.mrb[40].mxu0  ;;  %vm15374_vm9 = vcmp.ge.f32.partialorder %v25274_v8, 0.0 }
 0xa01   : > { %v15193_v56 = vmul.f32 %v15184_v22, %v25270_v16  ;;  %v15238_v46 = vmul.f32 0.23164189, %v15229_v1  ;;  %v25283_v60 = vadd.f32 %v25176_v26, %v15023_v3  ;;  %v15025_v5 = vpop.f32.mrb[41].mxu0 }
 0xa02   : > { %v15194_v25 = vmul.f32 %v15185_v36, %v25274_v8  ;;  %v15239_v31 = vmul.f32 0.23164189, %v15230_v15  ;;  %v25295_v42 = vadd.f32 %v25176_v26, %v15025_v5 }
 0xa03   : > { %v15204_v55 = vmul.f32 1.442695, %v15193_v56  ;;  %v15247_v10 = vadd.f32 1.0, %v15238_v46  ;;  %v15440_v32 = vmul.f32 %v25283_v60, %v25283_v60 }
 0xa04   : > { %v25285_v20 = vpop.eup %19125  ;;  %v15206_v21 = vmul.f32 1.442695, %v15194_v25  ;;  %v15248_v28 = vadd.f32 1.0, %v15239_v31  ;;  %v15029_v30 = vpop.f32.mrb[42].mxu0  ;;  %v15441_v23 = vmul.f32 %v25295_v42, %v25295_v42 }
 0xa05   : > { %v25287_v62 = vpop.eup %19127  ;;  %19137 = vpow2.f32 %v15204_v55  ;;  %v25292_v35 = vmul.f32 %v25285_v20, %v25229_v37  ;;  %v15031_v17 = vpop.f32.mrb[43].mxu0  ;;  %v25309_v13 = vadd.f32 %v25184_v2, %v15029_v30 }
 0xa06   : > { %19139 = vrcp.f32 %v15247_v10  ;;  %v25300_v45 = vmul.f32 %v25287_v62, %v25235_v49  ;;  %v25345_v30 = vadd.f32 %v25184_v2, %v15031_v17 }
 0xa07   : > { %v25304_v48 = vpop.eup %19129  ;;  %19141 = vpow2.f32 %v15206_v21  ;;  %v15186_v29 = vmul.f32 -0.5, %v25292_v35  ;;  %v15231_v52 = vand.u32 2147483647, %v25292_v35  ;;  %vm15375_vm10 = vcmp.ge.f32.partialorder %v25292_v35, 0.0 }
 0xa08   : > { %v25311_v11 = vpop.eup %19131  ;;  %v15218_v14 = vmul.f32 0.3989423, %v25304_v48  ;;  %19143 = vrcp.f32 %v15248_v28  ;;  %v15187_v47 = vmul.f32 -0.5, %v25300_v45  ;;  %v15232_v4 = vand.u32 2147483647, %v25300_v45 }
 0xa09   : > { %v25316_v58 = vpop.eup %19133  ;;  %v15272_v50 = vmul.f32 1.0614054, %v25311_v11  ;;  %v15195_v40 = vmul.f32 %v15186_v29, %v25292_v35  ;;  %v15240_v19 = vmul.f32 0.23164189, %v15231_v52  ;;  %19145 = vrsqrt.f32 %v25309_v13 }
 0xa0a   : > { %v25322_v54 = vpop.eup %19135  ;;  %v25324_v12 = vmul.f32 %v15218_v14, %v15164_v44  ;;  %v15219_v22 = vmul.f32 0.3989423, %v25316_v58  ;;  %v15196_v1 = vmul.f32 %v15187_v47, %v25300_v45  ;;  %v15241_v36 = vmul.f32 0.23164189, %v15232_v4 }
 0xa0b   : > { %v15281_v15 = vadd.f32 -1.4531521, %v15272_v50  ;;  %v15273_v56 = vmul.f32 1.0614054, %v25322_v54  ;;  %v15208_v46 = vmul.f32 1.442695, %v15195_v40  ;;  %v25342_v44 = vadd.f32 %v15440_v32, %v25309_v13 }
 0xa0c   : > { %v25332_v3 = vmul.f32 %v25324_v12, %v25179_v57  ;;  %v25334_v25 = vmul.f32 %v15219_v22, %v15165_v38  ;;  %v15249_v31 = vadd.f32 1.0, %v15240_v19  ;;  %v15210_v5 = vmul.f32 1.442695, %v15196_v1 }
 0xa0d   : > { %v15290_v55 = vmul.f32 %v25311_v11, %v15281_v15  ;;  %v15282_v10 = vadd.f32 -1.4531521, %v15273_v56  ;;  %19147 = vpow2.f32 %v15208_v46  ;;  %v15250_v21 = vadd.f32 1.0, %v15241_v36  ;;  %26240 = vst [vmem:[#allocation26_spill] sm:$0xff] %v25342_v44 }
 0xa0e   : > { %v25339_v28 = vmul.f32 %v25334_v25, %v25182_v24  ;;  %19149 = vrcp.f32 %v15249_v31  ;;  %v15166_v47 = vmul.f32 %v25264_v43, %v25211_v61  ;;  %v25356_v32 = vadd.f32 %v15441_v23, %v25345_v30  ;;  %v16428_v50 = vpop.f32.mrb[44].mxu0 }
 0xa0f   : > { %v25347_v38 = vpop.eup %19137  ;;  %v15299_v29 = vadd.f32 1.4214138, %v15290_v55  ;;  %v15291_v52 = vmul.f32 %v25322_v54, %v15282_v10  ;;  %19151 = vpow2.f32 %v15210_v5  ;;  %v15167_v1 = vmul.f32 %v25266_v63, %v25216_v53  ;;  %v15100_v36 = vpop.f32.mrb[45].mxu0 }
 0xa10   : > { %v25350_v14 = vpop.eup %19139  ;;  %v15220_v4 = vmul.f32 0.3989423, %v25347_v38  ;;  %19153 = vrcp.f32 %v15250_v21  ;;  %26241 = vst [vmem:[#allocation22_spill] sm:$0xff] %v25356_v32  ;;  %v15168_v23 = vmul.f32 %v25285_v20, %v25245_v7  ;;  %v25372_v56 = vadd.f32 %v25176_v26, %v15100_v36 }
 0xa11   : > { %v25358_v17 = vpop.eup %19141  ;;  %v15308_v40 = vmul.f32 %v25311_v11, %v15299_v29  ;;  %v15300_v19 = vadd.f32 1.4214138, %v15291_v52  ;;  %v15274_v22 = vmul.f32 1.0614054, %v25350_v14  ;;  %v25383_v10 = vadd.f32 %v16428_v50, %v25184_v2 }
 0xa12   : > { %v25364_v15 = vpop.eup %19143  ;;  %v25366_v61 = vmul.f32 %v15220_v4, %v15166_v47  ;;  %v15221_v43 = vmul.f32 0.3989423, %v25358_v17  ;;  %26242 = vst [vmem:[#allocation20_spill] sm:$0xff] %v25372_v56  ;;  %v15442_v7 = vmul.f32 %v25372_v56, %v25372_v56  ;;  %v15169_v4 = vmul.f32 %v25287_v62, %v25251_v59 }
 0xa13   : > { %v15317_v46 = vadd.f32 -0.28449672, %v15308_v40  ;;  %v15309_v31 = vmul.f32 %v25322_v54, %v15300_v19  ;;  %v15283_v5 = vadd.f32 -1.4531521, %v15274_v22  ;;  %v15275_v55 = vmul.f32 1.0614054, %v25364_v15  ;;  %v25387_v26 = vpop.eup %19145 }
 0xa14   : > { %v25378_v53 = vmul.f32 %v25366_v61, %v25205_v9  ;;  %v25380_v63 = vmul.f32 %v15221_v43, %v15167_v1  ;;  %v25399_v2 = vmul.f32 %v25387_v26, %v25283_v60  ;;  %v25402_v50 = vadd.f32 %v15442_v7, %v25383_v10 }
 0xa15   : > { %v15326_v20 = vmul.f32 %v25311_v11, %v15317_v46  ;;  %v15318_v21 = vadd.f32 -0.28449672, %v15309_v31  ;;  %v15292_v29 = vmul.f32 %v25350_v14, %v15283_v5  ;;  %v15284_v52 = vadd.f32 -1.4531521, %v15275_v55 }
 0xa16   : > { %v25393_v47 = vmul.f32 %v25380_v63, %v25208_v0  ;;  %26243 = vst [vmem:[#allocation19_spill] sm:$0xff] %v25399_v2  ;;  %26244 = vst [vmem:[#allocation17_spill] sm:$0xff] %v25402_v50  ;;  %v15188_v62 = vmul.f32 -0.5, %v25399_v2  ;;  %v15233_v46 = vand.u32 2147483647, %v25399_v2  ;;  %19155 = vrsqrt.f32 %v25345_v30 }
 0xa17   : > { %v25404_v40 = vpop.eup %19147  ;;  %v15335_v19 = vadd.f32 0.2548296, %v15326_v20  ;;  %v15327_v22 = vmul.f32 %v25322_v54, %v15318_v21  ;;  %v15301_v1 = vadd.f32 1.4214138, %v15292_v29  ;;  %v15293_v36 = vmul.f32 %v25364_v15, %v15284_v52 }
 0xa18   : > { %v25408_v43 = vpop.eup %19149  ;;  %v15222_v59 = vmul.f32 0.3989423, %v25404_v40  ;;  %v15197_v32 = vmul.f32 %v15188_v62, %v25399_v2  ;;  %19157 = vrsqrt.f32 %v25383_v10  ;;  %vm15376_vm11 = vcmp.ge.f32.partialorder %v25300_v45, 0.0 }
 0xa19   : > { %v25415_v31 = vpop.eup %19151  ;;  %v15344_v5 = vmul.f32 %v25311_v11, %v15335_v19  ;;  %v15336_v55 = vadd.f32 0.2548296, %v15327_v22  ;;  %v15310_v7 = vmul.f32 %v25350_v14, %v15301_v1  ;;  %v15302_v20 = vadd.f32 1.4214138, %v15293_v36 }
 0xa1a   : > { %v25419_v21 = vpop.eup %19153  ;;  %v15276_v29 = vmul.f32 1.0614054, %v25408_v43  ;;  %v25423_v52 = vmul.f32 %v15222_v59, %v15168_v23  ;;  %v15223_v50 = vmul.f32 0.3989423, %v25415_v31 }
 0xa1b   : > { %v15353_v44 = vmul.f32 %v25304_v48, %v15344_v5  ;;  %v15345_v11 = vmul.f32 %v25322_v54, %v15336_v55  ;;  %v15319_v19 = vadd.f32 -0.28449672, %v15310_v7  ;;  %v15311_v22 = vmul.f32 %v25364_v15, %v15302_v20 }
 0xa1c   : > { %v15285_v1 = vadd.f32 -1.4531521, %v15276_v29  ;;  %v25432_v36 = vmul.f32 %v25423_v52, %v25229_v37  ;;  %v15277_v56 = vmul.f32 1.0614054, %v25419_v21  ;;  %v25435_v23 = vmul.f32 %v15223_v50, %v15169_v4 }
 0xa1d   : > { %v15362_v59 = vsub.f32 1.0, %v15353_v44  ;;  %v15354_v39 = vmul.f32 %v25316_v58, %v15345_v11  ;;  %v15328_v62 = vmul.f32 %v25350_v14, %v15319_v19  ;;  %v15320_v48 = vadd.f32 -0.28449672, %v15311_v22 }
 0xa1e   : > { %v15294_v54 = vmul.f32 %v25408_v43, %v15285_v1  ;;  %v15286_v5 = vadd.f32 -1.4531521, %v15277_v56  ;;  %v25442_v55 = vmul.f32 %v25435_v23, %v25235_v49  ;;  %v15212_v7 = vmul.f32 1.442695, %v15197_v32 }
 0xa1f   : > { %v15380_v20 = vsub.f32 0.0, %v15362_v59  ;;  %v15363_v29 = vsub.f32 1.0, %v15354_v39  ;;  %v15337_v2 = vadd.f32 0.2548296, %v15328_v62  ;;  %v15329_v4 = vmul.f32 %v25364_v15, %v15320_v48 }
 0xa20   : > { %v15303_v44 = vadd.f32 1.4214138, %v15294_v54  ;;  %v15295_v58 = vmul.f32 %v25419_v21, %v15286_v5  ;;  %v15242_v50 = vmul.f32 0.23164189, %v15233_v46  ;;  %v25450_v1 = vpop.eup %19155  ;;  %19159 = vpow2.f32 %v15212_v7 }
 0xa21   : > { %v15389_v11 = vsel %vm15371_vm7, %v15362_v59, %v15380_v20  ;;  %v15381_v56 = vsub.f32 0.0, %v15363_v29  ;;  %v15346_v19 = vmul.f32 %v25350_v14, %v15337_v2  ;;  %v15338_v22 = vadd.f32 0.2548296, %v15329_v4 }
 0xa22   : > { %v15398_v32 = vadd.f32 1.0, %v15389_v11  ;;  %v15312_v39 = vmul.f32 %v25408_v43, %v15303_v44  ;;  %v15304_v62 = vadd.f32 1.4214138, %v15295_v58  ;;  %v15251_v4 = vadd.f32 1.0, %v15242_v50 }
 0xa23   : > { %v15390_v48 = vsel %vm15372_vm4, %v15363_v29, %v15381_v56  ;;  %v15355_v46 = vmul.f32 %v25347_v38, %v15346_v19  ;;  %v15347_v41 = vmul.f32 %v25364_v15, %v15338_v22  ;;  %v25462_v44 = vmul.f32 %v25450_v1, %v25295_v42 }
 0xa24   : > { %v15407_v59 = vmul.f32 0.5, %v15398_v32  ;;  %v15399_v54 = vadd.f32 1.0, %v15390_v48  ;;  %v15321_v14 = vadd.f32 -0.28449672, %v15312_v39  ;;  %v15313_v2 = vmul.f32 %v25419_v21, %v15304_v62 }
 0xa25   : > { %v15364_v5 = vsub.f32 1.0, %v15355_v46  ;;  %v15356_v20 = vmul.f32 %v25358_v17, %v15347_v41  ;;  %19161 = vrcp.f32 %v15251_v4  ;;  %vm15378_vm2 = vcmp.ge.f32.partialorder %v25462_v44, 0.0 }
 0xa26   : > { %v15416_v27 = vsub.f32 1.0, %v15407_v59  ;;  %v15461_v29 = vmul.f32 %v15407_v59, %v25179_v57  ;;  %v15479_v38 = vmul.f32 %v25198_v6, %v15407_v59  ;;  %v15408_v15 = vmul.f32 0.5, %v15399_v54 }
 0xa27   : > { %v15382_v7 = vsub.f32 0.0, %v15364_v5  ;;  %v15365_v58 = vsub.f32 1.0, %v15356_v20  ;;  %v15330_v11 = vmul.f32 %v25408_v43, %v15321_v14  ;;  %v15322_v56 = vadd.f32 -0.28449672, %v15313_v2  ;;  %v25489_v2 = vpop.eup %19157 }
 0xa28   : > { %v25468_v19 = vadd.f32 %v15461_v29, %v25324_v12  ;;  %v15488_v17 = vadd.f32 %v15479_v38, %v25332_v3  ;;  %v15515_v50 = vmul.f32 %v15416_v27, %v25179_v57  ;;  %v15533_v22 = vmul.f32 %v25198_v6, %v15416_v27 }
 0xa29   : > { %v15417_v32 = vsub.f32 1.0, %v15408_v15  ;;  %v15462_v39 = vmul.f32 %v15408_v15, %v25182_v24  ;;  %v15480_v62 = vmul.f32 %v25202_v51, %v15408_v15  ;;  %v15391_v48 = vsel %vm15373_vm5, %v15364_v5, %v15382_v7 }
 0xa2a   : > { %v15497_v46 = vmul.f32 %v25468_v19, %v25468_v19  ;;  %v15524_v41 = vsub.f32 %v25324_v12, %v15515_v50  ;;  %v15542_v59 = vsub.f32 %v15533_v22, %v25332_v3  ;;  %v15569_v54 = vsub.f32 0.0, %v25468_v19  ;;  %v25493_v3 = vpop.eup %19159 }
 0xa2b   : > { %v25484_v57 = vadd.f32 %v15462_v39, %v25334_v25  ;;  %v15489_v6 = vadd.f32 %v15480_v62, %v25339_v28  ;;  %v15516_v14 = vmul.f32 %v15417_v32, %v25182_v24  ;;  %v15534_v16 = vmul.f32 %v25202_v51, %v15417_v32 }
 0xa2c   : > { %v15506_v5 = vsub.f32 %v15488_v17, %v15497_v46  ;;  %v15551_v20 = vmul.f32 %v15524_v41, %v15524_v41  ;;  %v15578_v12 = vmul.f32 %v15569_v54, %v15524_v41  ;;  %v25491_v27 = vmul.f32 0.01, %v15524_v41 }
 0xa2d   : > { %v15498_v29 = vmul.f32 %v25484_v57, %v25484_v57  ;;  %v15525_v38 = vsub.f32 %v25334_v25, %v15516_v14  ;;  %v15543_v15 = vsub.f32 %v15534_v16, %v25339_v28  ;;  %v15570_v24 = vsub.f32 0.0, %v25484_v57 }
 0xa2e   : > { %v15560_v7 = vsub.f32 %v15542_v59, %v15551_v20  ;;  %v15596_v51 = vsub.f32 %v25468_v19, %v25491_v27  ;;  %v15400_v17 = vadd.f32 1.0, %v15391_v48  ;;  %v15383_v41 = vsub.f32 0.0, %v15365_v58 }
 0xa2f   : > { %v15507_v50 = vsub.f32 %v15489_v6, %v15498_v29  ;;  %v15552_v22 = vmul.f32 %v15525_v38, %v15525_v38  ;;  %v15579_v32 = vmul.f32 %v15570_v24, %v15525_v38  ;;  %v25502_v39 = vmul.f32 0.01, %v15525_v38 }
 0xa30   : > { %v15605_v62 = vmul.f32 0.0001, %v15560_v7  ;;  %v15409_v46 = vmul.f32 0.5, %v15400_v17  ;;  %v15339_v54 = vadd.f32 0.2548296, %v15330_v11  ;;  %v15331_v14 = vmul.f32 %v25419_v21, %v15322_v56 }
 0xa31   : > { %v25504_v25 = vmul.f32 0.02, %v15578_v12  ;;  %v15561_v28 = vsub.f32 %v15543_v15, %v15552_v22  ;;  %v15597_v59 = vsub.f32 %v25484_v57, %v25502_v39  ;;  %v25513_v29 = vmul.f32 0.02, %v15579_v32 }
 0xa32   : > { %v25509_v16 = vadd.f32 %v15605_v62, %v15506_v5  ;;  %v15418_v4 = vsub.f32 1.0, %v15409_v46  ;;  %v15463_v48 = vmul.f32 %v15409_v46, %v25205_v9  ;;  %v15481_v6 = vmul.f32 %v25222_v34, %v15409_v46 }
 0xa33   : > { %v15606_v20 = vmul.f32 0.0001, %v15561_v28  ;;  %v15392_v11 = vsel %vm15374_vm9, %v15365_v58, %v15383_v41  ;;  %v15348_v12 = vmul.f32 %v25408_v43, %v15339_v54  ;;  %v15340_v32 = vadd.f32 0.2548296, %v15331_v14  ;;  %v25537_v41 = vpop.eup %19161 }
 0xa34   : > { %v15632_v56 = vsub.f32 %v25509_v16, %v25504_v25  ;;  %v25522_v5 = vadd.f32 %v15463_v48, %v25366_v61  ;;  %v15490_v38 = vadd.f32 %v15481_v6, %v25378_v53  ;;  %v15517_v15 = vmul.f32 %v15418_v4, %v25205_v9  ;;  %v26245_v25 = vld [vmem:[#allocation25_spill] sm:$0xff] }
 0xa35   : > { %v25526_v24 = vadd.f32 %v15606_v20, %v15507_v50  ;;  %v15535_v7 = vmul.f32 %v25222_v34, %v15418_v4  ;;  %v15401_v8 = vadd.f32 1.0, %v15392_v11  ;;  %v15357_v58 = vmul.f32 %v25404_v40, %v15348_v12 }
 0xa36   : > { %v15499_v43 = vmul.f32 %v25522_v5, %v25522_v5  ;;  %v15526_v17 = vsub.f32 %v25366_v61, %v15517_v15  ;;  %v15571_v22 = vsub.f32 0.0, %v25522_v5  ;;  %v15170_v14 = vmul.f32 %v25387_v26, %v25309_v13 }
 0xa37   : > { %v15633_v62 = vsub.f32 %v25526_v24, %v25513_v29  ;;  %v15544_v9 = vsub.f32 %v15535_v7, %v25378_v53  ;;  %v15410_v50 = vmul.f32 0.5, %v15401_v8  ;;  %v15366_v46 = vsub.f32 1.0, %v15357_v58 }
 0xa38   : > { %v15508_v34 = vsub.f32 %v15490_v38, %v15499_v43  ;;  %v15553_v54 = vmul.f32 %v15526_v17, %v15526_v17  ;;  %v15580_v40 = vmul.f32 %v15571_v22, %v15526_v17  ;;  %v25539_v28 = vmul.f32 0.01, %v15526_v17 }
 0xa39   : > { %v15419_v4 = vsub.f32 1.0, %v15410_v50  ;;  %v15464_v61 = vmul.f32 %v15410_v50, %v25208_v0  ;;  %v15482_v48 = vmul.f32 %v25226_v18, %v15410_v50  ;;  %v15384_v11 = vsub.f32 0.0, %v15366_v46 }
 0xa3a   : > { %v15562_v6 = vsub.f32 %v15544_v9, %v15553_v54  ;;  %v15598_v53 = vsub.f32 %v25522_v5, %v25539_v28  ;;  %v25547_v20 = vmul.f32 0.02, %v15580_v40  ;;  %v15349_v26 = vmul.f32 %v25419_v21, %v15340_v32 }
 0xa3b   : > { %v25550_v12 = vadd.f32 %v15464_v61, %v25380_v63  ;;  %v15491_v38 = vadd.f32 %v15482_v48, %v25393_v47  ;;  %v15518_v15 = vmul.f32 %v15419_v4, %v25208_v0  ;;  %v15536_v7 = vmul.f32 %v25226_v18, %v15419_v4 }
 0xa3c   : > { %v15607_v8 = vmul.f32 0.0001, %v15562_v6  ;;  %v15393_v13 = vsel %vm15375_vm10, %v15366_v46, %v15384_v11  ;;  %v15224_v58 = vmul.f32 0.3989423, %v25493_v3  ;;  %v15358_v35 = vmul.f32 %v25415_v31, %v15349_v26 }
 0xa3d   : > { %v15500_v43 = vmul.f32 %v25550_v12, %v25550_v12  ;;  %v15527_v17 = vsub.f32 %v25380_v63, %v15518_v15  ;;  %v15545_v22 = vsub.f32 %v15536_v7, %v25393_v47  ;;  %v15572_v0 = vsub.f32 0.0, %v25550_v12 }
 0xa3e   : > { %v15616_v18 = vadd.f32 %v15607_v8, %v15508_v34  ;;  %v15402_v9 = vadd.f32 1.0, %v15393_v13  ;;  %v15278_v50 = vmul.f32 1.0614054, %v25537_v41  ;;  %v15367_v61 = vsub.f32 1.0, %v15358_v35 }
 0xa3f   : > { %v15509_v21 = vsub.f32 %v15491_v38, %v15500_v43  ;;  %v15554_v32 = vmul.f32 %v15527_v17, %v15527_v17  ;;  %v15581_v46 = vmul.f32 %v15572_v0, %v15527_v17  ;;  %v25567_v54 = vmul.f32 0.01, %v15527_v17 }
 0xa40   : > { %v15634_v40 = vsub.f32 %v15616_v18, %v25547_v20  ;;  %v15411_v4 = vmul.f32 0.5, %v15402_v9  ;;  %v15287_v63 = vadd.f32 -1.4531521, %v15278_v50  ;;  %v25572_v34 = vmul.f32 %v15224_v58, %v15170_v14 }
 0xa41   : > { %v15563_v48 = vsub.f32 %v15545_v22, %v15554_v32  ;;  %v15599_v47 = vsub.f32 %v25550_v12, %v25567_v54  ;;  %v25576_v31 = vmul.f32 %v25450_v1, %v25345_v30  ;;  %v25578_v6 = vmul.f32 0.02, %v15581_v46 }
 0xa42   : > { %v15420_v11 = vsub.f32 1.0, %v15411_v4  ;;  %v15465_v38 = vmul.f32 %v15411_v4, %v25229_v37  ;;  %v15483_v20 = vmul.f32 %v25258_v33, %v15411_v4  ;;  %v15385_v7 = vsub.f32 0.0, %v15367_v61 }
 0xa43   : > { %v15608_v15 = vmul.f32 0.0001, %v15563_v48  ;;  %v15296_v8 = vmul.f32 %v25537_v41, %v15287_v63  ;;  %v25585_v13 = vmul.f32 %v25572_v34, %v25283_v60  ;;  %v15189_v22 = vmul.f32 -0.5, %v25462_v44 }
 0xa44   : > { %v25588_v14 = vadd.f32 %v15465_v38, %v25423_v52  ;;  %v15492_v30 = vadd.f32 %v15483_v20, %v25432_v36  ;;  %v15519_v1 = vmul.f32 %v15420_v11, %v25229_v37  ;;  %v15537_v26 = vmul.f32 %v25258_v33, %v15420_v11 }
 0xa45   : > { %v15617_v58 = vadd.f32 %v15608_v15, %v15509_v21  ;;  %v15394_v43 = vsel %vm15376_vm11, %v15367_v61, %v15385_v7  ;;  %v15305_v17 = vadd.f32 1.4214138, %v15296_v8  ;;  %v15198_v45 = vmul.f32 %v15189_v22, %v25462_v44 }
 0xa46   : > { %v15501_v0 = vmul.f32 %v25588_v14, %v25588_v14  ;;  %v15528_v18 = vsub.f32 %v25423_v52, %v15519_v1  ;;  %v15546_v9 = vsub.f32 %v15537_v26, %v25432_v36  ;;  %v15573_v35 = vsub.f32 0.0, %v25588_v14 }
 0xa47   : > { %v15635_v37 = vsub.f32 %v15617_v58, %v25578_v6  ;;  %v15403_v50 = vadd.f32 1.0, %v15394_v43  ;;  %v15314_v33 = vmul.f32 %v25537_v41, %v15305_v17  ;;  %v25609_v52 = vmax.f32 %v15632_v56, 0.0 }
 0xa48   : > { %v15510_v21 = vsub.f32 %v15492_v30, %v15501_v0  ;;  %v15555_v32 = vmul.f32 %v15528_v18, %v15528_v18  ;;  %v15582_v46 = vmul.f32 %v15573_v35, %v15528_v18  ;;  %v25604_v4 = vmul.f32 0.01, %v15528_v18  ;;  %v26246_v18 = vld [vmem:[#allocation19_spill] sm:$0xff] }
 0xa49   : > { %v15412_v36 = vmul.f32 0.5, %v15403_v50  ;;  %v15323_v61 = vadd.f32 -0.28449672, %v15314_v33  ;;  %v15214_v63 = vmul.f32 1.442695, %v15198_v45  ;;  %v25614_v48 = vmax.f32 %v15633_v62, 0.0 }
 0xa4a   : > { %v15564_v6 = vsub.f32 %v15546_v9, %v15555_v32  ;;  %v15600_v11 = vsub.f32 %v25588_v14, %v25604_v4  ;;  %v15234_v38 = vand.u32 2147483647, %v25462_v44  ;;  %v25622_v7 = vmax.f32 %v15634_v40, 0.0 }
 0xa4b   : > { %v15421_v20 = vsub.f32 1.0, %v15412_v36  ;;  %v15466_v15 = vmul.f32 %v15412_v36, %v25235_v49  ;;  %v15484_v16 = vmul.f32 %v26245_v25, %v15412_v36  ;;  %v15332_v56 = vmul.f32 %v25537_v41, %v15323_v61 }
 0xa4c   : > { %v15609_v8 = vmul.f32 0.0001, %v15564_v6  ;;  %19163 = vpow2.f32 %v15214_v63  ;;  %v15243_v29 = vmul.f32 0.23164189, %v15234_v38  ;;  %v15627_v26 = vmul.f32 0.02, %v15582_v46  ;;  %v25636_v46 = vpop.permute.xlu1 %15651 }
 0xa4d   : > { %v15475_v24 = vadd.f32 %v15466_v15, %v25435_v23  ;;  %v15493_v62 = vadd.f32 %v15484_v16, %v25442_v55  ;;  %v15520_v14 = vmul.f32 %v15421_v20, %v25235_v49  ;;  %v15538_v30 = vmul.f32 %v26245_v25, %v15421_v20  ;;  %v26247_v49 = vld [vmem:[#allocation20_spill] sm:$0xff]  ;;  %v25643_v25 = vpop.permute.xlu0 %15664 }
 0xa4e   : > { %v15618_v1 = vadd.f32 %v15609_v8, %v15510_v21  ;;  %v15341_v58 = vadd.f32 0.2548296, %v15332_v56  ;;  %v15252_v43 = vadd.f32 1.0, %v15243_v29  ;;  %vm15377_vm12 = vcmp.ge.f32.partialorder %v26246_v18, 0.0 }
 0xa4f   : > { %v15502_v17 = vmul.f32 %v15475_v24, %v15475_v24  ;;  %v15529_v22 = vsub.f32 %v25435_v23, %v15520_v14  ;;  %v15547_v40 = vsub.f32 %v15538_v30, %v25442_v55  ;;  %v15574_v0 = vsub.f32 0.0, %v15475_v24 }
 0xa50   : > { %v15636_v9 = vsub.f32 %v15618_v1, %v15627_v26  ;;  %v15350_v35 = vmul.f32 %v25537_v41, %v15341_v58  ;;  %19165 = vrcp.f32 %v15252_v43  ;;  %v25634_v50 = vmul.f32 %v25489_v2, %v26247_v49 }
 0xa51   : > { %v15511_v33 = vsub.f32 %v15493_v62, %v15502_v17  ;;  %v15556_v45 = vmul.f32 %v15529_v22, %v15529_v22  ;;  %v15583_v21 = vmul.f32 %v15574_v0, %v15529_v22  ;;  %v15592_v32 = vmul.f32 0.01, %v15529_v22 }
 0xa52   : > { %v15644_v23 = vmax.f32 %v15635_v37, 0.0  ;;  %v15359_v55 = vmul.f32 %v25493_v3, %v15350_v35  ;;  %v15190_v4 = vmul.f32 -0.5, %v25634_v50  ;;  %v15235_v36 = vand.u32 2147483647, %v25634_v50 }
 0xa53   : > { %v15645_v41 = vmax.f32 %v15636_v9, 0.0  ;;  %v15565_v61 = vsub.f32 %v15547_v40, %v15556_v45  ;;  %v15601_v63 = vsub.f32 %v15475_v24, %v15592_v32  ;;  %v15628_v6 = vmul.f32 0.02, %v15583_v21 }
 0xa54   : > { %v15368_v38 = vsub.f32 1.0, %v15359_v55  ;;  %v15199_v20 = vmul.f32 %v15190_v4, %v25634_v50  ;;  %v15244_v15 = vmul.f32 0.23164189, %v15235_v36  ;;  %v15654_v3 = vmul.f32 %v25636_v46, %v15596_v51 }
 0xa55   : > { %v15610_v37 = vmul.f32 0.0001, %v15565_v61  ;;  %v15655_v16 = vmul.f32 %v25636_v46, %v15597_v59  ;;  %v15656_v56 = vmul.f32 %v25636_v46, %v15598_v53  ;;  %v15657_v8 = vmul.f32 %v25636_v46, %v15599_v47  ;;  %v25672_v53 = vpop.permute.xlu1 %15677 }
 0xa56   : > { %v25661_v29 = vpop.eup %19163  ;;  %v15386_v19 = vsub.f32 0.0, %v15368_v38  ;;  %v15216_v27 = vmul.f32 1.442695, %v15199_v20  ;;  %v15253_v51 = vadd.f32 1.0, %v15244_v15  ;;  %v15658_v57 = vmul.f32 %v25636_v46, %v15600_v11 }
 0xa57   : > { %v15619_v39 = vadd.f32 %v15610_v37, %v15511_v33  ;;  %v15225_v59 = vmul.f32 0.3989423, %v25661_v29  ;;  %v15659_v5 = vmul.f32 %v25636_v46, %v15601_v63  ;;  %v15667_v28 = vadd.f32 %v25643_v25, %v15654_v3  ;;  %v26248_v33 = vld [vmem:[#allocation26_spill] sm:$0xff] }
 0xa58   : > { %v15395_v12 = vsel %vm15377_vm12, %v15368_v38, %v15386_v19  ;;  %19167 = vpow2.f32 %v15216_v27  ;;  %v15668_v54 = vadd.f32 %v25643_v25, %v15655_v16  ;;  %v15669_v47 = vadd.f32 %v25643_v25, %v15656_v56 }
 0xa59   : > { %v15637_v11 = vsub.f32 %v15619_v39, %v15628_v6  ;;  %v15404_v24 = vadd.f32 1.0, %v15395_v12  ;;  %v25679_v62 = vmul.f32 %v15225_v59, %v25576_v31  ;;  %19169 = vrcp.f32 %v15253_v51  ;;  %15698 = vst [vmem:[%s25666_s28] sm:$0xff] %v15667_v28 }
 0xa5a   : > { %v25682_v14 = vpop.eup %19165  ;;  %v15670_v30 = vadd.f32 %v25643_v25, %v15657_v8  ;;  %v15671_v1 = vadd.f32 %v25643_v25, %v15658_v57  ;;  %v15672_v26 = vadd.f32 %v25643_v25, %v15659_v5  ;;  %15699 = vst [vmem:[%s25666_s28 + $0x8] sm:$0xff] %v15668_v54  ;;  %15700 = vst [vmem:[%s25666_s28 + $0x10] sm:$0xff] %v15669_v47  ;;  %vm15379_vm3 = vcmp.ge.f32.partialorder %v25634_v50, 0.0 }
 0xa5b   : > { %v15680_v58 = vmul.f32 %v25672_v53, %v25609_v52  ;;  %v15646_v43 = vmax.f32 %v15637_v11, 0.0  ;;  %v15413_v17 = vmul.f32 0.5, %v15404_v24  ;;  %v15279_v31 = vmul.f32 1.0614054, %v25682_v14 }
 0xa5c   : > { %v25694_v22 = vmul.f32 %v25679_v62, %v25295_v42  ;;  %15701 = vst [vmem:[%s25666_s28 + $0x18] sm:$0xff] %v15670_v30  ;;  %15702 = vst [vmem:[%s25666_s28 + $0x20] sm:$0xff] %v15671_v1  ;;  %v15681_v40 = vmul.f32 %v25672_v53, %v25614_v48  ;;  %v15682_v0 = vmul.f32 %v25672_v53, %v25622_v7 }
 0xa5d   : > { %15703 = vst [vmem:[%s25666_s28 + $0x28] sm:$0xff] %v15672_v26  ;;  %v15683_v18 = vmul.f32 %v25672_v53, %v15644_v23  ;;  %v15684_v52 = vmul.f32 %v25672_v53, %v15645_v41  ;;  %v15422_v9 = vsub.f32 1.0, %v15413_v17  ;;  %v15467_v35 = vmul.f32 %v15413_v17, %v25283_v60 }
 0xa5e   : > { %v15485_v45 = vmul.f32 %v26248_v33, %v15413_v17  ;;  %v15288_v21 = vadd.f32 -1.4531521, %v15279_v31  ;;  %v15685_v32 = vmul.f32 %v25672_v53, %v15646_v43  ;;  %v15689_v55 = vadd.f32 2e-07, %v15680_v58 }
 0xa5f   : > { %v15690_v48 = vadd.f32 2e-07, %v15681_v40  ;;  %v15691_v4 = vadd.f32 2e-07, %v15682_v0  ;;  %v15476_v7 = vadd.f32 %v15467_v35, %v25572_v34  ;;  %v15521_v36 = vmul.f32 %v15422_v9, %v25283_v60 }
 0xa60   : > { %v15494_v23 = vadd.f32 %v15485_v45, %v25585_v13  ;;  %v15539_v41 = vmul.f32 %v26248_v33, %v15422_v9  ;;  %v15297_v61 = vmul.f32 %v25682_v14, %v15288_v21  ;;  %v15692_v63 = vadd.f32 2e-07, %v15683_v18  ;;  %15707 = vst [vmem:[%s25666_s28 + $0x48] sm:$0xff] %v15689_v55 }
 0xa61   : > { %v15693_v6 = vadd.f32 2e-07, %v15684_v52  ;;  %v15694_v38 = vadd.f32 2e-07, %v15685_v32  ;;  %15708 = vst [vmem:[%s25666_s28 + $0x50] sm:$0xff] %v15690_v48  ;;  %15709 = vst [vmem:[%s25666_s28 + $0x58] sm:$0xff] %v15691_v4  ;;  %v15503_v20 = vmul.f32 %v15476_v7, %v15476_v7  ;;  %v15530_v15 = vsub.f32 %v25572_v34, %v15521_v36 }
 0xa62   : > { %v15548_v3 = vsub.f32 %v15539_v41, %v25585_v13  ;;  %v15575_v37 = vsub.f32 0.0, %v15476_v7  ;;  %v19168_v16 = vpop.eup %19167  ;;  %v15306_v60 = vadd.f32 1.4214138, %v15297_v61  ;;  %15710 = vst [vmem:[%s25666_s28 + $0x60] sm:$0xff] %v15692_v63  ;;  %v15172_v39 = vmul.f32 %v25489_v2, %v25383_v10  ;;  %v26249_v41 = vld [vmem:[#allocation22_spill] sm:$0xff] }
 0xa63   : > { %15711 = vst [vmem:[%s25666_s28 + $0x68] sm:$0xff] %v15693_v6  ;;  %15712 = vst [vmem:[%s25666_s28 + $0x70] sm:$0xff] %v15694_v38  ;;  %v19170_v56 = vpop.eup %19169  ;;  %v15512_v8 = vsub.f32 %v15494_v23, %v15503_v20  ;;  %v15557_v19 = vmul.f32 %v15530_v15, %v15530_v15  ;;  %v15593_v51 = vmul.f32 0.01, %v15530_v15  ;;  %v15226_v59 = vmul.f32 0.3989423, %v19168_v16 }
 0xa64   : > { %v15584_v27 = vmul.f32 %v15575_v37, %v15530_v15  ;;  %v15315_v57 = vmul.f32 %v25682_v14, %v15306_v60  ;;  %v15280_v34 = vmul.f32 1.0614054, %v19170_v56 }
 0xa65   : > { %v15566_v5 = vsub.f32 %v15548_v3, %v15557_v19  ;;  %v15602_v13 = vsub.f32 %v15476_v7, %v15593_v51  ;;  %v25724_v54 = vmul.f32 %v15226_v59, %v15172_v39 }
 0xa66   : > { %v15324_v28 = vadd.f32 -0.28449672, %v15315_v57  ;;  %v15289_v12 = vadd.f32 -1.4531521, %v15280_v34  ;;  %v15629_v2 = vmul.f32 0.02, %v15584_v27 }
 0xa67   : > { %v15611_v47 = vmul.f32 0.0001, %v15566_v5  ;;  %v15660_v11 = vmul.f32 %v25636_v46, %v15602_v13  ;;  %v25730_v1 = vmul.f32 %v25724_v54, %v26247_v49  ;;  %v26250_v34 = vld [vmem:[#allocation17_spill] sm:$0xff] }
 0xa68   : > { %v15333_v24 = vmul.f32 %v25682_v14, %v15324_v28  ;;  %v15298_v30 = vmul.f32 %v19170_v56, %v15289_v12 }
 0xa69   : > { %v15620_v10 = vadd.f32 %v15611_v47, %v15512_v8  ;;  %v15673_v26 = vadd.f32 %v25643_v25, %v15660_v11 }
 0xa6a   : > { %v15342_v58 = vadd.f32 0.2548296, %v15333_v24  ;;  %v15307_v43 = vadd.f32 1.4214138, %v15298_v30 }
 0xa6b   : > { %v15638_v17 = vsub.f32 %v15620_v10, %v15629_v2  ;;  %15704 = vst [vmem:[%s25666_s28 + $0x30] sm:$0xff] %v15673_v26 }
 0xa6c   : > { %v15351_v31 = vmul.f32 %v25682_v14, %v15342_v58  ;;  %v15316_v40 = vmul.f32 %v19170_v56, %v15307_v43 }
 0xa6d   : > { %v15647_v0 = vmax.f32 %v15638_v17, 0.0 }
 0xa6e   : > { %v15360_v18 = vmul.f32 %v25661_v29, %v15351_v31  ;;  %v15325_v52 = vadd.f32 -0.28449672, %v15316_v40 }
 0xa6f   : > { %v15686_v9 = vmul.f32 %v25672_v53, %v15647_v0 }
 0xa70   : > { %v15369_v35 = vsub.f32 1.0, %v15360_v18  ;;  %v15334_v33 = vmul.f32 %v19170_v56, %v15325_v52 }
 0xa71   : > { %v15695_v45 = vadd.f32 2e-07, %v15686_v9 }
 0xa72   : > { %v15387_v21 = vsub.f32 0.0, %v15369_v35  ;;  %v15343_v32 = vadd.f32 0.2548296, %v15334_v33 }
 0xa73   : > { %15713 = vst [vmem:[%s25666_s28 + $0x78] sm:$0xff] %v15695_v45 }
 0xa74   : > { %v15396_v55 = vsel %vm15378_vm2, %v15369_v35, %v15387_v21  ;;  %v15352_v48 = vmul.f32 %v19170_v56, %v15343_v32 }
 0xa75   : > { %v15405_v4 = vadd.f32 1.0, %v15396_v55 }
 0xa76   : > { %v15361_v7 = vmul.f32 %v19168_v16, %v15352_v48 }
 0xa77   : > { %v15414_v14 = vmul.f32 0.5, %v15405_v4 }
 0xa78   : > { %v15370_v23 = vsub.f32 1.0, %v15361_v7 }
 0xa79   : > { %v15423_v36 = vsub.f32 1.0, %v15414_v14  ;;  %v15468_v29 = vmul.f32 %v15414_v14, %v25295_v42  ;;  %v15486_v61 = vmul.f32 %v26249_v41, %v15414_v14 }
 0xa7a   : > { %v15388_v63 = vsub.f32 0.0, %v15370_v23 }
 0xa7b   : > { %v15477_v6 = vadd.f32 %v15468_v29, %v25679_v62  ;;  %v15495_v38 = vadd.f32 %v15486_v61, %v25694_v22  ;;  %v15522_v44 = vmul.f32 %v15423_v36, %v25295_v42  ;;  %v15540_v20 = vmul.f32 %v26249_v41, %v15423_v36 }
 0xa7c   : > { %v15397_v15 = vsel %vm15379_vm3, %v15370_v23, %v15388_v63 }
 0xa7d   : > { %v15504_v3 = vmul.f32 %v15477_v6, %v15477_v6  ;;  %v15531_v37 = vsub.f32 %v25679_v62, %v15522_v44  ;;  %v15549_v16 = vsub.f32 %v15540_v20, %v25694_v22  ;;  %v15576_v60 = vsub.f32 0.0, %v15477_v6 }
 0xa7e   : > { %v15406_v56 = vadd.f32 1.0, %v15397_v15 }
 0xa7f   : > { %v15513_v8 = vsub.f32 %v15495_v38, %v15504_v3  ;;  %v15558_v19 = vmul.f32 %v15531_v37, %v15531_v37  ;;  %v15585_v50 = vmul.f32 %v15576_v60, %v15531_v37  ;;  %v15594_v27 = vmul.f32 0.01, %v15531_v37 }
 0xa80   : > { %v15415_v51 = vmul.f32 0.5, %v15406_v56 }
 0xa81   : > { %v15567_v57 = vsub.f32 %v15549_v16, %v15558_v19  ;;  %v15603_v39 = vsub.f32 %v15477_v6, %v15594_v27  ;;  %v15630_v24 = vmul.f32 0.02, %v15585_v50 }
 0xa82   : > { %v15424_v59 = vsub.f32 1.0, %v15415_v51  ;;  %v15469_v42 = vmul.f32 %v15415_v51, %v26247_v49  ;;  %v15487_v5 = vmul.f32 %v26250_v34, %v15415_v51 }
 0xa83   : > { %v15612_v13 = vmul.f32 0.0001, %v15567_v57  ;;  %v15661_v62 = vmul.f32 %v25636_v46, %v15603_v39 }
 0xa84   : > { %v15478_v22 = vadd.f32 %v15469_v42, %v25724_v54  ;;  %v15496_v28 = vadd.f32 %v15487_v5, %v25730_v1  ;;  %v15523_v12 = vmul.f32 %v15424_v59, %v26247_v49  ;;  %v15541_v47 = vmul.f32 %v26250_v34, %v15424_v59 }
 0xa85   : > { %v15621_v11 = vadd.f32 %v15612_v13, %v15513_v8  ;;  %v15674_v30 = vadd.f32 %v25643_v25, %v15661_v62 }
 0xa86   : > { %v15505_v10 = vmul.f32 %v15478_v22, %v15478_v22  ;;  %v15532_v2 = vsub.f32 %v25724_v54, %v15523_v12  ;;  %v15550_v26 = vsub.f32 %v15541_v47, %v25730_v1  ;;  %v15577_v58 = vsub.f32 0.0, %v15478_v22 }
 0xa87   : > { %v15639_v43 = vsub.f32 %v15621_v11, %v15630_v24  ;;  %15705 = vst [vmem:[%s25666_s28 + $0x38] sm:$0xff] %v15674_v30 }
 0xa88   : > { %v15514_v17 = vsub.f32 %v15496_v28, %v15505_v10  ;;  %v15559_v31 = vmul.f32 %v15532_v2, %v15532_v2  ;;  %v15586_v40 = vmul.f32 %v15577_v58, %v15532_v2  ;;  %v15595_v49 = vmul.f32 0.01, %v15532_v2 }
 0xa89   : > { %v15648_v0 = vmax.f32 %v15639_v43, 0.0 }
 0xa8a   : > { %v15568_v18 = vsub.f32 %v15550_v26, %v15559_v31  ;;  %v15604_v52 = vsub.f32 %v15478_v22, %v15595_v49  ;;  %v15631_v45 = vmul.f32 0.02, %v15586_v40 }
 0xa8b   : > { %v15687_v9 = vmul.f32 %v25672_v53, %v15648_v0 }
 0xa8c   : > { %v15613_v35 = vmul.f32 0.0001, %v15568_v18  ;;  %v15662_v54 = vmul.f32 %v25636_v46, %v15604_v52 }
 0xa8d   : > { %v15696_v33 = vadd.f32 2e-07, %v15687_v9 }
 0xa8e   : > { %v15622_v1 = vadd.f32 %v15613_v35, %v15514_v17  ;;  %v15675_v21 = vadd.f32 %v25643_v25, %v15662_v54 }
 0xa8f   : > { %15714 = vst [vmem:[%s25666_s28 + $0x80] sm:$0xff] %v15696_v33 }
 0xa90   : > { %v15640_v32 = vsub.f32 %v15622_v1, %v15631_v45  ;;  %15706 = vst [vmem:[%s25666_s28 + $0x40] sm:$0xff] %v15675_v21 }
 0xa92   : > { %v15649_v55 = vmax.f32 %v15640_v32, 0.0 }
 0xa94   : > { %v15688_v48 = vmul.f32 %v25672_v53, %v15649_v55 }
 0xa96   : > { %v15697_v4 = vadd.f32 2e-07, %v15688_v48 }
 0xa98   : > { %15715 = vst [vmem:[%s25666_s28 + $0x88] sm:$0xff] %v15697_v4 }
 0xa99 PF: > { %s17_s24 = sadd.s32 1, %s19282_s24  }
 0xa9a   : > { %p14_p4 = scmp.ge.s32.totalorder %s17_s24, 4  }
 0xa9c   :  { %16 = sbr.rel (!%p14_p4) target bundleno = 1 (0x1), region = 99 }

</bundles_post_ra>
